<compile_context>
chip_gen: v7x
topology: tpu7x:2x2x1
jax: 0.10.0
libtpu: 0.0.40
codegen_flags: <defaults>
</compile_context>

<pallas_src>
import jax
import jax.numpy as jnp
import numpy as np
from jax import lax
from jax.experimental import pallas as pl
from jax.experimental.pallas import tpu as pltpu

EPS = 1e-5  # torch BatchNorm2d default


def _zero_halo(pad_ref, N, Hp, Wp, C):
    """Zero only the 1-wide border of a (N, Hp+2, Wp+2, C) padded scratch buffer."""
    zrow = jnp.zeros((N, 1, Wp + 2, C), jnp.float32)
    zcol = jnp.zeros((N, Hp + 2, 1, C), jnp.float32)
    pad_ref[:, 0:1, :, :] = zrow            # top halo row (incl. corners)
    pad_ref[:, Hp + 1:Hp + 2, :, :] = zrow  # bottom halo row (incl. corners)
    pad_ref[:, :, 0:1, :] = zcol            # left halo column
    pad_ref[:, :, Wp + 1:Wp + 2, :] = zcol  # right halo column


def _down_kernel(x_ref, w1_ref, g1_ref, b1_ref, w2_ref, g2_ref, b2_ref,
                 out_ref, pad1_ref, pad2_ref):
    N, Hp, _, Wp, two_cin = x_ref.shape
    Cin = two_cin // 2
    Cmid = w1_ref.shape[2]
    Cout = w2_ref.shape[2]
    rows = N * Hp * Wp
    inv_n = 1.0 / rows

    # ---- MaxPool2d(2), fused (x_ref is (N, Hp, 2, Wp, 2*Cin), a free reshape of NHWC) ----
    r0 = x_ref[:, :, 0:1, :, :].reshape(N, Hp, Wp, two_cin)   # even input rows
    r1 = x_ref[:, :, 1:2, :, :].reshape(N, Hp, Wp, two_cin)   # odd input rows
    rowmax = jnp.maximum(r0, r1)
    # lane halves [0:Cin] / [Cin:2Cin] are the even/odd input columns of the 2x2 window.
    pooled = jnp.maximum(rowmax[..., :Cin], rowmax[..., Cin:])  # (N, Hp, Wp, Cin)

    # ---- conv1 (3x3, pad=1, no bias): halo-zeroed VMEM pad + 9 per-tap MXU matmuls ----
    _zero_halo(pad1_ref, N, Hp, Wp, Cin)
    pad1_ref[:, 1:Hp + 1, 1:Wp + 1, :] = pooled

    acc1 = jnp.zeros((rows, Cmid), jnp.float32)
    for dy in range(3):
        for dx in range(3):
            k = dy * 3 + dx
            patch = pad1_ref[:, dy:dy + Hp, dx:dx + Wp, :].reshape(rows, Cin)
            acc1 = acc1 + jnp.dot(patch, w1_ref[k],
                                  preferred_element_type=jnp.float32,
                                  precision=lax.Precision.HIGHEST)

    # ---- BatchNorm2d (training-mode batch stats, single pass) + ReLU ----
    s1 = jnp.sum(acc1, axis=0, keepdims=True)
    ss1 = jnp.sum(acc1 * acc1, axis=0, keepdims=True)
    mu1 = s1 * inv_n
    var1 = jnp.maximum(ss1 * inv_n - mu1 * mu1, 0.0)
    scale1 = g1_ref[...] * lax.rsqrt(var1 + EPS)
    shift1 = b1_ref[...] - mu1 * scale1
    h1 = jnp.maximum(acc1 * scale1 + shift1, 0.0)             # (rows, Cmid)

    # ---- conv2 (3x3, pad=1, no bias) ----
    _zero_halo(pad2_ref, N, Hp, Wp, Cmid)
    pad2_ref[:, 1:Hp + 1, 1:Wp + 1, :] = h1.reshape(N, Hp, Wp, Cmid)

    acc2 = jnp.zeros((rows, Cout), jnp.float32)
    for dy in range(3):
        for dx in range(3):
            k = dy * 3 + dx
            patch = pad2_ref[:, dy:dy + Hp, dx:dx + Wp, :].reshape(rows, Cmid)
            acc2 = acc2 + jnp.dot(patch, w2_ref[k],
                                  preferred_element_type=jnp.float32,
                                  precision=lax.Precision.HIGHEST)

    # ---- BatchNorm2d + ReLU ----
    s2 = jnp.sum(acc2, axis=0, keepdims=True)
    ss2 = jnp.sum(acc2 * acc2, axis=0, keepdims=True)
    mu2 = s2 * inv_n
    var2 = jnp.maximum(ss2 * inv_n - mu2 * mu2, 0.0)
    scale2 = g2_ref[...] * lax.rsqrt(var2 + EPS)
    shift2 = b2_ref[...] - mu2 * scale2
    out_ref[...] = jnp.maximum(acc2 * scale2 + shift2, 0.0)   # (rows, Cout)


def down_pallas(x_nchw, params):
    """x_nchw: (N, Cin, H, W) float32, PyTorch layout. Returns (N, Cout, H//2, W//2)."""
    N, Cin, H, W = x_nchw.shape
    Cmid = params['w1'].shape[0]
    Cout = params['w2'].shape[0]
    Hp, Wp = H // 2, W // 2

    # MaxPool2d(2) floors odd sizes -> crop trailing row/col (no-op for even H, W).
    x = x_nchw[:, :, :2 * Hp, :2 * Wp]
    x = jnp.transpose(x, (0, 2, 3, 1)).astype(jnp.float32)    # NHWC (edge glue)
    x5 = x.reshape(N, Hp, 2, Wp, 2 * Cin)                     # free reshape of contiguous NHWC

    # OIHW -> (kh*kw, I, O) tap-major weights; BN affine params as (1, C) rows.
    w1 = jnp.transpose(params['w1'], (2, 3, 1, 0)).reshape(9, Cin, Cmid).astype(jnp.float32)
    w2 = jnp.transpose(params['w2'], (2, 3, 1, 0)).reshape(9, Cmid, Cout).astype(jnp.float32)
    g1 = params['g1'].reshape(1, Cmid).astype(jnp.float32)
    b1 = params['b1'].reshape(1, Cmid).astype(jnp.float32)
    g2 = params['g2'].reshape(1, Cout).astype(jnp.float32)
    b2 = params['b2'].reshape(1, Cout).astype(jnp.float32)

    # TODO(synk): at real UNet sizes, tile over (N, H) with a two-pass grid
    # (conv + sum/sumsq accumulation pass, then a normalize pass) so both v7x
    # TensorCores get work and the 64 MiB VMEM budget holds; BatchNorm's global
    # batch statistics make a naive per-tile parallel grid incorrect.
    vmem = pl.BlockSpec(memory_space=pltpu.MemorySpace.VMEM)
    out2d = pl.pallas_call(
        _down_kernel,
        out_shape=jax.ShapeDtypeStruct((N * Hp * Wp, Cout), jnp.float32),
        in_specs=[vmem] * 7,
        out_specs=vmem,
        scratch_shapes=[
            pltpu.VMEM((N, Hp + 2, Wp + 2, Cin), jnp.float32),   # halo-padded conv1 input
            pltpu.VMEM((N, Hp + 2, Wp + 2, Cmid), jnp.float32),  # halo-padded conv2 input
        ],
    )(x5, w1, g1, b1, w2, g2, b2)

    out_nhwc = out2d.reshape(N, Hp, Wp, Cout)
    return jnp.transpose(out_nhwc, (0, 3, 1, 2))              # back to NCHW


def down_reference(x_nchw, params):
    """Pure-JAX reference (same math as the torch forward in training mode)."""
    xp = lax.reduce_window(x_nchw, -jnp.inf, lax.max, (1, 1, 2, 2), (1, 1, 2, 2), 'VALID')

    def conv_bn_relu(h, w, g, b):
        y = lax.conv_general_dilated(h, w, (1, 1), ((1, 1), (1, 1)),
                                     dimension_numbers=('NCHW', 'OIHW', 'NCHW'),
                                     precision=lax.Precision.HIGHEST)
        mu = jnp.mean(y, axis=(0, 2, 3), keepdims=True)
        var = jnp.mean((y - mu) ** 2, axis=(0, 2, 3), keepdims=True)
        yn = (y - mu) * lax.rsqrt(var + EPS)
        yn = yn * g.reshape(1, -1, 1, 1) + b.reshape(1, -1, 1, 1)
        return jnp.maximum(yn, 0.0)

    h = conv_bn_relu(xp, params['w1'], params['g1'], params['b1'])
    return conv_bn_relu(h, params['w2'], params['g2'], params['b2'])


if __name__ == "__main__":
    key = jax.random.PRNGKey(0)
    kx, k1, k2, k3, k4, k5, k6 = jax.random.split(key, 7)

    N, Cin, H, W = 2, 4, 16, 16
    Cout = 8  # DoubleConv: mid_channels defaults to out_channels

    x = jax.random.normal(kx, (N, Cin, H, W), jnp.float32)
    params = {
        'w1': 0.2 * jax.random.normal(k1, (Cout, Cin, 3, 3), jnp.float32),
        'g1': 1.0 + 0.1 * jax.random.normal(k2, (Cout,), jnp.float32),
        'b1': 0.1 * jax.random.normal(k3, (Cout,), jnp.float32),
        'w2': 0.2 * jax.random.normal(k4, (Cout, Cout, 3, 3), jnp.float32),
        'g2': 1.0 + 0.1 * jax.random.normal(k5, (Cout,), jnp.float32),
        'b2': 0.1 * jax.random.normal(k6, (Cout,), jnp.float32),
    }

    out = jax.jit(down_pallas)(x, params)
    out = jax.block_until_ready(out)

    ref = down_reference(x, params)
    assert out.shape == (N, Cout, H // 2, W // 2)
    np.testing.assert_allclose(np.asarray(out), np.asarray(ref), rtol=2e-3, atol=2e-4)

    print("KERNEL_OK")
</pallas_src>

<mosaic_0001>
module attributes {stable_mosaic.version = 11 : i64} {
  func.func @_down_kernel(%arg0: memref<2x8x2x8x8xf32, #tpu.memory_space<vmem>>, %arg1: memref<9x4x8xf32, #tpu.memory_space<vmem>>, %arg2: memref<1x8xf32, #tpu.memory_space<vmem>>, %arg3: memref<1x8xf32, #tpu.memory_space<vmem>>, %arg4: memref<9x8x8xf32, #tpu.memory_space<vmem>>, %arg5: memref<1x8xf32, #tpu.memory_space<vmem>>, %arg6: memref<1x8xf32, #tpu.memory_space<vmem>>, %arg7: memref<128x8xf32, #tpu.memory_space<vmem>>, %arg8: memref<2x10x10x4xf32, #tpu.memory_space<vmem>>, %arg9: memref<2x10x10x8xf32, #tpu.memory_space<vmem>>) attributes {dimension_semantics = [], scalar_prefetch = 0 : i64, scratch_operands = 2 : i64, tpu.core_type = #tpu.core_type<tc>} {
    %c0 = arith.constant 0 : index
    %c0_0 = arith.constant 0 : index
    %c0_1 = arith.constant 0 : index
    %c0_2 = arith.constant 0 : index
    %c0_3 = arith.constant 0 : index
    %0 = vector.load %arg0[%c0, %c0_0, %c0_1, %c0_2, %c0_3] : memref<2x8x2x8x8xf32, #tpu.memory_space<vmem>>, vector<2x8x1x8x8xf32>
    %1 = vector.shape_cast %0 : vector<2x8x1x8x8xf32> to vector<2x8x8x8xf32>
    %c0_4 = arith.constant 0 : index
    %c0_5 = arith.constant 0 : index
    %c1 = arith.constant 1 : index
    %c0_6 = arith.constant 0 : index
    %c0_7 = arith.constant 0 : index
    %2 = vector.load %arg0[%c0_4, %c0_5, %c1, %c0_6, %c0_7] : memref<2x8x2x8x8xf32, #tpu.memory_space<vmem>>, vector<2x8x1x8x8xf32>
    %3 = vector.shape_cast %2 : vector<2x8x1x8x8xf32> to vector<2x8x8x8xf32>
    %4 = arith.maximumf %1, %3 : vector<2x8x8x8xf32>
    %5 = vector.extract_strided_slice %4 {offsets = [0, 0, 0, 0], sizes = [2, 8, 8, 4], strides = [1, 1, 1, 1]} : vector<2x8x8x8xf32> to vector<2x8x8x4xf32>
    %6 = vector.extract_strided_slice %4 {offsets = [0, 0, 0, 4], sizes = [2, 8, 8, 4], strides = [1, 1, 1, 1]} : vector<2x8x8x8xf32> to vector<2x8x8x4xf32>
    %7 = arith.maximumf %5, %6 : vector<2x8x8x4xf32>
    %cst = arith.constant 0.000000e+00 : f32
    %8 = vector.broadcast %cst : f32 to vector<2x1x10x4xf32>
    %cst_8 = arith.constant 0.000000e+00 : f32
    %9 = vector.broadcast %cst_8 : f32 to vector<2x10x1x4xf32>
    %c0_9 = arith.constant 0 : index
    %c0_10 = arith.constant 0 : index
    %c0_11 = arith.constant 0 : index
    %c0_12 = arith.constant 0 : index
    %10 = vector.load %arg8[%c0_9, %c0_10, %c0_11, %c0_12] : memref<2x10x10x4xf32, #tpu.memory_space<vmem>>, vector<2x1x10x4xf32>
    tpu.vector_store %arg8[%c0_9, %c0_10, %c0_11, %c0_12], %8 {strides = array<i32>} : memref<2x10x10x4xf32, #tpu.memory_space<vmem>>, vector<2x1x10x4xf32>,
    %c0_13 = arith.constant 0 : index
    %c9 = arith.constant 9 : index
    %c0_14 = arith.constant 0 : index
    %c0_15 = arith.constant 0 : index
    %11 = vector.load %arg8[%c0_13, %c9, %c0_14, %c0_15] : memref<2x10x10x4xf32, #tpu.memory_space<vmem>>, vector<2x1x10x4xf32>
    tpu.vector_store %arg8[%c0_13, %c9, %c0_14, %c0_15], %8 {strides = array<i32>} : memref<2x10x10x4xf32, #tpu.memory_space<vmem>>, vector<2x1x10x4xf32>,
    %c0_16 = arith.constant 0 : index
    %c0_17 = arith.constant 0 : index
    %c0_18 = arith.constant 0 : index
    %c0_19 = arith.constant 0 : index
    %12 = vector.load %arg8[%c0_16, %c0_17, %c0_18, %c0_19] : memref<2x10x10x4xf32, #tpu.memory_space<vmem>>, vector<2x10x1x4xf32>
    tpu.vector_store %arg8[%c0_16, %c0_17, %c0_18, %c0_19], %9 {strides = array<i32>} : memref<2x10x10x4xf32, #tpu.memory_space<vmem>>, vector<2x10x1x4xf32>,
    %c0_20 = arith.constant 0 : index
    %c0_21 = arith.constant 0 : index
    %c9_22 = arith.constant 9 : index
    %c0_23 = arith.constant 0 : index
    %13 = vector.load %arg8[%c0_20, %c0_21, %c9_22, %c0_23] : memref<2x10x10x4xf32, #tpu.memory_space<vmem>>, vector<2x10x1x4xf32>
    tpu.vector_store %arg8[%c0_20, %c0_21, %c9_22, %c0_23], %9 {strides = array<i32>} : memref<2x10x10x4xf32, #tpu.memory_space<vmem>>, vector<2x10x1x4xf32>,
    %c0_24 = arith.constant 0 : index
    %c1_25 = arith.constant 1 : index
    %c1_26 = arith.constant 1 : index
    %c0_27 = arith.constant 0 : index
    %14 = vector.load %arg8[%c0_24, %c1_25, %c1_26, %c0_27] : memref<2x10x10x4xf32, #tpu.memory_space<vmem>>, vector<2x8x8x4xf32>
    tpu.vector_store %arg8[%c0_24, %c1_25, %c1_26, %c0_27], %7 {strides = array<i32>} : memref<2x10x10x4xf32, #tpu.memory_space<vmem>>, vector<2x8x8x4xf32>,
    %cst_28 = arith.constant 0.000000e+00 : f32
    %15 = vector.broadcast %cst_28 : f32 to vector<128x8xf32>
    %c0_29 = arith.constant 0 : index
    %c0_30 = arith.constant 0 : index
    %c0_31 = arith.constant 0 : index
    %c0_32 = arith.constant 0 : index
    %16 = vector.load %arg8[%c0_29, %c0_30, %c0_31, %c0_32] : memref<2x10x10x4xf32, #tpu.memory_space<vmem>>, vector<2x8x8x4xf32>
    %17 = vector.shape_cast %16 : vector<2x8x8x4xf32> to vector<128x4xf32>
    %c0_33 = arith.constant 0 : index
    %c0_34 = arith.constant 0 : index
    %c0_35 = arith.constant 0 : index
    %18 = vector.load %arg1[%c0_33, %c0_34, %c0_35] : memref<9x4x8xf32, #tpu.memory_space<vmem>>, vector<1x4x8xf32>
    %19 = vector.shape_cast %18 : vector<1x4x8xf32> to vector<4x8xf32>
    %cst_36 = arith.constant dense<0.000000e+00> : vector<128x8xf32>
    %20 = tpu.matmul %17, %19, %cst_36 {dimension_numbers = #tpu.dot_dimension_numbers<[1], [0], [0], [1], [0, 0, 1, 1], [], []>, precision = #tpu.contract_precision<fp32>} : vector<128x4xf32>, vector<4x8xf32>, vector<128x8xf32> -> vector<128x8xf32>
    %21 = arith.addf %15, %20 : vector<128x8xf32>
    %c0_37 = arith.constant 0 : index
    %c0_38 = arith.constant 0 : index
    %c1_39 = arith.constant 1 : index
    %c0_40 = arith.constant 0 : index
    %22 = vector.load %arg8[%c0_37, %c0_38, %c1_39, %c0_40] : memref<2x10x10x4xf32, #tpu.memory_space<vmem>>, vector<2x8x8x4xf32>
    %23 = vector.shape_cast %22 : vector<2x8x8x4xf32> to vector<128x4xf32>
    %c1_41 = arith.constant 1 : index
    %c0_42 = arith.constant 0 : index
    %c0_43 = arith.constant 0 : index
    %24 = vector.load %arg1[%c1_41, %c0_42, %c0_43] : memref<9x4x8xf32, #tpu.memory_space<vmem>>, vector<1x4x8xf32>
    %25 = vector.shape_cast %24 : vector<1x4x8xf32> to vector<4x8xf32>
    %cst_44 = arith.constant dense<0.000000e+00> : vector<128x8xf32>
    %26 = tpu.matmul %23, %25, %cst_44 {dimension_numbers = #tpu.dot_dimension_numbers<[1], [0], [0], [1], [0, 0, 1, 1], [], []>, precision = #tpu.contract_precision<fp32>} : vector<128x4xf32>, vector<4x8xf32>, vector<128x8xf32> -> vector<128x8xf32>
    %27 = arith.addf %21, %26 : vector<128x8xf32>
    %c0_45 = arith.constant 0 : index
    %c0_46 = arith.constant 0 : index
    %c2 = arith.constant 2 : index
    %c0_47 = arith.constant 0 : index
    %28 = vector.load %arg8[%c0_45, %c0_46, %c2, %c0_47] : memref<2x10x10x4xf32, #tpu.memory_space<vmem>>, vector<2x8x8x4xf32>
    %29 = vector.shape_cast %28 : vector<2x8x8x4xf32> to vector<128x4xf32>
    %c2_48 = arith.constant 2 : index
    %c0_49 = arith.constant 0 : index
    %c0_50 = arith.constant 0 : index
    %30 = vector.load %arg1[%c2_48, %c0_49, %c0_50] : memref<9x4x8xf32, #tpu.memory_space<vmem>>, vector<1x4x8xf32>
    %31 = vector.shape_cast %30 : vector<1x4x8xf32> to vector<4x8xf32>
    %cst_51 = arith.constant dense<0.000000e+00> : vector<128x8xf32>
    %32 = tpu.matmul %29, %31, %cst_51 {dimension_numbers = #tpu.dot_dimension_numbers<[1], [0], [0], [1], [0, 0, 1, 1], [], []>, precision = #tpu.contract_precision<fp32>} : vector<128x4xf32>, vector<4x8xf32>, vector<128x8xf32> -> vector<128x8xf32>
    %33 = arith.addf %27, %32 : vector<128x8xf32>
    %c0_52 = arith.constant 0 : index
    %c1_53 = arith.constant 1 : index
    %c0_54 = arith.constant 0 : index
    %c0_55 = arith.constant 0 : index
    %34 = vector.load %arg8[%c0_52, %c1_53, %c0_54, %c0_55] : memref<2x10x10x4xf32, #tpu.memory_space<vmem>>, vector<2x8x8x4xf32>
    %35 = vector.shape_cast %34 : vector<2x8x8x4xf32> to vector<128x4xf32>
    %c3 = arith.constant 3 : index
    %c0_56 = arith.constant 0 : index
    %c0_57 = arith.constant 0 : index
    %36 = vector.load %arg1[%c3, %c0_56, %c0_57] : memref<9x4x8xf32, #tpu.memory_space<vmem>>, vector<1x4x8xf32>
    %37 = vector.shape_cast %36 : vector<1x4x8xf32> to vector<4x8xf32>
    %cst_58 = arith.constant dense<0.000000e+00> : vector<128x8xf32>
    %38 = tpu.matmul %35, %37, %cst_58 {dimension_numbers = #tpu.dot_dimension_numbers<[1], [0], [0], [1], [0, 0, 1, 1], [], []>, precision = #tpu.contract_precision<fp32>} : vector<128x4xf32>, vector<4x8xf32>, vector<128x8xf32> -> vector<128x8xf32>
    %39 = arith.addf %33, %38 : vector<128x8xf32>
    %c0_59 = arith.constant 0 : index
    %c1_60 = arith.constant 1 : index
    %c1_61 = arith.constant 1 : index
    %c0_62 = arith.constant 0 : index
    %40 = vector.load %arg8[%c0_59, %c1_60, %c1_61, %c0_62] : memref<2x10x10x4xf32, #tpu.memory_space<vmem>>, vector<2x8x8x4xf32>
    %41 = vector.shape_cast %40 : vector<2x8x8x4xf32> to vector<128x4xf32>
    %c4 = arith.constant 4 : index
    %c0_63 = arith.constant 0 : index
    %c0_64 = arith.constant 0 : index
    %42 = vector.load %arg1[%c4, %c0_63, %c0_64] : memref<9x4x8xf32, #tpu.memory_space<vmem>>, vector<1x4x8xf32>
    %43 = vector.shape_cast %42 : vector<1x4x8xf32> to vector<4x8xf32>
    %cst_65 = arith.constant dense<0.000000e+00> : vector<128x8xf32>
    %44 = tpu.matmul %41, %43, %cst_65 {dimension_numbers = #tpu.dot_dimension_numbers<[1], [0], [0], [1], [0, 0, 1, 1], [], []>, precision = #tpu.contract_precision<fp32>} : vector<128x4xf32>, vector<4x8xf32>, vector<128x8xf32> -> vector<128x8xf32>
    %45 = arith.addf %39, %44 : vector<128x8xf32>
    %c0_66 = arith.constant 0 : index
    %c1_67 = arith.constant 1 : index
    %c2_68 = arith.constant 2 : index
    %c0_69 = arith.constant 0 : index
    %46 = vector.load %arg8[%c0_66, %c1_67, %c2_68, %c0_69] : memref<2x10x10x4xf32, #tpu.memory_space<vmem>>, vector<2x8x8x4xf32>
    %47 = vector.shape_cast %46 : vector<2x8x8x4xf32> to vector<128x4xf32>
    %c5 = arith.constant 5 : index
    %c0_70 = arith.constant 0 : index
    %c0_71 = arith.constant 0 : index
    %48 = vector.load %arg1[%c5, %c0_70, %c0_71] : memref<9x4x8xf32, #tpu.memory_space<vmem>>, vector<1x4x8xf32>
    %49 = vector.shape_cast %48 : vector<1x4x8xf32> to vector<4x8xf32>
    %cst_72 = arith.constant dense<0.000000e+00> : vector<128x8xf32>
    %50 = tpu.matmul %47, %49, %cst_72 {dimension_numbers = #tpu.dot_dimension_numbers<[1], [0], [0], [1], [0, 0, 1, 1], [], []>, precision = #tpu.contract_precision<fp32>} : vector<128x4xf32>, vector<4x8xf32>, vector<128x8xf32> -> vector<128x8xf32>
    %51 = arith.addf %45, %50 : vector<128x8xf32>
    %c0_73 = arith.constant 0 : index
    %c2_74 = arith.constant 2 : index
    %c0_75 = arith.constant 0 : index
    %c0_76 = arith.constant 0 : index
    %52 = vector.load %arg8[%c0_73, %c2_74, %c0_75, %c0_76] : memref<2x10x10x4xf32, #tpu.memory_space<vmem>>, vector<2x8x8x4xf32>
    %53 = vector.shape_cast %52 : vector<2x8x8x4xf32> to vector<128x4xf32>
    %c6 = arith.constant 6 : index
    %c0_77 = arith.constant 0 : index
    %c0_78 = arith.constant 0 : index
    %54 = vector.load %arg1[%c6, %c0_77, %c0_78] : memref<9x4x8xf32, #tpu.memory_space<vmem>>, vector<1x4x8xf32>
    %55 = vector.shape_cast %54 : vector<1x4x8xf32> to vector<4x8xf32>
    %cst_79 = arith.constant dense<0.000000e+00> : vector<128x8xf32>
    %56 = tpu.matmul %53, %55, %cst_79 {dimension_numbers = #tpu.dot_dimension_numbers<[1], [0], [0], [1], [0, 0, 1, 1], [], []>, precision = #tpu.contract_precision<fp32>} : vector<128x4xf32>, vector<4x8xf32>, vector<128x8xf32> -> vector<128x8xf32>
    %57 = arith.addf %51, %56 : vector<128x8xf32>
    %c0_80 = arith.constant 0 : index
    %c2_81 = arith.constant 2 : index
    %c1_82 = arith.constant 1 : index
    %c0_83 = arith.constant 0 : index
    %58 = vector.load %arg8[%c0_80, %c2_81, %c1_82, %c0_83] : memref<2x10x10x4xf32, #tpu.memory_space<vmem>>, vector<2x8x8x4xf32>
    %59 = vector.shape_cast %58 : vector<2x8x8x4xf32> to vector<128x4xf32>
    %c7 = arith.constant 7 : index
    %c0_84 = arith.constant 0 : index
    %c0_85 = arith.constant 0 : index
    %60 = vector.load %arg1[%c7, %c0_84, %c0_85] : memref<9x4x8xf32, #tpu.memory_space<vmem>>, vector<1x4x8xf32>
    %61 = vector.shape_cast %60 : vector<1x4x8xf32> to vector<4x8xf32>
    %cst_86 = arith.constant dense<0.000000e+00> : vector<128x8xf32>
    %62 = tpu.matmul %59, %61, %cst_86 {dimension_numbers = #tpu.dot_dimension_numbers<[1], [0], [0], [1], [0, 0, 1, 1], [], []>, precision = #tpu.contract_precision<fp32>} : vector<128x4xf32>, vector<4x8xf32>, vector<128x8xf32> -> vector<128x8xf32>
    %63 = arith.addf %57, %62 : vector<128x8xf32>
    %c0_87 = arith.constant 0 : index
    %c2_88 = arith.constant 2 : index
    %c2_89 = arith.constant 2 : index
    %c0_90 = arith.constant 0 : index
    %64 = vector.load %arg8[%c0_87, %c2_88, %c2_89, %c0_90] : memref<2x10x10x4xf32, #tpu.memory_space<vmem>>, vector<2x8x8x4xf32>
    %65 = vector.shape_cast %64 : vector<2x8x8x4xf32> to vector<128x4xf32>
    %c8 = arith.constant 8 : index
    %c0_91 = arith.constant 0 : index
    %c0_92 = arith.constant 0 : index
    %66 = vector.load %arg1[%c8, %c0_91, %c0_92] : memref<9x4x8xf32, #tpu.memory_space<vmem>>, vector<1x4x8xf32>
    %67 = vector.shape_cast %66 : vector<1x4x8xf32> to vector<4x8xf32>
    %cst_93 = arith.constant dense<0.000000e+00> : vector<128x8xf32>
    %68 = tpu.matmul %65, %67, %cst_93 {dimension_numbers = #tpu.dot_dimension_numbers<[1], [0], [0], [1], [0, 0, 1, 1], [], []>, precision = #tpu.contract_precision<fp32>} : vector<128x4xf32>, vector<4x8xf32>, vector<128x8xf32> -> vector<128x8xf32>
    %69 = arith.addf %63, %68 : vector<128x8xf32>
    %cst_94 = arith.constant dense<0.000000e+00> : vector<8xf32>
    %70 = vector.multi_reduction <add>, %69, %cst_94 [0] : vector<128x8xf32> to vector<8xf32>
    %71 = vector.shape_cast %70 : vector<8xf32> to vector<1x8xf32>
    %72 = arith.mulf %69, %69 : vector<128x8xf32>
    %cst_95 = arith.constant dense<0.000000e+00> : vector<8xf32>
    %73 = vector.multi_reduction <add>, %72, %cst_95 [0] : vector<128x8xf32> to vector<8xf32>
    %74 = vector.shape_cast %73 : vector<8xf32> to vector<1x8xf32>
    %cst_96 = arith.constant 7.812500e-03 : f32
    %75 = vector.broadcast %cst_96 : f32 to vector<1x8xf32>
    %76 = arith.mulf %71, %75 : vector<1x8xf32>
    %cst_97 = arith.constant 7.812500e-03 : f32
    %77 = vector.broadcast %cst_97 : f32 to vector<1x8xf32>
    %78 = arith.mulf %74, %77 : vector<1x8xf32>
    %79 = arith.mulf %76, %76 : vector<1x8xf32>
    %80 = arith.subf %78, %79 : vector<1x8xf32>
    %cst_98 = arith.constant 0.000000e+00 : f32
    %81 = vector.broadcast %cst_98 : f32 to vector<1x8xf32>
    %82 = arith.maximumf %80, %81 : vector<1x8xf32>
    %c0_99 = arith.constant 0 : index
    %c0_100 = arith.constant 0 : index
    %83 = vector.load %arg2[%c0_99, %c0_100] : memref<1x8xf32, #tpu.memory_space<vmem>>, vector<1x8xf32>
    %cst_101 = arith.constant 9.99999974E-6 : f32
    %84 = vector.broadcast %cst_101 : f32 to vector<1x8xf32>
    %85 = arith.addf %82, %84 : vector<1x8xf32>
    %86 = math.rsqrt %85 : vector<1x8xf32>
    %87 = arith.mulf %83, %86 : vector<1x8xf32>
    %c0_102 = arith.constant 0 : index
    %c0_103 = arith.constant 0 : index
    %88 = vector.load %arg3[%c0_102, %c0_103] : memref<1x8xf32, #tpu.memory_space<vmem>>, vector<1x8xf32>
    %89 = arith.mulf %76, %87 : vector<1x8xf32>
    %90 = arith.subf %88, %89 : vector<1x8xf32>
    %91 = vector.broadcast %87 : vector<1x8xf32> to vector<128x8xf32>
    %92 = arith.mulf %69, %91 : vector<128x8xf32>
    %93 = vector.broadcast %90 : vector<1x8xf32> to vector<128x8xf32>
    %94 = arith.addf %92, %93 : vector<128x8xf32>
    %cst_104 = arith.constant 0.000000e+00 : f32
    %95 = vector.broadcast %cst_104 : f32 to vector<128x8xf32>
    %96 = arith.maximumf %94, %95 : vector<128x8xf32>
    %cst_105 = arith.constant 0.000000e+00 : f32
    %97 = vector.broadcast %cst_105 : f32 to vector<2x1x10x8xf32>
    %cst_106 = arith.constant 0.000000e+00 : f32
    %98 = vector.broadcast %cst_106 : f32 to vector<2x10x1x8xf32>
    %c0_107 = arith.constant 0 : index
    %c0_108 = arith.constant 0 : index
    %c0_109 = arith.constant 0 : index
    %c0_110 = arith.constant 0 : index
    %99 = vector.load %arg9[%c0_107, %c0_108, %c0_109, %c0_110] : memref<2x10x10x8xf32, #tpu.memory_space<vmem>>, vector<2x1x10x8xf32>
    tpu.vector_store %arg9[%c0_107, %c0_108, %c0_109, %c0_110], %97 {strides = array<i32>} : memref<2x10x10x8xf32, #tpu.memory_space<vmem>>, vector<2x1x10x8xf32>,
    %c0_111 = arith.constant 0 : index
    %c9_112 = arith.constant 9 : index
    %c0_113 = arith.constant 0 : index
    %c0_114 = arith.constant 0 : index
    %100 = vector.load %arg9[%c0_111, %c9_112, %c0_113, %c0_114] : memref<2x10x10x8xf32, #tpu.memory_space<vmem>>, vector<2x1x10x8xf32>
    tpu.vector_store %arg9[%c0_111, %c9_112, %c0_113, %c0_114], %97 {strides = array<i32>} : memref<2x10x10x8xf32, #tpu.memory_space<vmem>>, vector<2x1x10x8xf32>,
    %c0_115 = arith.constant 0 : index
    %c0_116 = arith.constant 0 : index
    %c0_117 = arith.constant 0 : index
    %c0_118 = arith.constant 0 : index
    %101 = vector.load %arg9[%c0_115, %c0_116, %c0_117, %c0_118] : memref<2x10x10x8xf32, #tpu.memory_space<vmem>>, vector<2x10x1x8xf32>
    tpu.vector_store %arg9[%c0_115, %c0_116, %c0_117, %c0_118], %98 {strides = array<i32>} : memref<2x10x10x8xf32, #tpu.memory_space<vmem>>, vector<2x10x1x8xf32>,
    %c0_119 = arith.constant 0 : index
    %c0_120 = arith.constant 0 : index
    %c9_121 = arith.constant 9 : index
    %c0_122 = arith.constant 0 : index
    %102 = vector.load %arg9[%c0_119, %c0_120, %c9_121, %c0_122] : memref<2x10x10x8xf32, #tpu.memory_space<vmem>>, vector<2x10x1x8xf32>
    tpu.vector_store %arg9[%c0_119, %c0_120, %c9_121, %c0_122], %98 {strides = array<i32>} : memref<2x10x10x8xf32, #tpu.memory_space<vmem>>, vector<2x10x1x8xf32>,
    %103 = vector.shape_cast %96 : vector<128x8xf32> to vector<2x8x8x8xf32>
    %c0_123 = arith.constant 0 : index
    %c1_124 = arith.constant 1 : index
    %c1_125 = arith.constant 1 : index
    %c0_126 = arith.constant 0 : index
    %104 = vector.load %arg9[%c0_123, %c1_124, %c1_125, %c0_126] : memref<2x10x10x8xf32, #tpu.memory_space<vmem>>, vector<2x8x8x8xf32>
    tpu.vector_store %arg9[%c0_123, %c1_124, %c1_125, %c0_126], %103 {strides = array<i32>} : memref<2x10x10x8xf32, #tpu.memory_space<vmem>>, vector<2x8x8x8xf32>,
    %cst_127 = arith.constant 0.000000e+00 : f32
    %105 = vector.broadcast %cst_127 : f32 to vector<128x8xf32>
    %c0_128 = arith.constant 0 : index
    %c0_129 = arith.constant 0 : index
    %c0_130 = arith.constant 0 : index
    %c0_131 = arith.constant 0 : index
    %106 = vector.load %arg9[%c0_128, %c0_129, %c0_130, %c0_131] : memref<2x10x10x8xf32, #tpu.memory_space<vmem>>, vector<2x8x8x8xf32>
    %107 = vector.shape_cast %106 : vector<2x8x8x8xf32> to vector<128x8xf32>
    %c0_132 = arith.constant 0 : index
    %c0_133 = arith.constant 0 : index
    %c0_134 = arith.constant 0 : index
    %108 = vector.load %arg4[%c0_132, %c0_133, %c0_134] : memref<9x8x8xf32, #tpu.memory_space<vmem>>, vector<1x8x8xf32>
    %109 = vector.shape_cast %108 : vector<1x8x8xf32> to vector<8x8xf32>
    %cst_135 = arith.constant dense<0.000000e+00> : vector<128x8xf32>
    %110 = tpu.matmul %107, %109, %cst_135 {dimension_numbers = #tpu.dot_dimension_numbers<[1], [0], [0], [1], [0, 0, 1, 1], [], []>, precision = #tpu.contract_precision<fp32>} : vector<128x8xf32>, vector<8x8xf32>, vector<128x8xf32> -> vector<128x8xf32>
    %111 = arith.addf %105, %110 : vector<128x8xf32>
    %c0_136 = arith.constant 0 : index
    %c0_137 = arith.constant 0 : index
    %c1_138 = arith.constant 1 : index
    %c0_139 = arith.constant 0 : index
    %112 = vector.load %arg9[%c0_136, %c0_137, %c1_138, %c0_139] : memref<2x10x10x8xf32, #tpu.memory_space<vmem>>, vector<2x8x8x8xf32>
    %113 = vector.shape_cast %112 : vector<2x8x8x8xf32> to vector<128x8xf32>
    %c1_140 = arith.constant 1 : index
    %c0_141 = arith.constant 0 : index
    %c0_142 = arith.constant 0 : index
    %114 = vector.load %arg4[%c1_140, %c0_141, %c0_142] : memref<9x8x8xf32, #tpu.memory_space<vmem>>, vector<1x8x8xf32>
    %115 = vector.shape_cast %114 : vector<1x8x8xf32> to vector<8x8xf32>
    %cst_143 = arith.constant dense<0.000000e+00> : vector<128x8xf32>
    %116 = tpu.matmul %113, %115, %cst_143 {dimension_numbers = #tpu.dot_dimension_numbers<[1], [0], [0], [1], [0, 0, 1, 1], [], []>, precision = #tpu.contract_precision<fp32>} : vector<128x8xf32>, vector<8x8xf32>, vector<128x8xf32> -> vector<128x8xf32>
    %117 = arith.addf %111, %116 : vector<128x8xf32>
    %c0_144 = arith.constant 0 : index
    %c0_145 = arith.constant 0 : index
    %c2_146 = arith.constant 2 : index
    %c0_147 = arith.constant 0 : index
    %118 = vector.load %arg9[%c0_144, %c0_145, %c2_146, %c0_147] : memref<2x10x10x8xf32, #tpu.memory_space<vmem>>, vector<2x8x8x8xf32>
    %119 = vector.shape_cast %118 : vector<2x8x8x8xf32> to vector<128x8xf32>
    %c2_148 = arith.constant 2 : index
    %c0_149 = arith.constant 0 : index
    %c0_150 = arith.constant 0 : index
    %120 = vector.load %arg4[%c2_148, %c0_149, %c0_150] : memref<9x8x8xf32, #tpu.memory_space<vmem>>, vector<1x8x8xf32>
    %121 = vector.shape_cast %120 : vector<1x8x8xf32> to vector<8x8xf32>
    %cst_151 = arith.constant dense<0.000000e+00> : vector<128x8xf32>
    %122 = tpu.matmul %119, %121, %cst_151 {dimension_numbers = #tpu.dot_dimension_numbers<[1], [0], [0], [1], [0, 0, 1, 1], [], []>, precision = #tpu.contract_precision<fp32>} : vector<128x8xf32>, vector<8x8xf32>, vector<128x8xf32> -> vector<128x8xf32>
    %123 = arith.addf %117, %122 : vector<128x8xf32>
    %c0_152 = arith.constant 0 : index
    %c1_153 = arith.constant 1 : index
    %c0_154 = arith.constant 0 : index
    %c0_155 = arith.constant 0 : index
    %124 = vector.load %arg9[%c0_152, %c1_153, %c0_154, %c0_155] : memref<2x10x10x8xf32, #tpu.memory_space<vmem>>, vector<2x8x8x8xf32>
    %125 = vector.shape_cast %124 : vector<2x8x8x8xf32> to vector<128x8xf32>
    %c3_156 = arith.constant 3 : index
    %c0_157 = arith.constant 0 : index
    %c0_158 = arith.constant 0 : index
    %126 = vector.load %arg4[%c3_156, %c0_157, %c0_158] : memref<9x8x8xf32, #tpu.memory_space<vmem>>, vector<1x8x8xf32>
    %127 = vector.shape_cast %126 : vector<1x8x8xf32> to vector<8x8xf32>
    %cst_159 = arith.constant dense<0.000000e+00> : vector<128x8xf32>
    %128 = tpu.matmul %125, %127, %cst_159 {dimension_numbers = #tpu.dot_dimension_numbers<[1], [0], [0], [1], [0, 0, 1, 1], [], []>, precision = #tpu.contract_precision<fp32>} : vector<128x8xf32>, vector<8x8xf32>, vector<128x8xf32> -> vector<128x8xf32>
    %129 = arith.addf %123, %128 : vector<128x8xf32>
    %c0_160 = arith.constant 0 : index
    %c1_161 = arith.constant 1 : index
    %c1_162 = arith.constant 1 : index
    %c0_163 = arith.constant 0 : index
    %130 = vector.load %arg9[%c0_160, %c1_161, %c1_162, %c0_163] : memref<2x10x10x8xf32, #tpu.memory_space<vmem>>, vector<2x8x8x8xf32>
    %131 = vector.shape_cast %130 : vector<2x8x8x8xf32> to vector<128x8xf32>
    %c4_164 = arith.constant 4 : index
    %c0_165 = arith.constant 0 : index
    %c0_166 = arith.constant 0 : index
    %132 = vector.load %arg4[%c4_164, %c0_165, %c0_166] : memref<9x8x8xf32, #tpu.memory_space<vmem>>, vector<1x8x8xf32>
    %133 = vector.shape_cast %132 : vector<1x8x8xf32> to vector<8x8xf32>
    %cst_167 = arith.constant dense<0.000000e+00> : vector<128x8xf32>
    %134 = tpu.matmul %131, %133, %cst_167 {dimension_numbers = #tpu.dot_dimension_numbers<[1], [0], [0], [1], [0, 0, 1, 1], [], []>, precision = #tpu.contract_precision<fp32>} : vector<128x8xf32>, vector<8x8xf32>, vector<128x8xf32> -> vector<128x8xf32>
    %135 = arith.addf %129, %134 : vector<128x8xf32>
    %c0_168 = arith.constant 0 : index
    %c1_169 = arith.constant 1 : index
    %c2_170 = arith.constant 2 : index
    %c0_171 = arith.constant 0 : index
    %136 = vector.load %arg9[%c0_168, %c1_169, %c2_170, %c0_171] : memref<2x10x10x8xf32, #tpu.memory_space<vmem>>, vector<2x8x8x8xf32>
    %137 = vector.shape_cast %136 : vector<2x8x8x8xf32> to vector<128x8xf32>
    %c5_172 = arith.constant 5 : index
    %c0_173 = arith.constant 0 : index
    %c0_174 = arith.constant 0 : index
    %138 = vector.load %arg4[%c5_172, %c0_173, %c0_174] : memref<9x8x8xf32, #tpu.memory_space<vmem>>, vector<1x8x8xf32>
    %139 = vector.shape_cast %138 : vector<1x8x8xf32> to vector<8x8xf32>
    %cst_175 = arith.constant dense<0.000000e+00> : vector<128x8xf32>
    %140 = tpu.matmul %137, %139, %cst_175 {dimension_numbers = #tpu.dot_dimension_numbers<[1], [0], [0], [1], [0, 0, 1, 1], [], []>, precision = #tpu.contract_precision<fp32>} : vector<128x8xf32>, vector<8x8xf32>, vector<128x8xf32> -> vector<128x8xf32>
    %141 = arith.addf %135, %140 : vector<128x8xf32>
    %c0_176 = arith.constant 0 : index
    %c2_177 = arith.constant 2 : index
    %c0_178 = arith.constant 0 : index
    %c0_179 = arith.constant 0 : index
    %142 = vector.load %arg9[%c0_176, %c2_177, %c0_178, %c0_179] : memref<2x10x10x8xf32, #tpu.memory_space<vmem>>, vector<2x8x8x8xf32>
    %143 = vector.shape_cast %142 : vector<2x8x8x8xf32> to vector<128x8xf32>
    %c6_180 = arith.constant 6 : index
    %c0_181 = arith.constant 0 : index
    %c0_182 = arith.constant 0 : index
    %144 = vector.load %arg4[%c6_180, %c0_181, %c0_182] : memref<9x8x8xf32, #tpu.memory_space<vmem>>, vector<1x8x8xf32>
    %145 = vector.shape_cast %144 : vector<1x8x8xf32> to vector<8x8xf32>
    %cst_183 = arith.constant dense<0.000000e+00> : vector<128x8xf32>
    %146 = tpu.matmul %143, %145, %cst_183 {dimension_numbers = #tpu.dot_dimension_numbers<[1], [0], [0], [1], [0, 0, 1, 1], [], []>, precision = #tpu.contract_precision<fp32>} : vector<128x8xf32>, vector<8x8xf32>, vector<128x8xf32> -> vector<128x8xf32>
    %147 = arith.addf %141, %146 : vector<128x8xf32>
    %c0_184 = arith.constant 0 : index
    %c2_185 = arith.constant 2 : index
    %c1_186 = arith.constant 1 : index
    %c0_187 = arith.constant 0 : index
    %148 = vector.load %arg9[%c0_184, %c2_185, %c1_186, %c0_187] : memref<2x10x10x8xf32, #tpu.memory_space<vmem>>, vector<2x8x8x8xf32>
    %149 = vector.shape_cast %148 : vector<2x8x8x8xf32> to vector<128x8xf32>
    %c7_188 = arith.constant 7 : index
    %c0_189 = arith.constant 0 : index
    %c0_190 = arith.constant 0 : index
    %150 = vector.load %arg4[%c7_188, %c0_189, %c0_190] : memref<9x8x8xf32, #tpu.memory_space<vmem>>, vector<1x8x8xf32>
    %151 = vector.shape_cast %150 : vector<1x8x8xf32> to vector<8x8xf32>
    %cst_191 = arith.constant dense<0.000000e+00> : vector<128x8xf32>
    %152 = tpu.matmul %149, %151, %cst_191 {dimension_numbers = #tpu.dot_dimension_numbers<[1], [0], [0], [1], [0, 0, 1, 1], [], []>, precision = #tpu.contract_precision<fp32>} : vector<128x8xf32>, vector<8x8xf32>, vector<128x8xf32> -> vector<128x8xf32>
    %153 = arith.addf %147, %152 : vector<128x8xf32>
    %c0_192 = arith.constant 0 : index
    %c2_193 = arith.constant 2 : index
    %c2_194 = arith.constant 2 : index
    %c0_195 = arith.constant 0 : index
    %154 = vector.load %arg9[%c0_192, %c2_193, %c2_194, %c0_195] : memref<2x10x10x8xf32, #tpu.memory_space<vmem>>, vector<2x8x8x8xf32>
    %155 = vector.shape_cast %154 : vector<2x8x8x8xf32> to vector<128x8xf32>
    %c8_196 = arith.constant 8 : index
    %c0_197 = arith.constant 0 : index
    %c0_198 = arith.constant 0 : index
    %156 = vector.load %arg4[%c8_196, %c0_197, %c0_198] : memref<9x8x8xf32, #tpu.memory_space<vmem>>, vector<1x8x8xf32>
    %157 = vector.shape_cast %156 : vector<1x8x8xf32> to vector<8x8xf32>
    %cst_199 = arith.constant dense<0.000000e+00> : vector<128x8xf32>
    %158 = tpu.matmul %155, %157, %cst_199 {dimension_numbers = #tpu.dot_dimension_numbers<[1], [0], [0], [1], [0, 0, 1, 1], [], []>, precision = #tpu.contract_precision<fp32>} : vector<128x8xf32>, vector<8x8xf32>, vector<128x8xf32> -> vector<128x8xf32>
    %159 = arith.addf %153, %158 : vector<128x8xf32>
    %cst_200 = arith.constant dense<0.000000e+00> : vector<8xf32>
    %160 = vector.multi_reduction <add>, %159, %cst_200 [0] : vector<128x8xf32> to vector<8xf32>
    %161 = vector.shape_cast %160 : vector<8xf32> to vector<1x8xf32>
    %162 = arith.mulf %159, %159 : vector<128x8xf32>
    %cst_201 = arith.constant dense<0.000000e+00> : vector<8xf32>
    %163 = vector.multi_reduction <add>, %162, %cst_201 [0] : vector<128x8xf32> to vector<8xf32>
    %164 = vector.shape_cast %163 : vector<8xf32> to vector<1x8xf32>
    %cst_202 = arith.constant 7.812500e-03 : f32
    %165 = vector.broadcast %cst_202 : f32 to vector<1x8xf32>
    %166 = arith.mulf %161, %165 : vector<1x8xf32>
    %cst_203 = arith.constant 7.812500e-03 : f32
    %167 = vector.broadcast %cst_203 : f32 to vector<1x8xf32>
    %168 = arith.mulf %164, %167 : vector<1x8xf32>
    %169 = arith.mulf %166, %166 : vector<1x8xf32>
    %170 = arith.subf %168, %169 : vector<1x8xf32>
    %cst_204 = arith.constant 0.000000e+00 : f32
    %171 = vector.broadcast %cst_204 : f32 to vector<1x8xf32>
    %172 = arith.maximumf %170, %171 : vector<1x8xf32>
    %c0_205 = arith.constant 0 : index
    %c0_206 = arith.constant 0 : index
    %173 = vector.load %arg5[%c0_205, %c0_206] : memref<1x8xf32, #tpu.memory_space<vmem>>, vector<1x8xf32>
    %cst_207 = arith.constant 9.99999974E-6 : f32
    %174 = vector.broadcast %cst_207 : f32 to vector<1x8xf32>
    %175 = arith.addf %172, %174 : vector<1x8xf32>
    %176 = math.rsqrt %175 : vector<1x8xf32>
    %177 = arith.mulf %173, %176 : vector<1x8xf32>
    %c0_208 = arith.constant 0 : index
    %c0_209 = arith.constant 0 : index
    %178 = vector.load %arg6[%c0_208, %c0_209] : memref<1x8xf32, #tpu.memory_space<vmem>>, vector<1x8xf32>
    %179 = arith.mulf %166, %177 : vector<1x8xf32>
    %180 = arith.subf %178, %179 : vector<1x8xf32>
    %181 = vector.broadcast %177 : vector<1x8xf32> to vector<128x8xf32>
    %182 = arith.mulf %159, %181 : vector<128x8xf32>
    %183 = vector.broadcast %180 : vector<1x8xf32> to vector<128x8xf32>
    %184 = arith.addf %182, %183 : vector<128x8xf32>
    %cst_210 = arith.constant 0.000000e+00 : f32
    %185 = vector.broadcast %cst_210 : f32 to vector<128x8xf32>
    %186 = arith.maximumf %184, %185 : vector<128x8xf32>
    %c0_211 = arith.constant 0 : index
    %c0_212 = arith.constant 0 : index
    %187 = vector.load %arg7[%c0_211, %c0_212] : memref<128x8xf32, #tpu.memory_space<vmem>>, vector<128x8xf32>
    tpu.vector_store %arg7[%c0_211, %c0_212], %186 {strides = array<i32>} : memref<128x8xf32, #tpu.memory_space<vmem>>, vector<128x8xf32>,
    return
  }
}

</mosaic_0001>

<bundles_post_ra>
// kernel: down_pallas.1
= control target key start
LH: loop header
LB: loop body
LE: loop exit
PB: predicated region body
PF: predicated region fallthrough
CT: control target
= control target key end

     0   :  { %vm155_vm0 = vcmask 31744   ;;  %vm157_vm1 = vcmask 25600   ;;  %vm166_vm2 = vcmask 24576   ;;  %v33774_v3 = vmov 0.0   ;;  %s28094_s17 = smov 124   ;;  %s33766_s0 = inlined_call_operand.vmem [shape: f32[2,8,2,8,8], index: 0, kind: input, shape index: {}]   ;;  %s33767_s1 = inlined_call_operand.vmem [shape: f32[9,4,8], index: 1, kind: input, shape index: {}]   ;;  %s33768_s4 = inlined_call_operand.vmem [shape: f32[9,8,8], index: 4, kind: input, shape index: {}]   ;;  %s33769_s2 = inlined_call_operand.vmem [shape: f32[1,8], index: 2, kind: input, shape index: {}]   ;;  %s33770_s3 = inlined_call_operand.vmem [shape: f32[1,8], index: 3, kind: input, shape index: {}]   ;;  %s33771_s5 = inlined_call_operand.vmem [shape: f32[1,8], index: 5, kind: input, shape index: {}]   ;;  %s33772_s6 = inlined_call_operand.vmem [shape: f32[1,8], index: 6, kind: input, shape index: {}]   ;;  %s33773_s7 = inlined_call_operand.vmem [shape: f32[128,8], index: 7, kind: output, shape index: {}]  }
   0x1   :  { %v28_v0 = vld [vmem:[%s33766_s0 + $0x20] sm:$0xff]  ;;  %v21717_v1 = vld [vmem:[%s33766_s0 + $0x28] sm:$0xff]  ;;  %156 = vst.msk [vmem:[#allocation2] sm:$0xff] %vm155_vm0, %v33774_v3  ;;  %159 = vst.msk [vmem:[#allocation2 + $0xa0] sm:$0xff] %vm155_vm0, %v33774_v3  ;;  %vm307_vm3 = vcmask 1043456   ;;  %vm10777_vm4 = vcmask 64512  }
   0x2   :  { %v26_v2 = vld [vmem:[%s33766_s0] sm:$0xff]  ;;  %158 = vst.msk [vmem:[#allocation2 + $0x8] sm:$0x3] %vm157_vm1, %v33774_v3  ;;  %160 = vst.msk [vmem:[#allocation2 + $0xa8] sm:$0x3] %vm157_vm1, %v33774_v3  ;;  %v28220_v4 = vmax.f32 %v28_v0, %v21717_v1  ;;  %v21715_v5 = vld [vmem:[%s33766_s0 + $0x8] sm:$0xff] }
   0x3   :  { %162 = vst.msk [vmem:[#allocation2 + $0x90] sm:$0xff] %vm155_vm0, %v33774_v3  ;;  %164 = vst.msk [vmem:[#allocation2 + $0x130] sm:$0xff] %vm155_vm0, %v33774_v3  ;;  %v29_v6 = vld [vmem:[%s33766_s0 + $0x30] sm:$0xff]  ;;  %v21718_v7 = vld [vmem:[%s33766_s0 + $0x38] sm:$0xff]  ;;  %v28247_v8 = vmax.f32 %v26_v2, %v21715_v5  ;;  %vm10941_vm5 = vcmask 58368   ;;  %vm10950_vm6 = vcmask 57344  }
   0x4   :  { %163 = vst.msk [vmem:[#allocation2 + $0x98] sm:$0x3] %vm157_vm1, %v33774_v3  ;;  %165 = vst.msk [vmem:[#allocation2 + $0x138] sm:$0x3] %vm157_vm1, %v33774_v3  ;;  %v27_v9 = vld [vmem:[%s33766_s0 + $0x10] sm:$0xff]  ;;  %v21716_v10 = vld [vmem:[%s33766_s0 + $0x18] sm:$0xff]  ;;  %95 = vrot.lane.b32.xlu1 %v28220_v4, %s28094_s17  ;;  %v28257_v11 = vmax.f32 %v29_v6, %v21718_v7 }
   0x5   :  { %168 = vst.msk [vmem:[#allocation2 + $0x10] sm:$0x1] %vm166_vm2, %v33774_v3  ;;  %169 = vst.msk [vmem:[#allocation2 + $0x20] sm:$0x1] %vm166_vm2, %v33774_v3  ;;  %91 = vrot.lane.b32.xlu0 %v28247_v8, %s28094_s17  ;;  %v28261_v12 = vmax.f32 %v27_v9, %v21716_v10  ;;  %v31_v13 = vld [vmem:[%s33766_s0 + $0x50] sm:$0xff]  ;;  %v21720_v14 = vld [vmem:[%s33766_s0 + $0x58] sm:$0xff] }
   0x6   :  { %170 = vst.msk [vmem:[#allocation2 + $0x30] sm:$0x1] %vm166_vm2, %v33774_v3  ;;  %171 = vst.msk [vmem:[#allocation2 + $0x40] sm:$0x1] %vm166_vm2, %v33774_v3  ;;  %v30_v15 = vld [vmem:[%s33766_s0 + $0x40] sm:$0xff]  ;;  %v21719_v16 = vld [vmem:[%s33766_s0 + $0x48] sm:$0xff]  ;;  %v28277_v17 = vmax.f32 %v31_v13, %v21720_v14 }
   0x7   :  { %172 = vst.msk [vmem:[#allocation2 + $0x50] sm:$0x1] %vm166_vm2, %v33774_v3  ;;  %173 = vst.msk [vmem:[#allocation2 + $0x60] sm:$0x1] %vm166_vm2, %v33774_v3  ;;  %v28281_v18 = vmax.f32 %v30_v15, %v21719_v16  ;;  %v32_v19 = vld [vmem:[%s33766_s0 + $0x60] sm:$0xff]  ;;  %v21723_v21 = vld [vmem:[%s33766_s0 + $0x88] sm:$0xff] }
   0x8   :  { %174 = vst.msk [vmem:[#allocation2 + $0x70] sm:$0x1] %vm166_vm2, %v33774_v3  ;;  %175 = vst.msk [vmem:[#allocation2 + $0x80] sm:$0x1] %vm166_vm2, %v33774_v3  ;;  %97 = vrot.lane.b32.xlu1 %v28257_v11, %s28094_s17  ;;  %v34_v20 = vld [vmem:[%s33766_s0 + $0x80] sm:$0xff]  ;;  %v21721_v22 = vld [vmem:[%s33766_s0 + $0x68] sm:$0xff] }
   0x9   :  { %178 = vst.msk [vmem:[#allocation2 + $0xb0] sm:$0x1] %vm166_vm2, %v33774_v3  ;;  %179 = vst.msk [vmem:[#allocation2 + $0xc0] sm:$0x1] %vm166_vm2, %v33774_v3  ;;  %93 = vrot.lane.b32.xlu0 %v28261_v12, %s28094_s17  ;;  %v21731_v23 = vld [vmem:[%s33767_s1 + $0x4] sm:$0xf]  ;;  %v28302_v27 = vmax.f32 %v34_v20, %v21723_v21  ;;  %v28310_v30 = vmax.f32 %v32_v19, %v21721_v22 }
   0xa   :  { %180 = vst.msk [vmem:[#allocation2 + $0xd0] sm:$0x1] %vm166_vm2, %v33774_v3  ;;  %181 = vst.msk [vmem:[#allocation2 + $0xe0] sm:$0x1] %vm166_vm2, %v33774_v3  ;;  %v241_v24 = vld [vmem:[#allocation2 + $0x1] sm:$0xff]  ;;  %v309_v25 = vsel %vm307_vm3, %v21731_v23, 0 }
   0xb   :  { %182 = vst.msk [vmem:[#allocation2 + $0xf0] sm:$0x1] %vm166_vm2, %v33774_v3  ;;  %183 = vst.msk [vmem:[#allocation2 + $0x100] sm:$0x1] %vm166_vm2, %v33774_v3  ;;  %v260_v26 = vsel %vm155_vm0, %v241_v24, 0  ;;  %v28304_v28 = vand.u32 4294901760, %v309_v25 }
   0xc   :  { %184 = vst.msk [vmem:[#allocation2 + $0x110] sm:$0x1] %vm166_vm2, %v33774_v3  ;;  %185 = vst.msk [vmem:[#allocation2 + $0x120] sm:$0x1] %vm166_vm2, %v33774_v3  ;;  %101 = vrot.lane.b32.xlu1 %v28277_v17, %s28094_s17  ;;  %v28306_v29 = vand.u32 4294901760, %v260_v26  ;;  %v36_v31 = vld [vmem:[%s33766_s0 + $0xa0] sm:$0xff] }
   0xd   :  { %188 = vst.msk [vmem:[#allocation2 + $0x19] sm:$0x1] %vm166_vm2, %v33774_v3  ;;  %189 = vst.msk [vmem:[#allocation2 + $0x29] sm:$0x1] %vm166_vm2, %v33774_v3  ;;  %99 = vrot.lane.b32.xlu0 %v28281_v18, %s28094_s17  ;;  %v21725_v32 = vld [vmem:[%s33766_s0 + $0xa8] sm:$0xff]  ;;  %v35_v33 = vld [vmem:[%s33766_s0 + $0x90] sm:$0xff]  ;;  %23583 = vmatprep.subr.mxu0 %v28304_v28  ;;  %v28329_v36 = vsub.f32 %v309_v25, %v28304_v28 }
   0xe   :  { %190 = vst.msk [vmem:[#allocation2 + $0x39] sm:$0x1] %vm166_vm2, %v33774_v3  ;;  %191 = vst.msk [vmem:[#allocation2 + $0x49] sm:$0x1] %vm166_vm2, %v33774_v3  ;;  %v21724_v34 = vld [vmem:[%s33766_s0 + $0x98] sm:$0xff]  ;;  %v28326_v35 = vsub.f32 %v260_v26, %v28306_v29  ;;  %23584 = vmatpush3.msra.mxu0 %v28304_v28  ;;  %v28334_v37 = vmax.f32 %v36_v31, %v21725_v32  ;;  %v38_v41 = vld [vmem:[%s33766_s0 + $0xc0] sm:$0xff] }
   0xf   :  { %192 = vst.msk [vmem:[#allocation2 + $0x59] sm:$0x1] %vm166_vm2, %v33774_v3  ;;  %193 = vst.msk [vmem:[#allocation2 + $0x69] sm:$0x1] %vm166_vm2, %v33774_v3  ;;  %v28338_v39 = vand.u32 4294901760, %v28329_v36  ;;  %v28342_v40 = vmax.f32 %v35_v33, %v21724_v34  ;;  %v21727_v42 = vld [vmem:[%s33766_s0 + $0xc8] sm:$0xff] }
  0x10   :  { %194 = vst.msk [vmem:[#allocation2 + $0x79] sm:$0x1] %vm166_vm2, %v33774_v3  ;;  %195 = vst.msk [vmem:[#allocation2 + $0x89] sm:$0x1] %vm166_vm2, %v33774_v3  ;;  %107 = vrot.lane.b32.xlu1 %v28302_v27, %s28094_s17  ;;  %v379_v38 = vand.u32 4294901760, %v28326_v35  ;;  %v37_v43 = vld [vmem:[%s33766_s0 + $0xb0] sm:$0xff]  ;;  %v28363_v47 = vmax.f32 %v38_v41, %v21727_v42 }
  0x11   :  { %198 = vst.msk [vmem:[#allocation2 + $0xb9] sm:$0x1] %vm166_vm2, %v33774_v3  ;;  %199 = vst.msk [vmem:[#allocation2 + $0xc9] sm:$0x1] %vm166_vm2, %v33774_v3  ;;  %103 = vrot.lane.b32.xlu0 %v28310_v30, %s28094_s17  ;;  %v21726_v44 = vld [vmem:[%s33766_s0 + $0xb8] sm:$0xff]  ;;  %v541_v46 = vsub.f32 %v28329_v36, %v28338_v39  ;;  %v40_v51 = vld [vmem:[%s33766_s0 + $0xe0] sm:$0xff] }
  0x12   :  { %200 = vst.msk [vmem:[#allocation2 + $0xd9] sm:$0x1] %vm166_vm2, %v33774_v3  ;;  %201 = vst.msk [vmem:[#allocation2 + $0xe9] sm:$0x1] %vm166_vm2, %v33774_v3  ;;  %v380_v45 = vsub.f32 %v28326_v35, %v379_v38  ;;  %v28369_v50 = vmax.f32 %v37_v43, %v21726_v44  ;;  %v21729_v52 = vld [vmem:[%s33766_s0 + $0xe8] sm:$0xff]  ;;  %v39_v53 = vld [vmem:[%s33766_s0 + $0xd0] sm:$0xff] }
  0x13   :  { %202 = vst.msk [vmem:[#allocation2 + $0xf9] sm:$0x1] %vm166_vm2, %v33774_v3  ;;  %203 = vst.msk [vmem:[#allocation2 + $0x109] sm:$0x1] %vm166_vm2, %v33774_v3  ;;  %v28365_v49 = vand.u32 4294901760, %v541_v46  ;;  %v21728_v54 = vld [vmem:[%s33766_s0 + $0xd8] sm:$0xff]  ;;  %v28386_v55 = vmax.f32 %v40_v51, %v21729_v52 }
  0x14   :  { %204 = vst.msk [vmem:[#allocation2 + $0x119] sm:$0x1] %vm166_vm2, %v33774_v3  ;;  %205 = vst.msk [vmem:[#allocation2 + $0x129] sm:$0x1] %vm166_vm2, %v33774_v3  ;;  %111 = vrot.lane.b32.xlu1 %v28334_v37, %s28094_s17  ;;  %v381_v48 = vand.u32 4294901760, %v380_v45  ;;  %v28390_v56 = vmax.f32 %v39_v53, %v21728_v54  ;;  %v249_v7 = vld [vmem:[#allocation2 + $0xa1] sm:$0xff] }
  0x15   :  { %187 = vst.msk [vmem:[#allocation2 + $0x9] sm:$0x1] %vm166_vm2, %v33774_v3  ;;  %167 = vst.msk [vmem:[#allocation2] sm:$0x1] %vm166_vm2, %v33774_v3  ;;  %109 = vrot.lane.b32.xlu0 %v28342_v40, %s28094_s17  ;;  %23609 = vmatprep.subr.mxu0 %v28365_v49  ;;  %v284_v16 = vsel %vm155_vm0, %v249_v7, 0 }
  0x16   :  { %176 = vst.msk [vmem:[#allocation2 + $0x90] sm:$0x1] %vm166_vm2, %v33774_v3  ;;  %177 = vst.msk [vmem:[#allocation2 + $0xa0] sm:$0x1] %vm166_vm2, %v33774_v3  ;;  %23585 = vmatprep.mubr.f32.mxu0 %v381_v48  ;;  %v28429_v26 = vand.u32 4294901760, %v284_v16 }
  0x17   :  { %186 = vst.msk [vmem:[#allocation2 + $0x130] sm:$0x1] %vm166_vm2, %v33774_v3  ;;  %196 = vst.msk [vmem:[#allocation2 + $0x99] sm:$0x1] %vm166_vm2, %v33774_v3 }
  0x18   :  { %197 = vst.msk [vmem:[#allocation2 + $0xa9] sm:$0x1] %vm166_vm2, %v33774_v3  ;;  %206 = vst.msk [vmem:[#allocation2 + $0x139] sm:$0x1] %vm166_vm2, %v33774_v3  ;;  %115 = vrot.lane.b32.xlu1 %v28363_v47, %s28094_s17  ;;  %v28454_v52 = vsub.f32 %v284_v16, %v28429_v26 }
  0x19   :  { %113 = vrot.lane.b32.xlu0 %v28369_v50, %s28094_s17 }
  0x1a   :  { %v459_v7 = vand.u32 4294901760, %v28454_v52 }
  0x1c   :  { %119 = vrot.lane.b32.xlu1 %v28386_v55, %s28094_s17 }
  0x1d   :  { %117 = vrot.lane.b32.xlu0 %v28390_v56, %s28094_s17 }
  0x76   :  { %v96_v57 = vpop.permute.xlu1 %95 }
  0x77   :  { %v141_v58 = vmax.f32 %v28220_v4, %v96_v57  ;;  %v92_v59 = vpop.permute.xlu0 %91 }
  0x78   :  { %v139_v60 = vmax.f32 %v28247_v8, %v92_v59 }
  0x79   :  { %210 = vst.msk [vmem:[#allocation2 + $0x31] sm:$0xff] %vm155_vm0, %v141_v58 }
  0x7a   :  { %208 = vst.msk [vmem:[#allocation2 + $0x11] sm:$0xff] %vm155_vm0, %v139_v60  ;;  %v98_v61 = vpop.permute.xlu1 %97 }
  0x7b   :  { %v142_v62 = vmax.f32 %v28257_v11, %v98_v61  ;;  %v94_v63 = vpop.permute.xlu0 %93 }
  0x7c   :  { %v140_v0 = vmax.f32 %v28261_v12, %v94_v63 }
  0x7d   :  { %211 = vst.msk [vmem:[#allocation2 + $0x41] sm:$0xff] %vm155_vm0, %v142_v62 }
  0x7e   :  { %209 = vst.msk [vmem:[#allocation2 + $0x21] sm:$0xff] %vm155_vm0, %v140_v0  ;;  %v102_v1 = vpop.permute.xlu1 %101 }
  0x7f   :  { %v144_v2 = vmax.f32 %v28277_v17, %v102_v1  ;;  %v100_v4 = vpop.permute.xlu0 %99 }
  0x80   :  { %v143_v5 = vmax.f32 %v28281_v18, %v100_v4  ;;  %v244_v6 = vld [vmem:[#allocation2 + $0x31] sm:$0xff] }
  0x81   :  { %213 = vst.msk [vmem:[#allocation2 + $0x61] sm:$0xff] %vm155_vm0, %v144_v2  ;;  %v242_v8 = vld [vmem:[#allocation2 + $0x11] sm:$0xff]  ;;  %v269_v9 = vsel %vm155_vm0, %v244_v6, 0 }
  0x82   :  { %212 = vst.msk [vmem:[#allocation2 + $0x51] sm:$0xff] %vm155_vm0, %v143_v5  ;;  %v108_v10 = vpop.permute.xlu1 %107  ;;  %v263_v11 = vsel %vm155_vm0, %v242_v8, 0  ;;  %v28410_v12 = vand.u32 4294901760, %v269_v9 }
  0x83   :  { %v104_v13 = vpop.permute.xlu0 %103  ;;  %v147_v14 = vmax.f32 %v28302_v27, %v108_v10  ;;  %v28413_v15 = vand.u32 4294901760, %v263_v11 }
  0x84   :  { %v145_v17 = vmax.f32 %v28310_v30, %v104_v13  ;;  %v28418_v18 = vsub.f32 %v269_v9, %v28410_v12  ;;  %v245_v19 = vld [vmem:[#allocation2 + $0x41] sm:$0xff] }
  0x85   :  { %216 = vst.msk [vmem:[#allocation2 + $0xb1] sm:$0xff] %vm155_vm0, %v147_v14  ;;  %v28422_v20 = vsub.f32 %v263_v11, %v28413_v15  ;;  %v243_v21 = vld [vmem:[#allocation2 + $0x21] sm:$0xff]  ;;  %v272_v22 = vsel %vm155_vm0, %v245_v19, 0 }
  0x86   :  { %214 = vst.msk [vmem:[#allocation2 + $0x71] sm:$0xff] %vm155_vm0, %v145_v17  ;;  %v112_v23 = vpop.permute.xlu1 %111  ;;  %v266_v24 = vsel %vm155_vm0, %v243_v21, 0  ;;  %v28427_v25 = vand.u32 4294901760, %v272_v22  ;;  %v409_v34 = vand.u32 4294901760, %v28418_v18 }
  0x87   :  { %v110_v27 = vpop.permute.xlu0 %109  ;;  %v149_v30 = vmax.f32 %v28334_v37, %v112_v23  ;;  %v389_v31 = vand.u32 4294901760, %v28422_v20  ;;  %v28433_v32 = vand.u32 4294901760, %v266_v24 }
  0x88   :  { %v148_v33 = vmax.f32 %v28342_v40, %v110_v27  ;;  %v28438_v41 = vsub.f32 %v272_v22, %v28427_v25  ;;  %v247_v42 = vld [vmem:[#allocation2 + $0x61] sm:$0xff]  ;;  %v410_v61 = vsub.f32 %v28418_v18, %v409_v34 }
  0x89   :  { %218 = vst.msk [vmem:[#allocation2 + $0xd1] sm:$0xff] %vm155_vm0, %v149_v30  ;;  %v390_v43 = vsub.f32 %v28422_v20, %v389_v31  ;;  %v28445_v37 = vsub.f32 %v266_v24, %v28433_v32  ;;  %v246_v44 = vld [vmem:[#allocation2 + $0x51] sm:$0xff]  ;;  %v278_v45 = vsel %vm155_vm0, %v247_v42, 0 }
  0x8a   :  { %217 = vst.msk [vmem:[#allocation2 + $0xc1] sm:$0xff] %vm155_vm0, %v148_v33  ;;  %v116_v40 = vpop.permute.xlu1 %115  ;;  %v419_v46 = vand.u32 4294901760, %v28438_v41  ;;  %v275_v48 = vsel %vm155_vm0, %v246_v44, 0  ;;  %v28451_v51 = vand.u32 4294901760, %v278_v45  ;;  %v411_v16 = vand.u32 4294901760, %v410_v61 }
  0x8b   :  { %v114_v53 = vpop.permute.xlu0 %113  ;;  %v151_v54 = vmax.f32 %v28363_v47, %v116_v40  ;;  %v391_v57 = vand.u32 4294901760, %v390_v43  ;;  %v399_v58 = vand.u32 4294901760, %v28445_v37  ;;  %v28458_v59 = vand.u32 4294901760, %v275_v48 }
  0x8c   :  { %v150_v60 = vmax.f32 %v28369_v50, %v114_v53  ;;  %v420_v62 = vsub.f32 %v28438_v41, %v419_v46  ;;  %v28468_v63 = vsub.f32 %v278_v45, %v28451_v51  ;;  %v250_v0 = vld [vmem:[#allocation2 + $0xb1] sm:$0xff]  ;;  %v460_v43 = vsub.f32 %v28454_v52, %v459_v7 }
  0x8d   :  { %220 = vst.msk [vmem:[#allocation2 + $0xf1] sm:$0xff] %vm155_vm0, %v151_v54  ;;  %23586 = vmatmul.mubr.f32.vlgmr.msra.gmra.mrb[0].mxu0 %v391_v57  ;;  %v400_v47 = vsub.f32 %v28445_v37, %v399_v58  ;;  %v28475_v50 = vsub.f32 %v275_v48, %v28458_v59  ;;  %v248_v1 = vld [vmem:[#allocation2 + $0x71] sm:$0xff]  ;;  %v287_v2 = vsel %vm155_vm0, %v250_v0, 0 }
  0x8e   :  { %219 = vst.msk [vmem:[#allocation2 + $0xe1] sm:$0xff] %vm155_vm0, %v150_v60  ;;  %23610 = vmatpush3.msra.mxu0 %v28365_v49  ;;  %v120_v4 = vpop.permute.xlu1 %119  ;;  %v439_v5 = vand.u32 4294901760, %v28468_v63  ;;  %v281_v6 = vsel %vm155_vm0, %v248_v1, 0  ;;  %v28483_v8 = vand.u32 4294901760, %v287_v2  ;;  %v421_v17 = vand.u32 4294901760, %v420_v62 }
  0x8f   :  { %v118_v9 = vpop.permute.xlu0 %117  ;;  %v153_v10 = vmax.f32 %v28386_v55, %v120_v4  ;;  %v401_v11 = vand.u32 4294901760, %v400_v47  ;;  %v429_v13 = vand.u32 4294901760, %v28475_v50  ;;  %v28487_v14 = vand.u32 4294901760, %v281_v6  ;;  %23635 = vmatprep.subr.mxu0 %v28329_v36 }
  0x90   :  { %v152_v49 = vmax.f32 %v28390_v56, %v118_v9  ;;  %v28492_v19 = vsub.f32 %v287_v2, %v28483_v8  ;;  %v252_v21 = vld [vmem:[#allocation2 + $0xd1] sm:$0xff]  ;;  %v440_v22 = vsub.f32 %v28468_v63, %v439_v5  ;;  %v461_v1 = vand.u32 4294901760, %v460_v43 }
  0x91   :  { %222 = vst.msk [vmem:[#allocation2 + $0x111] sm:$0xff] %vm155_vm0, %v153_v10  ;;  %23588 = vmatprep.mubr.f32.mxu0 %v401_v11  ;;  %v430_v55 = vsub.f32 %v28475_v50, %v429_v13  ;;  %v28502_v23 = vsub.f32 %v281_v6, %v28487_v14  ;;  %v251_v56 = vld [vmem:[#allocation2 + $0xc1] sm:$0xff]  ;;  %v293_v24 = vsel %vm155_vm0, %v252_v21, 0 }
  0x92   :  { %221 = vst.msk [vmem:[#allocation2 + $0x101] sm:$0xff] %vm155_vm0, %v152_v49  ;;  %23589 = vmatmul.mubr.f32.gmra.mrb[2].mxu0 %v411_v16  ;;  %v290_v27 = vsel %vm155_vm0, %v251_v56, 0  ;;  %v28507_v30 = vand.u32 4294901760, %v293_v24  ;;  %v469_v45 = vand.u32 4294901760, %v28492_v19  ;;  %v441_v53 = vand.u32 4294901760, %v440_v22 }
  0x93   :  { %23591 = vmatprep.mubr.f32.mxu0 %v421_v17  ;;  %v431_v33 = vand.u32 4294901760, %v430_v55  ;;  %v449_v42 = vand.u32 4294901760, %v28502_v23  ;;  %v28513_v44 = vand.u32 4294901760, %v290_v27 }
  0x94   :  { %v28517_v40 = vsub.f32 %v293_v24, %v28507_v30  ;;  %v254_v48 = vld [vmem:[#allocation2 + $0xf1] sm:$0xff]  ;;  %v470_v6 = vsub.f32 %v28492_v19, %v469_v45 }
  0x95   :  { %v450_v54 = vsub.f32 %v28502_v23, %v449_v42  ;;  %v28523_v57 = vsub.f32 %v290_v27, %v28513_v44  ;;  %v253_v60 = vld [vmem:[#allocation2 + $0xe1] sm:$0xff]  ;;  %v299_v61 = vsel %vm155_vm0, %v254_v48, 0 }
  0x96   :  { %23592 = vmatmul.mubr.f32.gmra.mrb[4].mxu0 %v431_v33  ;;  %v296_v62 = vsel %vm155_vm0, %v253_v60, 0  ;;  %v28527_v0 = vand.u32 4294901760, %v299_v61  ;;  %v489_v9 = vand.u32 4294901760, %v28517_v40  ;;  %v471_v27 = vand.u32 4294901760, %v470_v6 }
  0x97   :  { %23594 = vmatprep.mubr.f32.mxu0 %v441_v53  ;;  %v451_v47 = vand.u32 4294901760, %v450_v54  ;;  %v479_v2 = vand.u32 4294901760, %v28523_v57  ;;  %v28530_v4 = vand.u32 4294901760, %v296_v62 }
  0x98   :  { %v28537_v10 = vsub.f32 %v299_v61, %v28527_v0  ;;  %v256_v11 = vld [vmem:[#allocation2 + $0x111] sm:$0xff]  ;;  %v490_v33 = vsub.f32 %v28517_v40, %v489_v9 }
  0x99   :  { %v480_v49 = vsub.f32 %v28523_v57, %v479_v2  ;;  %v28543_v16 = vsub.f32 %v296_v62, %v28530_v4  ;;  %v255_v17 = vld [vmem:[#allocation2 + $0x101] sm:$0xff]  ;;  %v305_v21 = vsel %vm155_vm0, %v256_v11, 0 }
  0x9a   :  { %23595 = vmatmul.mubr.f32.gmra.mrb[6].mxu0 %v451_v47  ;;  %v302_v55 = vsel %vm155_vm0, %v255_v17, 0  ;;  %v28547_v22 = vand.u32 4294901760, %v305_v21  ;;  %v509_v43 = vand.u32 4294901760, %v28537_v10  ;;  %v491_v62 = vand.u32 4294901760, %v490_v33 }
  0x9b   :  { %23597 = vmatprep.mubr.f32.mxu0 %v461_v1  ;;  %v499_v56 = vand.u32 4294901760, %v28543_v16  ;;  %v28550_v24 = vand.u32 4294901760, %v302_v55  ;;  %v481_v53 = vand.u32 4294901760, %v480_v49 }
  0x9c   :  { %v28557_v48 = vsub.f32 %v305_v21, %v28547_v22  ;;  %v510_v47 = vsub.f32 %v28537_v10, %v509_v43 }
  0x9d   :  { %v500_v54 = vsub.f32 %v28543_v16, %v499_v56  ;;  %v28563_v60 = vsub.f32 %v302_v55, %v28550_v24 }
  0x9e   :  { %23598 = vmatmul.mubr.f32.gmra.mrb[8].mxu0 %v471_v27  ;;  %v529_v1 = vand.u32 4294901760, %v28557_v48  ;;  %v511_v49 = vand.u32 4294901760, %v510_v47  ;;  %v235_v47 = vld [vmem:[#allocation2 + $0xd0] sm:$0xff] }
  0x9f   :  { %23600 = vmatprep.mubr.f32.mxu0 %v481_v53  ;;  %v519_v61 = vand.u32 4294901760, %v28563_v60  ;;  %v501_v6 = vand.u32 4294901760, %v500_v54 }
  0xa0   :  { %v530_v17 = vsub.f32 %v28557_v48, %v529_v1 }
  0xa1   :  { %v520_v11 = vsub.f32 %v28563_v60, %v519_v61 }
  0xa2   :  { %23601 = vmatmul.mubr.f32.gmra.mrb[10].mxu0 %v491_v62  ;;  %v531_v55 = vand.u32 4294901760, %v530_v17 }
  0xa3   :  { %23603 = vmatprep.mubr.f32.mxu0 %v501_v6  ;;  %v521_v21 = vand.u32 4294901760, %v520_v11 }
  0xa6   :  { %23604 = vmatmul.mubr.f32.gmra.mrb[12].mxu0 %v511_v49  ;;  %v236_v49 = vld [vmem:[#allocation2 + $0xe0] sm:$0xff] }
  0xa7   :  { %23606 = vmatprep.mubr.f32.mxu0 %v521_v21 }
  0xaa   :  { %23607 = vmatmul.mubr.f32.gmra.mrb[14].mxu0 %v531_v55 }
  0xab   :  { %23611 = vmatprep.mubr.f32.mxu0 %v28306_v29 }
  0xae   :  { %23612 = vmatmul.mubr.f32.vlgmr.msra.gmra.mrb[0].mxu0 %v28413_v15 }
  0xaf   :  { %23636 = vmatpush3.msra.mxu0 %v28329_v36  ;;  %23614 = vmatprep.mubr.f32.mxu0 %v28433_v32 }
  0xb0   :  { %23661 = vmatprep.subr.mxu0 %v28304_v28 }
  0xb2   :  { %23615 = vmatmul.mubr.f32.gmra.mrb[2].mxu0 %v28410_v12 }
  0xb3   :  { %23617 = vmatprep.mubr.f32.mxu0 %v28427_v25 }
  0xb6   :  { %23618 = vmatmul.mubr.f32.gmra.mrb[4].mxu0 %v28458_v59 }
  0xb7   :  { %23620 = vmatprep.mubr.f32.mxu0 %v28451_v51 }
  0xba   :  { %23621 = vmatmul.mubr.f32.gmra.mrb[6].mxu0 %v28487_v14 }
  0xbb   :  { %23623 = vmatprep.mubr.f32.mxu0 %v28429_v26 }
  0xbe   :  { %23624 = vmatmul.mubr.f32.gmra.mrb[8].mxu0 %v28483_v8 }
  0xbf   :  { %23626 = vmatprep.mubr.f32.mxu0 %v28513_v44 }
  0xc2   :  { %23627 = vmatmul.mubr.f32.gmra.mrb[10].mxu0 %v28507_v30 }
  0xc3   :  { %23629 = vmatprep.mubr.f32.mxu0 %v28530_v4 }
  0xc6   :  { %23630 = vmatmul.mubr.f32.gmra.mrb[12].mxu0 %v28527_v0 }
  0xc7   :  { %23632 = vmatprep.mubr.f32.mxu0 %v28550_v24 }
  0xca   :  { %23633 = vmatmul.mubr.f32.gmra.mrb[14].mxu0 %v28547_v22 }
  0xcb   :  { %23637 = vmatprep.mubr.f32.mxu0 %v28326_v35  ;;  %v240_v35 = vld [vmem:[%s33767_s1] sm:$0xf] }
  0xcc   :  { %v1451_v36 = vsel %vm307_vm3, %v240_v35, 0 }
  0xce   :  { %23638 = vmatmul.mubr.f32.vlgmr.msra.gmra.mrb[0].mxu0 %v28422_v20 }
  0xcf   :  { %23662 = vmatpush3.msra.mxu0 %v28304_v28  ;;  %23640 = vmatprep.mubr.f32.mxu0 %v28445_v37 }
  0xd0   :  { %23687 = vmatprep.subr.mxu0 %v28338_v39 }
  0xd2   :  { %23641 = vmatmul.mubr.f32.gmra.mrb[2].mxu0 %v28418_v18 }
  0xd3   :  { %23643 = vmatprep.mubr.f32.mxu0 %v28438_v41  ;;  %v225_v41 = vld [vmem:[#allocation2 + $0x10] sm:$0xff] }
  0xd4   :  { %v1406_v37 = vsel %vm155_vm0, %v225_v41, 0  ;;  %v237_v41 = vld [vmem:[#allocation2 + $0xf0] sm:$0xff] }
  0xd6   :  { %23644 = vmatmul.mubr.f32.gmra.mrb[4].mxu0 %v28475_v50  ;;  %v230_v50 = vld [vmem:[#allocation2 + $0x60] sm:$0xff] }
  0xd7   :  { %23646 = vmatprep.mubr.f32.mxu0 %v28468_v63 }
  0xda   :  { %23647 = vmatmul.mubr.f32.gmra.mrb[6].mxu0 %v28502_v23  ;;  %v232_v23 = vld [vmem:[#allocation2 + $0xa0] sm:$0xff] }
  0xdb   :  { %23649 = vmatprep.mubr.f32.mxu0 %v28454_v52  ;;  %v228_v52 = vld [vmem:[#allocation2 + $0x40] sm:$0xff] }
  0xdc   :  { %v1415_v63 = vsel %vm155_vm0, %v228_v52, 0 }
  0xde   :  { %23650 = vmatmul.mubr.f32.gmra.mrb[8].mxu0 %v28492_v19  ;;  %v28717_v19 = vand.u32 4294901760, %v1415_v63 }
  0xdf   :  { %23652 = vmatprep.mubr.f32.mxu0 %v28523_v57 }
  0xe0   :  { %33896 = vst [vmem:[#allocation7_spill] sm:$0xff] %v28717_v19 }
  0xe2   :  { %23653 = vmatmul.mubr.f32.gmra.mrb[10].mxu0 %v28517_v40 }
  0xe3   :  { %23655 = vmatprep.mubr.f32.mxu0 %v28543_v16  ;;  %v233_v16 = vld [vmem:[#allocation2 + $0xb0] sm:$0xff] }
  0xe6   :  { %23656 = vmatmul.mubr.f32.gmra.mrb[12].mxu0 %v28537_v10 }
  0xe7   :  { %23658 = vmatprep.mubr.f32.mxu0 %v28563_v60 }
  0xea   :  { %23659 = vmatmul.mubr.f32.gmra.mrb[14].mxu0 %v28557_v48  ;;  %v234_v48 = vld [vmem:[#allocation2 + $0xc0] sm:$0xff] }
  0xeb   :  { %23663 = vmatprep.mubr.f32.mxu0 %v379_v38  ;;  %v28651_v38 = vand.u32 4294901760, %v1451_v36  ;;  %v1433_v62 = vsel %vm155_vm0, %v234_v48, 0 }
  0xee   :  { %23664 = vmatmul.mubr.f32.vlgmr.msra.gmra.mrb[0].mxu0 %v389_v31  ;;  %v224_v31 = vld [vmem:[#allocation2] sm:$0xff] }
  0xef   :  { %23688 = vmatpush3.msra.mxu0 %v28338_v39  ;;  %23666 = vmatprep.mubr.f32.mxu0 %v399_v58 }
  0xf0   :  { %23713 = vmatprep.subr.mxu0 %v28304_v28 }
  0xf2   :  { %23667 = vmatmul.mubr.f32.gmra.mrb[2].mxu0 %v409_v34  ;;  %v1403_v34 = vsel %vm155_vm0, %v224_v31, 0  ;;  %v1436_v31 = vsel %vm155_vm0, %v235_v47, 0 }
  0xf3   :  { %23669 = vmatprep.mubr.f32.mxu0 %v419_v46  ;;  %v227_v46 = vld [vmem:[#allocation2 + $0x30] sm:$0xff] }
  0xf6   :  { %23670 = vmatmul.mubr.f32.gmra.mrb[4].mxu0 %v429_v13 }
  0xf7   :  { %23672 = vmatprep.mubr.f32.mxu0 %v439_v5 }
  0xfa   :  { %23673 = vmatmul.mubr.f32.gmra.mrb[6].mxu0 %v449_v42  ;;  %v231_v42 = vld [vmem:[#allocation2 + $0x70] sm:$0xff] }
  0xfb   :  { %23675 = vmatprep.mubr.f32.mxu0 %v459_v7  ;;  %v1424_v10 = vsel %vm155_vm0, %v231_v42, 0  ;;  %v239_v42 = vld [vmem:[#allocation2 + $0x110] sm:$0xff] }
  0xfc   :  { %v28758_v60 = vand.u32 4294901760, %v1424_v10  ;;  %v1448_v47 = vsel %vm155_vm0, %v239_v42, 0 }
  0xfe   :  { %23676 = vmatmul.mubr.f32.gmra.mrb[8].mxu0 %v469_v45  ;;  %33906 = vst [vmem:[#allocation17_spill] sm:$0xff] %v28758_v60  ;;  %v28784_v55 = vsub.f32 %v1424_v10, %v28758_v60 }
  0xff   :  { %23678 = vmatprep.mubr.f32.mxu0 %v479_v2 }
 0x100   :  { %33911 = vst [vmem:[#allocation22_spill] sm:$0xff] %v28784_v55 }
 0x102   :  { %23679 = vmatmul.mubr.f32.gmra.mrb[10].mxu0 %v489_v9  ;;  %v1427_v9 = vsel %vm155_vm0, %v232_v23, 0 }
 0x103   :  { %23681 = vmatprep.mubr.f32.mxu0 %v499_v56 }
 0x106   :  { %23682 = vmatmul.mubr.f32.gmra.mrb[12].mxu0 %v509_v43  ;;  %v28750_v43 = vand.u32 4294901760, %v1427_v9 }
 0x107   :  { %23684 = vmatprep.mubr.f32.mxu0 %v519_v61 }
 0x108   :  { %v28772_v6 = vsub.f32 %v1427_v9, %v28750_v43 }
 0x10a   :  { %23685 = vmatmul.mubr.f32.gmra.mrb[14].mxu0 %v529_v1 }
 0x10b   :  { %23689 = vmatprep.mubr.f32.mxu0 %v28306_v29 }
 0x10e   :  { %23690 = vmatmul.mubr.f32.vlgmr.msra.gmra.mrb[0].mxu0 %v28413_v15 }
 0x10f   :  { %23714 = vmatpush3.msra.mxu0 %v28304_v28  ;;  %23692 = vmatprep.mubr.f32.mxu0 %v28433_v32  ;;  %v28666_v28 = vsub.f32 %v1451_v36, %v28651_v38 }
 0x110   :  { %23739 = vmatprep.subr.mxu0 %v28651_v38 }
 0x111   :  { %v28671_v39 = vand.u32 4294901760, %v28666_v28 }
 0x112   :  { %23693 = vmatmul.mubr.f32.gmra.mrb[2].mxu0 %v28410_v12 }
 0x113   :  { %23695 = vmatprep.mubr.f32.mxu0 %v28427_v25  ;;  %v1683_v18 = vsub.f32 %v28666_v28, %v28671_v39 }
 0x115   :  { %v28679_v20 = vand.u32 4294901760, %v1683_v18  ;;  %v28790_v18 = vand.u32 4294901760, %v1433_v62 }
 0x116   :  { %23696 = vmatmul.mubr.f32.gmra.mrb[4].mxu0 %v28458_v59 }
 0x117   :  { %23698 = vmatprep.mubr.f32.mxu0 %v28451_v51  ;;  %33912 = vst [vmem:[#allocation23_spill] sm:$0xff] %v28790_v18 }
 0x11a   :  { %23699 = vmatmul.mubr.f32.gmra.mrb[6].mxu0 %v28487_v14 }
 0x11b   :  { %23701 = vmatprep.mubr.f32.mxu0 %v28429_v26 }
 0x11e   :  { %23702 = vmatmul.mubr.f32.gmra.mrb[8].mxu0 %v28483_v8 }
 0x11f   :  { %23704 = vmatprep.mubr.f32.mxu0 %v28513_v44 }
 0x122   :  { %23705 = vmatmul.mubr.f32.gmra.mrb[10].mxu0 %v28507_v30 }
 0x123   :  { %23707 = vmatprep.mubr.f32.mxu0 %v28530_v4 }
 0x126   :  { %23708 = vmatmul.mubr.f32.gmra.mrb[12].mxu0 %v28527_v0 }
 0x127   :  { %23710 = vmatprep.mubr.f32.mxu0 %v28550_v24 }
 0x12a   :  { %23711 = vmatmul.mubr.f32.gmra.mrb[14].mxu0 %v28547_v22 }
 0x12b   :  { %23715 = vmatprep.mubr.f32.mxu0 %v28306_v29  ;;  %v28690_v29 = vand.u32 4294901760, %v1403_v34 }
 0x12e   :  { %23716 = vmatmul.mubr.f32.vlgmr.msra.gmra.mrb[0].mxu0 %v28413_v15  ;;  %v226_v15 = vld [vmem:[#allocation2 + $0x20] sm:$0xff] }
 0x12f   :  { %23740 = vmatpush3.msra.mxu0 %v28651_v38  ;;  %23718 = vmatprep.mubr.f32.mxu0 %v28433_v32  ;;  %v1409_v32 = vsel %vm155_vm0, %v226_v15, 0 }
 0x130   :  { %23765 = vmatprep.subr.mxu0 %v28679_v20  ;;  %v28701_v58 = vand.u32 4294901760, %v1409_v32 }
 0x132   :  { %23719 = vmatmul.mubr.f32.gmra.mrb[2].mxu0 %v28410_v12  ;;  %v28697_v12 = vsub.f32 %v1403_v34, %v28690_v29  ;;  %v1439_v34 = vsel %vm155_vm0, %v236_v49, 0 }
 0x133   :  { %23721 = vmatprep.mubr.f32.mxu0 %v28427_v25  ;;  %v28699_v25 = vand.u32 4294901760, %v1406_v37 }
 0x135   :  { %v28709_v5 = vsub.f32 %v1406_v37, %v28699_v25  ;;  %v33776_v37 = vand.u32 4294901760, %v28772_v6 }
 0x136   :  { %23722 = vmatmul.mubr.f32.gmra.mrb[4].mxu0 %v28458_v59  ;;  %v229_v59 = vld [vmem:[#allocation2 + $0x50] sm:$0xff] }
 0x137   :  { %23724 = vmatprep.mubr.f32.mxu0 %v28451_v51  ;;  %v1412_v51 = vsel %vm155_vm0, %v227_v46, 0  ;;  %33893 = vst [vmem:[#allocation4_spill] sm:$0xff] %v28709_v5  ;;  %v1418_v13 = vsel %vm155_vm0, %v229_v59, 0  ;;  %v28726_v45 = vand.u32 4294901760, %v28709_v5  ;;  %v238_v46 = vld [vmem:[#allocation2 + $0x100] sm:$0xff]  ;;  %v28808_v59 = vand.u32 4294901760, %v28784_v55 }
 0x138   :  { %v28711_v7 = vand.u32 4294901760, %v1412_v51  ;;  %v28728_v40 = vand.u32 4294901760, %v1418_v13  ;;  %v1445_v23 = vsel %vm155_vm0, %v238_v46, 0  ;;  %v1602_v9 = vsub.f32 %v28772_v6, %v33776_v37 }
 0x139   :  { %33897 = vst [vmem:[#allocation8_spill] sm:$0xff] %v28726_v45  ;;  %v1532_v27 = vsub.f32 %v28709_v5, %v28726_v45  ;;  %33914 = vst [vmem:[#allocation25_spill] sm:$0xff] %v28808_v59 }
 0x13a   :  { %23725 = vmatmul.mubr.f32.gmra.mrb[6].mxu0 %v28487_v14  ;;  %33894 = vst [vmem:[#allocation5_spill] sm:$0xff] %v28711_v7  ;;  %v28715_v14 = vsub.f32 %v1409_v32, %v28701_v58  ;;  %33898 = vst [vmem:[#allocation9_spill] sm:$0xff] %v28728_v40  ;;  %v28731_v57 = vsub.f32 %v1412_v51, %v28711_v7  ;;  %v28748_v33 = vsub.f32 %v1418_v13, %v28728_v40 }
 0x13b   :  { %23727 = vmatprep.mubr.f32.mxu0 %v28429_v26  ;;  %v33777_v26 = vand.u32 4294901760, %v28697_v12  ;;  %v28776_v17 = vand.u32 4294901760, %v1532_v27  ;;  %v28818_v13 = vand.u32 4294901760, %v1439_v34  ;;  %v1603_v49 = vand.u32 4294901760, %v1602_v9 }
 0x13c   :  { %33895 = vst [vmem:[#allocation6_spill] sm:$0xff] %v28715_v14  ;;  %33899 = vst [vmem:[#allocation10_spill] sm:$0xff] %v28731_v57  ;;  %v28753_v53 = vand.u32 4294901760, %v28731_v57  ;;  %v28769_v1 = vand.u32 4294901760, %v28748_v33 }
 0x13d   :  { %33903 = vst [vmem:[#allocation14_spill] sm:$0xff] %v28748_v33  ;;  %33917 = vst [vmem:[#allocation28_spill] sm:$0xff] %v28818_v13 }
 0x13e   :  { %23728 = vmatmul.mubr.f32.gmra.mrb[8].mxu0 %v28483_v8  ;;  %v1421_v8 = vsel %vm155_vm0, %v230_v50, 0  ;;  %33904 = vst [vmem:[#allocation15_spill] sm:$0xff] %v28753_v53  ;;  %33908 = vst [vmem:[#allocation19_spill] sm:$0xff] %v28769_v1  ;;  %v1552_v21 = vsub.f32 %v28731_v57, %v28753_v53  ;;  %v1572_v15 = vsub.f32 %v28748_v33, %v28769_v1 }
 0x13f   :  { %23730 = vmatprep.mubr.f32.mxu0 %v28513_v44  ;;  %v1522_v44 = vsub.f32 %v28697_v12, %v33777_v26  ;;  %v28733_v2 = vand.u32 4294901760, %v1421_v8  ;;  %v28816_v50 = vsub.f32 %v1433_v62, %v28790_v18  ;;  %v28847_v62 = vand.u32 4294901760, %v1445_v23 }
 0x140   :  { %v28803_v52 = vand.u32 4294901760, %v1552_v21 }
 0x141   :  { %33900 = vst [vmem:[#allocation11_spill] sm:$0xff] %v28733_v2  ;;  %v1523_v56 = vand.u32 4294901760, %v1522_v44  ;;  %v28756_v54 = vsub.f32 %v1421_v8, %v28733_v2  ;;  %33916 = vst [vmem:[#allocation27_spill] sm:$0xff] %v28816_v50  ;;  %v1442_v8 = vsel %vm155_vm0, %v237_v41, 0  ;;  %v28824_v44 = vand.u32 4294901760, %v1572_v15 }
 0x142   :  { %23731 = vmatmul.mubr.f32.gmra.mrb[10].mxu0 %v28507_v30  ;;  %v28737_v30 = vand.u32 4294901760, %v28715_v14  ;;  %v28839_v48 = vand.u32 4294901760, %v1442_v8  ;;  %33923 = vst [vmem:[#allocation34_spill] sm:$0xff] %v28847_v62  ;;  %v28862_v41 = vand.u32 4294901760, %v1448_v47 }
 0x143   :  { %23733 = vmatprep.mubr.f32.mxu0 %v28530_v4  ;;  %v28740_v4 = vsub.f32 %v1415_v63, %v28717_v19  ;;  %33905 = vst [vmem:[#allocation16_spill] sm:$0xff] %v28756_v54 }
 0x144   :  { %33901 = vst [vmem:[#allocation12_spill] sm:$0xff] %v28737_v30  ;;  %33920 = vst [vmem:[#allocation31_spill] sm:$0xff] %v28839_v48 }
 0x145   :  { %33902 = vst [vmem:[#allocation13_spill] sm:$0xff] %v28740_v4  ;;  %v28764_v61 = vand.u32 4294901760, %v28740_v4  ;;  %33926 = vst [vmem:[#allocation37_spill] sm:$0xff] %v28862_v41 }
 0x146   :  { %23734 = vmatmul.mubr.f32.gmra.mrb[12].mxu0 %v28527_v0  ;;  %v1430_v0 = vsel %vm155_vm0, %v233_v16, 0 }
 0x147   :  { %23736 = vmatprep.mubr.f32.mxu0 %v28550_v24  ;;  %v1542_v24 = vsub.f32 %v28715_v14, %v28737_v30  ;;  %33907 = vst [vmem:[#allocation18_spill] sm:$0xff] %v28764_v61  ;;  %v28774_v11 = vand.u32 4294901760, %v1430_v0  ;;  %v1562_v36 = vsub.f32 %v28740_v4, %v28764_v61 }
 0x149   :  { %33909 = vst [vmem:[#allocation20_spill] sm:$0xff] %v28774_v11  ;;  %v28786_v35 = vand.u32 4294901760, %v1542_v24  ;;  %v28801_v32 = vsub.f32 %v1430_v0, %v28774_v11  ;;  %v28813_v63 = vand.u32 4294901760, %v1562_v36  ;;  %v28842_v0 = vand.u32 4294901760, %v28816_v50 }
 0x14a   :  { %23737 = vmatmul.mubr.f32.gmra.mrb[14].mxu0 %v28547_v22  ;;  %v28781_v22 = vand.u32 4294901760, %v28756_v54  ;;  %v28845_v24 = vsub.f32 %v1439_v34, %v28818_v13  ;;  %v28860_v34 = vsub.f32 %v1442_v8, %v28839_v48 }
 0x14b   :  { %23741 = vmatprep.mubr.f32.mxu0 %v1523_v56  ;;  %33913 = vst [vmem:[#allocation24_spill] sm:$0xff] %v28801_v32  ;;  %v28830_v10 = vand.u32 4294901760, %v28801_v32  ;;  %v1592_v56 = vsub.f32 %v28784_v55, %v28808_v59  ;;  %33921 = vst [vmem:[#allocation32_spill] sm:$0xff] %v28842_v0  ;;  %v1622_v15 = vsub.f32 %v28816_v50, %v28842_v0 }
 0x14c   :  { %33910 = vst [vmem:[#allocation21_spill] sm:$0xff] %v28781_v22  ;;  %v1582_v51 = vsub.f32 %v28756_v54, %v28781_v22  ;;  %33922 = vst [vmem:[#allocation33_spill] sm:$0xff] %v28845_v24  ;;  %v28867_v46 = vand.u32 4294901760, %v28845_v24  ;;  %v28878_v9 = vand.u32 4294901760, %v28860_v34 }
 0x14d   :  { %33918 = vst [vmem:[#allocation29_spill] sm:$0xff] %v28830_v10  ;;  %v1612_v21 = vsub.f32 %v28801_v32, %v28830_v10  ;;  %v28854_v36 = vand.u32 4294901760, %v1592_v56  ;;  %33925 = vst [vmem:[#allocation36_spill] sm:$0xff] %v28860_v34  ;;  %v28881_v56 = vsub.f32 %v1448_v47, %v28862_v41  ;;  %v28883_v3 = vand.u32 4294901760, %v1622_v15 }
 0x14e   :  { %23742 = vmatmul.mubr.f32.vlgmr.msra.gmra.mrb[0].mxu0 %v28776_v17  ;;  %v28832_v16 = vand.u32 4294901760, %v1582_v51  ;;  %33927 = vst [vmem:[#allocation38_spill] sm:$0xff] %v28867_v46  ;;  %v28870_v51 = vsub.f32 %v1445_v23, %v28847_v62  ;;  %33930 = vst [vmem:[#allocation41_spill] sm:$0xff] %v28878_v9  ;;  %v1642_v23 = vsub.f32 %v28845_v24, %v28867_v46 }
 0x14f   :  { %23766 = vmatpush3.msra.mxu0 %v28679_v20  ;;  %23744 = vmatprep.mubr.f32.mxu0 %v28786_v35  ;;  %v28810_v20 = vand.u32 4294901760, %v1436_v31  ;;  %v28873_v42 = vand.u32 4294901760, %v1612_v21  ;;  %33931 = vst [vmem:[#allocation42_spill] sm:$0xff] %v28881_v56  ;;  %33932 = vst [vmem:[#allocation43_spill] sm:$0xff] %v28883_v3  ;;  %v1652_v21 = vsub.f32 %v28860_v34, %v28878_v9  ;;  %v28897_v47 = vand.u32 4294901760, %v28881_v56 }
 0x150   :  { %23791 = vmatprep.subr.mxu0 %v28666_v28  ;;  %33928 = vst [vmem:[#allocation39_spill] sm:$0xff] %v28870_v51  ;;  %v28888_v37 = vand.u32 4294901760, %v28870_v51  ;;  %v28899_v15 = vand.u32 4294901760, %v1642_v23 }
 0x151   :  { %33915 = vst [vmem:[#allocation26_spill] sm:$0xff] %v28810_v20  ;;  %v28837_v27 = vsub.f32 %v1436_v31, %v28810_v20  ;;  %33929 = vst [vmem:[#allocation40_spill] sm:$0xff] %v28873_v42 }
 0x152   :  { %23745 = vmatmul.mubr.f32.gmra.mrb[2].mxu0 %v28803_v52  ;;  %33933 = vst [vmem:[#allocation44_spill] sm:$0xff] %v28888_v37  ;;  %33934 = vst [vmem:[#allocation45_spill] sm:$0xff] %v28897_v47  ;;  %v1662_v26 = vsub.f32 %v28870_v51, %v28888_v37 }
 0x153   :  { %23747 = vmatprep.mubr.f32.mxu0 %v28813_v63  ;;  %33919 = vst [vmem:[#allocation30_spill] sm:$0xff] %v28837_v27  ;;  %v28857_v31 = vand.u32 4294901760, %v28837_v27 }
 0x155   :  { %33924 = vst [vmem:[#allocation35_spill] sm:$0xff] %v28857_v31  ;;  %v1632_v8 = vsub.f32 %v28837_v27, %v28857_v31 }
 0x156   :  { %23748 = vmatmul.mubr.f32.gmra.mrb[4].mxu0 %v28824_v44 }
 0x157   :  { %23750 = vmatprep.mubr.f32.mxu0 %v28832_v16 }
 0x15a   :  { %23751 = vmatmul.mubr.f32.gmra.mrb[6].mxu0 %v28854_v36 }
 0x15b   :  { %23753 = vmatprep.mubr.f32.mxu0 %v1603_v49  ;;  %v28892_v49 = vand.u32 4294901760, %v1632_v8  ;;  %v1672_v8 = vsub.f32 %v28881_v56, %v28897_v47 }
 0x15d   :  { %v28913_v23 = vand.u32 4294901760, %v1672_v8 }
 0x15e   :  { %23754 = vmatmul.mubr.f32.gmra.mrb[8].mxu0 %v28873_v42  ;;  %v28905_v42 = vand.u32 4294901760, %v1652_v21  ;;  %v21722_v21 = vld [vmem:[%s33766_s0 + $0x78] sm:$0xff] }
 0x15f   :  { %23756 = vmatprep.mubr.f32.mxu0 %v28883_v3  ;;  %v28909_v3 = vand.u32 4294901760, %v1662_v26 }
 0x162   :  { %23757 = vmatmul.mubr.f32.gmra.mrb[10].mxu0 %v28892_v49 }
 0x163   :  { %23759 = vmatprep.mubr.f32.mxu0 %v28899_v15 }
 0x166   :  { %23760 = vmatmul.mubr.f32.gmra.mrb[12].mxu0 %v28905_v42 }
 0x167   :  { %23762 = vmatprep.mubr.f32.mxu0 %v28909_v3 }
 0x16a   :  { %23763 = vmatmul.mubr.f32.gmra.mrb[14].mxu0 %v28913_v23 }
 0x16b   :  { %23767 = vmatprep.mubr.f32.mxu0 %v28690_v29 }
 0x16e   :  { %23768 = vmatmul.mubr.f32.vlgmr.msra.gmra.mrb[0].mxu0 %v28699_v25 }
 0x16f   :  { %23792 = vmatpush3.msra.mxu0 %v28666_v28  ;;  %23770 = vmatprep.mubr.f32.mxu0 %v28701_v58  ;;  %v33935_v28 = vand.u32 4294901760, %v28697_v12 }
 0x170   :  { %23817 = vmatprep.subr.mxu0 %v28651_v38 }
 0x172   :  { %23771 = vmatmul.mubr.f32.gmra.mrb[2].mxu0 %v28711_v7 }
 0x173   :  { %23773 = vmatprep.mubr.f32.mxu0 %v28717_v19 }
 0x176   :  { %23774 = vmatmul.mubr.f32.gmra.mrb[4].mxu0 %v28728_v40 }
 0x177   :  { %23776 = vmatprep.mubr.f32.mxu0 %v28733_v2 }
 0x17a   :  { %23777 = vmatmul.mubr.f32.gmra.mrb[6].mxu0 %v28758_v60 }
 0x17b   :  { %23779 = vmatprep.mubr.f32.mxu0 %v28750_v43 }
 0x17e   :  { %23780 = vmatmul.mubr.f32.gmra.mrb[8].mxu0 %v28774_v11 }
 0x17f   :  { %23782 = vmatprep.mubr.f32.mxu0 %v28790_v18 }
 0x182   :  { %23783 = vmatmul.mubr.f32.gmra.mrb[10].mxu0 %v28810_v20 }
 0x183   :  { %23785 = vmatprep.mubr.f32.mxu0 %v28818_v13 }
 0x186   :  { %23786 = vmatmul.mubr.f32.gmra.mrb[12].mxu0 %v28839_v48 }
 0x187   :  { %23788 = vmatprep.mubr.f32.mxu0 %v28847_v62 }
 0x18a   :  { %23789 = vmatmul.mubr.f32.gmra.mrb[14].mxu0 %v28862_v41 }
 0x18b   :  { %23793 = vmatprep.mubr.f32.mxu0 %v28697_v12  ;;  %v33936_v12 = vand.u32 4294901760, %v28772_v6 }
 0x18e   :  { %23794 = vmatmul.mubr.f32.vlgmr.msra.gmra.mrb[0].mxu0 %v28709_v5  ;;  %v2556_v5 = vld [vmem:[#allocation2 + $0xe2] sm:$0xff] }
 0x18f   :  { %23818 = vmatpush3.msra.mxu0 %v28651_v38  ;;  %23796 = vmatprep.mubr.f32.mxu0 %v28715_v14 }
 0x190   :  { %23843 = vmatprep.subr.mxu0 %v28671_v39 }
 0x192   :  { %23797 = vmatmul.mubr.f32.gmra.mrb[2].mxu0 %v28731_v57 }
 0x193   :  { %23799 = vmatprep.mubr.f32.mxu0 %v28740_v4 }
 0x196   :  { %23800 = vmatmul.mubr.f32.gmra.mrb[4].mxu0 %v28748_v33 }
 0x197   :  { %23802 = vmatprep.mubr.f32.mxu0 %v28756_v54 }
 0x19a   :  { %23803 = vmatmul.mubr.f32.gmra.mrb[6].mxu0 %v28784_v55 }
 0x19b   :  { %23805 = vmatprep.mubr.f32.mxu0 %v28772_v6  ;;  %v33_v6 = vld [vmem:[%s33766_s0 + $0x70] sm:$0xff] }
 0x19e   :  { %23806 = vmatmul.mubr.f32.gmra.mrb[8].mxu0 %v28801_v32  ;;  %v2553_v32 = vld [vmem:[#allocation2 + $0xb2] sm:$0xff] }
 0x19f   :  { %23808 = vmatprep.mubr.f32.mxu0 %v28816_v50 }
 0x1a2   :  { %23809 = vmatmul.mubr.f32.gmra.mrb[10].mxu0 %v28837_v27 }
 0x1a3   :  { %23811 = vmatprep.mubr.f32.mxu0 %v28845_v24 }
 0x1a6   :  { %23812 = vmatmul.mubr.f32.gmra.mrb[12].mxu0 %v28860_v34 }
 0x1a7   :  { %23814 = vmatprep.mubr.f32.mxu0 %v28870_v51 }
 0x1aa   :  { %23815 = vmatmul.mubr.f32.gmra.mrb[14].mxu0 %v28881_v56  ;;  %v2551_v56 = vld [vmem:[#allocation2 + $0x72] sm:$0xff] }
 0x1ab   :  { %23819 = vmatprep.mubr.f32.mxu0 %v33935_v28  ;;  %v28985_v28 = vmax.f32 %v33_v6, %v21722_v21  ;;  %v2584_v50 = vsel %vm155_vm0, %v2551_v56, 0  ;;  %v2590_v56 = vsel %vm155_vm0, %v2553_v32, 0 }
 0x1ac   :  { %v29096_v54 = vand.u32 4294901760, %v2584_v50  ;;  %v29112_v32 = vand.u32 4294901760, %v2590_v56 }
 0x1ad   :  { %105 = vrot.lane.b32.xlu0 %v28985_v28, %s28094_s17 }
 0x1ae   :  { %23820 = vmatmul.mubr.f32.vlgmr.msra.gmra.mrb[0].mxu0 %v28726_v45  ;;  %v2552_v45 = vld [vmem:[#allocation2 + $0xa2] sm:$0xff] }
 0x1af   :  { %23844 = vmatpush3.msra.mxu0 %v28671_v39  ;;  %23822 = vmatprep.mubr.f32.mxu0 %v28737_v30  ;;  %v21732_v39 = vld [vmem:[%s33767_s1 + $0x8] sm:$0xf]  ;;  %v2587_v34 = vsel %vm155_vm0, %v2552_v45, 0 }
 0x1b0   :  { %23869 = vmatprep.subr.mxu0 %v28651_v38  ;;  %v2611_v26 = vsel %vm307_vm3, %v21732_v39, 0  ;;  %v29090_v45 = vand.u32 4294901760, %v2587_v34 }
 0x1b1   :  { %v28983_v8 = vand.u32 4294901760, %v2611_v26 }
 0x1b2   :  { %23823 = vmatmul.mubr.f32.gmra.mrb[2].mxu0 %v28753_v53  ;;  %v29110_v14 = vsub.f32 %v2587_v34, %v29090_v45 }
 0x1b3   :  { %23825 = vmatprep.mubr.f32.mxu0 %v28764_v61  ;;  %v29012_v6 = vsub.f32 %v2611_v26, %v28983_v8 }
 0x1b5   :  { %v29017_v21 = vand.u32 4294901760, %v29012_v6 }
 0x1b6   :  { %23826 = vmatmul.mubr.f32.gmra.mrb[4].mxu0 %v28769_v1  ;;  %v2549_v1 = vld [vmem:[#allocation2 + $0x52] sm:$0xff] }
 0x1b7   :  { %23828 = vmatprep.mubr.f32.mxu0 %v28781_v22  ;;  %v2578_v53 = vsel %vm155_vm0, %v2549_v1, 0 }
 0x1b8   :  { %v29071_v51 = vand.u32 4294901760, %v2578_v53 }
 0x1ba   :  { %23829 = vmatmul.mubr.f32.gmra.mrb[6].mxu0 %v28808_v59 }
 0x1bb   :  { %23831 = vmatprep.mubr.f32.mxu0 %v33936_v12  ;;  %v21730_v12 = vld [vmem:[%s33766_s0 + $0xf8] sm:$0xff] }
 0x1be   :  { %23832 = vmatmul.mubr.f32.gmra.mrb[8].mxu0 %v28830_v10 }
 0x1bf   :  { %23834 = vmatprep.mubr.f32.mxu0 %v28842_v0 }
 0x1c2   :  { %23835 = vmatmul.mubr.f32.gmra.mrb[10].mxu0 %v28857_v31  ;;  %v2547_v31 = vld [vmem:[#allocation2 + $0x32] sm:$0xff] }
 0x1c3   :  { %23837 = vmatprep.mubr.f32.mxu0 %v28867_v46  ;;  %v2572_v22 = vsel %vm155_vm0, %v2547_v31, 0 }
 0x1c4   :  { %v29057_v61 = vand.u32 4294901760, %v2572_v22 }
 0x1c6   :  { %23838 = vmatmul.mubr.f32.gmra.mrb[12].mxu0 %v28878_v9 }
 0x1c7   :  { %23840 = vmatprep.mubr.f32.mxu0 %v28888_v37  ;;  %v2546_v37 = vld [vmem:[#allocation2 + $0x22] sm:$0xff] }
 0x1c8   :  { %v2569_v46 = vsel %vm155_vm0, %v2546_v37, 0 }
 0x1c9   :  { %v29047_v59 = vand.u32 4294901760, %v2569_v46 }
 0x1ca   :  { %23841 = vmatmul.mubr.f32.gmra.mrb[14].mxu0 %v28897_v47 }
 0x1cb   :  { %23845 = vmatprep.mubr.f32.mxu0 %v28690_v29  ;;  %v29061_v30 = vsub.f32 %v2569_v46, %v29047_v59  ;;  %v29075_v46 = vsub.f32 %v2572_v22, %v29057_v61  ;;  %v29088_v22 = vsub.f32 %v2578_v53, %v29071_v51 }
 0x1cd   :  { %v33938_v33 = vand.u32 4294901760, %v29061_v30 }
 0x1ce   :  { %23846 = vmatmul.mubr.f32.vlgmr.msra.gmra.mrb[0].mxu0 %v28699_v25 }
 0x1cf   :  { %23870 = vmatpush3.msra.mxu0 %v28651_v38  ;;  %23848 = vmatprep.mubr.f32.mxu0 %v28701_v58  ;;  %v41_v38 = vld [vmem:[%s33766_s0 + $0xf0] sm:$0xff]  ;;  %v2702_v4 = vsub.f32 %v29061_v30, %v33938_v33 }
 0x1d0   :  { %23895 = vmatprep.subr.mxu0 %v28983_v8  ;;  %v29005_v39 = vmax.f32 %v41_v38, %v21730_v12  ;;  %v2843_v38 = vsub.f32 %v29012_v6, %v29017_v21  ;;  %v2544_v12 = vld [vmem:[#allocation2 + $0x2] sm:$0xff] }
 0x1d1   :  { %v2563_v47 = vsel %vm155_vm0, %v2544_v12, 0  ;;  %v2548_v12 = vld [vmem:[#allocation2 + $0x42] sm:$0xff] }
 0x1d2   :  { %23849 = vmatmul.mubr.f32.gmra.mrb[2].mxu0 %v28711_v7  ;;  %121 = vrot.lane.b32.xlu1 %v29005_v39, %s28094_s17  ;;  %v29025_v26 = vand.u32 4294901760, %v2843_v38  ;;  %v29036_v38 = vand.u32 4294901760, %v2563_v47 }
 0x1d3   :  { %23851 = vmatprep.mubr.f32.mxu0 %v28717_v19 }
 0x1d4   :  { %v29043_v0 = vsub.f32 %v2563_v47, %v29036_v38 }
 0x1d6   :  { %23852 = vmatmul.mubr.f32.gmra.mrb[4].mxu0 %v28728_v40  ;;  %v33801_v37 = vand.u32 4294901760, %v29043_v0 }
 0x1d7   :  { %23854 = vmatprep.mubr.f32.mxu0 %v28733_v2 }
 0x1da   :  { %23855 = vmatmul.mubr.f32.gmra.mrb[6].mxu0 %v28758_v60 }
 0x1db   :  { %23857 = vmatprep.mubr.f32.mxu0 %v28750_v43 }
 0x1de   :  { %23858 = vmatmul.mubr.f32.gmra.mrb[8].mxu0 %v28774_v11 }
 0x1df   :  { %23860 = vmatprep.mubr.f32.mxu0 %v28790_v18 }
 0x1e2   :  { %23861 = vmatmul.mubr.f32.gmra.mrb[10].mxu0 %v28810_v20 }
 0x1e3   :  { %23863 = vmatprep.mubr.f32.mxu0 %v28818_v13 }
 0x1e6   :  { %23864 = vmatmul.mubr.f32.gmra.mrb[12].mxu0 %v28839_v48 }
 0x1e7   :  { %23866 = vmatprep.mubr.f32.mxu0 %v28847_v62 }
 0x1ea   :  { %23867 = vmatmul.mubr.f32.gmra.mrb[14].mxu0 %v28862_v41 }
 0x1eb   :  { %23871 = vmatprep.mubr.f32.mxu0 %v28690_v29  ;;  %v2545_v29 = vld [vmem:[#allocation2 + $0x12] sm:$0xff] }
 0x1ec   :  { %v2566_v9 = vsel %vm155_vm0, %v2545_v29, 0  ;;  %v2575_v29 = vsel %vm155_vm0, %v2548_v12, 0 }
 0x1ed   :  { %v29045_v10 = vand.u32 4294901760, %v2566_v9  ;;  %v29063_v31 = vand.u32 4294901760, %v2575_v29 }
 0x1ee   :  { %23872 = vmatmul.mubr.f32.vlgmr.msra.gmra.mrb[0].mxu0 %v28699_v25 }
 0x1ef   :  { %23896 = vmatpush3.msra.mxu0 %v28983_v8  ;;  %23874 = vmatprep.mubr.f32.mxu0 %v28701_v58  ;;  %v29055_v47 = vsub.f32 %v2566_v9, %v29045_v10  ;;  %v2682_v9 = vsub.f32 %v29043_v0, %v33801_v37  ;;  %v2554_v37 = vld [vmem:[#allocation2 + $0xc2] sm:$0xff] }
 0x1f0   :  { %23921 = vmatprep.subr.mxu0 %v29025_v26  ;;  %v2593_v57 = vsel %vm155_vm0, %v2554_v37, 0 }
 0x1f1   :  { %v2683_v1 = vand.u32 4294901760, %v2682_v9  ;;  %v33937_v24 = vand.u32 4294901760, %v29055_v47  ;;  %v33939_v9 = vand.u32 4294901760, %v29075_v46  ;;  %v29120_v37 = vand.u32 4294901760, %v2593_v57 }
 0x1f2   :  { %23875 = vmatmul.mubr.f32.gmra.mrb[2].mxu0 %v28711_v7 }
 0x1f3   :  { %23877 = vmatprep.mubr.f32.mxu0 %v28717_v19 }
 0x1f6   :  { %23878 = vmatmul.mubr.f32.gmra.mrb[4].mxu0 %v28728_v40 }
 0x1f7   :  { %23880 = vmatprep.mubr.f32.mxu0 %v28733_v2 }
 0x1fa   :  { %23881 = vmatmul.mubr.f32.gmra.mrb[6].mxu0 %v28758_v60 }
 0x1fb   :  { %23883 = vmatprep.mubr.f32.mxu0 %v28750_v43  ;;  %v2550_v43 = vld [vmem:[#allocation2 + $0x62] sm:$0xff] }
 0x1fc   :  { %v2581_v12 = vsel %vm155_vm0, %v2550_v43, 0  ;;  %v29080_v43 = vsub.f32 %v2575_v29, %v29063_v31  ;;  %v2692_v29 = vsub.f32 %v29055_v47, %v33937_v24  ;;  %v2555_v24 = vld [vmem:[#allocation2 + $0xd2] sm:$0xff] }
 0x1fd   :  { %v29082_v27 = vand.u32 4294901760, %v2581_v12 }
 0x1fe   :  { %23884 = vmatmul.mubr.f32.gmra.mrb[8].mxu0 %v28774_v11  ;;  %v2693_v33 = vand.u32 4294901760, %v2692_v29  ;;  %v2599_v29 = vsel %vm155_vm0, %v2556_v5, 0 }
 0x1ff   :  { %23886 = vmatprep.mubr.f32.mxu0 %v28790_v18  ;;  %v29104_v53 = vsub.f32 %v2581_v12, %v29082_v27  ;;  %v2712_v12 = vsub.f32 %v29075_v46, %v33939_v9  ;;  %v33943_v18 = vand.u32 4294901760, %v29110_v14 }
 0x201   :  { %v2713_v34 = vand.u32 4294901760, %v2712_v12  ;;  %v2762_v11 = vsub.f32 %v29110_v14, %v33943_v18 }
 0x202   :  { %23887 = vmatmul.mubr.f32.gmra.mrb[10].mxu0 %v28810_v20  ;;  %v29134_v20 = vsub.f32 %v2590_v56, %v29112_v32 }
 0x203   :  { %23889 = vmatprep.mubr.f32.mxu0 %v28818_v13  ;;  %v2557_v13 = vld [vmem:[#allocation2 + $0xf2] sm:$0xff] }
 0x204   :  { %v2602_v56 = vsel %vm155_vm0, %v2557_v13, 0 }
 0x206   :  { %23890 = vmatmul.mubr.f32.gmra.mrb[12].mxu0 %v28839_v48  ;;  %v2596_v48 = vsel %vm155_vm0, %v2555_v24, 0  ;;  %v2559_v24 = vld [vmem:[#allocation2 + $0x112] sm:$0xff] }
 0x207   :  { %23892 = vmatprep.mubr.f32.mxu0 %v28847_v62  ;;  %v29118_v62 = vsub.f32 %v2584_v50, %v29096_v54  ;;  %v33941_v50 = vand.u32 4294901760, %v29088_v22  ;;  %v29140_v5 = vand.u32 4294901760, %v2596_v48  ;;  %v2608_v18 = vsel %vm155_vm0, %v2559_v24, 0 }
 0x209   :  { %v2732_v9 = vsub.f32 %v29088_v22, %v33941_v50  ;;  %v33944_v60 = vand.u32 4294901760, %v29118_v62  ;;  %v29159_v13 = vsub.f32 %v2596_v48, %v29140_v5 }
 0x20a   :  { %23893 = vmatmul.mubr.f32.gmra.mrb[14].mxu0 %v28862_v41  ;;  %v2703_v41 = vand.u32 4294901760, %v2702_v4  ;;  %v29146_v4 = vand.u32 4294901760, %v2599_v29 }
 0x20b   :  { %23897 = vmatprep.mubr.f32.mxu0 %v2683_v1  ;;  %v33940_v1 = vand.u32 4294901760, %v29080_v43  ;;  %v33833_v48 = vand.u32 4294901760, %v29159_v13 }
 0x20d   :  { %v2722_v55 = vsub.f32 %v29080_v43, %v33940_v1  ;;  %v2558_v1 = vld [vmem:[#allocation2 + $0x102] sm:$0xff] }
 0x20e   :  { %23898 = vmatmul.mubr.f32.vlgmr.msra.gmra.mrb[0].mxu0 %v2693_v33  ;;  %v29138_v33 = vsub.f32 %v2593_v57, %v29120_v37  ;;  %v2605_v12 = vsel %vm155_vm0, %v2558_v1, 0  ;;  %v2733_v57 = vand.u32 4294901760, %v2732_v9  ;;  %v29164_v9 = vsub.f32 %v2599_v29, %v29146_v4 }
 0x20f   :  { %23922 = vmatpush3.msra.mxu0 %v29025_v26  ;;  %23900 = vmatprep.mubr.f32.mxu0 %v2703_v41  ;;  %v2723_v41 = vand.u32 4294901760, %v2722_v55  ;;  %v33942_v26 = vand.u32 4294901760, %v29104_v53  ;;  %v2763_v55 = vand.u32 4294901760, %v2762_v11 }
 0x210   :  { %23947 = vmatprep.subr.mxu0 %v29012_v6  ;;  %v33946_v29 = vand.u32 4294901760, %v29138_v33  ;;  %v2801_v24 = vand.u32 4294901760, %v29164_v9 }
 0x211   :  { %v2742_v50 = vsub.f32 %v29104_v53, %v33942_v26  ;;  %v2752_v26 = vsub.f32 %v29118_v62, %v33944_v60  ;;  %v33945_v60 = vand.u32 4294901760, %v29134_v20 }
 0x212   :  { %23901 = vmatmul.mubr.f32.gmra.mrb[2].mxu0 %v2713_v34  ;;  %v29161_v34 = vand.u32 4294901760, %v2602_v56  ;;  %v2782_v7 = vsub.f32 %v29138_v33, %v33946_v29  ;;  %v2802_v29 = vsub.f32 %v29164_v9, %v2801_v24 }
 0x213   :  { %23903 = vmatprep.mubr.f32.mxu0 %v2723_v41  ;;  %v2743_v1 = vand.u32 4294901760, %v2742_v50  ;;  %v29166_v41 = vand.u32 4294901760, %v2605_v12  ;;  %v2772_v2 = vsub.f32 %v29134_v20, %v33945_v60  ;;  %v2753_v40 = vand.u32 4294901760, %v2752_v26 }
 0x214   :  { %v29174_v19 = vsub.f32 %v2602_v56, %v29161_v34  ;;  %v29176_v50 = vand.u32 4294901760, %v2608_v18  ;;  %v2792_v26 = vsub.f32 %v29159_v13, %v33833_v48  ;;  %v2783_v60 = vand.u32 4294901760, %v2782_v7 }
 0x215   :  { %v29183_v11 = vsub.f32 %v2605_v12, %v29166_v41  ;;  %v2803_v48 = vand.u32 4294901760, %v2802_v29 }
 0x216   :  { %23904 = vmatmul.mubr.f32.gmra.mrb[4].mxu0 %v2733_v57  ;;  %v2773_v57 = vand.u32 4294901760, %v2772_v2  ;;  %v2811_v56 = vand.u32 4294901760, %v29174_v19 }
 0x217   :  { %23906 = vmatprep.mubr.f32.mxu0 %v2743_v1  ;;  %v29190_v1 = vsub.f32 %v2608_v18, %v29176_v50  ;;  %v2821_v12 = vand.u32 4294901760, %v29183_v11 }
 0x218   :  { %v2812_v2 = vsub.f32 %v29174_v19, %v2811_v56 }
 0x219   :  { %v2822_v7 = vsub.f32 %v29183_v11, %v2821_v12 }
 0x21a   :  { %23907 = vmatmul.mubr.f32.gmra.mrb[6].mxu0 %v2753_v40  ;;  %v2793_v40 = vand.u32 4294901760, %v2792_v26  ;;  %v2813_v18 = vand.u32 4294901760, %v2812_v2  ;;  %v33949_v2 = vand.u32 4294901760, %v29061_v30 }
 0x21b   :  { %23909 = vmatprep.mubr.f32.mxu0 %v2763_v55  ;;  %v2831_v55 = vand.u32 4294901760, %v29190_v1 }
 0x21e   :  { %23910 = vmatmul.mubr.f32.gmra.mrb[8].mxu0 %v2773_v57  ;;  %v2832_v57 = vsub.f32 %v29190_v1, %v2831_v55 }
 0x21f   :  { %23912 = vmatprep.mubr.f32.mxu0 %v2783_v60  ;;  %v2823_v60 = vand.u32 4294901760, %v2822_v7  ;;  %v33950_v7 = vand.u32 4294901760, %v29075_v46 }
 0x220   :  { %v2833_v26 = vand.u32 4294901760, %v2832_v57  ;;  %v33952_v57 = vand.u32 4294901760, %v29088_v22 }
 0x222   :  { %23913 = vmatmul.mubr.f32.gmra.mrb[10].mxu0 %v2793_v40  ;;  %v33948_v40 = vand.u32 4294901760, %v29055_v47 }
 0x223   :  { %23915 = vmatprep.mubr.f32.mxu0 %v2803_v48 }
 0x226   :  { %23916 = vmatmul.mubr.f32.gmra.mrb[12].mxu0 %v2813_v18  ;;  %v33951_v18 = vand.u32 4294901760, %v29080_v43 }
 0x227   :  { %23918 = vmatprep.mubr.f32.mxu0 %v2823_v60  ;;  %v33982_v60 = vld [vmem:[#allocation30_spill] sm:$0xff] }
 0x22a   :  { %23919 = vmatmul.mubr.f32.gmra.mrb[14].mxu0 %v2833_v26  ;;  %v33983_v26 = vld [vmem:[#allocation33_spill] sm:$0xff] }
 0x22b   :  { %23923 = vmatprep.mubr.f32.mxu0 %v29036_v38 }
 0x22e   :  { %23924 = vmatmul.mubr.f32.vlgmr.msra.gmra.mrb[0].mxu0 %v29045_v10 }
 0x22f   :  { %23948 = vmatpush3.msra.mxu0 %v29012_v6  ;;  %23926 = vmatprep.mubr.f32.mxu0 %v29047_v59  ;;  %v106_v6 = vpop.permute.xlu0 %105 }
 0x230   :  { %23973 = vmatprep.subr.mxu0 %v28983_v8  ;;  %v146_v48 = vmax.f32 %v28985_v28, %v106_v6  ;;  %v33984_v6 = vld [vmem:[#allocation36_spill] sm:$0xff] }
 0x232   :  { %23927 = vmatmul.mubr.f32.gmra.mrb[2].mxu0 %v29057_v61  ;;  %215 = vst.msk [vmem:[#allocation2 + $0x81] sm:$0xff] %vm155_vm0, %v146_v48  ;;  %v33985_v48 = vld [vmem:[#allocation39_spill] sm:$0xff] }
 0x233   :  { %23929 = vmatprep.mubr.f32.mxu0 %v29063_v31 }
 0x236   :  { %23930 = vmatmul.mubr.f32.gmra.mrb[4].mxu0 %v29071_v51 }
 0x237   :  { %23932 = vmatprep.mubr.f32.mxu0 %v29082_v27 }
 0x23a   :  { %23933 = vmatmul.mubr.f32.gmra.mrb[6].mxu0 %v29096_v54 }
 0x23b   :  { %23935 = vmatprep.mubr.f32.mxu0 %v29090_v45 }
 0x23e   :  { %23936 = vmatmul.mubr.f32.gmra.mrb[8].mxu0 %v29112_v32 }
 0x23f   :  { %23938 = vmatprep.mubr.f32.mxu0 %v29120_v37 }
 0x242   :  { %23939 = vmatmul.mubr.f32.gmra.mrb[10].mxu0 %v29140_v5 }
 0x243   :  { %23941 = vmatprep.mubr.f32.mxu0 %v29146_v4 }
 0x244   :  { %v122_v28 = vpop.permute.xlu1 %121 }
 0x245   :  { %v154_v29 = vmax.f32 %v29005_v39, %v122_v28  ;;  %v33947_v39 = vand.u32 4294901760, %v29043_v0  ;;  %v33986_v28 = vld [vmem:[#allocation42_spill] sm:$0xff] }
 0x246   :  { %23942 = vmatmul.mubr.f32.gmra.mrb[12].mxu0 %v29161_v34 }
 0x247   :  { %23944 = vmatprep.mubr.f32.mxu0 %v29166_v41  ;;  %223 = vst.msk [vmem:[#allocation2 + $0x121] sm:$0xff] %vm155_vm0, %v154_v29  ;;  %v33987_v29 = vld [vmem:[#allocation8_spill] sm:$0xff] }
 0x24a   :  { %23945 = vmatmul.mubr.f32.gmra.mrb[14].mxu0 %v29176_v50 }
 0x24b   :  { %23949 = vmatprep.mubr.f32.mxu0 %v29043_v0  ;;  %v33953_v0 = vand.u32 4294901760, %v29104_v53 }
 0x24e   :  { %23950 = vmatmul.mubr.f32.vlgmr.msra.gmra.mrb[0].mxu0 %v29055_v47  ;;  %v33954_v47 = vand.u32 4294901760, %v29118_v62 }
 0x24f   :  { %23974 = vmatpush3.msra.mxu0 %v28983_v8  ;;  %23952 = vmatprep.mubr.f32.mxu0 %v29061_v30  ;;  %v33955_v30 = vand.u32 4294901760, %v29110_v14 }
 0x250   :  { %23999 = vmatprep.subr.mxu0 %v29017_v21 }
 0x252   :  { %23953 = vmatmul.mubr.f32.gmra.mrb[2].mxu0 %v29075_v46  ;;  %v33957_v46 = vand.u32 4294901760, %v29138_v33 }
 0x253   :  { %23955 = vmatprep.mubr.f32.mxu0 %v29080_v43  ;;  %v33958_v43 = vand.u32 4294901760, %v29159_v13 }
 0x256   :  { %23956 = vmatmul.mubr.f32.gmra.mrb[4].mxu0 %v29088_v22 }
 0x257   :  { %23958 = vmatprep.mubr.f32.mxu0 %v29104_v53 }
 0x25a   :  { %23959 = vmatmul.mubr.f32.gmra.mrb[6].mxu0 %v29118_v62 }
 0x25b   :  { %23961 = vmatprep.mubr.f32.mxu0 %v29110_v14  ;;  %v21733_v14 = vld [vmem:[%s33767_s1 + $0xc] sm:$0xf] }
 0x25e   :  { %23962 = vmatmul.mubr.f32.gmra.mrb[8].mxu0 %v29134_v20 }
 0x25f   :  { %23964 = vmatprep.mubr.f32.mxu0 %v29138_v33  ;;  %v33969_v33 = vld [vmem:[#allocation28_spill] sm:$0xff] }
 0x262   :  { %23965 = vmatmul.mubr.f32.gmra.mrb[10].mxu0 %v29159_v13  ;;  %v33971_v13 = vld [vmem:[#allocation34_spill] sm:$0xff] }
 0x263   :  { %23967 = vmatprep.mubr.f32.mxu0 %v29164_v9  ;;  %v33973_v9 = vld [vmem:[#allocation4_spill] sm:$0xff] }
 0x266   :  { %23968 = vmatmul.mubr.f32.gmra.mrb[12].mxu0 %v29174_v19 }
 0x267   :  { %23970 = vmatprep.mubr.f32.mxu0 %v29183_v11  ;;  %v33977_v11 = vld [vmem:[#allocation14_spill] sm:$0xff] }
 0x26a   :  { %23971 = vmatmul.mubr.f32.gmra.mrb[14].mxu0 %v29190_v1  ;;  %v33979_v1 = vld [vmem:[#allocation22_spill] sm:$0xff] }
 0x26b   :  { %23975 = vmatprep.mubr.f32.mxu0 %v33947_v39  ;;  %v33988_v39 = vld [vmem:[#allocation12_spill] sm:$0xff] }
 0x26e   :  { %23976 = vmatmul.mubr.f32.vlgmr.msra.gmra.mrb[0].mxu0 %v33948_v40  ;;  %v33989_v40 = vld [vmem:[#allocation15_spill] sm:$0xff] }
 0x26f   :  { %24000 = vmatpush3.msra.mxu0 %v29017_v21  ;;  %23978 = vmatprep.mubr.f32.mxu0 %v33949_v2  ;;  %v33956_v21 = vand.u32 4294901760, %v29134_v20  ;;  %v3787_v20 = vsel %vm307_vm3, %v21733_v14, 0  ;;  %v33990_v2 = vld [vmem:[#allocation18_spill] sm:$0xff] }
 0x270   :  { %24025 = vmatprep.subr.mxu0 %v28983_v8  ;;  %v29285_v62 = vand.u32 4294901760, %v3787_v20  ;;  %v21734_v14 = vld [vmem:[%s33767_s1 + $0x10] sm:$0xf] }
 0x272   :  { %23979 = vmatmul.mubr.f32.gmra.mrb[2].mxu0 %v33950_v7  ;;  %v4017_v19 = vsub.f32 %v3787_v20, %v29285_v62  ;;  %v33991_v7 = vld [vmem:[#allocation19_spill] sm:$0xff]  ;;  %v34000_v20 = vld [vmem:[#allocation45_spill] sm:$0xff] }
 0x273   :  { %23981 = vmatprep.mubr.f32.mxu0 %v33951_v18  ;;  %v33992_v18 = vld [vmem:[#allocation21_spill] sm:$0xff] }
 0x276   :  { %23982 = vmatmul.mubr.f32.gmra.mrb[4].mxu0 %v33952_v57  ;;  %v33993_v57 = vld [vmem:[#allocation25_spill] sm:$0xff] }
 0x277   :  { %23984 = vmatprep.mubr.f32.mxu0 %v33953_v0  ;;  %v33994_v0 = vld [vmem:[#allocation29_spill] sm:$0xff] }
 0x27a   :  { %23985 = vmatmul.mubr.f32.gmra.mrb[6].mxu0 %v33954_v47  ;;  %v33995_v47 = vld [vmem:[#allocation32_spill] sm:$0xff] }
 0x27b   :  { %23987 = vmatprep.mubr.f32.mxu0 %v33955_v30  ;;  %v33996_v30 = vld [vmem:[#allocation35_spill] sm:$0xff] }
 0x27e   :  { %23988 = vmatmul.mubr.f32.gmra.mrb[8].mxu0 %v33956_v21  ;;  %v33997_v21 = vld [vmem:[#allocation38_spill] sm:$0xff] }
 0x27f   :  { %23990 = vmatprep.mubr.f32.mxu0 %v33957_v46  ;;  %v33998_v46 = vld [vmem:[#allocation41_spill] sm:$0xff] }
 0x282   :  { %23991 = vmatmul.mubr.f32.gmra.mrb[10].mxu0 %v33958_v43  ;;  %v33999_v43 = vld [vmem:[#allocation44_spill] sm:$0xff] }
 0x283   :  { %23993 = vmatprep.mubr.f32.mxu0 %v2801_v24  ;;  %v33976_v24 = vld [vmem:[#allocation13_spill] sm:$0xff] }
 0x286   :  { %23994 = vmatmul.mubr.f32.gmra.mrb[12].mxu0 %v2811_v56  ;;  %v33978_v56 = vld [vmem:[#allocation16_spill] sm:$0xff] }
 0x287   :  { %23996 = vmatprep.mubr.f32.mxu0 %v2821_v12  ;;  %v33980_v12 = vld [vmem:[#allocation24_spill] sm:$0xff] }
 0x28a   :  { %23997 = vmatmul.mubr.f32.gmra.mrb[14].mxu0 %v2831_v55  ;;  %v33981_v55 = vld [vmem:[#allocation27_spill] sm:$0xff] }
 0x28b   :  { %24001 = vmatprep.mubr.f32.mxu0 %v29036_v38 }
 0x28e   :  { %24002 = vmatmul.mubr.f32.vlgmr.msra.gmra.mrb[0].mxu0 %v29045_v10 }
 0x28f   :  { %24026 = vmatpush3.msra.mxu0 %v28983_v8  ;;  %24004 = vmatprep.mubr.f32.mxu0 %v29047_v59  ;;  %v29302_v8 = vand.u32 4294901760, %v4017_v19 }
 0x290   :  { %24051 = vmatprep.subr.mxu0 %v29285_v62 }
 0x291   :  { %v4019_v22 = vsub.f32 %v4017_v19, %v29302_v8 }
 0x292   :  { %24005 = vmatmul.mubr.f32.gmra.mrb[2].mxu0 %v29057_v61 }
 0x293   :  { %24007 = vmatprep.mubr.f32.mxu0 %v29063_v31  ;;  %v4020_v53 = vand.u32 4294901760, %v4019_v22 }
 0x296   :  { %24008 = vmatmul.mubr.f32.gmra.mrb[4].mxu0 %v29071_v51 }
 0x297   :  { %24010 = vmatprep.mubr.f32.mxu0 %v29082_v27 }
 0x29a   :  { %24011 = vmatmul.mubr.f32.gmra.mrb[6].mxu0 %v29096_v54 }
 0x29b   :  { %24013 = vmatprep.mubr.f32.mxu0 %v29090_v45 }
 0x29e   :  { %24014 = vmatmul.mubr.f32.gmra.mrb[8].mxu0 %v29112_v32 }
 0x29f   :  { %24016 = vmatprep.mubr.f32.mxu0 %v29120_v37 }
 0x2a2   :  { %24017 = vmatmul.mubr.f32.gmra.mrb[10].mxu0 %v29140_v5 }
 0x2a3   :  { %24019 = vmatprep.mubr.f32.mxu0 %v29146_v4 }
 0x2a6   :  { %24020 = vmatmul.mubr.f32.gmra.mrb[12].mxu0 %v29161_v34 }
 0x2a7   :  { %24022 = vmatprep.mubr.f32.mxu0 %v29166_v41 }
 0x2aa   :  { %24023 = vmatmul.mubr.f32.gmra.mrb[14].mxu0 %v29176_v50 }
 0x2ab   :  { %24027 = vmatprep.mubr.f32.mxu0 %v29036_v38 }
 0x2ae   :  { %24028 = vmatmul.mubr.f32.vlgmr.msra.gmra.mrb[0].mxu0 %v29045_v10 }
 0x2af   :  { %24052 = vmatpush3.msra.mxu0 %v29285_v62  ;;  %24030 = vmatprep.mubr.f32.mxu0 %v29047_v59  ;;  %v3727_v59 = vld [vmem:[#allocation2 + $0x80] sm:$0xff] }
 0x2b0   :  { %24077 = vmatprep.subr.mxu0 %v4020_v53 }
 0x2b2   :  { %24031 = vmatmul.mubr.f32.gmra.mrb[2].mxu0 %v29057_v61  ;;  %v3760_v61 = vsel %vm155_vm0, %v3727_v59, 0 }
 0x2b3   :  { %24033 = vmatprep.mubr.f32.mxu0 %v29063_v31  ;;  %v29325_v10 = vand.u32 4294901760, %v3760_v61  ;;  %v33959_v31 = vld [vmem:[#allocation40_spill] sm:$0xff] }
 0x2b6   :  { %24034 = vmatmul.mubr.f32.gmra.mrb[4].mxu0 %v29071_v51  ;;  %v3735_v51 = vld [vmem:[#allocation2 + $0x120] sm:$0xff] }
 0x2b7   :  { %24036 = vmatprep.mubr.f32.mxu0 %v29082_v27  ;;  %v3784_v38 = vsel %vm155_vm0, %v3735_v51, 0 }
 0x2ba   :  { %24037 = vmatmul.mubr.f32.gmra.mrb[6].mxu0 %v29096_v54  ;;  %v29330_v54 = vsub.f32 %v3760_v61, %v29325_v10  ;;  %v4896_v61 = vld [vmem:[#allocation2 + $0x11] sm:$0xff] }
 0x2bb   :  { %24039 = vmatprep.mubr.f32.mxu0 %v29090_v45 }
 0x2bc   :  { %v3927_v27 = vand.u32 4294901760, %v29330_v54 }
 0x2be   :  { %24040 = vmatmul.mubr.f32.gmra.mrb[8].mxu0 %v29112_v32  ;;  %v33964_v32 = vld [vmem:[#allocation11_spill] sm:$0xff] }
 0x2bf   :  { %24042 = vmatprep.mubr.f32.mxu0 %v29120_v37  ;;  %v33967_v37 = vld [vmem:[#allocation23_spill] sm:$0xff] }
 0x2c2   :  { %24043 = vmatmul.mubr.f32.gmra.mrb[10].mxu0 %v29140_v5  ;;  %v33970_v5 = vld [vmem:[#allocation31_spill] sm:$0xff] }
 0x2c3   :  { %24045 = vmatprep.mubr.f32.mxu0 %v29146_v4  ;;  %v33968_v4 = vld [vmem:[#allocation26_spill] sm:$0xff] }
 0x2c6   :  { %24046 = vmatmul.mubr.f32.gmra.mrb[12].mxu0 %v29161_v34  ;;  %v33972_v34 = vld [vmem:[#allocation37_spill] sm:$0xff] }
 0x2c7   :  { %24048 = vmatprep.mubr.f32.mxu0 %v29166_v41  ;;  %v33974_v41 = vld [vmem:[#allocation6_spill] sm:$0xff] }
 0x2ca   :  { %24049 = vmatmul.mubr.f32.gmra.mrb[14].mxu0 %v29176_v50  ;;  %v33975_v50 = vld [vmem:[#allocation10_spill] sm:$0xff] }
 0x2cb   :  { %24053 = vmatprep.mubr.f32.mxu0 %v28776_v17  ;;  %v3928_v17 = vsub.f32 %v29330_v54, %v3927_v27 }
 0x2ce   :  { %24054 = vmatmul.mubr.f32.vlgmr.msra.gmra.mrb[0].mxu0 %v28786_v35  ;;  %v3929_v35 = vand.u32 4294901760, %v3928_v17 }
 0x2cf   :  { %24078 = vmatpush3.msra.mxu0 %v4020_v53  ;;  %24056 = vmatprep.mubr.f32.mxu0 %v28803_v52  ;;  %v29343_v52 = vand.u32 4294901760, %v3784_v38 }
 0x2d0   :  { %24103 = vmatprep.subr.mxu0 %v4017_v19 }
 0x2d2   :  { %24057 = vmatmul.mubr.f32.gmra.mrb[2].mxu0 %v28813_v63  ;;  %v29347_v63 = vsub.f32 %v3784_v38, %v29343_v52  ;;  %v4899_v38 = vld [vmem:[#allocation2 + $0x41] sm:$0xff] }
 0x2d3   :  { %24059 = vmatprep.mubr.f32.mxu0 %v28824_v44  ;;  %v33960_v44 = vld [vmem:[#allocation43_spill] sm:$0xff] }
 0x2d4   :  { %v4007_v45 = vand.u32 4294901760, %v29347_v63 }
 0x2d6   :  { %24060 = vmatmul.mubr.f32.gmra.mrb[4].mxu0 %v28832_v16  ;;  %v4008_v16 = vsub.f32 %v29347_v63, %v4007_v45 }
 0x2d7   :  { %24062 = vmatprep.mubr.f32.mxu0 %v28854_v36 }
 0x2d8   :  { %v4009_v36 = vand.u32 4294901760, %v4008_v16  ;;  %v4901_v16 = vld [vmem:[#allocation2 + $0x61] sm:$0xff] }
 0x2da   :  { %24063 = vmatmul.mubr.f32.gmra.mrb[6].mxu0 %v3929_v35 }
 0x2db   :  { %24065 = vmatprep.mubr.f32.mxu0 %v33959_v31  ;;  %v4900_v31 = vld [vmem:[#allocation2 + $0x51] sm:$0xff] }
 0x2de   :  { %24066 = vmatmul.mubr.f32.gmra.mrb[8].mxu0 %v33960_v44 }
 0x2df   :  { %24068 = vmatprep.mubr.f32.mxu0 %v28892_v49  ;;  %v33961_v49 = vld [vmem:[#allocation5_spill] sm:$0xff] }
 0x2e2   :  { %24069 = vmatmul.mubr.f32.gmra.mrb[10].mxu0 %v28899_v15  ;;  %v33963_v15 = vld [vmem:[#allocation9_spill] sm:$0xff] }
 0x2e3   :  { %24071 = vmatprep.mubr.f32.mxu0 %v28905_v42  ;;  %v33962_v42 = vld [vmem:[#allocation7_spill] sm:$0xff] }
 0x2e6   :  { %24072 = vmatmul.mubr.f32.gmra.mrb[12].mxu0 %v28909_v3  ;;  %v33965_v3 = vld [vmem:[#allocation17_spill] sm:$0xff] }
 0x2e7   :  { %24074 = vmatprep.mubr.f32.mxu0 %v28913_v23  ;;  %v33966_v23 = vld [vmem:[#allocation20_spill] sm:$0xff] }
 0x2ea   :  { %24075 = vmatmul.mubr.f32.gmra.mrb[14].mxu0 %v4009_v36  ;;  %v4927_v36 = vsel %vm155_vm0, %v4900_v31, 0 }
 0x2eb   :  { %24079 = vmatprep.mubr.f32.mxu0 %v28699_v25 }
 0x2ee   :  { %24080 = vmatmul.mubr.f32.vlgmr.msra.gmra.mrb[0].mxu0 %v28701_v58 }
 0x2ef   :  { %24104 = vmatpush3.msra.mxu0 %v4017_v19  ;;  %24082 = vmatprep.mubr.f32.mxu0 %v33961_v49  ;;  %v4963_v19 = vsel %vm307_vm3, %v21734_v14, 0 }
 0x2f0   :  { %24129 = vmatprep.subr.mxu0 %v29285_v62 }
 0x2f2   :  { %24083 = vmatmul.mubr.f32.gmra.mrb[2].mxu0 %v33962_v42 }
 0x2f3   :  { %24085 = vmatprep.mubr.f32.mxu0 %v33963_v15 }
 0x2f6   :  { %24086 = vmatmul.mubr.f32.gmra.mrb[4].mxu0 %v33964_v32 }
 0x2f7   :  { %24088 = vmatprep.mubr.f32.mxu0 %v33965_v3 }
 0x2fa   :  { %24089 = vmatmul.mubr.f32.gmra.mrb[6].mxu0 %v29325_v10 }
 0x2fb   :  { %24091 = vmatprep.mubr.f32.mxu0 %v33966_v23 }
 0x2fe   :  { %24092 = vmatmul.mubr.f32.gmra.mrb[8].mxu0 %v33967_v37 }
 0x2ff   :  { %24094 = vmatprep.mubr.f32.mxu0 %v33968_v4 }
 0x302   :  { %24095 = vmatmul.mubr.f32.gmra.mrb[10].mxu0 %v33969_v33 }
 0x303   :  { %24097 = vmatprep.mubr.f32.mxu0 %v33970_v5 }
 0x306   :  { %24098 = vmatmul.mubr.f32.gmra.mrb[12].mxu0 %v33971_v13 }
 0x307   :  { %24100 = vmatprep.mubr.f32.mxu0 %v33972_v34 }
 0x30a   :  { %24101 = vmatmul.mubr.f32.gmra.mrb[14].mxu0 %v29343_v52 }
 0x30b   :  { %24105 = vmatprep.mubr.f32.mxu0 %v33973_v9  ;;  %v4903_v9 = vld [vmem:[#allocation2 + $0x81] sm:$0xff] }
 0x30e   :  { %24106 = vmatmul.mubr.f32.vlgmr.msra.gmra.mrb[0].mxu0 %v33974_v41 }
 0x30f   :  { %24130 = vmatpush3.msra.mxu0 %v29285_v62  ;;  %24108 = vmatprep.mubr.f32.mxu0 %v33975_v50 }
 0x310   :  { %24155 = vmatprep.subr.mxu0 %v29302_v8 }
 0x312   :  { %24109 = vmatmul.mubr.f32.gmra.mrb[2].mxu0 %v33976_v24 }
 0x313   :  { %24111 = vmatprep.mubr.f32.mxu0 %v33977_v11 }
 0x316   :  { %24112 = vmatmul.mubr.f32.gmra.mrb[4].mxu0 %v33978_v56 }
 0x317   :  { %24114 = vmatprep.mubr.f32.mxu0 %v33979_v1 }
 0x31a   :  { %24115 = vmatmul.mubr.f32.gmra.mrb[6].mxu0 %v29330_v54  ;;  %v4897_v54 = vld [vmem:[#allocation2 + $0x21] sm:$0xff] }
 0x31b   :  { %24117 = vmatprep.mubr.f32.mxu0 %v33980_v12 }
 0x31e   :  { %24118 = vmatmul.mubr.f32.gmra.mrb[8].mxu0 %v33981_v55  ;;  %v4905_v55 = vld [vmem:[#allocation2 + $0xc1] sm:$0xff] }
 0x31f   :  { %24120 = vmatprep.mubr.f32.mxu0 %v33982_v60  ;;  %v4906_v60 = vld [vmem:[#allocation2 + $0xd1] sm:$0xff] }
 0x322   :  { %24121 = vmatmul.mubr.f32.gmra.mrb[10].mxu0 %v33983_v26 }
 0x323   :  { %24123 = vmatprep.mubr.f32.mxu0 %v33984_v6 }
 0x326   :  { %24124 = vmatmul.mubr.f32.gmra.mrb[12].mxu0 %v33985_v48 }
 0x327   :  { %24126 = vmatprep.mubr.f32.mxu0 %v33986_v28 }
 0x32a   :  { %24127 = vmatmul.mubr.f32.gmra.mrb[14].mxu0 %v29347_v63 }
 0x32b   :  { %24131 = vmatprep.mubr.f32.mxu0 %v33987_v29 }
 0x32e   :  { %24132 = vmatmul.mubr.f32.vlgmr.msra.gmra.mrb[0].mxu0 %v33988_v39 }
 0x32f   :  { %24156 = vmatpush3.msra.mxu0 %v29302_v8  ;;  %24134 = vmatprep.mubr.f32.mxu0 %v33989_v40  ;;  %v29419_v8 = vand.u32 4294901760, %v4963_v19 }
 0x330   :  { %24181 = vmatprep.subr.mxu0 %v29285_v62 }
 0x332   :  { %24135 = vmatmul.mubr.f32.gmra.mrb[2].mxu0 %v33990_v2 }
 0x333   :  { %24137 = vmatprep.mubr.f32.mxu0 %v33991_v7  ;;  %v4945_v7 = vsel %vm155_vm0, %v4906_v60, 0 }
 0x334   :  { %v29542_v14 = vand.u32 4294901760, %v4945_v7 }
 0x336   :  { %24138 = vmatmul.mubr.f32.gmra.mrb[4].mxu0 %v33992_v18  ;;  %v4907_v18 = vld [vmem:[#allocation2 + $0xe1] sm:$0xff] }
 0x337   :  { %24140 = vmatprep.mubr.f32.mxu0 %v33993_v57 }
 0x33a   :  { %24141 = vmatmul.mubr.f32.gmra.mrb[6].mxu0 %v3927_v27  ;;  %v4898_v27 = vld [vmem:[#allocation2 + $0x31] sm:$0xff] }
 0x33b   :  { %24143 = vmatprep.mubr.f32.mxu0 %v33994_v0  ;;  %v4921_v17 = vsel %vm155_vm0, %v4898_v27, 0 }
 0x33c   :  { %v29466_v63 = vand.u32 4294901760, %v4921_v17 }
 0x33e   :  { %24144 = vmatmul.mubr.f32.gmra.mrb[8].mxu0 %v33995_v47 }
 0x33f   :  { %24146 = vmatprep.mubr.f32.mxu0 %v33996_v30  ;;  %v4908_v30 = vld [vmem:[#allocation2 + $0xf1] sm:$0xff] }
 0x342   :  { %24147 = vmatmul.mubr.f32.gmra.mrb[10].mxu0 %v33997_v21 }
 0x343   :  { %24149 = vmatprep.mubr.f32.mxu0 %v33998_v46 }
 0x346   :  { %24150 = vmatmul.mubr.f32.gmra.mrb[12].mxu0 %v33999_v43 }
 0x347   :  { %24152 = vmatprep.mubr.f32.mxu0 %v34000_v20 }
 0x34a   :  { %24153 = vmatmul.mubr.f32.gmra.mrb[14].mxu0 %v4007_v45  ;;  %v4924_v45 = vsel %vm155_vm0, %v4899_v38, 0 }
 0x34b   :  { %24157 = vmatprep.mubr.f32.mxu0 %v28699_v25 }
 0x34e   :  { %24158 = vmatmul.mubr.f32.vlgmr.msra.gmra.mrb[0].mxu0 %v28701_v58 }
 0x34f   :  { %24182 = vmatpush3.msra.mxu0 %v29285_v62  ;;  %24160 = vmatprep.mubr.f32.mxu0 %v33961_v49  ;;  %v29434_v62 = vsub.f32 %v4963_v19, %v29419_v8 }
 0x350   :  { %24207 = vmatprep.subr.mxu0 %v29419_v8 }
 0x351   :  { %v29439_v22 = vand.u32 4294901760, %v29434_v62 }
 0x352   :  { %24161 = vmatmul.mubr.f32.gmra.mrb[2].mxu0 %v33962_v42 }
 0x353   :  { %24163 = vmatprep.mubr.f32.mxu0 %v33963_v15  ;;  %v5195_v53 = vsub.f32 %v29434_v62, %v29439_v22 }
 0x355   :  { %v29447_v59 = vand.u32 4294901760, %v5195_v53  ;;  %v4948_v53 = vsel %vm155_vm0, %v4907_v18, 0 }
 0x356   :  { %24164 = vmatmul.mubr.f32.gmra.mrb[4].mxu0 %v33964_v32 }
 0x357   :  { %24166 = vmatprep.mubr.f32.mxu0 %v33965_v3 }
 0x35a   :  { %24167 = vmatmul.mubr.f32.gmra.mrb[6].mxu0 %v29325_v10 }
 0x35b   :  { %24169 = vmatprep.mubr.f32.mxu0 %v33966_v23 }
 0x35e   :  { %24170 = vmatmul.mubr.f32.gmra.mrb[8].mxu0 %v33967_v37 }
 0x35f   :  { %24172 = vmatprep.mubr.f32.mxu0 %v33968_v4 }
 0x362   :  { %24173 = vmatmul.mubr.f32.gmra.mrb[10].mxu0 %v33969_v33 }
 0x363   :  { %24175 = vmatprep.mubr.f32.mxu0 %v33970_v5 }
 0x366   :  { %24176 = vmatmul.mubr.f32.gmra.mrb[12].mxu0 %v33971_v13 }
 0x367   :  { %24178 = vmatprep.mubr.f32.mxu0 %v33972_v34 }
 0x36a   :  { %24179 = vmatmul.mubr.f32.gmra.mrb[14].mxu0 %v29343_v52 }
 0x36b   :  { %24183 = vmatprep.mubr.f32.mxu0 %v28699_v25  ;;  %v4915_v25 = vsel %vm155_vm0, %v4896_v61, 0  ;;  %v4951_v61 = vsel %vm155_vm0, %v4908_v30, 0 }
 0x36c   :  { %v29459_v51 = vand.u32 4294901760, %v4915_v25 }
 0x36e   :  { %24184 = vmatmul.mubr.f32.vlgmr.msra.gmra.mrb[0].mxu0 %v28701_v58  ;;  %v4918_v58 = vsel %vm155_vm0, %v4897_v54, 0  ;;  %v29469_v44 = vsub.f32 %v4915_v25, %v29459_v51  ;;  %v4909_v54 = vld [vmem:[#allocation2 + $0x101] sm:$0xff] }
 0x36f   :  { %24208 = vmatpush3.msra.mxu0 %v29419_v8  ;;  %24186 = vmatprep.mubr.f32.mxu0 %v33961_v49  ;;  %v29464_v35 = vand.u32 4294901760, %v4918_v58  ;;  %v4902_v49 = vld [vmem:[#allocation2 + $0x71] sm:$0xff] }
 0x370   :  { %24233 = vmatprep.subr.mxu0 %v29447_v59 }
 0x372   :  { %24187 = vmatmul.mubr.f32.gmra.mrb[2].mxu0 %v33962_v42  ;;  %v29479_v42 = vsub.f32 %v4921_v17, %v29466_v63  ;;  %v4910_v17 = vld [vmem:[#allocation2 + $0x111] sm:$0xff] }
 0x373   :  { %24189 = vmatprep.mubr.f32.mxu0 %v33963_v15  ;;  %v29481_v15 = vand.u32 4294901760, %v4924_v45 }
 0x374   :  { %v5053_v24 = vand.u32 4294901760, %v29479_v42 }
 0x375   :  { %v29495_v11 = vsub.f32 %v4924_v45, %v29481_v15  ;;  %v29560_v45 = vsub.f32 %v4945_v7, %v29542_v14 }
 0x376   :  { %24190 = vmatmul.mubr.f32.gmra.mrb[4].mxu0 %v33964_v32  ;;  %v4930_v32 = vsel %vm155_vm0, %v4901_v16, 0  ;;  %v5054_v28 = vsub.f32 %v29479_v42, %v5053_v24  ;;  %v29562_v16 = vand.u32 4294901760, %v4948_v53 }
 0x377   :  { %24192 = vmatprep.mubr.f32.mxu0 %v33965_v3  ;;  %v5033_v3 = vand.u32 4294901760, %v29469_v44  ;;  %v29491_v50 = vand.u32 4294901760, %v4930_v32  ;;  %v5063_v29 = vand.u32 4294901760, %v29495_v11 }
 0x378   :  { %v29581_v60 = vsub.f32 %v4948_v53, %v29562_v16 }
 0x379   :  { %v29513_v6 = vsub.f32 %v4930_v32, %v29491_v50  ;;  %v5064_v46 = vsub.f32 %v29495_v11, %v5063_v29  ;;  %v4954_v32 = vsel %vm155_vm0, %v4909_v54, 0 }
 0x37a   :  { %24193 = vmatmul.mubr.f32.gmra.mrb[6].mxu0 %v29325_v10  ;;  %v29476_v10 = vsub.f32 %v4918_v58, %v29464_v35 }
 0x37b   :  { %24195 = vmatprep.mubr.f32.mxu0 %v33966_v23  ;;  %v29485_v23 = vand.u32 4294901760, %v4927_v36  ;;  %v5083_v57 = vand.u32 4294901760, %v29513_v6  ;;  %v5065_v38 = vand.u32 4294901760, %v5064_v46 }
 0x37c   :  { %v5043_v41 = vand.u32 4294901760, %v29476_v10 }
 0x37d   :  { %v29502_v1 = vsub.f32 %v4927_v36, %v29485_v23  ;;  %v5084_v25 = vsub.f32 %v29513_v6, %v5083_v57 }
 0x37e   :  { %24196 = vmatmul.mubr.f32.gmra.mrb[8].mxu0 %v33967_v37  ;;  %v4904_v37 = vld [vmem:[#allocation2 + $0xb1] sm:$0xff]  ;;  %v5044_v26 = vsub.f32 %v29476_v10, %v5043_v41 }
 0x37f   :  { %24198 = vmatprep.mubr.f32.mxu0 %v33968_v4  ;;  %v4933_v4 = vsel %vm155_vm0, %v4902_v49, 0  ;;  %v4939_v56 = vsel %vm155_vm0, %v4904_v37, 0  ;;  %v5073_v40 = vand.u32 4294901760, %v29502_v1  ;;  %v29568_v49 = vand.u32 4294901760, %v4951_v61 }
 0x380   :  { %v29504_v12 = vand.u32 4294901760, %v4933_v4  ;;  %v29515_v48 = vand.u32 4294901760, %v4939_v56  ;;  %v5045_v21 = vand.u32 4294901760, %v5044_v26  ;;  %v4957_v37 = vsel %vm155_vm0, %v4910_v17, 0 }
 0x381   :  { %v5074_v20 = vsub.f32 %v29502_v1, %v5073_v40  ;;  %v29583_v26 = vand.u32 4294901760, %v4954_v32 }
 0x382   :  { %24199 = vmatmul.mubr.f32.gmra.mrb[10].mxu0 %v33969_v33  ;;  %v5034_v33 = vsub.f32 %v29469_v44, %v5033_v3  ;;  %v29526_v2 = vsub.f32 %v4933_v4, %v29504_v12  ;;  %v29532_v0 = vsub.f32 %v4939_v56, %v29515_v48  ;;  %v4911_v4 = vld [vmem:[#allocation2 + $0x121] sm:$0xff] }
 0x383   :  { %24201 = vmatprep.mubr.f32.mxu0 %v33970_v5  ;;  %v4936_v5 = vsel %vm155_vm0, %v4903_v9, 0  ;;  %v5085_v9 = vand.u32 4294901760, %v5084_v25  ;;  %v4960_v7 = vsel %vm155_vm0, %v4911_v4, 0  ;;  %v29596_v46 = vsub.f32 %v4954_v32, %v29583_v26 }
 0x384   :  { %v29521_v39 = vand.u32 4294901760, %v4936_v5  ;;  %v5093_v19 = vand.u32 4294901760, %v29526_v2  ;;  %v5113_v27 = vand.u32 4294901760, %v29532_v0 }
 0x386   :  { %24202 = vmatmul.mubr.f32.gmra.mrb[12].mxu0 %v33971_v13  ;;  %v4942_v13 = vsel %vm155_vm0, %v4905_v55, 0  ;;  %v29540_v43 = vsub.f32 %v4936_v5, %v29521_v39  ;;  %v5094_v36 = vsub.f32 %v29526_v2, %v5093_v19  ;;  %v5114_v56 = vsub.f32 %v29532_v0, %v5113_v27 }
 0x387   :  { %24204 = vmatprep.mubr.f32.mxu0 %v33972_v34  ;;  %v5035_v34 = vand.u32 4294901760, %v5034_v33  ;;  %v29534_v47 = vand.u32 4294901760, %v4942_v13  ;;  %v5133_v55 = vand.u32 4294901760, %v29560_v45 }
 0x388   :  { %v5103_v31 = vand.u32 4294901760, %v29540_v43 }
 0x389   :  { %v29556_v58 = vsub.f32 %v4942_v13, %v29534_v47  ;;  %v29586_v13 = vsub.f32 %v4951_v61, %v29568_v49  ;;  %v5134_v53 = vsub.f32 %v29560_v45, %v5133_v55 }
 0x38a   :  { %24205 = vmatmul.mubr.f32.gmra.mrb[14].mxu0 %v29343_v52  ;;  %v5055_v52 = vand.u32 4294901760, %v5054_v28  ;;  %v5104_v5 = vsub.f32 %v29540_v43, %v5103_v31  ;;  %v5095_v28 = vand.u32 4294901760, %v5094_v36 }
 0x38b   :  { %24209 = vmatprep.mubr.f32.mxu0 %v5035_v34  ;;  %v5123_v33 = vand.u32 4294901760, %v29556_v58  ;;  %v29588_v34 = vand.u32 4294901760, %v4957_v37  ;;  %v5153_v61 = vand.u32 4294901760, %v29586_v13  ;;  %v5135_v36 = vand.u32 4294901760, %v5134_v53  ;;  %v6082_v53 = vld [vmem:[#allocation2 + $0xd2] sm:$0xff] }
 0x38c   :  { %v5105_v30 = vand.u32 4294901760, %v5104_v5 }
 0x38d   :  { %v5124_v18 = vsub.f32 %v29556_v58, %v5123_v33  ;;  %v29605_v54 = vsub.f32 %v4957_v37, %v29588_v34  ;;  %v5154_v32 = vsub.f32 %v29586_v13, %v5153_v61 }
 0x38e   :  { %24210 = vmatmul.mubr.f32.vlgmr.msra.gmra.mrb[0].mxu0 %v5045_v21  ;;  %v5143_v21 = vand.u32 4294901760, %v29581_v60 }
 0x38f   :  { %24234 = vmatpush3.msra.mxu0 %v29447_v59  ;;  %24212 = vmatprep.mubr.f32.mxu0 %v5055_v52  ;;  %v5075_v59 = vand.u32 4294901760, %v5074_v20  ;;  %v29598_v52 = vand.u32 4294901760, %v4960_v7  ;;  %v5115_v20 = vand.u32 4294901760, %v5114_v56  ;;  %v5125_v25 = vand.u32 4294901760, %v5124_v18 }
 0x390   :  { %24259 = vmatprep.subr.mxu0 %v29434_v62  ;;  %v5144_v17 = vsub.f32 %v29581_v60, %v5143_v21  ;;  %v5173_v37 = vand.u32 4294901760, %v29605_v54  ;;  %v5155_v5 = vand.u32 4294901760, %v5154_v32 }
 0x392   :  { %24213 = vmatmul.mubr.f32.gmra.mrb[2].mxu0 %v5065_v38  ;;  %v5163_v38 = vand.u32 4294901760, %v29596_v46  ;;  %v5145_v4 = vand.u32 4294901760, %v5144_v17 }
 0x393   :  { %24215 = vmatprep.mubr.f32.mxu0 %v5075_v59  ;;  %v29612_v59 = vsub.f32 %v4960_v7, %v29598_v52 }
 0x395   :  { %v5183_v56 = vand.u32 4294901760, %v29612_v59 }
 0x396   :  { %24216 = vmatmul.mubr.f32.gmra.mrb[4].mxu0 %v5085_v9  ;;  %v5164_v9 = vsub.f32 %v29596_v46, %v5163_v38 }
 0x397   :  { %24218 = vmatprep.mubr.f32.mxu0 %v5095_v28  ;;  %v5174_v28 = vsub.f32 %v29605_v54, %v5173_v37  ;;  %v5184_v18 = vsub.f32 %v29612_v59, %v5183_v56 }
 0x398   :  { %v5165_v7 = vand.u32 4294901760, %v5164_v9 }
 0x39a   :  { %24219 = vmatmul.mubr.f32.gmra.mrb[6].mxu0 %v5105_v30  ;;  %v5175_v30 = vand.u32 4294901760, %v5174_v28  ;;  %v6084_v28 = vld [vmem:[#allocation2 + $0xf2] sm:$0xff] }
 0x39b   :  { %24221 = vmatprep.mubr.f32.mxu0 %v5115_v20  ;;  %v5185_v20 = vand.u32 4294901760, %v5184_v18 }
 0x39e   :  { %24222 = vmatmul.mubr.f32.gmra.mrb[8].mxu0 %v5125_v25 }
 0x39f   :  { %24224 = vmatprep.mubr.f32.mxu0 %v5135_v36 }
 0x3a2   :  { %24225 = vmatmul.mubr.f32.gmra.mrb[10].mxu0 %v5145_v4  ;;  %v6083_v4 = vld [vmem:[#allocation2 + $0xe2] sm:$0xff] }
 0x3a3   :  { %24227 = vmatprep.mubr.f32.mxu0 %v5155_v5 }
 0x3a6   :  { %24228 = vmatmul.mubr.f32.gmra.mrb[12].mxu0 %v5165_v7 }
 0x3a7   :  { %24230 = vmatprep.mubr.f32.mxu0 %v5175_v30 }
 0x3aa   :  { %24231 = vmatmul.mubr.f32.gmra.mrb[14].mxu0 %v5185_v20 }
 0x3ab   :  { %24235 = vmatprep.mubr.f32.mxu0 %v29459_v51 }
 0x3ae   :  { %24236 = vmatmul.mubr.f32.vlgmr.msra.gmra.mrb[0].mxu0 %v29464_v35 }
 0x3af   :  { %24260 = vmatpush3.msra.mxu0 %v29434_v62  ;;  %24238 = vmatprep.mubr.f32.mxu0 %v29466_v63  ;;  %v21735_v62 = vld [vmem:[%s33767_s1 + $0x14] sm:$0xf] }
 0x3b0   :  { %24285 = vmatprep.subr.mxu0 %v29419_v8 }
 0x3b2   :  { %24239 = vmatmul.mubr.f32.gmra.mrb[2].mxu0 %v29481_v15 }
 0x3b3   :  { %24241 = vmatprep.mubr.f32.mxu0 %v29485_v23 }
 0x3b6   :  { %24242 = vmatmul.mubr.f32.gmra.mrb[4].mxu0 %v29491_v50 }
 0x3b7   :  { %24244 = vmatprep.mubr.f32.mxu0 %v29504_v12 }
 0x3ba   :  { %24245 = vmatmul.mubr.f32.gmra.mrb[6].mxu0 %v29521_v39 }
 0x3bb   :  { %24247 = vmatprep.mubr.f32.mxu0 %v29515_v48 }
 0x3be   :  { %24248 = vmatmul.mubr.f32.gmra.mrb[8].mxu0 %v29534_v47 }
 0x3bf   :  { %24250 = vmatprep.mubr.f32.mxu0 %v29542_v14 }
 0x3c2   :  { %24251 = vmatmul.mubr.f32.gmra.mrb[10].mxu0 %v29562_v16 }
 0x3c3   :  { %24253 = vmatprep.mubr.f32.mxu0 %v29568_v49 }
 0x3c6   :  { %24254 = vmatmul.mubr.f32.gmra.mrb[12].mxu0 %v29583_v26 }
 0x3c7   :  { %24256 = vmatprep.mubr.f32.mxu0 %v29588_v34 }
 0x3ca   :  { %24257 = vmatmul.mubr.f32.gmra.mrb[14].mxu0 %v29598_v52 }
 0x3cb   :  { %24261 = vmatprep.mubr.f32.mxu0 %v29469_v44 }
 0x3ce   :  { %24262 = vmatmul.mubr.f32.vlgmr.msra.gmra.mrb[0].mxu0 %v29476_v10 }
 0x3cf   :  { %24286 = vmatpush3.msra.mxu0 %v29419_v8  ;;  %24264 = vmatprep.mubr.f32.mxu0 %v29479_v42 }
 0x3d0   :  { %24311 = vmatprep.subr.mxu0 %v29439_v22 }
 0x3d2   :  { %24265 = vmatmul.mubr.f32.gmra.mrb[2].mxu0 %v29495_v11  ;;  %v6073_v11 = vld [vmem:[#allocation2 + $0x22] sm:$0xff] }
 0x3d3   :  { %24267 = vmatprep.mubr.f32.mxu0 %v29502_v1  ;;  %v6094_v1 = vsel %vm155_vm0, %v6073_v11, 0 }
 0x3d6   :  { %24268 = vmatmul.mubr.f32.gmra.mrb[4].mxu0 %v29513_v6  ;;  %v6076_v6 = vld [vmem:[#allocation2 + $0x52] sm:$0xff] }
 0x3d7   :  { %24270 = vmatprep.mubr.f32.mxu0 %v29526_v2  ;;  %v6078_v2 = vld [vmem:[#allocation2 + $0x72] sm:$0xff] }
 0x3da   :  { %24271 = vmatmul.mubr.f32.gmra.mrb[6].mxu0 %v29540_v43 }
 0x3db   :  { %24273 = vmatprep.mubr.f32.mxu0 %v29532_v0 }
 0x3de   :  { %24274 = vmatmul.mubr.f32.gmra.mrb[8].mxu0 %v29556_v58 }
 0x3df   :  { %24276 = vmatprep.mubr.f32.mxu0 %v29560_v45 }
 0x3e2   :  { %24277 = vmatmul.mubr.f32.gmra.mrb[10].mxu0 %v29581_v60 }
 0x3e3   :  { %24279 = vmatprep.mubr.f32.mxu0 %v29586_v13 }
 0x3e6   :  { %24280 = vmatmul.mubr.f32.gmra.mrb[12].mxu0 %v29596_v46 }
 0x3e7   :  { %24282 = vmatprep.mubr.f32.mxu0 %v29605_v54 }
 0x3ea   :  { %24283 = vmatmul.mubr.f32.gmra.mrb[14].mxu0 %v29612_v59 }
 0x3eb   :  { %24287 = vmatprep.mubr.f32.mxu0 %v5033_v3 }
 0x3ee   :  { %24288 = vmatmul.mubr.f32.vlgmr.msra.gmra.mrb[0].mxu0 %v5043_v41  ;;  %v6072_v41 = vld [vmem:[#allocation2 + $0x12] sm:$0xff] }
 0x3ef   :  { %24312 = vmatpush3.msra.mxu0 %v29439_v22  ;;  %24290 = vmatprep.mubr.f32.mxu0 %v5053_v24  ;;  %v6139_v22 = vsel %vm307_vm3, %v21735_v62, 0  ;;  %v6091_v24 = vsel %vm155_vm0, %v6072_v41, 0  ;;  %v6127_v41 = vsel %vm155_vm0, %v6084_v28, 0 }
 0x3f0   :  { %24337 = vmatprep.subr.mxu0 %v29419_v8  ;;  %v29703_v44 = vand.u32 4294901760, %v6139_v22 }
 0x3f2   :  { %24291 = vmatmul.mubr.f32.gmra.mrb[2].mxu0 %v5063_v29 }
 0x3f3   :  { %24293 = vmatprep.mubr.f32.mxu0 %v5073_v40  ;;  %v6077_v40 = vld [vmem:[#allocation2 + $0x62] sm:$0xff] }
 0x3f4   :  { %v6106_v43 = vsel %vm155_vm0, %v6077_v40, 0 }
 0x3f6   :  { %24294 = vmatmul.mubr.f32.gmra.mrb[4].mxu0 %v5083_v57 }
 0x3f7   :  { %24296 = vmatprep.mubr.f32.mxu0 %v5093_v19  ;;  %v6109_v19 = vsel %vm155_vm0, %v6078_v2, 0 }
 0x3f8   :  { %v29777_v45 = vand.u32 4294901760, %v6109_v19 }
 0x3fa   :  { %24297 = vmatmul.mubr.f32.gmra.mrb[6].mxu0 %v5103_v31  ;;  %v29775_v31 = vand.u32 4294901760, %v6106_v43  ;;  %v29800_v25 = vsub.f32 %v6109_v19, %v29777_v45 }
 0x3fb   :  { %24299 = vmatprep.mubr.f32.mxu0 %v5113_v27 }
 0x3fc   :  { %v29797_v54 = vsub.f32 %v6106_v43, %v29775_v31 }
 0x3fe   :  { %24300 = vmatmul.mubr.f32.gmra.mrb[8].mxu0 %v5123_v33  ;;  %v6080_v33 = vld [vmem:[#allocation2 + $0xb2] sm:$0xff]  ;;  %v6259_v9 = vand.u32 4294901760, %v29797_v54 }
 0x3ff   :  { %24302 = vmatprep.mubr.f32.mxu0 %v5133_v55  ;;  %v6115_v46 = vsel %vm155_vm0, %v6080_v33, 0 }
 0x400   :  { %v29810_v32 = vand.u32 4294901760, %v6115_v46  ;;  %v6260_v11 = vsub.f32 %v29797_v54, %v6259_v9 }
 0x402   :  { %24303 = vmatmul.mubr.f32.gmra.mrb[10].mxu0 %v5143_v21  ;;  %v6081_v21 = vld [vmem:[#allocation2 + $0xc2] sm:$0xff]  ;;  %v6261_v33 = vand.u32 4294901760, %v6260_v11 }
 0x403   :  { %24305 = vmatprep.mubr.f32.mxu0 %v5153_v61 }
 0x406   :  { %24306 = vmatmul.mubr.f32.gmra.mrb[12].mxu0 %v5163_v38 }
 0x407   :  { %24308 = vmatprep.mubr.f32.mxu0 %v5173_v37  ;;  %v6121_v37 = vsel %vm155_vm0, %v6082_v53, 0 }
 0x408   :  { %v29824_v20 = vand.u32 4294901760, %v6121_v37 }
 0x40a   :  { %24309 = vmatmul.mubr.f32.gmra.mrb[14].mxu0 %v5183_v56  ;;  %v6269_v56 = vand.u32 4294901760, %v29800_v25 }
 0x40b   :  { %24313 = vmatprep.mubr.f32.mxu0 %v29459_v51 }
 0x40e   :  { %24314 = vmatmul.mubr.f32.vlgmr.msra.gmra.mrb[0].mxu0 %v29464_v35 }
 0x40f   :  { %24338 = vmatpush3.msra.mxu0 %v29419_v8  ;;  %24316 = vmatprep.mubr.f32.mxu0 %v29466_v63  ;;  %v29718_v8 = vsub.f32 %v6139_v22, %v29703_v44  ;;  %v29830_v22 = vsub.f32 %v6115_v46, %v29810_v32 }
 0x410   :  { %24363 = vmatprep.subr.mxu0 %v29703_v44 }
 0x411   :  { %v29723_v10 = vand.u32 4294901760, %v29718_v8  ;;  %v6289_v2 = vand.u32 4294901760, %v29830_v22 }
 0x412   :  { %24317 = vmatmul.mubr.f32.gmra.mrb[2].mxu0 %v29481_v15 }
 0x413   :  { %24319 = vmatprep.mubr.f32.mxu0 %v29485_v23  ;;  %v6371_v42 = vsub.f32 %v29718_v8, %v29723_v10 }
 0x415   :  { %v29731_v3 = vand.u32 4294901760, %v6371_v42  ;;  %v6124_v42 = vsel %vm155_vm0, %v6083_v4, 0 }
 0x416   :  { %24320 = vmatmul.mubr.f32.gmra.mrb[4].mxu0 %v29491_v50 }
 0x417   :  { %24322 = vmatprep.mubr.f32.mxu0 %v29504_v12 }
 0x41a   :  { %24323 = vmatmul.mubr.f32.gmra.mrb[6].mxu0 %v29521_v39 }
 0x41b   :  { %24325 = vmatprep.mubr.f32.mxu0 %v29515_v48 }
 0x41e   :  { %24326 = vmatmul.mubr.f32.gmra.mrb[8].mxu0 %v29534_v47 }
 0x41f   :  { %24328 = vmatprep.mubr.f32.mxu0 %v29542_v14 }
 0x422   :  { %24329 = vmatmul.mubr.f32.gmra.mrb[10].mxu0 %v29562_v16 }
 0x423   :  { %24331 = vmatprep.mubr.f32.mxu0 %v29568_v49 }
 0x426   :  { %24332 = vmatmul.mubr.f32.gmra.mrb[12].mxu0 %v29583_v26 }
 0x427   :  { %24334 = vmatprep.mubr.f32.mxu0 %v29588_v34 }
 0x42a   :  { %24335 = vmatmul.mubr.f32.gmra.mrb[14].mxu0 %v29598_v52 }
 0x42b   :  { %24339 = vmatprep.mubr.f32.mxu0 %v29459_v51  ;;  %v6074_v51 = vld [vmem:[#allocation2 + $0x32] sm:$0xff] }
 0x42e   :  { %24340 = vmatmul.mubr.f32.vlgmr.msra.gmra.mrb[0].mxu0 %v29464_v35  ;;  %v29742_v35 = vand.u32 4294901760, %v6091_v24 }
 0x42f   :  { %24364 = vmatpush3.msra.mxu0 %v29703_v44  ;;  %24342 = vmatprep.mubr.f32.mxu0 %v29466_v63  ;;  %v6097_v63 = vsel %vm155_vm0, %v6074_v51, 0  ;;  %v6270_v51 = vsub.f32 %v29800_v25, %v6269_v56 }
 0x430   :  { %24389 = vmatprep.subr.mxu0 %v29731_v3  ;;  %v29751_v29 = vsub.f32 %v6091_v24, %v29742_v35  ;;  %v6085_v24 = vld [vmem:[#allocation2 + $0x102] sm:$0xff] }
 0x431   :  { %v6130_v43 = vsel %vm155_vm0, %v6085_v24, 0 }
 0x432   :  { %24343 = vmatmul.mubr.f32.gmra.mrb[2].mxu0 %v29481_v15  ;;  %v6075_v15 = vld [vmem:[#allocation2 + $0x42] sm:$0xff]  ;;  %v6209_v57 = vand.u32 4294901760, %v29751_v29 }
 0x433   :  { %24345 = vmatprep.mubr.f32.mxu0 %v29485_v23  ;;  %v29748_v23 = vand.u32 4294901760, %v6094_v1 }
 0x434   :  { %v6210_v55 = vsub.f32 %v29751_v29, %v6209_v57 }
 0x436   :  { %24346 = vmatmul.mubr.f32.gmra.mrb[4].mxu0 %v29491_v50  ;;  %v29753_v50 = vand.u32 4294901760, %v6097_v63  ;;  %v6211_v17 = vand.u32 4294901760, %v6210_v55  ;;  %v6271_v55 = vand.u32 4294901760, %v6270_v51 }
 0x437   :  { %24348 = vmatprep.mubr.f32.mxu0 %v29504_v12  ;;  %v6100_v12 = vsel %vm155_vm0, %v6075_v15, 0 }
 0x438   :  { %v29763_v0 = vand.u32 4294901760, %v6100_v12  ;;  %v29768_v27 = vsub.f32 %v6097_v63, %v29753_v50  ;;  %v6086_v63 = vld [vmem:[#allocation2 + $0x112] sm:$0xff] }
 0x439   :  { %v6133_v19 = vsel %vm155_vm0, %v6086_v63, 0 }
 0x43a   :  { %24349 = vmatmul.mubr.f32.gmra.mrb[6].mxu0 %v29521_v39  ;;  %v6103_v39 = vsel %vm155_vm0, %v6076_v6, 0  ;;  %v29783_v60 = vsub.f32 %v6100_v12, %v29763_v0  ;;  %v6229_v13 = vand.u32 4294901760, %v29768_v27  ;;  %v29846_v12 = vsub.f32 %v6121_v37, %v29824_v20 }
 0x43b   :  { %24351 = vmatprep.mubr.f32.mxu0 %v29515_v48  ;;  %v29760_v48 = vsub.f32 %v6094_v1, %v29748_v23  ;;  %v29770_v58 = vand.u32 4294901760, %v6103_v39 }
 0x43c   :  { %v6239_v38 = vand.u32 4294901760, %v29783_v60  ;;  %v6309_v46 = vand.u32 4294901760, %v29846_v12 }
 0x43e   :  { %24352 = vmatmul.mubr.f32.gmra.mrb[8].mxu0 %v29534_v47  ;;  %v6079_v47 = vld [vmem:[#allocation2 + $0x82] sm:$0xff]  ;;  %v6240_v18 = vsub.f32 %v29783_v60, %v6239_v38 }
 0x43f   :  { %24354 = vmatprep.mubr.f32.mxu0 %v29542_v14  ;;  %v6219_v14 = vand.u32 4294901760, %v29760_v48 }
 0x440   :  { %v6241_v15 = vand.u32 4294901760, %v6240_v18 }
 0x441   :  { %v6220_v61 = vsub.f32 %v29760_v48, %v6219_v14 }
 0x442   :  { %24355 = vmatmul.mubr.f32.gmra.mrb[10].mxu0 %v29562_v16  ;;  %v29787_v16 = vsub.f32 %v6103_v39, %v29770_v58  ;;  %v29852_v39 = vand.u32 4294901760, %v6127_v41 }
 0x443   :  { %24357 = vmatprep.mubr.f32.mxu0 %v29568_v49  ;;  %v6112_v49 = vsel %vm155_vm0, %v6079_v47, 0  ;;  %v6221_v7 = vand.u32 4294901760, %v6220_v61  ;;  %v6087_v47 = vld [vmem:[#allocation2 + $0x122] sm:$0xff]  ;;  %v29864_v61 = vand.u32 4294901760, %v6130_v43 }
 0x444   :  { %v29803_v59 = vand.u32 4294901760, %v6112_v49  ;;  %v6249_v36 = vand.u32 4294901760, %v29787_v16  ;;  %v6136_v37 = vsel %vm155_vm0, %v6087_v47, 0 }
 0x445   :  { %v29880_v18 = vsub.f32 %v6130_v43, %v29864_v61 }
 0x446   :  { %24358 = vmatmul.mubr.f32.gmra.mrb[12].mxu0 %v29583_v26  ;;  %v6118_v26 = vsel %vm155_vm0, %v6081_v21, 0  ;;  %v29822_v30 = vsub.f32 %v6112_v49, %v29803_v59  ;;  %v6250_v62 = vsub.f32 %v29787_v16, %v6249_v36 }
 0x447   :  { %24360 = vmatprep.mubr.f32.mxu0 %v29588_v34  ;;  %v6230_v34 = vsub.f32 %v29768_v27, %v6229_v13  ;;  %v29816_v5 = vand.u32 4294901760, %v6118_v26  ;;  %v6339_v63 = vand.u32 4294901760, %v29880_v18 }
 0x448   :  { %v6279_v6 = vand.u32 4294901760, %v29822_v30  ;;  %v6251_v40 = vand.u32 4294901760, %v6250_v62 }
 0x449   :  { %v29842_v1 = vsub.f32 %v6118_v26, %v29816_v5  ;;  %v29870_v26 = vsub.f32 %v6127_v41, %v29852_v39 }
 0x44a   :  { %24361 = vmatmul.mubr.f32.gmra.mrb[14].mxu0 %v29598_v52  ;;  %v6231_v52 = vand.u32 4294901760, %v6230_v34  ;;  %v6280_v21 = vsub.f32 %v29822_v30, %v6279_v6  ;;  %v29872_v34 = vand.u32 4294901760, %v6133_v19 }
 0x44b   :  { %24365 = vmatprep.mubr.f32.mxu0 %v6211_v17  ;;  %v6299_v49 = vand.u32 4294901760, %v29842_v1  ;;  %v6290_v17 = vsub.f32 %v29830_v22, %v6289_v2  ;;  %v6329_v41 = vand.u32 4294901760, %v29870_v26 }
 0x44c   :  { %v6281_v28 = vand.u32 4294901760, %v6280_v21  ;;  %v29889_v24 = vsub.f32 %v6133_v19, %v29872_v34 }
 0x44d   :  { %v6300_v4 = vsub.f32 %v29842_v1, %v6299_v49  ;;  %v6291_v62 = vand.u32 4294901760, %v6290_v17  ;;  %v6330_v43 = vsub.f32 %v29870_v26, %v6329_v41 }
 0x44e   :  { %24366 = vmatmul.mubr.f32.vlgmr.msra.gmra.mrb[0].mxu0 %v6221_v7  ;;  %v6349_v19 = vand.u32 4294901760, %v29889_v24 }
 0x44f   :  { %24390 = vmatpush3.msra.mxu0 %v29731_v3  ;;  %24368 = vmatprep.mubr.f32.mxu0 %v6231_v52  ;;  %v29848_v3 = vand.u32 4294901760, %v6124_v42  ;;  %v29882_v52 = vand.u32 4294901760, %v6136_v37  ;;  %v6301_v11 = vand.u32 4294901760, %v6300_v4  ;;  %v6331_v21 = vand.u32 4294901760, %v6330_v43 }
 0x450   :  { %24415 = vmatprep.subr.mxu0 %v29718_v8  ;;  %v6350_v17 = vsub.f32 %v29889_v24, %v6349_v19 }
 0x451   :  { %v29862_v53 = vsub.f32 %v6124_v42, %v29848_v3  ;;  %v6310_v42 = vsub.f32 %v29846_v12, %v6309_v46 }
 0x452   :  { %24369 = vmatmul.mubr.f32.gmra.mrb[2].mxu0 %v6241_v15  ;;  %v29896_v15 = vsub.f32 %v6136_v37, %v29882_v52 }
 0x453   :  { %24371 = vmatprep.mubr.f32.mxu0 %v6251_v40  ;;  %v6319_v7 = vand.u32 4294901760, %v29862_v53  ;;  %v6311_v40 = vand.u32 4294901760, %v6310_v42  ;;  %v7258_v42 = vld [vmem:[#allocation2 + $0xd0] sm:$0xff] }
 0x454   :  { %v7295_v43 = vsel %vm155_vm0, %v7258_v42, 0 }
 0x455   :  { %v6320_v51 = vsub.f32 %v29862_v53, %v6319_v7 }
 0x456   :  { %24372 = vmatmul.mubr.f32.gmra.mrb[4].mxu0 %v6261_v33  ;;  %v6340_v33 = vsub.f32 %v29880_v18, %v6339_v63 }
 0x457   :  { %24374 = vmatprep.mubr.f32.mxu0 %v6271_v55  ;;  %v6321_v47 = vand.u32 4294901760, %v6320_v51  ;;  %v6359_v55 = vand.u32 4294901760, %v29896_v15 }
 0x458   :  { %v6341_v37 = vand.u32 4294901760, %v6340_v33  ;;  %v7260_v33 = vld [vmem:[#allocation2 + $0xf0] sm:$0xff] }
 0x459   :  { %v6360_v4 = vsub.f32 %v29896_v15, %v6359_v55 }
 0x45a   :  { %24375 = vmatmul.mubr.f32.gmra.mrb[6].mxu0 %v6281_v28  ;;  %v6351_v28 = vand.u32 4294901760, %v6350_v17  ;;  %v7261_v17 = vld [vmem:[#allocation2 + $0x100] sm:$0xff] }
 0x45b   :  { %24377 = vmatprep.mubr.f32.mxu0 %v6291_v62  ;;  %v6361_v62 = vand.u32 4294901760, %v6360_v4 }
 0x45e   :  { %24378 = vmatmul.mubr.f32.gmra.mrb[8].mxu0 %v6301_v11  ;;  %v7259_v11 = vld [vmem:[#allocation2 + $0xe0] sm:$0xff] }
 0x45f   :  { %24380 = vmatprep.mubr.f32.mxu0 %v6311_v40 }
 0x462   :  { %24381 = vmatmul.mubr.f32.gmra.mrb[10].mxu0 %v6321_v47  ;;  %v7298_v47 = vsel %vm155_vm0, %v7259_v11, 0 }
 0x463   :  { %24383 = vmatprep.mubr.f32.mxu0 %v6331_v21 }
 0x466   :  { %24384 = vmatmul.mubr.f32.gmra.mrb[12].mxu0 %v6341_v37 }
 0x467   :  { %24386 = vmatprep.mubr.f32.mxu0 %v6351_v28  ;;  %v30111_v28 = vand.u32 4294901760, %v7295_v43 }
 0x46a   :  { %24387 = vmatmul.mubr.f32.gmra.mrb[14].mxu0 %v6361_v62 }
 0x46b   :  { %24391 = vmatprep.mubr.f32.mxu0 %v29742_v35 }
 0x46e   :  { %24392 = vmatmul.mubr.f32.vlgmr.msra.gmra.mrb[0].mxu0 %v29748_v23 }
 0x46f   :  { %24416 = vmatpush3.msra.mxu0 %v29718_v8  ;;  %24394 = vmatprep.mubr.f32.mxu0 %v29753_v50  ;;  %v21736_v8 = vld [vmem:[%s33767_s1 + $0x18] sm:$0xf] }
 0x470   :  { %24441 = vmatprep.subr.mxu0 %v29703_v44 }
 0x472   :  { %24395 = vmatmul.mubr.f32.gmra.mrb[2].mxu0 %v29763_v0 }
 0x473   :  { %24397 = vmatprep.mubr.f32.mxu0 %v29770_v58 }
 0x476   :  { %24398 = vmatmul.mubr.f32.gmra.mrb[4].mxu0 %v29775_v31 }
 0x477   :  { %24400 = vmatprep.mubr.f32.mxu0 %v29777_v45 }
 0x47a   :  { %24401 = vmatmul.mubr.f32.gmra.mrb[6].mxu0 %v29803_v59 }
 0x47b   :  { %24403 = vmatprep.mubr.f32.mxu0 %v29810_v32 }
 0x47e   :  { %24404 = vmatmul.mubr.f32.gmra.mrb[8].mxu0 %v29816_v5 }
 0x47f   :  { %24406 = vmatprep.mubr.f32.mxu0 %v29824_v20 }
 0x482   :  { %24407 = vmatmul.mubr.f32.gmra.mrb[10].mxu0 %v29848_v3 }
 0x483   :  { %24409 = vmatprep.mubr.f32.mxu0 %v29852_v39 }
 0x486   :  { %24410 = vmatmul.mubr.f32.gmra.mrb[12].mxu0 %v29864_v61 }
 0x487   :  { %24412 = vmatprep.mubr.f32.mxu0 %v29872_v34 }
 0x48a   :  { %24413 = vmatmul.mubr.f32.gmra.mrb[14].mxu0 %v29882_v52 }
 0x48b   :  { %24417 = vmatprep.mubr.f32.mxu0 %v29751_v29 }
 0x48e   :  { %24418 = vmatmul.mubr.f32.vlgmr.msra.gmra.mrb[0].mxu0 %v29760_v48 }
 0x48f   :  { %24442 = vmatpush3.msra.mxu0 %v29703_v44  ;;  %24420 = vmatprep.mubr.f32.mxu0 %v29768_v27 }
 0x490   :  { %24467 = vmatprep.subr.mxu0 %v29723_v10 }
 0x492   :  { %24421 = vmatmul.mubr.f32.gmra.mrb[2].mxu0 %v29783_v60 }
 0x493   :  { %24423 = vmatprep.mubr.f32.mxu0 %v29787_v16 }
 0x496   :  { %24424 = vmatmul.mubr.f32.gmra.mrb[4].mxu0 %v29797_v54  ;;  %v7253_v54 = vld [vmem:[#allocation2 + $0x60] sm:$0xff] }
 0x497   :  { %24426 = vmatprep.mubr.f32.mxu0 %v29800_v25 }
 0x49a   :  { %24427 = vmatmul.mubr.f32.gmra.mrb[6].mxu0 %v29822_v30  ;;  %v7256_v30 = vld [vmem:[#allocation2 + $0x90] sm:$0xff] }
 0x49b   :  { %24429 = vmatprep.mubr.f32.mxu0 %v29830_v22 }
 0x49e   :  { %24430 = vmatmul.mubr.f32.gmra.mrb[8].mxu0 %v29842_v1 }
 0x49f   :  { %24432 = vmatprep.mubr.f32.mxu0 %v29846_v12 }
 0x4a2   :  { %24433 = vmatmul.mubr.f32.gmra.mrb[10].mxu0 %v29862_v53 }
 0x4a3   :  { %24435 = vmatprep.mubr.f32.mxu0 %v29870_v26 }
 0x4a6   :  { %24436 = vmatmul.mubr.f32.gmra.mrb[12].mxu0 %v29880_v18 }
 0x4a7   :  { %24438 = vmatprep.mubr.f32.mxu0 %v29889_v24 }
 0x4aa   :  { %24439 = vmatmul.mubr.f32.gmra.mrb[14].mxu0 %v29896_v15 }
 0x4ab   :  { %24443 = vmatprep.mubr.f32.mxu0 %v6209_v57 }
 0x4ae   :  { %24444 = vmatmul.mubr.f32.vlgmr.msra.gmra.mrb[0].mxu0 %v6219_v14  ;;  %v7249_v14 = vld [vmem:[#allocation2 + $0x20] sm:$0xff] }
 0x4af   :  { %24468 = vmatpush3.msra.mxu0 %v29723_v10  ;;  %24446 = vmatprep.mubr.f32.mxu0 %v6229_v13  ;;  %v7316_v10 = vsel %vm307_vm3, %v21736_v8, 0  ;;  %v7268_v60 = vsel %vm155_vm0, %v7249_v14, 0  ;;  %v7251_v13 = vld [vmem:[#allocation2 + $0x40] sm:$0xff] }
 0x4b0   :  { %24493 = vmatprep.subr.mxu0 %v29703_v44  ;;  %v29987_v29 = vand.u32 4294901760, %v7316_v10 }
 0x4b2   :  { %24447 = vmatmul.mubr.f32.gmra.mrb[2].mxu0 %v6239_v38  ;;  %v7280_v38 = vsel %vm155_vm0, %v7253_v54, 0 }
 0x4b3   :  { %24449 = vmatprep.mubr.f32.mxu0 %v6249_v36  ;;  %v7254_v36 = vld [vmem:[#allocation2 + $0x70] sm:$0xff] }
 0x4b6   :  { %24450 = vmatmul.mubr.f32.gmra.mrb[4].mxu0 %v6259_v9  ;;  %v7255_v9 = vld [vmem:[#allocation2 + $0x80] sm:$0xff] }
 0x4b7   :  { %24452 = vmatprep.mubr.f32.mxu0 %v6269_v56  ;;  %v30048_v56 = vand.u32 4294901760, %v7280_v38 }
 0x4ba   :  { %24453 = vmatmul.mubr.f32.gmra.mrb[6].mxu0 %v6279_v6  ;;  %v7283_v6 = vsel %vm155_vm0, %v7254_v36, 0  ;;  %v7264_v36 = vld [vmem:[#allocation2 + $0x130] sm:$0xff] }
 0x4bb   :  { %24455 = vmatprep.mubr.f32.mxu0 %v6289_v2  ;;  %v7289_v2 = vsel %vm155_vm0, %v7256_v30, 0  ;;  %v30066_v53 = vand.u32 4294901760, %v7283_v6 }
 0x4bc   :  { %v30076_v18 = vand.u32 4294901760, %v7289_v2 }
 0x4bd   :  { %v30087_v15 = vsub.f32 %v7283_v6, %v30066_v53 }
 0x4be   :  { %24456 = vmatmul.mubr.f32.gmra.mrb[8].mxu0 %v6299_v49 }
 0x4bf   :  { %24458 = vmatprep.mubr.f32.mxu0 %v6309_v46  ;;  %v30064_v46 = vsub.f32 %v7280_v38, %v30048_v56  ;;  %v7436_v4 = vand.u32 4294901760, %v30087_v15 }
 0x4c1   :  { %v7437_v54 = vsub.f32 %v30087_v15, %v7436_v4 }
 0x4c2   :  { %24459 = vmatmul.mubr.f32.gmra.mrb[10].mxu0 %v6319_v7 }
 0x4c3   :  { %24461 = vmatprep.mubr.f32.mxu0 %v6329_v41 }
 0x4c6   :  { %24462 = vmatmul.mubr.f32.gmra.mrb[12].mxu0 %v6339_v63  ;;  %v7426_v63 = vand.u32 4294901760, %v30064_v46 }
 0x4c7   :  { %24464 = vmatprep.mubr.f32.mxu0 %v6349_v19  ;;  %v30098_v19 = vsub.f32 %v7289_v2, %v30076_v18 }
 0x4c9   :  { %v7456_v14 = vand.u32 4294901760, %v30098_v19 }
 0x4ca   :  { %24465 = vmatmul.mubr.f32.gmra.mrb[14].mxu0 %v6359_v55 }
 0x4cb   :  { %24469 = vmatprep.mubr.f32.mxu0 %v29742_v35 }
 0x4ce   :  { %24470 = vmatmul.mubr.f32.vlgmr.msra.gmra.mrb[0].mxu0 %v29748_v23 }
 0x4cf   :  { %24494 = vmatpush3.msra.mxu0 %v29703_v44  ;;  %24472 = vmatprep.mubr.f32.mxu0 %v29753_v50  ;;  %v30002_v44 = vsub.f32 %v7316_v10, %v29987_v29  ;;  %v30114_v10 = vand.u32 4294901760, %v7298_v47 }
 0x4d0   :  { %24519 = vmatprep.subr.mxu0 %v29987_v29 }
 0x4d1   :  { %v30007_v48 = vand.u32 4294901760, %v30002_v44 }
 0x4d2   :  { %24473 = vmatmul.mubr.f32.gmra.mrb[2].mxu0 %v29763_v0 }
 0x4d3   :  { %24475 = vmatprep.mubr.f32.mxu0 %v29770_v58  ;;  %v7548_v57 = vsub.f32 %v30002_v44, %v30007_v48 }
 0x4d5   :  { %v30015_v27 = vand.u32 4294901760, %v7548_v57  ;;  %v7301_v57 = vsel %vm155_vm0, %v7260_v33, 0 }
 0x4d6   :  { %24476 = vmatmul.mubr.f32.gmra.mrb[4].mxu0 %v29775_v31  ;;  %v30127_v38 = vand.u32 4294901760, %v7301_v57 }
 0x4d7   :  { %24478 = vmatprep.mubr.f32.mxu0 %v29777_v45 }
 0x4d8   :  { %v30149_v11 = vsub.f32 %v7301_v57, %v30127_v38 }
 0x4da   :  { %24479 = vmatmul.mubr.f32.gmra.mrb[6].mxu0 %v29803_v59 }
 0x4db   :  { %24481 = vmatprep.mubr.f32.mxu0 %v29810_v32 }
 0x4de   :  { %24482 = vmatmul.mubr.f32.gmra.mrb[8].mxu0 %v29816_v5 }
 0x4df   :  { %24484 = vmatprep.mubr.f32.mxu0 %v29824_v20 }
 0x4e2   :  { %24485 = vmatmul.mubr.f32.gmra.mrb[10].mxu0 %v29848_v3 }
 0x4e3   :  { %24487 = vmatprep.mubr.f32.mxu0 %v29852_v39 }
 0x4e6   :  { %24488 = vmatmul.mubr.f32.gmra.mrb[12].mxu0 %v29864_v61 }
 0x4e7   :  { %24490 = vmatprep.mubr.f32.mxu0 %v29872_v34 }
 0x4ea   :  { %24491 = vmatmul.mubr.f32.gmra.mrb[14].mxu0 %v29882_v52 }
 0x4eb   :  { %24495 = vmatprep.mubr.f32.mxu0 %v29742_v35  ;;  %v7250_v35 = vld [vmem:[#allocation2 + $0x30] sm:$0xff] }
 0x4ec   :  { %v7271_v16 = vsel %vm155_vm0, %v7250_v35, 0  ;;  %v7262_v35 = vld [vmem:[#allocation2 + $0x110] sm:$0xff] }
 0x4ed   :  { %v7307_v6 = vsel %vm155_vm0, %v7262_v35, 0 }
 0x4ee   :  { %24496 = vmatmul.mubr.f32.vlgmr.msra.gmra.mrb[0].mxu0 %v29748_v23  ;;  %v30026_v23 = vand.u32 4294901760, %v7268_v60 }
 0x4ef   :  { %24520 = vmatpush3.msra.mxu0 %v29987_v29  ;;  %24498 = vmatprep.mubr.f32.mxu0 %v29753_v50  ;;  %v7252_v50 = vld [vmem:[#allocation2 + $0x50] sm:$0xff] }
 0x4f0   :  { %24545 = vmatprep.subr.mxu0 %v30015_v27  ;;  %v30036_v25 = vsub.f32 %v7268_v60, %v30026_v23  ;;  %v7304_v60 = vsel %vm155_vm0, %v7261_v17, 0 }
 0x4f1   :  { %v30136_v30 = vand.u32 4294901760, %v7304_v60 }
 0x4f2   :  { %24499 = vmatmul.mubr.f32.gmra.mrb[2].mxu0 %v29763_v0  ;;  %v7274_v0 = vsel %vm155_vm0, %v7251_v13, 0  ;;  %v7386_v22 = vand.u32 4294901760, %v30036_v25 }
 0x4f3   :  { %24501 = vmatprep.mubr.f32.mxu0 %v29770_v58  ;;  %v30032_v58 = vand.u32 4294901760, %v7271_v16 }
 0x4f6   :  { %24502 = vmatmul.mubr.f32.gmra.mrb[4].mxu0 %v29775_v31  ;;  %v7277_v31 = vsel %vm155_vm0, %v7252_v50, 0  ;;  %v7263_v50 = vld [vmem:[#allocation2 + $0x120] sm:$0xff] }
 0x4f7   :  { %24504 = vmatprep.mubr.f32.mxu0 %v29777_v45  ;;  %v30038_v45 = vand.u32 4294901760, %v7274_v0 }
 0x4f9   :  { %v30052_v1 = vsub.f32 %v7274_v0, %v30038_v45 }
 0x4fa   :  { %24505 = vmatmul.mubr.f32.gmra.mrb[6].mxu0 %v29803_v59  ;;  %v30043_v59 = vand.u32 4294901760, %v7277_v31 }
 0x4fb   :  { %24507 = vmatprep.mubr.f32.mxu0 %v29810_v32  ;;  %v30046_v32 = vsub.f32 %v7271_v16, %v30032_v58 }
 0x4fc   :  { %v30059_v12 = vsub.f32 %v7277_v31, %v30043_v59  ;;  %v30125_v31 = vsub.f32 %v7295_v43, %v30111_v28  ;;  %v30155_v43 = vsub.f32 %v7304_v60, %v30136_v30 }
 0x4fd   :  { %v7396_v49 = vand.u32 4294901760, %v30046_v32 }
 0x4fe   :  { %24508 = vmatmul.mubr.f32.gmra.mrb[8].mxu0 %v29816_v5  ;;  %v7257_v5 = vld [vmem:[#allocation2 + $0xc0] sm:$0xff]  ;;  %v7416_v41 = vand.u32 4294901760, %v30059_v12  ;;  %v7476_v42 = vand.u32 4294901760, %v30125_v31  ;;  %v7506_v60 = vand.u32 4294901760, %v30155_v43 }
 0x4ff   :  { %24510 = vmatprep.mubr.f32.mxu0 %v29824_v20  ;;  %v7286_v20 = vsel %vm155_vm0, %v7255_v9, 0  ;;  %v7292_v26 = vsel %vm155_vm0, %v7257_v5, 0  ;;  %v7397_v51 = vsub.f32 %v30046_v32, %v7396_v49  ;;  %v30134_v9 = vsub.f32 %v7298_v47, %v30114_v10 }
 0x500   :  { %v30073_v7 = vand.u32 4294901760, %v7286_v20  ;;  %v30080_v24 = vand.u32 4294901760, %v7292_v26  ;;  %v7417_v55 = vsub.f32 %v30059_v12, %v7416_v41  ;;  %v7457_v5 = vsub.f32 %v30098_v19, %v7456_v14 }
 0x501   :  { %v7398_v37 = vand.u32 4294901760, %v7397_v51  ;;  %v30151_v51 = vand.u32 4294901760, %v7307_v6  ;;  %v7477_v17 = vsub.f32 %v30125_v31, %v7476_v42 }
 0x502   :  { %24511 = vmatmul.mubr.f32.gmra.mrb[10].mxu0 %v29848_v3  ;;  %v7387_v3 = vsub.f32 %v30036_v25, %v7386_v22  ;;  %v30105_v21 = vsub.f32 %v7292_v26, %v30080_v24  ;;  %v7418_v13 = vand.u32 4294901760, %v7417_v55  ;;  %v7313_v26 = vsel %vm155_vm0, %v7264_v36, 0 }
 0x503   :  { %24513 = vmatprep.mubr.f32.mxu0 %v29852_v39  ;;  %v7406_v39 = vand.u32 4294901760, %v30052_v1  ;;  %v7458_v33 = vand.u32 4294901760, %v7457_v5  ;;  %v30159_v55 = vand.u32 4294901760, %v7313_v26 }
 0x504   :  { %v7466_v16 = vand.u32 4294901760, %v30105_v21 }
 0x505   :  { %v7407_v40 = vsub.f32 %v30052_v1, %v7406_v39 }
 0x506   :  { %24514 = vmatmul.mubr.f32.gmra.mrb[12].mxu0 %v29864_v61  ;;  %v7388_v61 = vand.u32 4294901760, %v7387_v3  ;;  %v7467_v2 = vsub.f32 %v30105_v21, %v7466_v16  ;;  %v7438_v3 = vand.u32 4294901760, %v7437_v54 }
 0x507   :  { %24516 = vmatprep.mubr.f32.mxu0 %v29872_v34  ;;  %v30093_v34 = vsub.f32 %v7286_v20, %v30073_v7  ;;  %v7408_v62 = vand.u32 4294901760, %v7407_v40  ;;  %v7310_v20 = vsel %vm155_vm0, %v7263_v50, 0  ;;  %v7486_v40 = vand.u32 4294901760, %v30134_v9 }
 0x508   :  { %v30157_v47 = vand.u32 4294901760, %v7310_v20  ;;  %v7478_v50 = vand.u32 4294901760, %v7477_v17 }
 0x509   :  { %v7446_v8 = vand.u32 4294901760, %v30093_v34  ;;  %v7487_v57 = vsub.f32 %v30134_v9, %v7486_v40 }
 0x50a   :  { %24517 = vmatmul.mubr.f32.gmra.mrb[14].mxu0 %v29882_v52  ;;  %v7427_v52 = vsub.f32 %v30064_v46, %v7426_v63  ;;  %v30173_v35 = vsub.f32 %v7310_v20, %v30157_v47 }
 0x50b   :  { %24521 = vmatprep.mubr.f32.mxu0 %v7388_v61  ;;  %v7488_v36 = vand.u32 4294901760, %v7487_v57 }
 0x50c   :  { %v7428_v0 = vand.u32 4294901760, %v7427_v52  ;;  %v30166_v52 = vsub.f32 %v7307_v6, %v30151_v51  ;;  %v7526_v6 = vand.u32 4294901760, %v30173_v35 }
 0x50e   :  { %24522 = vmatmul.mubr.f32.vlgmr.msra.gmra.mrb[0].mxu0 %v7398_v37  ;;  %v7496_v37 = vand.u32 4294901760, %v30149_v11  ;;  %v7516_v54 = vand.u32 4294901760, %v30166_v52 }
 0x50f   :  { %24546 = vmatpush3.msra.mxu0 %v30015_v27  ;;  %24524 = vmatprep.mubr.f32.mxu0 %v7408_v62  ;;  %v7447_v27 = vsub.f32 %v30093_v34, %v7446_v8  ;;  %v7468_v62 = vand.u32 4294901760, %v7467_v2 }
 0x510   :  { %24571 = vmatprep.subr.mxu0 %v30002_v44  ;;  %v7517_v2 = vsub.f32 %v30166_v52, %v7516_v54 }
 0x511   :  { %v7448_v61 = vand.u32 4294901760, %v7447_v27  ;;  %v7507_v27 = vsub.f32 %v30155_v43, %v7506_v60 }
 0x512   :  { %24525 = vmatmul.mubr.f32.gmra.mrb[2].mxu0 %v7418_v13  ;;  %v30176_v13 = vsub.f32 %v7313_v26, %v30159_v55 }
 0x513   :  { %24527 = vmatprep.mubr.f32.mxu0 %v7428_v0  ;;  %v7497_v0 = vsub.f32 %v30149_v11, %v7496_v37  ;;  %v7508_v26 = vand.u32 4294901760, %v7507_v27 }
 0x514   :  { %v7536_v5 = vand.u32 4294901760, %v30176_v13 }
 0x515   :  { %v7498_v20 = vand.u32 4294901760, %v7497_v0 }
 0x516   :  { %24528 = vmatmul.mubr.f32.gmra.mrb[4].mxu0 %v7438_v3  ;;  %v7527_v3 = vsub.f32 %v30173_v35, %v7526_v6 }
 0x517   :  { %24530 = vmatprep.mubr.f32.mxu0 %v7448_v61  ;;  %v7537_v61 = vsub.f32 %v30176_v13, %v7536_v5 }
 0x518   :  { %v7528_v17 = vand.u32 4294901760, %v7527_v3  ;;  %v8437_v3 = vld [vmem:[#allocation2 + $0x101] sm:$0xff] }
 0x51a   :  { %24531 = vmatmul.mubr.f32.gmra.mrb[6].mxu0 %v7458_v33  ;;  %v7518_v33 = vand.u32 4294901760, %v7517_v2 }
 0x51b   :  { %24533 = vmatprep.mubr.f32.mxu0 %v7468_v62  ;;  %v7538_v62 = vand.u32 4294901760, %v7537_v61 }
 0x51e   :  { %24534 = vmatmul.mubr.f32.gmra.mrb[8].mxu0 %v7478_v50 }
 0x51f   :  { %24536 = vmatprep.mubr.f32.mxu0 %v7488_v36 }
 0x522   :  { %24537 = vmatmul.mubr.f32.gmra.mrb[10].mxu0 %v7498_v20  ;;  %v8436_v20 = vld [vmem:[#allocation2 + $0xf1] sm:$0xff] }
 0x523   :  { %24539 = vmatprep.mubr.f32.mxu0 %v7508_v26 }
 0x526   :  { %24540 = vmatmul.mubr.f32.gmra.mrb[12].mxu0 %v7518_v33 }
 0x527   :  { %24542 = vmatprep.mubr.f32.mxu0 %v7528_v17 }
 0x52a   :  { %24543 = vmatmul.mubr.f32.gmra.mrb[14].mxu0 %v7538_v62 }
 0x52b   :  { %24547 = vmatprep.mubr.f32.mxu0 %v30026_v23 }
 0x52e   :  { %24548 = vmatmul.mubr.f32.vlgmr.msra.gmra.mrb[0].mxu0 %v30032_v58 }
 0x52f   :  { %24572 = vmatpush3.msra.mxu0 %v30002_v44  ;;  %24550 = vmatprep.mubr.f32.mxu0 %v30038_v45  ;;  %v21737_v44 = vld [vmem:[%s33767_s1 + $0x1c] sm:$0xf] }
 0x530   :  { %24597 = vmatprep.subr.mxu0 %v29987_v29 }
 0x532   :  { %24551 = vmatmul.mubr.f32.gmra.mrb[2].mxu0 %v30043_v59 }
 0x533   :  { %24553 = vmatprep.mubr.f32.mxu0 %v30048_v56 }
 0x536   :  { %24554 = vmatmul.mubr.f32.gmra.mrb[4].mxu0 %v30066_v53 }
 0x537   :  { %24556 = vmatprep.mubr.f32.mxu0 %v30073_v7 }
 0x53a   :  { %24557 = vmatmul.mubr.f32.gmra.mrb[6].mxu0 %v30076_v18 }
 0x53b   :  { %24559 = vmatprep.mubr.f32.mxu0 %v30080_v24 }
 0x53e   :  { %24560 = vmatmul.mubr.f32.gmra.mrb[8].mxu0 %v30111_v28 }
 0x53f   :  { %24562 = vmatprep.mubr.f32.mxu0 %v30114_v10 }
 0x542   :  { %24563 = vmatmul.mubr.f32.gmra.mrb[10].mxu0 %v30127_v38 }
 0x543   :  { %24565 = vmatprep.mubr.f32.mxu0 %v30136_v30 }
 0x546   :  { %24566 = vmatmul.mubr.f32.gmra.mrb[12].mxu0 %v30151_v51 }
 0x547   :  { %24568 = vmatprep.mubr.f32.mxu0 %v30157_v47 }
 0x54a   :  { %24569 = vmatmul.mubr.f32.gmra.mrb[14].mxu0 %v30159_v55 }
 0x54b   :  { %24573 = vmatprep.mubr.f32.mxu0 %v30036_v25 }
 0x54e   :  { %24574 = vmatmul.mubr.f32.vlgmr.msra.gmra.mrb[0].mxu0 %v30046_v32 }
 0x54f   :  { %24598 = vmatpush3.msra.mxu0 %v29987_v29  ;;  %24576 = vmatprep.mubr.f32.mxu0 %v30052_v1 }
 0x550   :  { %24623 = vmatprep.subr.mxu0 %v30007_v48 }
 0x552   :  { %24577 = vmatmul.mubr.f32.gmra.mrb[2].mxu0 %v30059_v12  ;;  %v8425_v12 = vld [vmem:[#allocation2 + $0x21] sm:$0xff] }
 0x553   :  { %24579 = vmatprep.mubr.f32.mxu0 %v30064_v46  ;;  %v8427_v46 = vld [vmem:[#allocation2 + $0x41] sm:$0xff] }
 0x556   :  { %24580 = vmatmul.mubr.f32.gmra.mrb[4].mxu0 %v30087_v15 }
 0x557   :  { %24582 = vmatprep.mubr.f32.mxu0 %v30093_v34  ;;  %v8430_v34 = vld [vmem:[#allocation2 + $0x71] sm:$0xff] }
 0x55a   :  { %24583 = vmatmul.mubr.f32.gmra.mrb[6].mxu0 %v30098_v19  ;;  %v8431_v19 = vld [vmem:[#allocation2 + $0x81] sm:$0xff] }
 0x55b   :  { %24585 = vmatprep.mubr.f32.mxu0 %v30105_v21 }
 0x55e   :  { %24586 = vmatmul.mubr.f32.gmra.mrb[8].mxu0 %v30125_v31 }
 0x55f   :  { %24588 = vmatprep.mubr.f32.mxu0 %v30134_v9 }
 0x562   :  { %24589 = vmatmul.mubr.f32.gmra.mrb[10].mxu0 %v30149_v11 }
 0x563   :  { %24591 = vmatprep.mubr.f32.mxu0 %v30155_v43 }
 0x566   :  { %24592 = vmatmul.mubr.f32.gmra.mrb[12].mxu0 %v30166_v52  ;;  %v8434_v52 = vld [vmem:[#allocation2 + $0xd1] sm:$0xff] }
 0x567   :  { %24594 = vmatprep.mubr.f32.mxu0 %v30173_v35 }
 0x56a   :  { %24595 = vmatmul.mubr.f32.gmra.mrb[14].mxu0 %v30176_v13  ;;  %v8435_v13 = vld [vmem:[#allocation2 + $0xe1] sm:$0xff] }
 0x56b   :  { %24599 = vmatprep.mubr.f32.mxu0 %v7386_v22 }
 0x56e   :  { %24600 = vmatmul.mubr.f32.vlgmr.msra.gmra.mrb[0].mxu0 %v7396_v49  ;;  %v8426_v49 = vld [vmem:[#allocation2 + $0x31] sm:$0xff] }
 0x56f   :  { %24624 = vmatpush3.msra.mxu0 %v30007_v48  ;;  %24602 = vmatprep.mubr.f32.mxu0 %v7406_v39  ;;  %v8492_v48 = vsel %vm307_vm3, %v21737_v44, 0 }
 0x570   :  { %24649 = vmatprep.subr.mxu0 %v29987_v29  ;;  %v30271_v25 = vand.u32 4294901760, %v8492_v48 }
 0x572   :  { %24603 = vmatmul.mubr.f32.gmra.mrb[2].mxu0 %v7416_v41  ;;  %v8429_v41 = vld [vmem:[#allocation2 + $0x61] sm:$0xff] }
 0x573   :  { %24605 = vmatprep.mubr.f32.mxu0 %v7426_v63  ;;  %v8456_v15 = vsel %vm155_vm0, %v8429_v41, 0 }
 0x574   :  { %v30332_v21 = vand.u32 4294901760, %v8456_v15 }
 0x576   :  { %24606 = vmatmul.mubr.f32.gmra.mrb[4].mxu0 %v7436_v4  ;;  %v8432_v4 = vld [vmem:[#allocation2 + $0x91] sm:$0xff]  ;;  %v30348_v11 = vsub.f32 %v8456_v15, %v30332_v21 }
 0x577   :  { %24608 = vmatprep.mubr.f32.mxu0 %v7446_v8 }
 0x578   :  { %v8602_v50 = vand.u32 4294901760, %v30348_v11 }
 0x57a   :  { %24609 = vmatmul.mubr.f32.gmra.mrb[6].mxu0 %v7456_v14  ;;  %v8603_v33 = vsub.f32 %v30348_v11, %v8602_v50 }
 0x57b   :  { %24611 = vmatprep.mubr.f32.mxu0 %v7466_v16  ;;  %v8459_v16 = vsel %vm155_vm0, %v8430_v34, 0  ;;  %v8440_v34 = vld [vmem:[#allocation2 + $0x131] sm:$0xff] }
 0x57e   :  { %24612 = vmatmul.mubr.f32.gmra.mrb[8].mxu0 %v7476_v42  ;;  %v8465_v42 = vsel %vm155_vm0, %v8432_v4, 0 }
 0x57f   :  { %24614 = vmatprep.mubr.f32.mxu0 %v7486_v40  ;;  %v30350_v40 = vand.u32 4294901760, %v8459_v16  ;;  %v30360_v57 = vand.u32 4294901760, %v8465_v42 }
 0x581   :  { %v30369_v0 = vsub.f32 %v8459_v16, %v30350_v40 }
 0x582   :  { %24615 = vmatmul.mubr.f32.gmra.mrb[10].mxu0 %v7496_v37 }
 0x583   :  { %24617 = vmatprep.mubr.f32.mxu0 %v7506_v60 }
 0x586   :  { %24618 = vmatmul.mubr.f32.gmra.mrb[12].mxu0 %v7516_v54 }
 0x587   :  { %24620 = vmatprep.mubr.f32.mxu0 %v7526_v6  ;;  %v30382_v6 = vsub.f32 %v8465_v42, %v30360_v57 }
 0x58a   :  { %24621 = vmatmul.mubr.f32.gmra.mrb[14].mxu0 %v7536_v5  ;;  %v8474_v5 = vsel %vm155_vm0, %v8435_v13, 0 }
 0x58b   :  { %24625 = vmatprep.mubr.f32.mxu0 %v30026_v23 }
 0x58e   :  { %24626 = vmatmul.mubr.f32.vlgmr.msra.gmra.mrb[0].mxu0 %v30032_v58 }
 0x58f   :  { %24650 = vmatpush3.msra.mxu0 %v29987_v29  ;;  %24628 = vmatprep.mubr.f32.mxu0 %v30038_v45  ;;  %v30286_v29 = vsub.f32 %v8492_v48, %v30271_v25  ;;  %v30398_v48 = vand.u32 4294901760, %v8474_v5 }
 0x590   :  { %24675 = vmatprep.subr.mxu0 %v30271_v25 }
 0x591   :  { %v30291_v32 = vand.u32 4294901760, %v30286_v29 }
 0x592   :  { %24629 = vmatmul.mubr.f32.gmra.mrb[2].mxu0 %v30043_v59 }
 0x593   :  { %24631 = vmatprep.mubr.f32.mxu0 %v30048_v56  ;;  %v8724_v22 = vsub.f32 %v30286_v29, %v30291_v32 }
 0x595   :  { %v30299_v1 = vand.u32 4294901760, %v8724_v22  ;;  %v8477_v22 = vsel %vm155_vm0, %v8436_v20, 0 }
 0x596   :  { %24632 = vmatmul.mubr.f32.gmra.mrb[4].mxu0 %v30066_v53  ;;  %v30411_v15 = vand.u32 4294901760, %v8477_v22 }
 0x597   :  { %24634 = vmatprep.mubr.f32.mxu0 %v30073_v7 }
 0x59a   :  { %24635 = vmatmul.mubr.f32.gmra.mrb[6].mxu0 %v30076_v18 }
 0x59b   :  { %24637 = vmatprep.mubr.f32.mxu0 %v30080_v24 }
 0x59e   :  { %24638 = vmatmul.mubr.f32.gmra.mrb[8].mxu0 %v30111_v28 }
 0x59f   :  { %24640 = vmatprep.mubr.f32.mxu0 %v30114_v10 }
 0x5a2   :  { %24641 = vmatmul.mubr.f32.gmra.mrb[10].mxu0 %v30127_v38 }
 0x5a3   :  { %24643 = vmatprep.mubr.f32.mxu0 %v30136_v30 }
 0x5a6   :  { %24644 = vmatmul.mubr.f32.gmra.mrb[12].mxu0 %v30151_v51 }
 0x5a7   :  { %24646 = vmatprep.mubr.f32.mxu0 %v30157_v47 }
 0x5aa   :  { %24647 = vmatmul.mubr.f32.gmra.mrb[14].mxu0 %v30159_v55 }
 0x5ab   :  { %24651 = vmatprep.mubr.f32.mxu0 %v30026_v23  ;;  %v8444_v23 = vsel %vm155_vm0, %v8425_v12, 0  ;;  %v8632_v12 = vand.u32 4294901760, %v30382_v6 }
 0x5ac   :  { %v30311_v39 = vand.u32 4294901760, %v8444_v23 }
 0x5ae   :  { %24652 = vmatmul.mubr.f32.vlgmr.msra.gmra.mrb[0].mxu0 %v30032_v58  ;;  %v8447_v58 = vsel %vm155_vm0, %v8426_v49, 0  ;;  %v30320_v63 = vsub.f32 %v8444_v23, %v30311_v39  ;;  %v8480_v49 = vsel %vm155_vm0, %v8437_v3, 0  ;;  %v8438_v23 = vld [vmem:[#allocation2 + $0x111] sm:$0xff] }
 0x5af   :  { %24676 = vmatpush3.msra.mxu0 %v30271_v25  ;;  %24654 = vmatprep.mubr.f32.mxu0 %v30038_v45  ;;  %v8428_v45 = vld [vmem:[#allocation2 + $0x51] sm:$0xff]  ;;  %v30420_v4 = vand.u32 4294901760, %v8480_v49  ;;  %v8483_v16 = vsel %vm155_vm0, %v8438_v23, 0 }
 0x5b0   :  { %24701 = vmatprep.subr.mxu0 %v30299_v1  ;;  %v8562_v8 = vand.u32 4294901760, %v30320_v63  ;;  %v30435_v13 = vand.u32 4294901760, %v8483_v16 }
 0x5b2   :  { %24655 = vmatmul.mubr.f32.gmra.mrb[2].mxu0 %v30043_v59  ;;  %v8450_v59 = vsel %vm155_vm0, %v8427_v46, 0 }
 0x5b3   :  { %24657 = vmatprep.mubr.f32.mxu0 %v30048_v56  ;;  %v30316_v56 = vand.u32 4294901760, %v8447_v58 }
 0x5b6   :  { %24658 = vmatmul.mubr.f32.gmra.mrb[4].mxu0 %v30066_v53  ;;  %v8453_v53 = vsel %vm155_vm0, %v8428_v45, 0  ;;  %v8439_v45 = vld [vmem:[#allocation2 + $0x121] sm:$0xff] }
 0x5b7   :  { %24660 = vmatprep.mubr.f32.mxu0 %v30073_v7  ;;  %v30322_v7 = vand.u32 4294901760, %v8450_v59 }
 0x5b9   :  { %v30336_v14 = vsub.f32 %v8450_v59, %v30322_v7  ;;  %v8604_v59 = vand.u32 4294901760, %v8603_v33  ;;  %v30450_v33 = vsub.f32 %v8483_v16, %v30435_v13 }
 0x5ba   :  { %24661 = vmatmul.mubr.f32.gmra.mrb[6].mxu0 %v30076_v18  ;;  %v30328_v18 = vsub.f32 %v8447_v58, %v30316_v56 }
 0x5bb   :  { %24663 = vmatprep.mubr.f32.mxu0 %v30080_v24  ;;  %v30330_v24 = vand.u32 4294901760, %v8453_v53  ;;  %v8582_v43 = vand.u32 4294901760, %v30336_v14 }
 0x5bc   :  { %v8572_v31 = vand.u32 4294901760, %v30328_v18 }
 0x5bd   :  { %v30344_v9 = vsub.f32 %v8453_v53, %v30330_v24 }
 0x5be   :  { %24664 = vmatmul.mubr.f32.gmra.mrb[8].mxu0 %v30111_v28  ;;  %v8462_v28 = vsel %vm155_vm0, %v8431_v19, 0  ;;  %v8573_v60 = vsub.f32 %v30328_v18, %v8572_v31  ;;  %v30418_v19 = vsub.f32 %v8474_v5, %v30398_v48 }
 0x5bf   :  { %24666 = vmatprep.mubr.f32.mxu0 %v30114_v10  ;;  %v8433_v10 = vld [vmem:[#allocation2 + $0xc1] sm:$0xff]  ;;  %v30356_v37 = vand.u32 4294901760, %v8462_v28  ;;  %v8592_v35 = vand.u32 4294901760, %v30344_v9 }
 0x5c0   :  { %v8574_v61 = vand.u32 4294901760, %v8573_v60  ;;  %v30433_v60 = vsub.f32 %v8477_v22, %v30411_v15 }
 0x5c1   :  { %v30378_v27 = vsub.f32 %v8462_v28, %v30356_v37  ;;  %v8593_v2 = vsub.f32 %v30344_v9, %v8592_v35  ;;  %v8633_v28 = vsub.f32 %v30382_v6, %v8632_v12 }
 0x5c2   :  { %24667 = vmatmul.mubr.f32.gmra.mrb[10].mxu0 %v30127_v38  ;;  %v8563_v38 = vsub.f32 %v30320_v63, %v8562_v8 }
 0x5c3   :  { %24669 = vmatprep.mubr.f32.mxu0 %v30136_v30  ;;  %v8468_v30 = vsel %vm155_vm0, %v8433_v10, 0  ;;  %v8622_v44 = vand.u32 4294901760, %v30378_v27  ;;  %v8594_v46 = vand.u32 4294901760, %v8593_v2  ;;  %v8486_v10 = vsel %vm155_vm0, %v8439_v45, 0 }
 0x5c4   :  { %v30371_v54 = vand.u32 4294901760, %v8468_v30  ;;  %v8564_v36 = vand.u32 4294901760, %v8563_v38  ;;  %v8489_v38 = vsel %vm155_vm0, %v8440_v34, 0  ;;  %v30441_v5 = vand.u32 4294901760, %v8486_v10 }
 0x5c5   :  { %v8634_v20 = vand.u32 4294901760, %v8633_v28  ;;  %v30443_v2 = vand.u32 4294901760, %v8489_v38 }
 0x5c6   :  { %24670 = vmatmul.mubr.f32.gmra.mrb[12].mxu0 %v30151_v51  ;;  %v8471_v51 = vsel %vm155_vm0, %v8434_v52, 0  ;;  %v30395_v17 = vsub.f32 %v8468_v30, %v30371_v54  ;;  %v30457_v23 = vsub.f32 %v8486_v10, %v30441_v5 }
 0x5c7   :  { %24672 = vmatprep.mubr.f32.mxu0 %v30157_v47  ;;  %v8583_v47 = vsub.f32 %v30336_v14, %v8582_v43  ;;  %v30388_v26 = vand.u32 4294901760, %v8471_v51 }
 0x5c8   :  { %v8642_v53 = vand.u32 4294901760, %v30395_v17  ;;  %v8702_v16 = vand.u32 4294901760, %v30457_v23 }
 0x5c9   :  { %v8584_v62 = vand.u32 4294901760, %v8583_v47  ;;  %v30405_v58 = vsub.f32 %v8471_v51, %v30388_v26  ;;  %v30439_v47 = vsub.f32 %v8480_v49, %v30420_v4 }
 0x5ca   :  { %24673 = vmatmul.mubr.f32.gmra.mrb[14].mxu0 %v30159_v55  ;;  %v8612_v55 = vand.u32 4294901760, %v30369_v0  ;;  %v8643_v52 = vsub.f32 %v30395_v17, %v8642_v53 }
 0x5cb   :  { %24677 = vmatprep.mubr.f32.mxu0 %v8564_v36  ;;  %v8652_v42 = vand.u32 4294901760, %v30405_v58  ;;  %v8662_v36 = vand.u32 4294901760, %v30418_v19  ;;  %v8682_v49 = vand.u32 4294901760, %v30439_v47 }
 0x5cc   :  { %v8613_v41 = vsub.f32 %v30369_v0, %v8612_v55 }
 0x5cd   :  { %v8653_v3 = vsub.f32 %v30405_v58, %v8652_v42  ;;  %v8663_v22 = vsub.f32 %v30418_v19, %v8662_v36 }
 0x5ce   :  { %24678 = vmatmul.mubr.f32.vlgmr.msra.gmra.mrb[0].mxu0 %v8574_v61  ;;  %v8614_v30 = vand.u32 4294901760, %v8613_v41  ;;  %v8672_v61 = vand.u32 4294901760, %v30433_v60  ;;  %v8692_v41 = vand.u32 4294901760, %v30450_v33 }
 0x5cf   :  { %24702 = vmatpush3.msra.mxu0 %v30299_v1  ;;  %24680 = vmatprep.mubr.f32.mxu0 %v8584_v62  ;;  %v8623_v1 = vsub.f32 %v30378_v27, %v8622_v44  ;;  %v8644_v62 = vand.u32 4294901760, %v8643_v52  ;;  %v8654_v45 = vand.u32 4294901760, %v8653_v3  ;;  %v8664_v34 = vand.u32 4294901760, %v8663_v22 }
 0x5d0   :  { %24727 = vmatprep.subr.mxu0 %v30286_v29  ;;  %v8703_v52 = vsub.f32 %v30457_v23, %v8702_v16 }
 0x5d1   :  { %v8624_v51 = vand.u32 4294901760, %v8623_v1  ;;  %v8683_v1 = vsub.f32 %v30439_v47, %v8682_v49 }
 0x5d2   :  { %24681 = vmatmul.mubr.f32.gmra.mrb[2].mxu0 %v8594_v46  ;;  %v30460_v46 = vsub.f32 %v8489_v38, %v30443_v2  ;;  %v8693_v38 = vsub.f32 %v30450_v33, %v8692_v41  ;;  %v8704_v3 = vand.u32 4294901760, %v8703_v52  ;;  %v9613_v52 = vld [vmem:[#allocation2 + $0x102] sm:$0xff] }
 0x5d3   :  { %24683 = vmatprep.mubr.f32.mxu0 %v8604_v59  ;;  %v8673_v59 = vsub.f32 %v30433_v60, %v8672_v61 }
 0x5d4   :  { %v8712_v28 = vand.u32 4294901760, %v30460_v46 }
 0x5d5   :  { %v8674_v10 = vand.u32 4294901760, %v8673_v59 }
 0x5d6   :  { %24684 = vmatmul.mubr.f32.gmra.mrb[4].mxu0 %v8614_v30  ;;  %v8684_v30 = vand.u32 4294901760, %v8683_v1 }
 0x5d7   :  { %24686 = vmatprep.mubr.f32.mxu0 %v8624_v51  ;;  %v8713_v51 = vsub.f32 %v30460_v46, %v8712_v28 }
 0x5da   :  { %24687 = vmatmul.mubr.f32.gmra.mrb[6].mxu0 %v8634_v20  ;;  %v8694_v20 = vand.u32 4294901760, %v8693_v38 }
 0x5db   :  { %24689 = vmatprep.mubr.f32.mxu0 %v8644_v62  ;;  %v8714_v62 = vand.u32 4294901760, %v8713_v51 }
 0x5de   :  { %24690 = vmatmul.mubr.f32.gmra.mrb[8].mxu0 %v8654_v45 }
 0x5df   :  { %24692 = vmatprep.mubr.f32.mxu0 %v8664_v34 }
 0x5e2   :  { %24693 = vmatmul.mubr.f32.gmra.mrb[10].mxu0 %v8674_v10  ;;  %v9612_v10 = vld [vmem:[#allocation2 + $0xf2] sm:$0xff] }
 0x5e3   :  { %24695 = vmatprep.mubr.f32.mxu0 %v8684_v30 }
 0x5e6   :  { %24696 = vmatmul.mubr.f32.gmra.mrb[12].mxu0 %v8694_v20 }
 0x5e7   :  { %24698 = vmatprep.mubr.f32.mxu0 %v8704_v3 }
 0x5ea   :  { %24699 = vmatmul.mubr.f32.gmra.mrb[14].mxu0 %v8714_v62 }
 0x5eb   :  { %24703 = vmatprep.mubr.f32.mxu0 %v30311_v39 }
 0x5ee   :  { %24704 = vmatmul.mubr.f32.vlgmr.msra.gmra.mrb[0].mxu0 %v30316_v56 }
 0x5ef   :  { %24728 = vmatpush3.msra.mxu0 %v30286_v29  ;;  %24706 = vmatprep.mubr.f32.mxu0 %v30322_v7  ;;  %v21738_v29 = vld [vmem:[%s33767_s1 + $0x20] sm:$0xf] }
 0x5f0   :  { %24753 = vmatprep.subr.mxu0 %v30271_v25 }
 0x5f2   :  { %24707 = vmatmul.mubr.f32.gmra.mrb[2].mxu0 %v30330_v24 }
 0x5f3   :  { %24709 = vmatprep.mubr.f32.mxu0 %v30332_v21 }
 0x5f6   :  { %24710 = vmatmul.mubr.f32.gmra.mrb[4].mxu0 %v30350_v40 }
 0x5f7   :  { %24712 = vmatprep.mubr.f32.mxu0 %v30356_v37 }
 0x5fa   :  { %24713 = vmatmul.mubr.f32.gmra.mrb[6].mxu0 %v30360_v57 }
 0x5fb   :  { %24715 = vmatprep.mubr.f32.mxu0 %v30371_v54 }
 0x5fe   :  { %24716 = vmatmul.mubr.f32.gmra.mrb[8].mxu0 %v30388_v26 }
 0x5ff   :  { %24718 = vmatprep.mubr.f32.mxu0 %v30398_v48 }
 0x602   :  { %24719 = vmatmul.mubr.f32.gmra.mrb[10].mxu0 %v30411_v15 }
 0x603   :  { %24721 = vmatprep.mubr.f32.mxu0 %v30420_v4 }
 0x606   :  { %24722 = vmatmul.mubr.f32.gmra.mrb[12].mxu0 %v30435_v13 }
 0x607   :  { %24724 = vmatprep.mubr.f32.mxu0 %v30441_v5 }
 0x60a   :  { %24725 = vmatmul.mubr.f32.gmra.mrb[14].mxu0 %v30443_v2 }
 0x60b   :  { %24729 = vmatprep.mubr.f32.mxu0 %v30320_v63 }
 0x60e   :  { %24730 = vmatmul.mubr.f32.vlgmr.msra.gmra.mrb[0].mxu0 %v30328_v18 }
 0x60f   :  { %24754 = vmatpush3.msra.mxu0 %v30271_v25  ;;  %24732 = vmatprep.mubr.f32.mxu0 %v30336_v14 }
 0x610   :  { %24779 = vmatprep.subr.mxu0 %v30291_v32 }
 0x612   :  { %24733 = vmatmul.mubr.f32.gmra.mrb[2].mxu0 %v30344_v9  ;;  %v9602_v9 = vld [vmem:[#allocation2 + $0x32] sm:$0xff] }
 0x613   :  { %24735 = vmatprep.mubr.f32.mxu0 %v30348_v11  ;;  %v9603_v11 = vld [vmem:[#allocation2 + $0x42] sm:$0xff] }
 0x616   :  { %24736 = vmatmul.mubr.f32.gmra.mrb[4].mxu0 %v30369_v0 }
 0x617   :  { %24738 = vmatprep.mubr.f32.mxu0 %v30378_v27 }
 0x61a   :  { %24739 = vmatmul.mubr.f32.gmra.mrb[6].mxu0 %v30382_v6 }
 0x61b   :  { %24741 = vmatprep.mubr.f32.mxu0 %v30395_v17  ;;  %v9608_v17 = vld [vmem:[#allocation2 + $0x92] sm:$0xff] }
 0x61e   :  { %24742 = vmatmul.mubr.f32.gmra.mrb[8].mxu0 %v30405_v58 }
 0x61f   :  { %24744 = vmatprep.mubr.f32.mxu0 %v30418_v19  ;;  %v9641_v19 = vsel %vm155_vm0, %v9608_v17, 0 }
 0x620   :  { %v30644_v22 = vand.u32 4294901760, %v9641_v19 }
 0x622   :  { %24745 = vmatmul.mubr.f32.gmra.mrb[10].mxu0 %v30433_v60 }
 0x623   :  { %24747 = vmatprep.mubr.f32.mxu0 %v30439_v47 }
 0x626   :  { %24748 = vmatmul.mubr.f32.gmra.mrb[12].mxu0 %v30450_v33  ;;  %v9610_v33 = vld [vmem:[#allocation2 + $0xd2] sm:$0xff] }
 0x627   :  { %24750 = vmatprep.mubr.f32.mxu0 %v30457_v23 }
 0x62a   :  { %24751 = vmatmul.mubr.f32.gmra.mrb[14].mxu0 %v30460_v46  ;;  %v9611_v46 = vld [vmem:[#allocation2 + $0xe2] sm:$0xff] }
 0x62b   :  { %24755 = vmatprep.mubr.f32.mxu0 %v8562_v8 }
 0x62e   :  { %24756 = vmatmul.mubr.f32.vlgmr.msra.gmra.mrb[0].mxu0 %v8572_v31  ;;  %v9601_v31 = vld [vmem:[#allocation2 + $0x22] sm:$0xff] }
 0x62f   :  { %24780 = vmatpush3.msra.mxu0 %v30291_v32  ;;  %24758 = vmatprep.mubr.f32.mxu0 %v8582_v43  ;;  %v9668_v32 = vsel %vm307_vm3, %v21738_v29, 0 }
 0x630   :  { %24805 = vmatprep.subr.mxu0 %v30271_v25  ;;  %v30555_v63 = vand.u32 4294901760, %v9668_v32 }
 0x632   :  { %24759 = vmatmul.mubr.f32.gmra.mrb[2].mxu0 %v8592_v35  ;;  %v9605_v35 = vld [vmem:[#allocation2 + $0x62] sm:$0xff] }
 0x633   :  { %24761 = vmatprep.mubr.f32.mxu0 %v8602_v50  ;;  %v9632_v0 = vsel %vm155_vm0, %v9605_v35, 0 }
 0x636   :  { %24762 = vmatmul.mubr.f32.gmra.mrb[4].mxu0 %v8612_v55  ;;  %v30616_v55 = vand.u32 4294901760, %v9632_v0 }
 0x637   :  { %24764 = vmatprep.mubr.f32.mxu0 %v8622_v44 }
 0x638   :  { %v30632_v60 = vsub.f32 %v9632_v0, %v30616_v55 }
 0x63a   :  { %24765 = vmatmul.mubr.f32.gmra.mrb[6].mxu0 %v8632_v12  ;;  %v9778_v59 = vand.u32 4294901760, %v30632_v60 }
 0x63b   :  { %24767 = vmatprep.mubr.f32.mxu0 %v8642_v53 }
 0x63e   :  { %24768 = vmatmul.mubr.f32.gmra.mrb[8].mxu0 %v8652_v42 }
 0x63f   :  { %24770 = vmatprep.mubr.f32.mxu0 %v8662_v36 }
 0x642   :  { %24771 = vmatmul.mubr.f32.gmra.mrb[10].mxu0 %v8672_v61 }
 0x643   :  { %24773 = vmatprep.mubr.f32.mxu0 %v8682_v49 }
 0x646   :  { %24774 = vmatmul.mubr.f32.gmra.mrb[12].mxu0 %v8692_v41 }
 0x647   :  { %24776 = vmatprep.mubr.f32.mxu0 %v8702_v16  ;;  %v30666_v16 = vsub.f32 %v9641_v19, %v30644_v22 }
 0x64a   :  { %24777 = vmatmul.mubr.f32.gmra.mrb[14].mxu0 %v8712_v28  ;;  %v9650_v28 = vsel %vm155_vm0, %v9611_v46, 0 }
 0x64b   :  { %24781 = vmatprep.mubr.f32.mxu0 %v30311_v39 }
 0x64e   :  { %24782 = vmatmul.mubr.f32.vlgmr.msra.gmra.mrb[0].mxu0 %v30316_v56 }
 0x64f   :  { %24806 = vmatpush3.msra.mxu0 %v30271_v25  ;;  %24784 = vmatprep.mubr.f32.mxu0 %v30322_v7  ;;  %v30570_v25 = vsub.f32 %v9668_v32, %v30555_v63  ;;  %v30682_v32 = vand.u32 4294901760, %v9650_v28 }
 0x650   :  { %24831 = vmatprep.subr.mxu0 %v30555_v63 }
 0x651   :  { %v30575_v18 = vand.u32 4294901760, %v30570_v25 }
 0x652   :  { %24785 = vmatmul.mubr.f32.gmra.mrb[2].mxu0 %v30330_v24 }
 0x653   :  { %24787 = vmatprep.mubr.f32.mxu0 %v30332_v21  ;;  %v9900_v8 = vsub.f32 %v30570_v25, %v30575_v18 }
 0x655   :  { %v30583_v14 = vand.u32 4294901760, %v9900_v8  ;;  %v9653_v8 = vsel %vm155_vm0, %v9612_v10, 0 }
 0x656   :  { %24788 = vmatmul.mubr.f32.gmra.mrb[4].mxu0 %v30350_v40  ;;  %v30695_v0 = vand.u32 4294901760, %v9653_v8 }
 0x657   :  { %24790 = vmatprep.mubr.f32.mxu0 %v30356_v37 }
 0x65a   :  { %24791 = vmatmul.mubr.f32.gmra.mrb[6].mxu0 %v30360_v57 }
 0x65b   :  { %24793 = vmatprep.mubr.f32.mxu0 %v30371_v54 }
 0x65e   :  { %24794 = vmatmul.mubr.f32.gmra.mrb[8].mxu0 %v30388_v26 }
 0x65f   :  { %24796 = vmatprep.mubr.f32.mxu0 %v30398_v48 }
 0x662   :  { %24797 = vmatmul.mubr.f32.gmra.mrb[10].mxu0 %v30411_v15 }
 0x663   :  { %24799 = vmatprep.mubr.f32.mxu0 %v30420_v4 }
 0x666   :  { %24800 = vmatmul.mubr.f32.gmra.mrb[12].mxu0 %v30435_v13 }
 0x667   :  { %24802 = vmatprep.mubr.f32.mxu0 %v30441_v5 }
 0x66a   :  { %24803 = vmatmul.mubr.f32.gmra.mrb[14].mxu0 %v30443_v2 }
 0x66b   :  { %24807 = vmatprep.mubr.f32.mxu0 %v30311_v39  ;;  %v9620_v39 = vsel %vm155_vm0, %v9601_v31, 0  ;;  %v9808_v31 = vand.u32 4294901760, %v30666_v16 }
 0x66c   :  { %v30595_v43 = vand.u32 4294901760, %v9620_v39 }
 0x66e   :  { %24808 = vmatmul.mubr.f32.vlgmr.msra.gmra.mrb[0].mxu0 %v30316_v56  ;;  %v9623_v56 = vsel %vm155_vm0, %v9602_v9, 0  ;;  %v9656_v9 = vsel %vm155_vm0, %v9613_v52, 0 }
 0x66f   :  { %24832 = vmatpush3.msra.mxu0 %v30555_v63  ;;  %24810 = vmatprep.mubr.f32.mxu0 %v30322_v7  ;;  %v9626_v7 = vsel %vm155_vm0, %v9603_v11, 0  ;;  %v30704_v17 = vand.u32 4294901760, %v9656_v9 }
 0x670   :  { %24857 = vmatprep.subr.mxu0 %v30583_v14  ;;  %v30605_v50 = vand.u32 4294901760, %v9626_v7 }
 0x672   :  { %24811 = vmatmul.mubr.f32.gmra.mrb[2].mxu0 %v30330_v24  ;;  %v9604_v24 = vld [vmem:[#allocation2 + $0x52] sm:$0xff]  ;;  %v30620_v12 = vsub.f32 %v9626_v7, %v30605_v50  ;;  %v9615_v7 = vld [vmem:[#allocation2 + $0x122] sm:$0xff] }
 0x673   :  { %24813 = vmatprep.mubr.f32.mxu0 %v30332_v21  ;;  %v30600_v21 = vand.u32 4294901760, %v9623_v56 }
 0x675   :  { %v30612_v27 = vsub.f32 %v9623_v56, %v30600_v21 }
 0x676   :  { %24814 = vmatmul.mubr.f32.gmra.mrb[4].mxu0 %v30350_v40  ;;  %v30603_v40 = vsub.f32 %v9620_v39, %v30595_v43  ;;  %v9614_v39 = vld [vmem:[#allocation2 + $0x112] sm:$0xff] }
 0x677   :  { %24816 = vmatprep.mubr.f32.mxu0 %v30356_v37  ;;  %v9629_v37 = vsel %vm155_vm0, %v9604_v24, 0  ;;  %v9748_v53 = vand.u32 4294901760, %v30612_v27 }
 0x678   :  { %v30614_v6 = vand.u32 4294901760, %v9629_v37  ;;  %v9738_v44 = vand.u32 4294901760, %v30603_v40 }
 0x679   :  { %v9749_v49 = vsub.f32 %v30612_v27, %v9748_v53 }
 0x67a   :  { %24817 = vmatmul.mubr.f32.gmra.mrb[6].mxu0 %v30360_v57  ;;  %v9606_v57 = vld [vmem:[#allocation2 + $0x72] sm:$0xff]  ;;  %v30629_v42 = vsub.f32 %v9629_v37, %v30614_v6 }
 0x67b   :  { %24819 = vmatprep.mubr.f32.mxu0 %v30371_v54  ;;  %v9607_v54 = vld [vmem:[#allocation2 + $0x82] sm:$0xff]  ;;  %v9635_v58 = vsel %vm155_vm0, %v9606_v57, 0  ;;  %v9750_v51 = vand.u32 4294901760, %v9749_v49  ;;  %v9616_v57 = vld [vmem:[#allocation2 + $0x132] sm:$0xff]  ;;  %v30717_v49 = vsub.f32 %v9653_v8, %v30695_v0 }
 0x67c   :  { %v30634_v36 = vand.u32 4294901760, %v9635_v58  ;;  %v9768_v45 = vand.u32 4294901760, %v30629_v42 }
 0x67e   :  { %24820 = vmatmul.mubr.f32.gmra.mrb[8].mxu0 %v30388_v26  ;;  %v9609_v26 = vld [vmem:[#allocation2 + $0xc2] sm:$0xff]  ;;  %v30655_v41 = vsub.f32 %v9635_v58, %v30634_v36  ;;  %v9769_v20 = vsub.f32 %v30629_v42, %v9768_v45  ;;  %v9659_v58 = vsel %vm155_vm0, %v9614_v39, 0 }
 0x67f   :  { %24822 = vmatprep.mubr.f32.mxu0 %v30398_v48  ;;  %v9638_v48 = vsel %vm155_vm0, %v9607_v54, 0  ;;  %v9644_v47 = vsel %vm155_vm0, %v9609_v26, 0  ;;  %v30702_v54 = vsub.f32 %v9650_v28, %v30682_v32  ;;  %v9809_v26 = vsub.f32 %v30666_v16, %v9808_v31 }
 0x680   :  { %v30641_v61 = vand.u32 4294901760, %v9638_v48  ;;  %v30650_v23 = vand.u32 4294901760, %v9644_v47  ;;  %v9788_v3 = vand.u32 4294901760, %v30655_v41  ;;  %v9770_v24 = vand.u32 4294901760, %v9769_v20 }
 0x681   :  { %v30719_v46 = vand.u32 4294901760, %v9659_v58  ;;  %v9810_v10 = vand.u32 4294901760, %v9809_v26  ;;  %v9848_v20 = vand.u32 4294901760, %v30717_v49 }
 0x682   :  { %24823 = vmatmul.mubr.f32.gmra.mrb[10].mxu0 %v30411_v15  ;;  %v9739_v15 = vsub.f32 %v30603_v40, %v9738_v44  ;;  %v30662_v1 = vsub.f32 %v9638_v48, %v30641_v61  ;;  %v30670_v38 = vsub.f32 %v9644_v47, %v30650_v23  ;;  %v9789_v37 = vsub.f32 %v30655_v41, %v9788_v3 }
 0x683   :  { %24825 = vmatprep.mubr.f32.mxu0 %v30420_v4  ;;  %v9758_v4 = vand.u32 4294901760, %v30620_v12  ;;  %v9662_v48 = vsel %vm155_vm0, %v9615_v7, 0  ;;  %v9665_v47 = vsel %vm155_vm0, %v9616_v57, 0 }
 0x684   :  { %v9740_v34 = vand.u32 4294901760, %v9739_v15  ;;  %v9798_v29 = vand.u32 4294901760, %v30662_v1  ;;  %v9818_v11 = vand.u32 4294901760, %v30670_v38  ;;  %v9790_v15 = vand.u32 4294901760, %v9789_v37 }
 0x685   :  { %v30725_v28 = vand.u32 4294901760, %v9662_v48  ;;  %v30727_v52 = vand.u32 4294901760, %v9665_v47 }
 0x686   :  { %24826 = vmatmul.mubr.f32.gmra.mrb[12].mxu0 %v30435_v13  ;;  %v9647_v13 = vsel %vm155_vm0, %v9610_v33, 0  ;;  %v9819_v19 = vsub.f32 %v30670_v38, %v9818_v11 }
 0x687   :  { %24828 = vmatprep.mubr.f32.mxu0 %v30441_v5  ;;  %v9759_v5 = vsub.f32 %v30620_v12, %v9758_v4  ;;  %v30672_v30 = vand.u32 4294901760, %v9647_v13  ;;  %v30741_v39 = vsub.f32 %v9662_v48, %v30725_v28  ;;  %v30744_v7 = vsub.f32 %v9665_v47, %v30727_v52 }
 0x689   :  { %v9760_v62 = vand.u32 4294901760, %v9759_v5  ;;  %v30690_v56 = vsub.f32 %v9647_v13, %v30672_v30  ;;  %v30723_v5 = vsub.f32 %v9656_v9, %v30704_v17  ;;  %v9888_v26 = vand.u32 4294901760, %v30744_v7 }
 0x68a   :  { %24829 = vmatmul.mubr.f32.gmra.mrb[14].mxu0 %v30443_v2  ;;  %v9779_v2 = vsub.f32 %v30632_v60, %v9778_v59 }
 0x68b   :  { %24833 = vmatprep.mubr.f32.mxu0 %v9740_v34  ;;  %v9828_v33 = vand.u32 4294901760, %v30690_v56  ;;  %v9838_v34 = vand.u32 4294901760, %v30702_v54  ;;  %v9858_v9 = vand.u32 4294901760, %v30723_v5 }
 0x68c   :  { %v9780_v35 = vand.u32 4294901760, %v9779_v2  ;;  %v30734_v2 = vsub.f32 %v9659_v58, %v30719_v46  ;;  %v9878_v58 = vand.u32 4294901760, %v30741_v39 }
 0x68d   :  { %v9839_v8 = vsub.f32 %v30702_v54, %v9838_v34 }
 0x68e   :  { %24834 = vmatmul.mubr.f32.vlgmr.msra.gmra.mrb[0].mxu0 %v9750_v51  ;;  %v9829_v51 = vsub.f32 %v30690_v56, %v9828_v33  ;;  %v9868_v37 = vand.u32 4294901760, %v30734_v2 }
 0x68f   :  { %24858 = vmatpush3.msra.mxu0 %v30583_v14  ;;  %24836 = vmatprep.mubr.f32.mxu0 %v9760_v62  ;;  %v9799_v14 = vsub.f32 %v30662_v1, %v9798_v29  ;;  %v9820_v62 = vand.u32 4294901760, %v9819_v19  ;;  %v9840_v57 = vand.u32 4294901760, %v9839_v8 }
 0x690   :  { %24883 = vmatprep.subr.mxu0 %v30570_v25  ;;  %v9869_v19 = vsub.f32 %v30734_v2, %v9868_v37 }
 0x691   :  { %v9800_v13 = vand.u32 4294901760, %v9799_v14  ;;  %v9859_v14 = vsub.f32 %v30723_v5, %v9858_v9 }
 0x692   :  { %24837 = vmatmul.mubr.f32.gmra.mrb[2].mxu0 %v9770_v24  ;;  %v9830_v24 = vand.u32 4294901760, %v9829_v51 }
 0x693   :  { %24839 = vmatprep.mubr.f32.mxu0 %v9780_v35  ;;  %v9849_v35 = vsub.f32 %v30717_v49, %v9848_v20  ;;  %v9860_v47 = vand.u32 4294901760, %v9859_v14 }
 0x695   :  { %v9850_v48 = vand.u32 4294901760, %v9849_v35 }
 0x696   :  { %24840 = vmatmul.mubr.f32.gmra.mrb[4].mxu0 %v9790_v15  ;;  %v9879_v15 = vsub.f32 %v30741_v39, %v9878_v58 }
 0x697   :  { %24842 = vmatprep.mubr.f32.mxu0 %v9800_v13  ;;  %v9889_v13 = vsub.f32 %v30744_v7, %v9888_v26 }
 0x698   :  { %v9880_v51 = vand.u32 4294901760, %v9879_v15 }
 0x69a   :  { %24843 = vmatmul.mubr.f32.gmra.mrb[6].mxu0 %v9810_v10  ;;  %v9870_v10 = vand.u32 4294901760, %v9869_v19 }
 0x69b   :  { %24845 = vmatprep.mubr.f32.mxu0 %v9820_v62  ;;  %v9890_v62 = vand.u32 4294901760, %v9889_v13 }
 0x69e   :  { %24846 = vmatmul.mubr.f32.gmra.mrb[8].mxu0 %v9830_v24 }
 0x69f   :  { %24848 = vmatprep.mubr.f32.mxu0 %v9840_v57 }
 0x6a2   :  { %24849 = vmatmul.mubr.f32.gmra.mrb[10].mxu0 %v9850_v48 }
 0x6a3   :  { %24851 = vmatprep.mubr.f32.mxu0 %v9860_v47 }
 0x6a6   :  { %24852 = vmatmul.mubr.f32.gmra.mrb[12].mxu0 %v9870_v10 }
 0x6a7   :  { %24854 = vmatprep.mubr.f32.mxu0 %v9880_v51 }
 0x6aa   :  { %24855 = vmatmul.mubr.f32.gmra.mrb[14].mxu0 %v9890_v62 }
 0x6ab   :  { %24859 = vmatprep.mubr.f32.mxu0 %v30595_v43 }
 0x6ae   :  { %24860 = vmatmul.mubr.f32.vlgmr.msra.gmra.mrb[0].mxu0 %v30600_v21 }
 0x6af   :  { %24884 = vmatpush3.msra.mxu0 %v30570_v25  ;;  %24862 = vmatprep.mubr.f32.mxu0 %v30605_v50  ;;  %v21739_v25 = vld [vmem:[%s33768_s4 + $0x8] sm:$0xff] }
 0x6b0   :  { %24909 = vmatprep.subr.mxu0 %v30555_v63 }
 0x6b2   :  { %24863 = vmatmul.mubr.f32.gmra.mrb[2].mxu0 %v30614_v6 }
 0x6b3   :  { %24865 = vmatprep.mubr.f32.mxu0 %v30616_v55 }
 0x6b6   :  { %24866 = vmatmul.mubr.f32.gmra.mrb[4].mxu0 %v30634_v36 }
 0x6b7   :  { %24868 = vmatprep.mubr.f32.mxu0 %v30641_v61 }
 0x6ba   :  { %24869 = vmatmul.mubr.f32.gmra.mrb[6].mxu0 %v30644_v22 }
 0x6bb   :  { %24871 = vmatprep.mubr.f32.mxu0 %v30650_v23 }
 0x6be   :  { %24872 = vmatmul.mubr.f32.gmra.mrb[8].mxu0 %v30672_v30 }
 0x6bf   :  { %24874 = vmatprep.mubr.f32.mxu0 %v30682_v32 }
 0x6c2   :  { %24875 = vmatmul.mubr.f32.gmra.mrb[10].mxu0 %v30695_v0 }
 0x6c3   :  { %24877 = vmatprep.mubr.f32.mxu0 %v30704_v17 }
 0x6c6   :  { %24878 = vmatmul.mubr.f32.gmra.mrb[12].mxu0 %v30719_v46 }
 0x6c7   :  { %24880 = vmatprep.mubr.f32.mxu0 %v30725_v28 }
 0x6ca   :  { %24881 = vmatmul.mubr.f32.gmra.mrb[14].mxu0 %v30727_v52 }
 0x6cb   :  { %24885 = vmatprep.mubr.f32.mxu0 %v30603_v40 }
 0x6ce   :  { %24886 = vmatmul.mubr.f32.vlgmr.msra.gmra.mrb[0].mxu0 %v30612_v27 }
 0x6cf   :  { %24910 = vmatpush3.msra.mxu0 %v30555_v63  ;;  %24888 = vmatprep.mubr.f32.mxu0 %v30620_v12 }
 0x6d0   :  { %24935 = vmatprep.subr.mxu0 %v30575_v18 }
 0x6d2   :  { %24889 = vmatmul.mubr.f32.gmra.mrb[2].mxu0 %v30629_v42 }
 0x6d3   :  { %24891 = vmatprep.mubr.f32.mxu0 %v30632_v60 }
 0x6d6   :  { %24892 = vmatmul.mubr.f32.gmra.mrb[4].mxu0 %v30655_v41 }
 0x6d7   :  { %24894 = vmatprep.mubr.f32.mxu0 %v30662_v1 }
 0x6da   :  { %24895 = vmatmul.mubr.f32.gmra.mrb[6].mxu0 %v30666_v16 }
 0x6db   :  { %24897 = vmatprep.mubr.f32.mxu0 %v30670_v38 }
 0x6de   :  { %24898 = vmatmul.mubr.f32.gmra.mrb[8].mxu0 %v30690_v56 }
 0x6df   :  { %24900 = vmatprep.mubr.f32.mxu0 %v30702_v54 }
 0x6e2   :  { %24901 = vmatmul.mubr.f32.gmra.mrb[10].mxu0 %v30717_v49 }
 0x6e3   :  { %24903 = vmatprep.mubr.f32.mxu0 %v30723_v5 }
 0x6e6   :  { %24904 = vmatmul.mubr.f32.gmra.mrb[12].mxu0 %v30734_v2 }
 0x6e7   :  { %24906 = vmatprep.mubr.f32.mxu0 %v30741_v39 }
 0x6ea   :  { %24907 = vmatmul.mubr.f32.gmra.mrb[14].mxu0 %v30744_v7 }
 0x6eb   :  { %24911 = vmatprep.mubr.f32.mxu0 %v9738_v44 }
 0x6ee   :  { %24912 = vmatmul.mubr.f32.vlgmr.msra.gmra.mrb[0].mxu0 %v9748_v53 }
 0x6ef   :  { %24936 = vmatpush3.msra.mxu0 %v30575_v18  ;;  %24914 = vmatprep.mubr.f32.mxu0 %v9758_v4  ;;  %v30954_v18 = vand.u32 4294901760, %v21739_v25 }
 0x6f0   :  { %24961 = vmatprep.subr.mxu0 %v30555_v63 }
 0x6f1   :  { %24987 = vmatprep.subr.mxu1 %v30954_v18 }
 0x6f2   :  { %24915 = vmatmul.mubr.f32.gmra.mrb[2].mxu0 %v9768_v45  ;;  %24988 = vmatpush3.msra.mxu1 %v30954_v18 }
 0x6f3   :  { %24917 = vmatprep.mubr.f32.mxu0 %v9778_v59 }
 0x6f6   :  { %24918 = vmatmul.mubr.f32.gmra.mrb[4].mxu0 %v9788_v3 }
 0x6f7   :  { %24920 = vmatprep.mubr.f32.mxu0 %v9798_v29 }
 0x6fa   :  { %24921 = vmatmul.mubr.f32.gmra.mrb[6].mxu0 %v9808_v31 }
 0x6fb   :  { %24923 = vmatprep.mubr.f32.mxu0 %v9818_v11 }
 0x6fe   :  { %24924 = vmatmul.mubr.f32.gmra.mrb[8].mxu0 %v9828_v33 }
 0x6ff   :  { %24926 = vmatprep.mubr.f32.mxu0 %v9838_v34 }
 0x702   :  { %24927 = vmatmul.mubr.f32.gmra.mrb[10].mxu0 %v9848_v20 }
 0x703   :  { %24929 = vmatprep.mubr.f32.mxu0 %v9858_v9 }
 0x706   :  { %24930 = vmatmul.mubr.f32.gmra.mrb[12].mxu0 %v9868_v37 }
 0x707   :  { %24932 = vmatprep.mubr.f32.mxu0 %v9878_v58 }
 0x70a   :  { %24933 = vmatmul.mubr.f32.gmra.mrb[14].mxu0 %v9888_v26 }
 0x70b   :  { %24937 = vmatprep.mubr.f32.mxu0 %v30595_v43 }
 0x70e   :  { %24938 = vmatmul.mubr.f32.vlgmr.msra.gmra.mrb[0].mxu0 %v30600_v21 }
 0x70f   :  { %24962 = vmatpush3.msra.mxu0 %v30555_v63  ;;  %24940 = vmatprep.mubr.f32.mxu0 %v30605_v50  ;;  %v34001_v63 = vmov 0.0  }
 0x710   :  { %10940 = vst.msk [vmem:[#allocation3] sm:$0xff] %vm10777_vm4, %v34001_v63  ;;  %10943 = vst.msk [vmem:[#allocation3 + $0xa0] sm:$0xff] %vm10777_vm4, %v34001_v63 }
 0x711   :  { %10946 = vst.msk [vmem:[#allocation3 + $0x90] sm:$0xff] %vm10777_vm4, %v34001_v63  ;;  %10948 = vst.msk [vmem:[#allocation3 + $0x130] sm:$0xff] %vm10777_vm4, %v34001_v63 }
 0x712   :  { %24941 = vmatmul.mubr.f32.gmra.mrb[2].mxu0 %v30614_v6  ;;  %10942 = vst.msk [vmem:[#allocation3 + $0x8] sm:$0x3] %vm10941_vm5, %v34001_v63  ;;  %10944 = vst.msk [vmem:[#allocation3 + $0xa8] sm:$0x3] %vm10941_vm5, %v34001_v63 }
 0x713   :  { %24943 = vmatprep.mubr.f32.mxu0 %v30616_v55  ;;  %10947 = vst.msk [vmem:[#allocation3 + $0x98] sm:$0x3] %vm10941_vm5, %v34001_v63  ;;  %10949 = vst.msk [vmem:[#allocation3 + $0x138] sm:$0x3] %vm10941_vm5, %v34001_v63 }
 0x714   :  { %10951 = vst.msk [vmem:[#allocation3] sm:$0x1] %vm10950_vm6, %v34001_v63  ;;  %10952 = vst.msk [vmem:[#allocation3 + $0x10] sm:$0x1] %vm10950_vm6, %v34001_v63 }
 0x715   :  { %10953 = vst.msk [vmem:[#allocation3 + $0x20] sm:$0x1] %vm10950_vm6, %v34001_v63  ;;  %10954 = vst.msk [vmem:[#allocation3 + $0x30] sm:$0x1] %vm10950_vm6, %v34001_v63 }
 0x716   :  { %24944 = vmatmul.mubr.f32.gmra.mrb[4].mxu0 %v30634_v36  ;;  %10955 = vst.msk [vmem:[#allocation3 + $0x40] sm:$0x1] %vm10950_vm6, %v34001_v63  ;;  %10956 = vst.msk [vmem:[#allocation3 + $0x50] sm:$0x1] %vm10950_vm6, %v34001_v63 }
 0x717   :  { %24946 = vmatprep.mubr.f32.mxu0 %v30641_v61  ;;  %10957 = vst.msk [vmem:[#allocation3 + $0x60] sm:$0x1] %vm10950_vm6, %v34001_v63  ;;  %10958 = vst.msk [vmem:[#allocation3 + $0x70] sm:$0x1] %vm10950_vm6, %v34001_v63 }
 0x718   :  { %10959 = vst.msk [vmem:[#allocation3 + $0x80] sm:$0x1] %vm10950_vm6, %v34001_v63  ;;  %10960 = vst.msk [vmem:[#allocation3 + $0x90] sm:$0x1] %vm10950_vm6, %v34001_v63 }
 0x719   :  { %10961 = vst.msk [vmem:[#allocation3 + $0xa0] sm:$0x1] %vm10950_vm6, %v34001_v63  ;;  %10962 = vst.msk [vmem:[#allocation3 + $0xb0] sm:$0x1] %vm10950_vm6, %v34001_v63  ;;  %v11025_v40 = vld [vmem:[#allocation3 + $0x1] sm:$0xff] }
 0x71a   :  { %24947 = vmatmul.mubr.f32.gmra.mrb[6].mxu0 %v30644_v22  ;;  %10963 = vst.msk [vmem:[#allocation3 + $0xc0] sm:$0x1] %vm10950_vm6, %v34001_v63  ;;  %10964 = vst.msk [vmem:[#allocation3 + $0xd0] sm:$0x1] %vm10950_vm6, %v34001_v63  ;;  %v11044_v27 = vsel %vm10777_vm4, %v11025_v40, 0 }
 0x71b   :  { %24949 = vmatprep.mubr.f32.mxu0 %v30650_v23  ;;  %10965 = vst.msk [vmem:[#allocation3 + $0xe0] sm:$0x1] %vm10950_vm6, %v34001_v63  ;;  %10966 = vst.msk [vmem:[#allocation3 + $0xf0] sm:$0x1] %vm10950_vm6, %v34001_v63 }
 0x71c   :  { %10967 = vst.msk [vmem:[#allocation3 + $0x100] sm:$0x1] %vm10950_vm6, %v34001_v63  ;;  %10968 = vst.msk [vmem:[#allocation3 + $0x110] sm:$0x1] %vm10950_vm6, %v34001_v63 }
 0x71d   :  { %10969 = vst.msk [vmem:[#allocation3 + $0x120] sm:$0x1] %vm10950_vm6, %v34001_v63  ;;  %10970 = vst.msk [vmem:[#allocation3 + $0x130] sm:$0x1] %vm10950_vm6, %v34001_v63 }
 0x71e   :  { %24950 = vmatmul.mubr.f32.gmra.mrb[8].mxu0 %v30672_v30  ;;  %10972 = vst.msk [vmem:[#allocation3 + $0x19] sm:$0x1] %vm10950_vm6, %v34001_v63  ;;  %10973 = vst.msk [vmem:[#allocation3 + $0x29] sm:$0x1] %vm10950_vm6, %v34001_v63 }
 0x71f   :  { %24952 = vmatprep.mubr.f32.mxu0 %v30682_v32  ;;  %10974 = vst.msk [vmem:[#allocation3 + $0x39] sm:$0x1] %vm10950_vm6, %v34001_v63  ;;  %10975 = vst.msk [vmem:[#allocation3 + $0x49] sm:$0x1] %vm10950_vm6, %v34001_v63 }
 0x720   :  { %10976 = vst.msk [vmem:[#allocation3 + $0x59] sm:$0x1] %vm10950_vm6, %v34001_v63  ;;  %10977 = vst.msk [vmem:[#allocation3 + $0x69] sm:$0x1] %vm10950_vm6, %v34001_v63 }
 0x721   :  { %10978 = vst.msk [vmem:[#allocation3 + $0x79] sm:$0x1] %vm10950_vm6, %v34001_v63  ;;  %10979 = vst.msk [vmem:[#allocation3 + $0x89] sm:$0x1] %vm10950_vm6, %v34001_v63 }
 0x722   :  { %24953 = vmatmul.mubr.f32.gmra.mrb[10].mxu0 %v30695_v0  ;;  %10982 = vst.msk [vmem:[#allocation3 + $0xb9] sm:$0x1] %vm10950_vm6, %v34001_v63  ;;  %10983 = vst.msk [vmem:[#allocation3 + $0xc9] sm:$0x1] %vm10950_vm6, %v34001_v63 }
 0x723   :  { %24955 = vmatprep.mubr.f32.mxu0 %v30704_v17  ;;  %10984 = vst.msk [vmem:[#allocation3 + $0xd9] sm:$0x1] %vm10950_vm6, %v34001_v63  ;;  %10985 = vst.msk [vmem:[#allocation3 + $0xe9] sm:$0x1] %vm10950_vm6, %v34001_v63 }
 0x724   :  { %10986 = vst.msk [vmem:[#allocation3 + $0xf9] sm:$0x1] %vm10950_vm6, %v34001_v63  ;;  %10987 = vst.msk [vmem:[#allocation3 + $0x109] sm:$0x1] %vm10950_vm6, %v34001_v63 }
 0x725   :  { %10988 = vst.msk [vmem:[#allocation3 + $0x119] sm:$0x1] %vm10950_vm6, %v34001_v63  ;;  %10989 = vst.msk [vmem:[#allocation3 + $0x129] sm:$0x1] %vm10950_vm6, %v34001_v63 }
 0x726   :  { %24956 = vmatmul.mubr.f32.gmra.mrb[12].mxu0 %v30719_v46  ;;  %10971 = vst.msk [vmem:[#allocation3 + $0x9] sm:$0x1] %vm10950_vm6, %v34001_v63  ;;  %10980 = vst.msk [vmem:[#allocation3 + $0x99] sm:$0x1] %vm10950_vm6, %v34001_v63 }
 0x727   :  { %24958 = vmatprep.mubr.f32.mxu0 %v30725_v28  ;;  %10981 = vst.msk [vmem:[#allocation3 + $0xa9] sm:$0x1] %vm10950_vm6, %v34001_v63  ;;  %10990 = vst.msk [vmem:[#allocation3 + $0x139] sm:$0x1] %vm10950_vm6, %v34001_v63 }
 0x72a   :  { %24959 = vmatmul.mubr.f32.gmra.mrb[14].mxu0 %v30727_v52 }
 0x72b   :  { %24963 = vmatprep.mubr.f32.mxu0 %v30595_v43  ;;  %v30966_v43 = vsub.f32 %v21739_v25, %v30954_v18 }
 0x72e   :  { %24964 = vmatmul.mubr.f32.vlgmr.msra.gmra.mrb[0].mxu0 %v30600_v21  ;;  %v30970_v21 = vand.u32 4294901760, %v30966_v43 }
 0x72f   :  { %24966 = vmatprep.mubr.f32.mxu0 %v30605_v50 }
 0x730   :  { %v11321_v50 = vsub.f32 %v30966_v43, %v30970_v21 }
 0x732   :  { %24967 = vmatmul.mubr.f32.gmra.mrb[2].mxu0 %v30614_v6  ;;  %v30975_v6 = vand.u32 4294901760, %v11044_v27 }
 0x733   :  { %24969 = vmatprep.mubr.f32.mxu0 %v30616_v55  ;;  %v30977_v55 = vand.u32 4294901760, %v11321_v50 }
 0x734   :  { %v30980_v44 = vsub.f32 %v11044_v27, %v30975_v6 }
 0x735   :  { %25013 = vmatprep.subr.mxu1 %v30977_v55 }
 0x736   :  { %24970 = vmatmul.mubr.f32.gmra.mrb[4].mxu0 %v30634_v36  ;;  %v11159_v12 = vand.u32 4294901760, %v30980_v44 }
 0x737   :  { %24972 = vmatprep.mubr.f32.mxu0 %v30641_v61 }
 0x738   :  { %v11160_v53 = vsub.f32 %v30980_v44, %v11159_v12 }
 0x73a   :  { %24973 = vmatmul.mubr.f32.gmra.mrb[6].mxu0 %v30644_v22  ;;  %v11161_v42 = vand.u32 4294901760, %v11160_v53 }
 0x73b   :  { %24975 = vmatprep.mubr.f32.mxu0 %v30650_v23 }
 0x73c   :  { %24989 = vmatprep.mubr.f32.mxu1 %v11161_v42 }
 0x73e   :  { %24976 = vmatmul.mubr.f32.gmra.mrb[8].mxu0 %v30672_v30 }
 0x73f   :  { %24978 = vmatprep.mubr.f32.mxu0 %v30682_v32 }
 0x742   :  { %24979 = vmatmul.mubr.f32.gmra.mrb[10].mxu0 %v30695_v0 }
 0x743   :  { %24981 = vmatprep.mubr.f32.mxu0 %v30704_v17 }
 0x746   :  { %24982 = vmatmul.mubr.f32.gmra.mrb[12].mxu0 %v30719_v46 }
 0x747   :  { %24984 = vmatprep.mubr.f32.mxu0 %v30725_v28 }
 0x74a   :  { %24985 = vmatmul.mubr.f32.gmra.mrb[14].mxu0 %v30727_v52 }
 0x801   :  { %v30987_v60 = vpop.f32.mrb[0].mxu0 }
 0x802   :  { %v10779_v36 = vsel %vm10777_vm4, %v30987_v60, 0.0  ;;  %v10816_v4 = vmul.f32 %v30987_v60, %v30987_v60  ;;  %v30993_v61 = vpop.f32.mrb[1].mxu0 }
 0x803   :  { %v10778_v22 = vsel %vm10777_vm4, %v30993_v61, 0.0  ;;  %v10815_v23 = vmul.f32 %v30993_v61, %v30993_v61 }
 0x804   :  { %v10832_v45 = vsel %vm10777_vm4, %v10816_v4, 0.0  ;;  %v10780_v59 = vadd.f32 %v10779_v36, %v10778_v22 }
 0x805   :  { %v10831_v41 = vsel %vm10777_vm4, %v10815_v23, 0.0  ;;  %v31001_v1 = vpop.f32.mrb[2].mxu0 }
 0x806   :  { %v10833_v16 = vadd.f32 %v10832_v45, %v10831_v41  ;;  %v31003_v38 = vpop.f32.mrb[3].mxu0  ;;  %v10818_v30 = vmul.f32 %v31001_v1, %v31001_v1  ;;  %v10783_v31 = vsel %vm10777_vm4, %v31001_v1, 0.0 }
 0x807   :  { %v10781_v3 = vsel %vm10777_vm4, %v31003_v38, 0.0  ;;  %v10817_v29 = vmul.f32 %v31003_v38, %v31003_v38 }
 0x808   :  { %v10782_v32 = vadd.f32 %v10781_v3, %v10780_v59  ;;  %v10836_v33 = vsel %vm10777_vm4, %v10818_v30, 0.0 }
 0x809   :  { %v10834_v11 = vsel %vm10777_vm4, %v10817_v29, 0.0  ;;  %v31014_v56 = vpop.f32.mrb[4].mxu0 }
 0x80a   :  { %v10835_v0 = vadd.f32 %v10834_v11, %v10833_v16  ;;  %v31016_v54 = vpop.f32.mrb[5].mxu0  ;;  %v10784_v17 = vadd.f32 %v10783_v31, %v10782_v32  ;;  %v10820_v49 = vmul.f32 %v31014_v56, %v31014_v56  ;;  %v10787_v52 = vsel %vm10777_vm4, %v31014_v56, 0.0 }
 0x80b   :  { %v10785_v46 = vsel %vm10777_vm4, %v31016_v54, 0.0  ;;  %v10819_v34 = vmul.f32 %v31016_v54, %v31016_v54 }
 0x80c   :  { %v10786_v5 = vadd.f32 %v10785_v46, %v10784_v17  ;;  %v10837_v28 = vadd.f32 %v10836_v33, %v10835_v0  ;;  %v10840_v7 = vsel %vm10777_vm4, %v10820_v49, 0.0 }
 0x80d   :  { %v10838_v20 = vsel %vm10777_vm4, %v10819_v34, 0.0  ;;  %v31028_v2 = vpop.f32.mrb[6].mxu0 }
 0x80e   :  { %v10839_v8 = vadd.f32 %v10838_v20, %v10837_v28  ;;  %v31030_v9 = vpop.f32.mrb[7].mxu0  ;;  %v10788_v39 = vadd.f32 %v10787_v52, %v10786_v5  ;;  %v10822_v24 = vmul.f32 %v31028_v2, %v31028_v2  ;;  %v10791_v58 = vsel %vm10777_vm4, %v31028_v2, 0.0 }
 0x80f   :  { %v10789_v35 = vsel %vm10777_vm4, %v31030_v9, 0.0  ;;  %v10821_v37 = vmul.f32 %v31030_v9, %v31030_v9 }
 0x810   :  { %v10790_v57 = vadd.f32 %v10789_v35, %v10788_v39  ;;  %v10841_v14 = vadd.f32 %v10840_v7, %v10839_v8  ;;  %v10844_v13 = vsel %vm10777_vm4, %v10822_v24, 0.0 }
 0x811   :  { %v10842_v26 = vsel %vm10777_vm4, %v10821_v37, 0.0  ;;  %v31042_v48 = vpop.f32.mrb[8].mxu0 }
 0x812   :  { %v10843_v19 = vadd.f32 %v10842_v26, %v10841_v14  ;;  %v31044_v47 = vpop.f32.mrb[9].mxu0  ;;  %v10792_v15 = vadd.f32 %v10791_v58, %v10790_v57  ;;  %v10824_v10 = vmul.f32 %v31042_v48, %v31042_v48  ;;  %v10795_v40 = vsel %vm10777_vm4, %v31042_v48, 0.0 }
 0x813   :  { %v10793_v51 = vsel %vm10777_vm4, %v31044_v47, 0.0  ;;  %v10823_v62 = vmul.f32 %v31044_v47, %v31044_v47 }
 0x814   :  { %v10794_v63 = vadd.f32 %v10793_v51, %v10792_v15  ;;  %v10845_v25 = vadd.f32 %v10844_v13, %v10843_v19  ;;  %v10848_v4 = vsel %vm10777_vm4, %v10824_v10, 0.0 }
 0x815   :  { %v10846_v50 = vsel %vm10777_vm4, %v10823_v62, 0.0  ;;  %v31056_v27 = vpop.f32.mrb[10].mxu0 }
 0x816   :  { %v10847_v53 = vadd.f32 %v10846_v50, %v10845_v25  ;;  %v31058_v42 = vpop.f32.mrb[11].mxu0  ;;  %v10796_v36 = vadd.f32 %v10795_v40, %v10794_v63  ;;  %v10826_v22 = vmul.f32 %v31056_v27, %v31056_v27  ;;  %v10799_v16 = vsel %vm10777_vm4, %v31056_v27, 0.0 }
 0x817   :  { %v10797_v23 = vsel %vm10777_vm4, %v31058_v42, 0.0  ;;  %v10825_v45 = vmul.f32 %v31058_v42, %v31058_v42 }
 0x818   :  { %v10798_v59 = vadd.f32 %v10797_v23, %v10796_v36  ;;  %v10849_v41 = vadd.f32 %v10848_v4, %v10847_v53  ;;  %v10852_v11 = vsel %vm10777_vm4, %v10826_v22, 0.0 }
 0x819   :  { %v10850_v30 = vsel %vm10777_vm4, %v10825_v45, 0.0  ;;  %v31070_v3 = vpop.f32.mrb[12].mxu0 }
 0x81a   :  { %v10851_v29 = vadd.f32 %v10850_v30, %v10849_v41  ;;  %v31072_v32 = vpop.f32.mrb[13].mxu0  ;;  %v10800_v31 = vadd.f32 %v10799_v16, %v10798_v59  ;;  %v10828_v0 = vmul.f32 %v31070_v3, %v31070_v3  ;;  %v10803_v34 = vsel %vm10777_vm4, %v31070_v3, 0.0 }
 0x81b   :  { %v10801_v17 = vsel %vm10777_vm4, %v31072_v32, 0.0  ;;  %v10827_v33 = vmul.f32 %v31072_v32, %v31072_v32 }
 0x81c   :  { %v10802_v49 = vadd.f32 %v10801_v17, %v10800_v31  ;;  %v10853_v46 = vadd.f32 %v10852_v11, %v10851_v29  ;;  %v10856_v39 = vsel %vm10777_vm4, %v10828_v0, 0.0  ;;  %v10881_v31 = vlaneseq  ;;  %v10873_v0 = vld [vmem:[%s33769_s2] sm:$0x1] }
 0x81d   :  { %v10854_v5 = vsel %vm10777_vm4, %v10827_v33, 0.0  ;;  %v31084_v28 = vpop.f32.mrb[14].mxu0 }
 0x81e   :  { %v10855_v52 = vadd.f32 %v10854_v5, %v10853_v46  ;;  %v10751_v20 = vpop.f32.mrb[15].mxu0  ;;  %v10804_v8 = vadd.f32 %v10803_v34, %v10802_v49  ;;  %v10830_v7 = vmul.f32 %v31084_v28, %v31084_v28  ;;  %v10807_v14 = vsel %vm10777_vm4, %v31084_v28, 0.0  ;;  %v10877_v46 = vld [vmem:[%s33770_s3] sm:$0x1] }
 0x81f   :  { %v10805_v24 = vsel %vm10777_vm4, %v10751_v20, 0.0  ;;  %v10829_v35 = vmul.f32 %v10751_v20, %v10751_v20  ;;  %v10882_v11 = vshrl.u32 %v10881_v31, 7 }
 0x820   :  { %v10806_v37 = vadd.f32 %v10805_v24, %v10804_v8  ;;  %v10857_v57 = vadd.f32 %v10856_v39, %v10855_v52  ;;  %v10860_v15 = vsel %vm10777_vm4, %v10830_v7, 0.0 }
 0x821   :  { %v10858_v58 = vsel %vm10777_vm4, %v10829_v35, 0.0  ;;  %v31097_v17 = vsub.s32 0, %v10882_v11 }
 0x822   :  { %v10808_v26 = vadd.f32 %v10807_v14, %v10806_v37  ;;  %v10859_v19 = vadd.f32 %v10858_v58, %v10857_v57 }
 0x823   :  { %34002 = vst [vmem:[#allocation40_spill] sm:$0xff] %v31097_v17 }
 0x824   :  { %v10809_v13 = vrot.slane %v10808_v26, 4  ;;  %v10861_v10 = vadd.f32 %v10860_v15, %v10859_v19 }
 0x826   :  { %v10810_v51 = vadd.f32 %v10809_v13, %v10808_v26  ;;  %v10862_v62 = vrot.slane %v10861_v10, 4 }
 0x828   :  { %v10811_v63 = vrot.slane %v10810_v51, 2  ;;  %v10863_v25 = vadd.f32 %v10862_v62, %v10861_v10 }
 0x82a   :  { %v10812_v40 = vadd.f32 %v10811_v63, %v10810_v51  ;;  %v10864_v50 = vrot.slane %v10863_v25, 2 }
 0x82c   :  { %v10813_v53 = vrot.slane %v10812_v40, 1  ;;  %v10865_v36 = vadd.f32 %v10864_v50, %v10863_v25 }
 0x82e   :  { %v10814_v4 = vadd.f32 %v10813_v53, %v10812_v40  ;;  %v10866_v22 = vrot.slane %v10865_v36, 1 }
 0x830   :  { %v10867_v23 = vadd.f32 %v10866_v22, %v10865_v36  ;;  %v10868_v45 = vmul.f32 0.0078125, %v10814_v4  ;;  %v11033_v36 = vld [vmem:[#allocation3 + $0xa1] sm:$0xff] }
 0x832   :  { %v10869_v59 = vmul.f32 0.0078125, %v10867_v23  ;;  %v10870_v41 = vmul.f32 %v10868_v45, %v10868_v45 }
 0x834   :  { %v10871_v16 = vsub.f32 %v10869_v59, %v10870_v41 }
 0x836   :  { %v10872_v30 = vmax.f32 %v10871_v16, 0.0 }
 0x838   :  { %v10874_v29 = vadd.f32 1e-05, %v10872_v30 }
 0x83a   :  { %28089 = vrsqrt.f32 %v10874_v29  ;;  %v11068_v29 = vsel %vm10777_vm4, %v11033_v36, 0 }
 0x844   :  { %v28090_v33 = vpop.eup %28089 }
 0x845   :  { %v10876_v49 = vmul.f32 %v28090_v33, %v10873_v0  ;;  %v31164_v33 = vand.u32 4294901760, %v11068_v29 }
 0x847   :  { %v10878_v34 = vmul.f32 %v10876_v49, %v10868_v45  ;;  %v31103_v5 = vrot.slane %v10876_v49, %v31097_v17 }
 0x849   :  { %v10879_v52 = vsub.f32 %v10877_v46, %v10878_v34  ;;  %v10900_v8 = vmul.f32 %v31103_v5, %v10751_v20  ;;  %v10886_v39 = vmul.f32 %v31103_v5, %v30993_v61  ;;  %v10887_v7 = vmul.f32 %v30987_v60, %v31103_v5 }
 0x84a   :  { %v10888_v24 = vmul.f32 %v31103_v5, %v31003_v38  ;;  %v10889_v35 = vmul.f32 %v31001_v1, %v31103_v5  ;;  %v10890_v37 = vmul.f32 %v31103_v5, %v31016_v54  ;;  %v10891_v57 = vmul.f32 %v31014_v56, %v31103_v5 }
 0x84b   :  { %v31119_v20 = vrot.slane %v10879_v52, %v31097_v17  ;;  %v10892_v61 = vmul.f32 %v31103_v5, %v31030_v9  ;;  %v10894_v60 = vmul.f32 %v31103_v5, %v31044_v47  ;;  %v10895_v38 = vmul.f32 %v31042_v48, %v31103_v5 }
 0x84c   :  { %v10896_v1 = vmul.f32 %v31103_v5, %v31058_v42  ;;  %v10897_v54 = vmul.f32 %v31056_v27, %v31103_v5  ;;  %v10898_v56 = vmul.f32 %v31103_v5, %v31072_v32  ;;  %v10899_v14 = vmul.f32 %v31070_v3, %v31103_v5 }
 0x84d   :  { %v10922_v9 = vadd.f32 %v31119_v20, %v10900_v8  ;;  %v10908_v58 = vadd.f32 %v31119_v20, %v10886_v39  ;;  %v10909_v47 = vadd.f32 %v31119_v20, %v10887_v7  ;;  %v10910_v48 = vadd.f32 %v31119_v20, %v10888_v24 }
 0x84e   :  { %v10911_v26 = vadd.f32 %v31119_v20, %v10889_v35  ;;  %v10912_v42 = vadd.f32 %v31119_v20, %v10890_v37  ;;  %v10913_v27 = vadd.f32 %v31119_v20, %v10891_v57  ;;  %v10914_v19 = vadd.f32 %v31119_v20, %v10892_v61 }
 0x84f   :  { %v10938_v32 = vmax.f32 %v10922_v9, 0.0  ;;  %v10924_v15 = vmax.f32 %v10908_v58, 0.0  ;;  %v10925_v13 = vmax.f32 %v10909_v47, 0.0  ;;  %v10926_v3 = vmax.f32 %v10910_v48, 0.0 }
 0x850   :  { %v10927_v10 = vmax.f32 %v10911_v26, 0.0  ;;  %v10928_v51 = vmax.f32 %v10912_v42, 0.0  ;;  %v10929_v62 = vmax.f32 %v10913_v27, 0.0  ;;  %v10930_v63 = vmax.f32 %v10914_v19, 0.0 }
 0x851   :  { %11006 = vst.msk [vmem:[#allocation3 + $0x111] sm:$0xff] %vm10777_vm4, %v10938_v32  ;;  %10992 = vst.msk [vmem:[#allocation3 + $0x11] sm:$0xff] %vm10777_vm4, %v10924_v15  ;;  %v10916_v25 = vadd.f32 %v31119_v20, %v10894_v60  ;;  %v10917_v40 = vadd.f32 %v31119_v20, %v10895_v38  ;;  %v10918_v50 = vadd.f32 %v31119_v20, %v10896_v1 }
 0x852   :  { %10993 = vst.msk [vmem:[#allocation3 + $0x21] sm:$0xff] %vm10777_vm4, %v10925_v13  ;;  %10994 = vst.msk [vmem:[#allocation3 + $0x31] sm:$0xff] %vm10777_vm4, %v10926_v3  ;;  %v10919_v53 = vadd.f32 %v31119_v20, %v10897_v54  ;;  %v10920_v4 = vadd.f32 %v31119_v20, %v10898_v56  ;;  %v10921_v22 = vadd.f32 %v31119_v20, %v10899_v14 }
 0x853   :  { %10995 = vst.msk [vmem:[#allocation3 + $0x41] sm:$0xff] %vm10777_vm4, %v10927_v10  ;;  %10996 = vst.msk [vmem:[#allocation3 + $0x51] sm:$0xff] %vm10777_vm4, %v10928_v51  ;;  %v10932_v23 = vmax.f32 %v10916_v25, 0.0  ;;  %v10933_v45 = vmax.f32 %v10917_v40, 0.0  ;;  %v10934_v59 = vmax.f32 %v10918_v50, 0.0  ;;  %v31223_v25 = vsub.f32 %v11068_v29, %v31164_v33 }
 0x854   :  { %10997 = vst.msk [vmem:[#allocation3 + $0x61] sm:$0xff] %vm10777_vm4, %v10929_v62  ;;  %10998 = vst.msk [vmem:[#allocation3 + $0x71] sm:$0xff] %vm10777_vm4, %v10930_v63  ;;  %v10935_v41 = vmax.f32 %v10919_v53, 0.0  ;;  %v10936_v16 = vmax.f32 %v10920_v4, 0.0  ;;  %v10937_v30 = vmax.f32 %v10921_v22, 0.0 }
 0x855   :  { %11000 = vst.msk [vmem:[#allocation3 + $0xb1] sm:$0xff] %vm10777_vm4, %v10932_v23  ;;  %11001 = vst.msk [vmem:[#allocation3 + $0xc1] sm:$0xff] %vm10777_vm4, %v10933_v45 }
 0x856   :  { %11002 = vst.msk [vmem:[#allocation3 + $0xd1] sm:$0xff] %vm10777_vm4, %v10934_v59  ;;  %11003 = vst.msk [vmem:[#allocation3 + $0xe1] sm:$0xff] %vm10777_vm4, %v10935_v41 }
 0x857   :  { %11004 = vst.msk [vmem:[#allocation3 + $0xf1] sm:$0xff] %vm10777_vm4, %v10936_v16  ;;  %11005 = vst.msk [vmem:[#allocation3 + $0x101] sm:$0xff] %vm10777_vm4, %v10937_v30 }
 0x858   :  { %v11026_v31 = vld [vmem:[#allocation3 + $0x11] sm:$0xff] }
 0x859   :  { %v11027_v11 = vld [vmem:[#allocation3 + $0x21] sm:$0xff]  ;;  %v11028_v0 = vld [vmem:[#allocation3 + $0x31] sm:$0xff]  ;;  %v11047_v49 = vsel %vm10777_vm4, %v11026_v31, 0 }
 0x85a   :  { %v11050_v46 = vsel %vm10777_vm4, %v11027_v11, 0  ;;  %v11053_v34 = vsel %vm10777_vm4, %v11028_v0, 0  ;;  %v11029_v52 = vld [vmem:[#allocation3 + $0x41] sm:$0xff]  ;;  %v11030_v8 = vld [vmem:[#allocation3 + $0x51] sm:$0xff]  ;;  %v31169_v7 = vand.u32 4294901760, %v11047_v49  ;;  %v11239_v11 = vand.u32 4294901760, %v31223_v25 }
 0x85b   :  { %v11031_v39 = vld [vmem:[#allocation3 + $0x61] sm:$0xff]  ;;  %v31171_v24 = vand.u32 4294901760, %v11050_v46  ;;  %v31173_v35 = vand.u32 4294901760, %v11053_v34  ;;  %v11056_v37 = vsel %vm10777_vm4, %v11029_v52, 0  ;;  %v11032_v57 = vld [vmem:[#allocation3 + $0x71] sm:$0xff]  ;;  %v11059_v60 = vsel %vm10777_vm4, %v11030_v8, 0 }
 0x85c   :  { %v31176_v61 = vand.u32 4294901760, %v11056_v37  ;;  %v11062_v38 = vsel %vm10777_vm4, %v11031_v39, 0  ;;  %v11065_v1 = vsel %vm10777_vm4, %v11032_v57, 0  ;;  %v31182_v54 = vsub.f32 %v11047_v49, %v31169_v7  ;;  %v11034_v58 = vld [vmem:[#allocation3 + $0xb1] sm:$0xff]  ;;  %v11035_v50 = vld [vmem:[#allocation3 + $0xc1] sm:$0xff] }
 0x85d   :  { %v31185_v56 = vsub.f32 %v11050_v46, %v31171_v24  ;;  %v31188_v14 = vsub.f32 %v11053_v34, %v31173_v35  ;;  %v31190_v9 = vand.u32 4294901760, %v11059_v60  ;;  %v31195_v48 = vand.u32 4294901760, %v11062_v38  ;;  %v11036_v53 = vld [vmem:[#allocation3 + $0xd1] sm:$0xff]  ;;  %v11037_v36 = vld [vmem:[#allocation3 + $0xe1] sm:$0xff] }
 0x85e   :  { %v31193_v47 = vsub.f32 %v11056_v37, %v31176_v61  ;;  %v31197_v26 = vand.u32 4294901760, %v11065_v1  ;;  %v11071_v42 = vsel %vm10777_vm4, %v11034_v58, 0  ;;  %v11169_v27 = vand.u32 4294901760, %v31182_v54  ;;  %v11038_v29 = vld [vmem:[#allocation3 + $0xf1] sm:$0xff]  ;;  %v11039_v46 = vld [vmem:[#allocation3 + $0x101] sm:$0xff] }
 0x85f   :  { %v11179_v19 = vand.u32 4294901760, %v31185_v56  ;;  %v11189_v32 = vand.u32 4294901760, %v31188_v14  ;;  %v31204_v15 = vsub.f32 %v11059_v60, %v31190_v9  ;;  %v31208_v3 = vsub.f32 %v11062_v38, %v31195_v48 }
 0x860   :  { %v11199_v13 = vand.u32 4294901760, %v31193_v47  ;;  %v11170_v10 = vsub.f32 %v31182_v54, %v11169_v27  ;;  %v31220_v63 = vsub.f32 %v11065_v1, %v31197_v26  ;;  %v31225_v40 = vand.u32 4294901760, %v11071_v42  ;;  %v11040_v1 = vld [vmem:[#allocation3 + $0x111] sm:$0xff] }
 0x861   :  { %v11180_v51 = vsub.f32 %v31185_v56, %v11179_v19  ;;  %v11190_v62 = vsub.f32 %v31188_v14, %v11189_v32  ;;  %v11209_v23 = vand.u32 4294901760, %v31204_v15  ;;  %v11219_v45 = vand.u32 4294901760, %v31208_v3 }
 0x862   :  { %v11171_v4 = vand.u32 4294901760, %v11170_v10  ;;  %v11200_v59 = vsub.f32 %v31193_v47, %v11199_v13  ;;  %v11074_v41 = vsel %vm10777_vm4, %v11035_v50, 0  ;;  %v11077_v16 = vsel %vm10777_vm4, %v11036_v53, 0 }
 0x863   :  { %v11181_v22 = vand.u32 4294901760, %v11180_v51  ;;  %v11080_v30 = vsel %vm10777_vm4, %v11037_v36, 0  ;;  %v11229_v31 = vand.u32 4294901760, %v31220_v63  ;;  %v31239_v0 = vsub.f32 %v11071_v42, %v31225_v40 }
 0x864   :  { %24990 = vmatmul.mubr.f32.vlgmr.msra.gmra.mrb[0].mxu1 %v11171_v4  ;;  %v31241_v49 = vand.u32 4294901760, %v11074_v41  ;;  %v11191_v34 = vand.u32 4294901760, %v11190_v62  ;;  %v11210_v52 = vsub.f32 %v31204_v15, %v11209_v23  ;;  %v31249_v8 = vand.u32 4294901760, %v11077_v16 }
 0x865   :  { %25014 = vmatpush3.msra.mxu1 %v30977_v55  ;;  %24992 = vmatprep.mubr.f32.mxu1 %v11181_v22  ;;  %v11220_v55 = vsub.f32 %v31208_v3, %v11219_v45  ;;  %v11201_v39 = vand.u32 4294901760, %v11200_v59  ;;  %v31255_v57 = vand.u32 4294901760, %v11080_v30  ;;  %v11083_v60 = vsel %vm10777_vm4, %v11038_v29, 0 }
 0x866   :  { %25039 = vmatprep.subr.mxu1 %v30966_v43  ;;  %v31253_v37 = vsub.f32 %v11074_v41, %v31241_v49  ;;  %v11086_v38 = vsel %vm10777_vm4, %v11039_v46, 0  ;;  %v11230_v58 = vsub.f32 %v31220_v63, %v11229_v31  ;;  %v11240_v42 = vsub.f32 %v31223_v25, %v11239_v11 }
 0x867   :  { %v11249_v10 = vand.u32 4294901760, %v31239_v0  ;;  %v11211_v51 = vand.u32 4294901760, %v11210_v52  ;;  %v11221_v62 = vand.u32 4294901760, %v11220_v55  ;;  %v31267_v50 = vsub.f32 %v11077_v16, %v31249_v8 }
 0x868   :  { %24993 = vmatmul.mubr.f32.gmra.mrb[2].mxu1 %v11191_v34  ;;  %v31269_v53 = vand.u32 4294901760, %v11083_v60  ;;  %v11259_v36 = vand.u32 4294901760, %v31253_v37  ;;  %v31273_v4 = vsub.f32 %v11080_v30, %v31255_v57  ;;  %v31275_v22 = vand.u32 4294901760, %v11086_v38 }
 0x869   :  { %24995 = vmatprep.mubr.f32.mxu1 %v11201_v39  ;;  %v11089_v59 = vsel %vm10777_vm4, %v11040_v1, 0  ;;  %v11231_v41 = vand.u32 4294901760, %v11230_v58  ;;  %v11241_v29 = vand.u32 4294901760, %v11240_v42  ;;  %v11250_v16 = vsub.f32 %v31239_v0, %v11249_v10 }
 0x86a   :  { %v33834_v46 = vand.u32 4294901760, %v31267_v50  ;;  %v31283_v34 = vsub.f32 %v11083_v60, %v31269_v53  ;;  %v31285_v52 = vand.u32 4294901760, %v11089_v59  ;;  %v11260_v30 = vsub.f32 %v31253_v37, %v11259_v36 }
 0x86b   :  { %v11279_v55 = vand.u32 4294901760, %v31273_v4  ;;  %v31292_v39 = vsub.f32 %v11086_v38, %v31275_v22  ;;  %v11251_v1 = vand.u32 4294901760, %v11250_v16 }
 0x86c   :  { %24996 = vmatmul.mubr.f32.gmra.mrb[4].mxu1 %v11211_v51  ;;  %v11270_v58 = vsub.f32 %v31267_v50, %v33834_v46  ;;  %v11289_v60 = vand.u32 4294901760, %v31283_v34  ;;  %v31299_v42 = vsub.f32 %v11089_v59, %v31285_v52  ;;  %v11261_v51 = vand.u32 4294901760, %v11260_v30 }
 0x86d   :  { %24998 = vmatprep.mubr.f32.mxu1 %v11221_v62  ;;  %v11280_v62 = vsub.f32 %v31273_v4, %v11279_v55  ;;  %v11299_v38 = vand.u32 4294901760, %v31292_v39 }
 0x86e   :  { %v11309_v16 = vand.u32 4294901760, %v31299_v42 }
 0x86f   :  { %v11281_v46 = vand.u32 4294901760, %v11280_v62  ;;  %v11300_v59 = vsub.f32 %v31292_v39, %v11299_v38  ;;  %v10901_v62 = vmul.f32 %v31084_v28, %v31103_v5 }
 0x870   :  { %24999 = vmatmul.mubr.f32.gmra.mrb[6].mxu1 %v11231_v41  ;;  %v11271_v41 = vand.u32 4294901760, %v11270_v58 }
 0x871   :  { %25001 = vmatprep.mubr.f32.mxu1 %v11241_v29  ;;  %v11290_v29 = vsub.f32 %v31283_v34, %v11289_v60 }
 0x873   :  { %v11291_v30 = vand.u32 4294901760, %v11290_v29  ;;  %v10923_v29 = vadd.f32 %v31119_v20, %v10901_v62  ;;  %v11020_v62 = vld [vmem:[#allocation3 + $0xe0] sm:$0xff] }
 0x874   :  { %25002 = vmatmul.mubr.f32.gmra.mrb[8].mxu1 %v11251_v1  ;;  %v11310_v1 = vsub.f32 %v31299_v42, %v11309_v16 }
 0x875   :  { %25004 = vmatprep.mubr.f32.mxu1 %v11261_v51  ;;  %v11301_v51 = vand.u32 4294901760, %v11300_v59  ;;  %v10939_v59 = vmax.f32 %v10923_v29, 0.0 }
 0x876   :  { %v11311_v58 = vand.u32 4294901760, %v11310_v1 }
 0x877   :  { %11007 = vst.msk [vmem:[#allocation3 + $0x121] sm:$0xff] %vm10777_vm4, %v10939_v59 }
 0x878   :  { %25005 = vmatmul.mubr.f32.gmra.mrb[10].mxu1 %v11271_v41 }
 0x879   :  { %25007 = vmatprep.mubr.f32.mxu1 %v11281_v46  ;;  %v10893_v46 = vmul.f32 %v31028_v2, %v31103_v5 }
 0x87c   :  { %25008 = vmatmul.mubr.f32.gmra.mrb[12].mxu1 %v11291_v30 }
 0x87d   :  { %25010 = vmatprep.mubr.f32.mxu1 %v11301_v51  ;;  %v11019_v51 = vld [vmem:[#allocation3 + $0xd0] sm:$0xff] }
 0x880   :  { %25011 = vmatmul.mubr.f32.gmra.mrb[14].mxu1 %v11311_v58 }
 0x881   :  { %25015 = vmatprep.mubr.f32.mxu1 %v30975_v6 }
 0x884   :  { %25016 = vmatmul.mubr.f32.vlgmr.msra.gmra.mrb[0].mxu1 %v31169_v7 }
 0x885   :  { %25040 = vmatpush3.msra.mxu1 %v30966_v43  ;;  %25018 = vmatprep.mubr.f32.mxu1 %v31171_v24  ;;  %v10915_v43 = vadd.f32 %v31119_v20, %v10893_v46  ;;  %v11008_v20 = vld [vmem:[#allocation3] sm:$0xff] }
 0x886   :  { %25065 = vmatprep.subr.mxu1 %v30954_v18 }
 0x887   :  { %v10931_v41 = vmax.f32 %v10915_v43, 0.0 }
 0x888   :  { %25019 = vmatmul.mubr.f32.gmra.mrb[2].mxu1 %v31173_v35 }
 0x889   :  { %25021 = vmatprep.mubr.f32.mxu1 %v31176_v61  ;;  %10999 = vst.msk [vmem:[#allocation3 + $0x81] sm:$0xff] %vm10777_vm4, %v10931_v41 }
 0x88c   :  { %25022 = vmatmul.mubr.f32.gmra.mrb[4].mxu1 %v31190_v9 }
 0x88d   :  { %25024 = vmatprep.mubr.f32.mxu1 %v31195_v48 }
 0x890   :  { %25025 = vmatmul.mubr.f32.gmra.mrb[6].mxu1 %v31197_v26 }
 0x891   :  { %25027 = vmatprep.mubr.f32.mxu1 %v31164_v33 }
 0x894   :  { %25028 = vmatmul.mubr.f32.gmra.mrb[8].mxu1 %v31225_v40 }
 0x895   :  { %25030 = vmatprep.mubr.f32.mxu1 %v31241_v49 }
 0x898   :  { %25031 = vmatmul.mubr.f32.gmra.mrb[10].mxu1 %v31249_v8 }
 0x899   :  { %25033 = vmatprep.mubr.f32.mxu1 %v31255_v57 }
 0x89c   :  { %25034 = vmatmul.mubr.f32.gmra.mrb[12].mxu1 %v31269_v53 }
 0x89d   :  { %25036 = vmatprep.mubr.f32.mxu1 %v31275_v22 }
 0x8a0   :  { %25037 = vmatmul.mubr.f32.gmra.mrb[14].mxu1 %v31285_v52 }
 0x8a1   :  { %25041 = vmatprep.mubr.f32.mxu1 %v30980_v44  ;;  %v11024_v44 = vld [vmem:[%s33768_s4] sm:$0xff] }
 0x8a4   :  { %25042 = vmatmul.mubr.f32.vlgmr.msra.gmra.mrb[0].mxu1 %v31182_v54  ;;  %v12183_v54 = vsel %vm10777_vm4, %v11008_v20, 0  ;;  %v12216_v20 = vsel %vm10777_vm4, %v11019_v51, 0 }
 0x8a5   :  { %25066 = vmatpush3.msra.mxu1 %v30954_v18  ;;  %25044 = vmatprep.mubr.f32.mxu1 %v31185_v56  ;;  %v11009_v56 = vld [vmem:[#allocation3 + $0x10] sm:$0xff] }
 0x8a6   :  { %25091 = vmatprep.subr.mxu1 %v30970_v21 }
 0x8a8   :  { %25045 = vmatmul.mubr.f32.gmra.mrb[2].mxu1 %v31188_v14  ;;  %v12186_v14 = vsel %vm10777_vm4, %v11009_v56, 0  ;;  %v11021_v56 = vld [vmem:[#allocation3 + $0xf0] sm:$0xff] }
 0x8a9   :  { %25047 = vmatprep.mubr.f32.mxu1 %v31193_v47  ;;  %v11011_v47 = vld [vmem:[#allocation3 + $0x30] sm:$0xff] }
 0x8ac   :  { %25048 = vmatmul.mubr.f32.gmra.mrb[4].mxu1 %v31204_v15 }
 0x8ad   :  { %25050 = vmatprep.mubr.f32.mxu1 %v31208_v3 }
 0x8b0   :  { %25051 = vmatmul.mubr.f32.gmra.mrb[6].mxu1 %v31220_v63 }
 0x8b1   :  { %25053 = vmatprep.mubr.f32.mxu1 %v31223_v25 }
 0x8b4   :  { %25054 = vmatmul.mubr.f32.gmra.mrb[8].mxu1 %v31239_v0 }
 0x8b5   :  { %25056 = vmatprep.mubr.f32.mxu1 %v31253_v37 }
 0x8b8   :  { %25057 = vmatmul.mubr.f32.gmra.mrb[10].mxu1 %v31267_v50 }
 0x8b9   :  { %25059 = vmatprep.mubr.f32.mxu1 %v31273_v4 }
 0x8bc   :  { %25060 = vmatmul.mubr.f32.gmra.mrb[12].mxu1 %v31283_v34 }
 0x8bd   :  { %25062 = vmatprep.mubr.f32.mxu1 %v31292_v39 }
 0x8c0   :  { %25063 = vmatmul.mubr.f32.gmra.mrb[14].mxu1 %v31299_v42 }
 0x8c1   :  { %25067 = vmatprep.mubr.f32.mxu1 %v11159_v12  ;;  %v31397_v12 = vand.u32 4294901760, %v11024_v44 }
 0x8c4   :  { %25068 = vmatmul.mubr.f32.vlgmr.msra.gmra.mrb[0].mxu1 %v11169_v27 }
 0x8c5   :  { %25092 = vmatpush3.msra.mxu1 %v30970_v21  ;;  %25070 = vmatprep.mubr.f32.mxu1 %v11179_v19  ;;  %v34003_v21 = vand.u32 4294901760, %v31267_v50  ;;  %v11013_v19 = vld [vmem:[#allocation3 + $0x50] sm:$0xff] }
 0x8c6   :  { %25117 = vmatprep.subr.mxu1 %v30954_v18  ;;  %v12198_v3 = vsel %vm10777_vm4, %v11013_v19, 0 }
 0x8c7   :  { %v31474_v0 = vand.u32 4294901760, %v12198_v3 }
 0x8c8   :  { %25071 = vmatmul.mubr.f32.gmra.mrb[2].mxu1 %v11189_v32  ;;  %v11014_v32 = vld [vmem:[#allocation3 + $0x60] sm:$0xff] }
 0x8c9   :  { %25073 = vmatprep.mubr.f32.mxu1 %v11199_v13  ;;  %34007 = vst [vmem:[#allocation9_spill] sm:$0xff] %v31474_v0 }
 0x8cc   :  { %25074 = vmatmul.mubr.f32.gmra.mrb[4].mxu1 %v11209_v23  ;;  %v11016_v23 = vld [vmem:[#allocation3 + $0xa0] sm:$0xff] }
 0x8cd   :  { %25076 = vmatprep.mubr.f32.mxu1 %v11219_v45  ;;  %v11015_v45 = vld [vmem:[#allocation3 + $0x70] sm:$0xff] }
 0x8ce   :  { %v12204_v50 = vsel %vm10777_vm4, %v11015_v45, 0  ;;  %v11023_v45 = vld [vmem:[#allocation3 + $0x110] sm:$0xff] }
 0x8cf   :  { %v12228_v51 = vsel %vm10777_vm4, %v11023_v45, 0 }
 0x8d0   :  { %25077 = vmatmul.mubr.f32.gmra.mrb[6].mxu1 %v11229_v31 }
 0x8d1   :  { %25079 = vmatprep.mubr.f32.mxu1 %v11239_v11 }
 0x8d4   :  { %25080 = vmatmul.mubr.f32.gmra.mrb[8].mxu1 %v11249_v10  ;;  %v12207_v10 = vsel %vm10777_vm4, %v11016_v23, 0 }
 0x8d5   :  { %25082 = vmatprep.mubr.f32.mxu1 %v11259_v36  ;;  %v11017_v36 = vld [vmem:[#allocation3 + $0xb0] sm:$0xff]  ;;  %v31496_v39 = vand.u32 4294901760, %v12207_v10 }
 0x8d7   :  { %v31518_v46 = vsub.f32 %v12207_v10, %v31496_v39 }
 0x8d8   :  { %25083 = vmatmul.mubr.f32.gmra.mrb[10].mxu1 %v34003_v21 }
 0x8d9   :  { %25085 = vmatprep.mubr.f32.mxu1 %v11279_v55  ;;  %v31494_v55 = vsub.f32 %v12198_v3, %v31474_v0 }
 0x8db   :  { %34012 = vst [vmem:[#allocation26_spill] sm:$0xff] %v31494_v55  ;;  %v31515_v58 = vand.u32 4294901760, %v31494_v55 }
 0x8dc   :  { %25086 = vmatmul.mubr.f32.gmra.mrb[12].mxu1 %v11289_v60  ;;  %v11018_v60 = vld [vmem:[#allocation3 + $0xc0] sm:$0xff] }
 0x8dd   :  { %25088 = vmatprep.mubr.f32.mxu1 %v11299_v38  ;;  %v12213_v1 = vsel %vm10777_vm4, %v11018_v60, 0  ;;  %34017 = vst [vmem:[#allocation4_spill] sm:$0xff] %v31515_v58 }
 0x8e0   :  { %25089 = vmatmul.mubr.f32.gmra.mrb[14].mxu1 %v11309_v16  ;;  %v31504_v16 = vand.u32 4294901760, %v12204_v50 }
 0x8e1   :  { %25093 = vmatprep.mubr.f32.mxu1 %v30975_v6 }
 0x8e2   :  { %34015 = vst [vmem:[#allocation34_spill] sm:$0xff] %v31504_v16  ;;  %v31530_v59 = vsub.f32 %v12204_v50, %v31504_v16 }
 0x8e4   :  { %25094 = vmatmul.mubr.f32.vlgmr.msra.gmra.mrb[0].mxu1 %v31169_v7  ;;  %34020 = vst [vmem:[#allocation13_spill] sm:$0xff] %v31530_v59  ;;  %v31554_v19 = vand.u32 4294901760, %v31530_v59 }
 0x8e5   :  { %25118 = vmatpush3.msra.mxu1 %v30954_v18  ;;  %25096 = vmatprep.mubr.f32.mxu1 %v31171_v24  ;;  %v31412_v18 = vsub.f32 %v11024_v44, %v31397_v12 }
 0x8e6   :  { %25143 = vmatprep.subr.mxu1 %v31397_v12  ;;  %34023 = vst [vmem:[#allocation22_spill] sm:$0xff] %v31554_v19 }
 0x8e7   :  { %v31417_v2 = vand.u32 4294901760, %v31412_v18 }
 0x8e8   :  { %25097 = vmatmul.mubr.f32.gmra.mrb[2].mxu1 %v31173_v35 }
 0x8e9   :  { %25099 = vmatprep.mubr.f32.mxu1 %v31176_v61  ;;  %v12460_v28 = vsub.f32 %v31412_v18, %v31417_v2 }
 0x8eb   :  { %v31425_v5 = vand.u32 4294901760, %v12460_v28  ;;  %v31536_v28 = vand.u32 4294901760, %v12213_v1 }
 0x8ec   :  { %25100 = vmatmul.mubr.f32.gmra.mrb[4].mxu1 %v31190_v9 }
 0x8ed   :  { %25102 = vmatprep.mubr.f32.mxu1 %v31195_v48  ;;  %34021 = vst [vmem:[#allocation14_spill] sm:$0xff] %v31536_v28 }
 0x8f0   :  { %25103 = vmatmul.mubr.f32.gmra.mrb[6].mxu1 %v31197_v26 }
 0x8f1   :  { %25105 = vmatprep.mubr.f32.mxu1 %v31164_v33 }
 0x8f4   :  { %25106 = vmatmul.mubr.f32.gmra.mrb[8].mxu1 %v31225_v40 }
 0x8f5   :  { %25108 = vmatprep.mubr.f32.mxu1 %v31241_v49 }
 0x8f8   :  { %25109 = vmatmul.mubr.f32.gmra.mrb[10].mxu1 %v31249_v8 }
 0x8f9   :  { %25111 = vmatprep.mubr.f32.mxu1 %v31255_v57 }
 0x8fc   :  { %25112 = vmatmul.mubr.f32.gmra.mrb[12].mxu1 %v31269_v53 }
 0x8fd   :  { %25114 = vmatprep.mubr.f32.mxu1 %v31275_v22 }
 0x900   :  { %25115 = vmatmul.mubr.f32.gmra.mrb[14].mxu1 %v31285_v52 }
 0x901   :  { %25119 = vmatprep.mubr.f32.mxu1 %v30975_v6  ;;  %v31436_v6 = vand.u32 4294901760, %v12183_v54 }
 0x904   :  { %25120 = vmatmul.mubr.f32.vlgmr.msra.gmra.mrb[0].mxu1 %v31169_v7  ;;  %v11010_v7 = vld [vmem:[#allocation3 + $0x20] sm:$0xff] }
 0x905   :  { %25144 = vmatpush3.msra.mxu1 %v31397_v12  ;;  %25122 = vmatprep.mubr.f32.mxu1 %v31171_v24  ;;  %v12189_v24 = vsel %vm10777_vm4, %v11010_v7, 0  ;;  %v12349_v7 = vsub.f32 %v31494_v55, %v31515_v58 }
 0x906   :  { %25169 = vmatprep.subr.mxu1 %v31425_v5  ;;  %v31447_v27 = vand.u32 4294901760, %v12189_v24 }
 0x908   :  { %25123 = vmatmul.mubr.f32.gmra.mrb[2].mxu1 %v31173_v35  ;;  %v31443_v35 = vsub.f32 %v12183_v54, %v31436_v6  ;;  %v31461_v63 = vsub.f32 %v12189_v24, %v31447_v27  ;;  %v12219_v54 = vsel %vm10777_vm4, %v11020_v62, 0 }
 0x909   :  { %25125 = vmatprep.mubr.f32.mxu1 %v31176_v61  ;;  %v31445_v61 = vand.u32 4294901760, %v12186_v14  ;;  %v31564_v3 = vand.u32 4294901760, %v12219_v54 }
 0x90a   :  { %34005 = vst [vmem:[#allocation5_spill] sm:$0xff] %v31461_v63 }
 0x90b   :  { %v31455_v15 = vsub.f32 %v12186_v14, %v31445_v61  ;;  %v33835_v14 = vand.u32 4294901760, %v31518_v46  ;;  %34026 = vst [vmem:[#allocation30_spill] sm:$0xff] %v31564_v3 }
 0x90c   :  { %25126 = vmatmul.mubr.f32.gmra.mrb[4].mxu1 %v31190_v9  ;;  %v11012_v9 = vld [vmem:[#allocation3 + $0x40] sm:$0xff] }
 0x90d   :  { %25128 = vmatprep.mubr.f32.mxu1 %v31195_v48  ;;  %v12192_v48 = vsel %vm10777_vm4, %v11011_v47, 0  ;;  %34004 = vst [vmem:[#allocation43_spill] sm:$0xff] %v31455_v15  ;;  %v31472_v11 = vand.u32 4294901760, %v31455_v15  ;;  %v11022_v47 = vld [vmem:[#allocation3 + $0x100] sm:$0xff]  ;;  %v12379_v10 = vsub.f32 %v31518_v46, %v33835_v14 }
 0x90e   :  { %v31457_v13 = vand.u32 4294901760, %v12192_v48  ;;  %v12225_v23 = vsel %vm10777_vm4, %v11022_v47, 0 }
 0x90f   :  { %34006 = vst [vmem:[#allocation7_spill] sm:$0xff] %v31472_v11  ;;  %v12309_v34 = vsub.f32 %v31455_v15, %v31472_v11  ;;  %v12380_v62 = vand.u32 4294901760, %v12379_v10 }
 0x910   :  { %25129 = vmatmul.mubr.f32.gmra.mrb[6].mxu1 %v31197_v26  ;;  %v12195_v26 = vsel %vm10777_vm4, %v11012_v9, 0 }
 0x911   :  { %25131 = vmatprep.mubr.f32.mxu1 %v31164_v33  ;;  %v33836_v33 = vand.u32 4294901760, %v31443_v35  ;;  %v31463_v25 = vand.u32 4294901760, %v12195_v26  ;;  %v31522_v41 = vand.u32 4294901760, %v12309_v34 }
 0x913   :  { %v12299_v31 = vsub.f32 %v31443_v35, %v33836_v33 }
 0x914   :  { %25132 = vmatmul.mubr.f32.gmra.mrb[8].mxu1 %v31225_v40  ;;  %v12201_v40 = vsel %vm10777_vm4, %v11014_v32, 0  ;;  %v31562_v32 = vsub.f32 %v12213_v1, %v31536_v28  ;;  %v31593_v1 = vand.u32 4294901760, %v12225_v23 }
 0x915   :  { %25134 = vmatprep.mubr.f32.mxu1 %v31241_v49  ;;  %v31477_v49 = vsub.f32 %v12192_v48, %v31457_v13  ;;  %v31479_v37 = vand.u32 4294901760, %v12201_v40  ;;  %v12300_v4 = vand.u32 4294901760, %v12299_v31  ;;  %v31570_v31 = vand.u32 4294901760, %v12349_v7 }
 0x916   :  { %34025 = vst [vmem:[#allocation27_spill] sm:$0xff] %v31562_v32  ;;  %34032 = vst [vmem:[#allocation12_spill] sm:$0xff] %v31593_v1 }
 0x917   :  { %34008 = vst [vmem:[#allocation11_spill] sm:$0xff] %v31477_v49  ;;  %34009 = vst [vmem:[#allocation17_spill] sm:$0xff] %v31479_v37  ;;  %v31499_v42 = vand.u32 4294901760, %v31477_v49  ;;  %v31502_v38 = vsub.f32 %v12201_v40, %v31479_v37  ;;  %v12222_v40 = vsel %vm10777_vm4, %v11021_v56, 0  ;;  %v31608_v56 = vand.u32 4294901760, %v12228_v51 }
 0x918   :  { %25135 = vmatmul.mubr.f32.gmra.mrb[10].mxu1 %v31249_v8  ;;  %v31483_v8 = vand.u32 4294901760, %v31461_v63  ;;  %v31585_v60 = vand.u32 4294901760, %v12222_v40 }
 0x919   :  { %25137 = vmatprep.mubr.f32.mxu1 %v31255_v57  ;;  %v31486_v57 = vsub.f32 %v12195_v26, %v31463_v25  ;;  %34013 = vst [vmem:[#allocation28_spill] sm:$0xff] %v31499_v42  ;;  %34014 = vst [vmem:[#allocation31_spill] sm:$0xff] %v31502_v38  ;;  %v12329_v29 = vsub.f32 %v31477_v49, %v31499_v42 }
 0x91a   :  { %34010 = vst [vmem:[#allocation20_spill] sm:$0xff] %v31483_v8  ;;  %34029 = vst [vmem:[#allocation39_spill] sm:$0xff] %v31585_v60 }
 0x91b   :  { %34011 = vst [vmem:[#allocation23_spill] sm:$0xff] %v31486_v57  ;;  %v31510_v30 = vand.u32 4294901760, %v31486_v57  ;;  %v31549_v9 = vand.u32 4294901760, %v12329_v29  ;;  %34035 = vst [vmem:[#allocation19_spill] sm:$0xff] %v31608_v56 }
 0x91c   :  { %25138 = vmatmul.mubr.f32.gmra.mrb[12].mxu1 %v31269_v53  ;;  %v12210_v53 = vsel %vm10777_vm4, %v11017_v36, 0 }
 0x91d   :  { %25140 = vmatprep.mubr.f32.mxu1 %v31275_v22  ;;  %v12319_v22 = vsub.f32 %v31461_v63, %v31483_v8  ;;  %34016 = vst [vmem:[#allocation37_spill] sm:$0xff] %v31510_v30  ;;  %v31520_v43 = vand.u32 4294901760, %v12210_v53  ;;  %v12339_v44 = vsub.f32 %v31486_v57, %v31510_v30 }
 0x91f   :  { %34018 = vst [vmem:[#allocation6_spill] sm:$0xff] %v31520_v43  ;;  %v31532_v21 = vand.u32 4294901760, %v12319_v22  ;;  %v31547_v24 = vsub.f32 %v12210_v53, %v31520_v43  ;;  %v31559_v26 = vand.u32 4294901760, %v12339_v44  ;;  %v31588_v53 = vand.u32 4294901760, %v31562_v32 }
 0x920   :  { %25141 = vmatmul.mubr.f32.gmra.mrb[14].mxu1 %v31285_v52  ;;  %v31527_v52 = vand.u32 4294901760, %v31502_v38  ;;  %v31591_v22 = vsub.f32 %v12219_v54, %v31564_v3  ;;  %v31606_v54 = vsub.f32 %v12222_v40, %v31585_v60 }
 0x921   :  { %25145 = vmatprep.mubr.f32.mxu1 %v12300_v4  ;;  %34022 = vst [vmem:[#allocation16_spill] sm:$0xff] %v31547_v24  ;;  %v31576_v50 = vand.u32 4294901760, %v31547_v24  ;;  %v12369_v4 = vsub.f32 %v31530_v59, %v31554_v19  ;;  %34030 = vst [vmem:[#allocation42_spill] sm:$0xff] %v31588_v53  ;;  %v12399_v7 = vsub.f32 %v31562_v32, %v31588_v53 }
 0x922   :  { %34019 = vst [vmem:[#allocation10_spill] sm:$0xff] %v31527_v52  ;;  %v12359_v48 = vsub.f32 %v31502_v38, %v31527_v52  ;;  %34031 = vst [vmem:[#allocation8_spill] sm:$0xff] %v31591_v22  ;;  %v31613_v47 = vand.u32 4294901760, %v31591_v22  ;;  %v31624_v10 = vand.u32 4294901760, %v31606_v54 }
 0x923   :  { %34027 = vst [vmem:[#allocation33_spill] sm:$0xff] %v31576_v50  ;;  %v12389_v29 = vsub.f32 %v31547_v24, %v31576_v50  ;;  %v31600_v44 = vand.u32 4294901760, %v12369_v4  ;;  %34034 = vst [vmem:[#allocation18_spill] sm:$0xff] %v31606_v54  ;;  %v31627_v4 = vsub.f32 %v12228_v51, %v31608_v56  ;;  %v31629_v14 = vand.u32 4294901760, %v12399_v7 }
 0x924   :  { %25146 = vmatmul.mubr.f32.vlgmr.msra.gmra.mrb[0].mxu1 %v31522_v41  ;;  %v31578_v36 = vand.u32 4294901760, %v12359_v48  ;;  %34036 = vst [vmem:[#allocation21_spill] sm:$0xff] %v31613_v47  ;;  %v31616_v48 = vsub.f32 %v12225_v23, %v31593_v1  ;;  %34039 = vst [vmem:[#allocation32_spill] sm:$0xff] %v31624_v10  ;;  %v12419_v23 = vsub.f32 %v31591_v22, %v31613_v47 }
 0x925   :  { %25170 = vmatpush3.msra.mxu1 %v31425_v5  ;;  %25148 = vmatprep.mubr.f32.mxu1 %v31532_v21  ;;  %v31556_v5 = vand.u32 4294901760, %v12216_v20  ;;  %v31619_v45 = vand.u32 4294901760, %v12389_v29  ;;  %34040 = vst [vmem:[#allocation35_spill] sm:$0xff] %v31627_v4  ;;  %34041 = vst [vmem:[#allocation38_spill] sm:$0xff] %v31629_v14  ;;  %v12429_v29 = vsub.f32 %v31606_v54, %v31624_v10  ;;  %v31643_v51 = vand.u32 4294901760, %v31627_v4 }
 0x926   :  { %25195 = vmatprep.subr.mxu1 %v31412_v18  ;;  %34037 = vst [vmem:[#allocation25_spill] sm:$0xff] %v31616_v48  ;;  %v31634_v33 = vand.u32 4294901760, %v31616_v48  ;;  %v31645_v7 = vand.u32 4294901760, %v12419_v23 }
 0x927   :  { %34024 = vst [vmem:[#allocation24_spill] sm:$0xff] %v31556_v5  ;;  %v31583_v34 = vsub.f32 %v12216_v20, %v31556_v5  ;;  %34038 = vst [vmem:[#allocation29_spill] sm:$0xff] %v31619_v45 }
 0x928   :  { %25149 = vmatmul.mubr.f32.gmra.mrb[2].mxu1 %v31549_v9  ;;  %34042 = vst [vmem:[#allocation41_spill] sm:$0xff] %v31634_v33  ;;  %34043 = vst [vmem:[#allocation44_spill] sm:$0xff] %v31643_v51  ;;  %v12439_v17 = vsub.f32 %v31616_v48, %v31634_v33 }
 0x929   :  { %25151 = vmatprep.mubr.f32.mxu1 %v31559_v26  ;;  %34028 = vst [vmem:[#allocation36_spill] sm:$0xff] %v31583_v34  ;;  %v31603_v20 = vand.u32 4294901760, %v31583_v34 }
 0x92b   :  { %34033 = vst [vmem:[#allocation15_spill] sm:$0xff] %v31603_v20  ;;  %v12409_v40 = vsub.f32 %v31583_v34, %v31603_v20 }
 0x92c   :  { %25152 = vmatmul.mubr.f32.gmra.mrb[4].mxu1 %v31570_v31 }
 0x92d   :  { %25154 = vmatprep.mubr.f32.mxu1 %v31578_v36 }
 0x930   :  { %25155 = vmatmul.mubr.f32.gmra.mrb[6].mxu1 %v31600_v44 }
 0x931   :  { %25157 = vmatprep.mubr.f32.mxu1 %v12380_v62  ;;  %v31638_v62 = vand.u32 4294901760, %v12409_v40  ;;  %v12449_v40 = vsub.f32 %v31627_v4, %v31643_v51 }
 0x933   :  { %v31659_v23 = vand.u32 4294901760, %v12449_v40 }
 0x934   :  { %25158 = vmatmul.mubr.f32.gmra.mrb[8].mxu1 %v31619_v45  ;;  %v31651_v45 = vand.u32 4294901760, %v12429_v29 }
 0x935   :  { %25160 = vmatprep.mubr.f32.mxu1 %v31629_v14  ;;  %v31655_v14 = vand.u32 4294901760, %v12439_v17  ;;  %v34044_v17 = vand.u32 4294901760, %v31443_v35 }
 0x938   :  { %25161 = vmatmul.mubr.f32.gmra.mrb[10].mxu1 %v31638_v62 }
 0x939   :  { %25163 = vmatprep.mubr.f32.mxu1 %v31645_v7 }
 0x93c   :  { %25164 = vmatmul.mubr.f32.gmra.mrb[12].mxu1 %v31651_v45 }
 0x93d   :  { %25166 = vmatprep.mubr.f32.mxu1 %v31655_v14 }
 0x940   :  { %25167 = vmatmul.mubr.f32.gmra.mrb[14].mxu1 %v31659_v23 }
 0x941   :  { %25171 = vmatprep.mubr.f32.mxu1 %v31436_v6 }
 0x944   :  { %25172 = vmatmul.mubr.f32.vlgmr.msra.gmra.mrb[0].mxu1 %v31445_v61 }
 0x945   :  { %25196 = vmatpush3.msra.mxu1 %v31412_v18  ;;  %25174 = vmatprep.mubr.f32.mxu1 %v31447_v27  ;;  %v34045_v18 = vand.u32 4294901760, %v31518_v46 }
 0x946   :  { %25221 = vmatprep.subr.mxu1 %v31397_v12 }
 0x948   :  { %25175 = vmatmul.mubr.f32.gmra.mrb[2].mxu1 %v31457_v13 }
 0x949   :  { %25177 = vmatprep.mubr.f32.mxu1 %v31463_v25 }
 0x94c   :  { %25178 = vmatmul.mubr.f32.gmra.mrb[4].mxu1 %v31474_v0 }
 0x94d   :  { %25180 = vmatprep.mubr.f32.mxu1 %v31479_v37 }
 0x950   :  { %25181 = vmatmul.mubr.f32.gmra.mrb[6].mxu1 %v31504_v16 }
 0x951   :  { %25183 = vmatprep.mubr.f32.mxu1 %v31496_v39 }
 0x954   :  { %25184 = vmatmul.mubr.f32.gmra.mrb[8].mxu1 %v31520_v43 }
 0x955   :  { %25186 = vmatprep.mubr.f32.mxu1 %v31536_v28 }
 0x958   :  { %25187 = vmatmul.mubr.f32.gmra.mrb[10].mxu1 %v31556_v5 }
 0x959   :  { %25189 = vmatprep.mubr.f32.mxu1 %v31564_v3 }
 0x95c   :  { %25190 = vmatmul.mubr.f32.gmra.mrb[12].mxu1 %v31585_v60 }
 0x95d   :  { %25192 = vmatprep.mubr.f32.mxu1 %v31593_v1 }
 0x960   :  { %25193 = vmatmul.mubr.f32.gmra.mrb[14].mxu1 %v31608_v56 }
 0x961   :  { %25197 = vmatprep.mubr.f32.mxu1 %v31443_v35 }
 0x964   :  { %25198 = vmatmul.mubr.f32.vlgmr.msra.gmra.mrb[0].mxu1 %v31455_v15 }
 0x965   :  { %25222 = vmatpush3.msra.mxu1 %v31397_v12  ;;  %25200 = vmatprep.mubr.f32.mxu1 %v31461_v63 }
 0x966   :  { %25247 = vmatprep.subr.mxu1 %v31417_v2 }
 0x968   :  { %25201 = vmatmul.mubr.f32.gmra.mrb[2].mxu1 %v31477_v49 }
 0x969   :  { %25203 = vmatprep.mubr.f32.mxu1 %v31486_v57 }
 0x96c   :  { %25204 = vmatmul.mubr.f32.gmra.mrb[4].mxu1 %v31494_v55  ;;  %v13332_v55 = vld [vmem:[#allocation3 + $0xd2] sm:$0xff] }
 0x96d   :  { %25206 = vmatprep.mubr.f32.mxu1 %v31502_v38 }
 0x970   :  { %25207 = vmatmul.mubr.f32.gmra.mrb[6].mxu1 %v31530_v59 }
 0x971   :  { %25209 = vmatprep.mubr.f32.mxu1 %v31518_v46 }
 0x974   :  { %25210 = vmatmul.mubr.f32.gmra.mrb[8].mxu1 %v31547_v24 }
 0x975   :  { %25212 = vmatprep.mubr.f32.mxu1 %v31562_v32 }
 0x978   :  { %25213 = vmatmul.mubr.f32.gmra.mrb[10].mxu1 %v31583_v34  ;;  %v13330_v34 = vld [vmem:[#allocation3 + $0xb2] sm:$0xff] }
 0x979   :  { %25215 = vmatprep.mubr.f32.mxu1 %v31591_v22  ;;  %v13367_v59 = vsel %vm10777_vm4, %v13330_v34, 0  ;;  %v13333_v34 = vld [vmem:[#allocation3 + $0xe2] sm:$0xff] }
 0x97a   :  { %v31837_v57 = vand.u32 4294901760, %v13367_v59 }
 0x97c   :  { %25216 = vmatmul.mubr.f32.gmra.mrb[12].mxu1 %v31606_v54 }
 0x97d   :  { %25218 = vmatprep.mubr.f32.mxu1 %v31616_v48  ;;  %v13331_v48 = vld [vmem:[#allocation3 + $0xc2] sm:$0xff] }
 0x980   :  { %25219 = vmatmul.mubr.f32.gmra.mrb[14].mxu1 %v31627_v4 }
 0x981   :  { %25223 = vmatprep.mubr.f32.mxu1 %v34044_v17  ;;  %v13321_v17 = vld [vmem:[#allocation3 + $0x2] sm:$0xff] }
 0x984   :  { %25224 = vmatmul.mubr.f32.vlgmr.msra.gmra.mrb[0].mxu1 %v31472_v11 }
 0x985   :  { %25248 = vmatpush3.msra.mxu1 %v31417_v2  ;;  %25226 = vmatprep.mubr.f32.mxu1 %v31483_v8  ;;  %v21740_v2 = vld [vmem:[%s33768_s4 + $0x10] sm:$0xff] }
 0x986   :  { %25273 = vmatprep.subr.mxu1 %v31397_v12  ;;  %v31722_v35 = vand.u32 4294901760, %v21740_v2  ;;  %v13328_v8 = vld [vmem:[#allocation3 + $0x72] sm:$0xff] }
 0x987   :  { %v13361_v22 = vsel %vm10777_vm4, %v13328_v8, 0 }
 0x988   :  { %25227 = vmatmul.mubr.f32.gmra.mrb[2].mxu1 %v31499_v42  ;;  %v31824_v24 = vand.u32 4294901760, %v13361_v22 }
 0x989   :  { %25229 = vmatprep.mubr.f32.mxu1 %v31510_v30 }
 0x98a   :  { %v31844_v15 = vsub.f32 %v13361_v22, %v31824_v24 }
 0x98c   :  { %25230 = vmatmul.mubr.f32.gmra.mrb[4].mxu1 %v31515_v58 }
 0x98d   :  { %25232 = vmatprep.mubr.f32.mxu1 %v31527_v52  ;;  %v13327_v52 = vld [vmem:[#allocation3 + $0x62] sm:$0xff] }
 0x98e   :  { %v13358_v42 = vsel %vm10777_vm4, %v13327_v52, 0 }
 0x98f   :  { %v31802_v4 = vand.u32 4294901760, %v13358_v42 }
 0x990   :  { %25233 = vmatmul.mubr.f32.gmra.mrb[6].mxu1 %v31554_v19  ;;  %v13326_v19 = vld [vmem:[#allocation3 + $0x52] sm:$0xff] }
 0x991   :  { %25235 = vmatprep.mubr.f32.mxu1 %v34045_v18  ;;  %v13340_v18 = vsel %vm10777_vm4, %v13321_v17, 0  ;;  %v13355_v58 = vsel %vm10777_vm4, %v13326_v19, 0  ;;  %v31822_v8 = vsub.f32 %v13358_v42, %v31802_v4 }
 0x992   :  { %v31797_v19 = vand.u32 4294901760, %v13355_v58 }
 0x994   :  { %25236 = vmatmul.mubr.f32.gmra.mrb[8].mxu1 %v31576_v50  ;;  %v31816_v32 = vsub.f32 %v13355_v58, %v31797_v19  ;;  %v13370_v58 = vsel %vm10777_vm4, %v13331_v48, 0 }
 0x995   :  { %25238 = vmatprep.mubr.f32.mxu1 %v31588_v53 }
 0x998   :  { %25239 = vmatmul.mubr.f32.gmra.mrb[10].mxu1 %v31603_v20  ;;  %v13325_v20 = vld [vmem:[#allocation3 + $0x42] sm:$0xff] }
 0x999   :  { %25241 = vmatprep.mubr.f32.mxu1 %v31613_v47 }
 0x99c   :  { %25242 = vmatmul.mubr.f32.gmra.mrb[12].mxu1 %v31624_v10  ;;  %v13324_v10 = vld [vmem:[#allocation3 + $0x32] sm:$0xff] }
 0x99d   :  { %25244 = vmatprep.mubr.f32.mxu1 %v31634_v33  ;;  %v13349_v50 = vsel %vm10777_vm4, %v13324_v10, 0 }
 0x9a0   :  { %25245 = vmatmul.mubr.f32.gmra.mrb[14].mxu1 %v31643_v51 }
 0x9a1   :  { %25249 = vmatprep.mubr.f32.mxu1 %v31436_v6 }
 0x9a4   :  { %25250 = vmatmul.mubr.f32.vlgmr.msra.gmra.mrb[0].mxu1 %v31445_v61 }
 0x9a5   :  { %25274 = vmatpush3.msra.mxu1 %v31397_v12  ;;  %25252 = vmatprep.mubr.f32.mxu1 %v31447_v27  ;;  %v31737_v12 = vsub.f32 %v21740_v2, %v31722_v35  ;;  %v13322_v2 = vld [vmem:[#allocation3 + $0x12] sm:$0xff] }
 0x9a6   :  { %25299 = vmatprep.subr.mxu1 %v31722_v35  ;;  %v13343_v51 = vsel %vm10777_vm4, %v13322_v2, 0  ;;  %v13352_v2 = vsel %vm10777_vm4, %v13325_v20, 0  ;;  %v13329_v20 = vld [vmem:[#allocation3 + $0xa2] sm:$0xff] }
 0x9a7   :  { %v31742_v46 = vand.u32 4294901760, %v31737_v12  ;;  %v31770_v17 = vand.u32 4294901760, %v13343_v51  ;;  %v31788_v10 = vand.u32 4294901760, %v13352_v2  ;;  %v13364_v52 = vsel %vm10777_vm4, %v13329_v20, 0 }
 0x9a8   :  { %25253 = vmatmul.mubr.f32.gmra.mrb[2].mxu1 %v31457_v13  ;;  %v31818_v20 = vand.u32 4294901760, %v13364_v52 }
 0x9a9   :  { %25255 = vmatprep.mubr.f32.mxu1 %v31463_v25  ;;  %v13617_v29 = vsub.f32 %v31737_v12, %v31742_v46  ;;  %v31807_v54 = vsub.f32 %v13352_v2, %v31788_v10 }
 0x9aa   :  { %v31835_v42 = vsub.f32 %v13364_v52, %v31818_v20  ;;  %v31849_v52 = vand.u32 4294901760, %v13370_v58 }
 0x9ab   :  { %v31750_v40 = vand.u32 4294901760, %v13617_v29  ;;  %v13323_v29 = vld [vmem:[#allocation3 + $0x22] sm:$0xff] }
 0x9ac   :  { %25256 = vmatmul.mubr.f32.gmra.mrb[4].mxu1 %v31474_v0  ;;  %v13346_v33 = vsel %vm10777_vm4, %v13323_v29, 0  ;;  %v31782_v29 = vand.u32 4294901760, %v13349_v50 }
 0x9ad   :  { %25258 = vmatprep.mubr.f32.mxu1 %v31479_v37  ;;  %v31772_v53 = vand.u32 4294901760, %v13346_v33 }
 0x9af   :  { %v31786_v30 = vsub.f32 %v13346_v33, %v31772_v53  ;;  %v31800_v33 = vsub.f32 %v13349_v50, %v31782_v29 }
 0x9b0   :  { %25259 = vmatmul.mubr.f32.gmra.mrb[6].mxu1 %v31504_v16 }
 0x9b1   :  { %25261 = vmatprep.mubr.f32.mxu1 %v31496_v39  ;;  %v34047_v63 = vand.u32 4294901760, %v31800_v33 }
 0x9b4   :  { %25262 = vmatmul.mubr.f32.gmra.mrb[8].mxu1 %v31520_v43 }
 0x9b5   :  { %25264 = vmatprep.mubr.f32.mxu1 %v31536_v28 }
 0x9b8   :  { %25265 = vmatmul.mubr.f32.gmra.mrb[10].mxu1 %v31556_v5 }
 0x9b9   :  { %25267 = vmatprep.mubr.f32.mxu1 %v31564_v3 }
 0x9bc   :  { %25268 = vmatmul.mubr.f32.gmra.mrb[12].mxu1 %v31585_v60 }
 0x9bd   :  { %25270 = vmatprep.mubr.f32.mxu1 %v31593_v1 }
 0x9c0   :  { %25271 = vmatmul.mubr.f32.gmra.mrb[14].mxu1 %v31608_v56 }
 0x9c1   :  { %25275 = vmatprep.mubr.f32.mxu1 %v31436_v6  ;;  %v31761_v6 = vand.u32 4294901760, %v13340_v18 }
 0x9c3   :  { %v31768_v47 = vsub.f32 %v13340_v18, %v31761_v6  ;;  %v31780_v18 = vsub.f32 %v13343_v51, %v31770_v17 }
 0x9c4   :  { %25276 = vmatmul.mubr.f32.vlgmr.msra.gmra.mrb[0].mxu1 %v31445_v61 }
 0x9c5   :  { %25300 = vmatpush3.msra.mxu1 %v31722_v35  ;;  %25278 = vmatprep.mubr.f32.mxu1 %v31447_v27  ;;  %v33865_v11 = vand.u32 4294901760, %v31780_v18 }
 0x9c6   :  { %25325 = vmatprep.subr.mxu1 %v31750_v40 }
 0x9c7   :  { %v13466_v50 = vsub.f32 %v31780_v18, %v33865_v11  ;;  %v31859_v11 = vsub.f32 %v13367_v59, %v31837_v57 }
 0x9c8   :  { %25279 = vmatmul.mubr.f32.gmra.mrb[2].mxu1 %v31457_v13 }
 0x9c9   :  { %25281 = vmatprep.mubr.f32.mxu1 %v31463_v25  ;;  %v13467_v49 = vand.u32 4294901760, %v13466_v50  ;;  %v13376_v50 = vsel %vm10777_vm4, %v13333_v34, 0  ;;  %v34051_v34 = vand.u32 4294901760, %v31835_v42 }
 0x9cc   :  { %25282 = vmatmul.mubr.f32.gmra.mrb[4].mxu1 %v31474_v0 }
 0x9cd   :  { %25284 = vmatprep.mubr.f32.mxu1 %v31479_v37 }
 0x9d0   :  { %25285 = vmatmul.mubr.f32.gmra.mrb[6].mxu1 %v31504_v16 }
 0x9d1   :  { %25287 = vmatprep.mubr.f32.mxu1 %v31496_v39  ;;  %v33860_v39 = vand.u32 4294901760, %v31768_v47 }
 0x9d3   :  { %v13456_v51 = vsub.f32 %v31768_v47, %v33860_v39 }
 0x9d4   :  { %25288 = vmatmul.mubr.f32.gmra.mrb[8].mxu1 %v31520_v43 }
 0x9d5   :  { %25290 = vmatprep.mubr.f32.mxu1 %v31536_v28  ;;  %v13457_v39 = vand.u32 4294901760, %v13456_v51  ;;  %v34046_v51 = vand.u32 4294901760, %v31786_v30  ;;  %v33891_v28 = vand.u32 4294901760, %v31859_v11 }
 0x9d7   :  { %v13476_v38 = vsub.f32 %v31786_v30, %v34046_v51  ;;  %v13486_v51 = vsub.f32 %v31800_v33, %v34047_v63  ;;  %v34049_v63 = vand.u32 4294901760, %v31816_v32 }
 0x9d8   :  { %25291 = vmatmul.mubr.f32.gmra.mrb[10].mxu1 %v31556_v5  ;;  %v13536_v5 = vsub.f32 %v31835_v42, %v34051_v34 }
 0x9d9   :  { %25293 = vmatprep.mubr.f32.mxu1 %v31564_v3  ;;  %v13477_v48 = vand.u32 4294901760, %v13476_v38  ;;  %v13506_v22 = vsub.f32 %v31816_v32, %v34049_v63  ;;  %v31871_v63 = vand.u32 4294901760, %v13376_v50  ;;  %v13336_v38 = vld [vmem:[#allocation3 + $0x112] sm:$0xff] }
 0x9da   :  { %v13385_v34 = vsel %vm10777_vm4, %v13336_v38, 0 }
 0x9dc   :  { %25294 = vmatmul.mubr.f32.gmra.mrb[12].mxu1 %v31585_v60  ;;  %v13487_v60 = vand.u32 4294901760, %v13486_v51 }
 0x9dd   :  { %25296 = vmatprep.mubr.f32.mxu1 %v31593_v1  ;;  %v13334_v1 = vld [vmem:[#allocation3 + $0xf2] sm:$0xff] }
 0x9de   :  { %v13379_v59 = vsel %vm10777_vm4, %v13334_v1, 0  ;;  %v31901_v1 = vand.u32 4294901760, %v13385_v34 }
 0x9e0   :  { %25297 = vmatmul.mubr.f32.gmra.mrb[14].mxu1 %v31608_v56  ;;  %v13373_v56 = vsel %vm10777_vm4, %v13332_v55, 0  ;;  %v34050_v55 = vand.u32 4294901760, %v31822_v8 }
 0x9e1   :  { %25301 = vmatprep.mubr.f32.mxu1 %v13457_v39  ;;  %v34048_v39 = vand.u32 4294901760, %v31807_v54  ;;  %v31865_v3 = vand.u32 4294901760, %v13373_v56 }
 0x9e3   :  { %v13496_v2 = vsub.f32 %v31807_v54, %v34048_v39  ;;  %v13335_v39 = vld [vmem:[#allocation3 + $0x102] sm:$0xff]  ;;  %v31883_v16 = vsub.f32 %v13373_v56, %v31865_v3 }
 0x9e4   :  { %25302 = vmatmul.mubr.f32.vlgmr.msra.gmra.mrb[0].mxu1 %v13467_v49  ;;  %v13516_v49 = vsub.f32 %v31822_v8, %v34050_v55  ;;  %v13382_v51 = vsel %vm10777_vm4, %v13335_v39, 0  ;;  %v13507_v55 = vand.u32 4294901760, %v13506_v22  ;;  %v31889_v22 = vsub.f32 %v13376_v50, %v31871_v63 }
 0x9e5   :  { %25326 = vmatpush3.msra.mxu1 %v31750_v40  ;;  %25304 = vmatprep.mubr.f32.mxu1 %v13477_v48  ;;  %v13497_v40 = vand.u32 4294901760, %v13496_v2  ;;  %v31869_v48 = vsub.f32 %v13370_v58, %v31849_v52  ;;  %v34052_v58 = vand.u32 4294901760, %v31844_v15  ;;  %v31891_v39 = vand.u32 4294901760, %v13382_v51 }
 0x9e6   :  { %25351 = vmatprep.subr.mxu1 %v31737_v12  ;;  %v13517_v2 = vand.u32 4294901760, %v13516_v49  ;;  %v13537_v49 = vand.u32 4294901760, %v13536_v5  ;;  %v13575_v38 = vand.u32 4294901760, %v31889_v22 }
 0x9e7   :  { %v13526_v43 = vsub.f32 %v31844_v15, %v34052_v58  ;;  %v33892_v58 = vand.u32 4294901760, %v31883_v16  ;;  %v34053_v50 = vand.u32 4294901760, %v31869_v48  ;;  %v31908_v5 = vsub.f32 %v13382_v51, %v31891_v39 }
 0x9e8   :  { %25305 = vmatmul.mubr.f32.gmra.mrb[2].mxu1 %v13487_v60  ;;  %v31885_v60 = vand.u32 4294901760, %v13379_v59 }
 0x9e9   :  { %25307 = vmatprep.mubr.f32.mxu1 %v13497_v40  ;;  %v13546_v40 = vsub.f32 %v31859_v11, %v33891_v28  ;;  %v13527_v56 = vand.u32 4294901760, %v13526_v43  ;;  %v13556_v0 = vsub.f32 %v31869_v48, %v34053_v50  ;;  %v13566_v43 = vsub.f32 %v31883_v16, %v33892_v58 }
 0x9ea   :  { %v31899_v37 = vsub.f32 %v13379_v59, %v31885_v60  ;;  %v13576_v50 = vsub.f32 %v31889_v22, %v13575_v38  ;;  %v13595_v51 = vand.u32 4294901760, %v31908_v5 }
 0x9eb   :  { %v13557_v28 = vand.u32 4294901760, %v13556_v0 }
 0x9ec   :  { %25308 = vmatmul.mubr.f32.gmra.mrb[4].mxu1 %v13507_v55  ;;  %v13547_v55 = vand.u32 4294901760, %v13546_v40  ;;  %v13585_v59 = vand.u32 4294901760, %v31899_v37  ;;  %v13577_v58 = vand.u32 4294901760, %v13576_v50  ;;  %v13596_v0 = vsub.f32 %v31908_v5, %v13595_v51 }
 0x9ed   :  { %25310 = vmatprep.mubr.f32.mxu1 %v13517_v2  ;;  %v31915_v2 = vsub.f32 %v13385_v34, %v31901_v1  ;;  %v34056_v50 = vand.u32 4294901760, %v31786_v30 }
 0x9ee   :  { %v13586_v40 = vsub.f32 %v31899_v37, %v13585_v59 }
 0x9f0   :  { %25311 = vmatmul.mubr.f32.gmra.mrb[6].mxu1 %v13527_v56  ;;  %v13605_v56 = vand.u32 4294901760, %v31915_v2  ;;  %v13587_v34 = vand.u32 4294901760, %v13586_v40  ;;  %v34058_v40 = vand.u32 4294901760, %v31807_v54 }
 0x9f1   :  { %25313 = vmatprep.mubr.f32.mxu1 %v13537_v49  ;;  %v13567_v49 = vand.u32 4294901760, %v13566_v43 }
 0x9f4   :  { %25314 = vmatmul.mubr.f32.gmra.mrb[8].mxu1 %v13547_v55  ;;  %v13606_v55 = vsub.f32 %v31915_v2, %v13605_v56 }
 0x9f5   :  { %25316 = vmatprep.mubr.f32.mxu1 %v13557_v28  ;;  %v13597_v28 = vand.u32 4294901760, %v13596_v0  ;;  %v34059_v0 = vand.u32 4294901760, %v31816_v32 }
 0x9f6   :  { %v13607_v43 = vand.u32 4294901760, %v13606_v55  ;;  %v34091_v55 = vld [vmem:[#allocation35_spill] sm:$0xff] }
 0x9f8   :  { %25317 = vmatmul.mubr.f32.gmra.mrb[10].mxu1 %v13567_v49  ;;  %v34057_v49 = vand.u32 4294901760, %v31800_v33 }
 0x9f9   :  { %25319 = vmatprep.mubr.f32.mxu1 %v13577_v58  ;;  %v34055_v58 = vand.u32 4294901760, %v31780_v18 }
 0x9fc   :  { %25320 = vmatmul.mubr.f32.gmra.mrb[12].mxu1 %v13587_v34  ;;  %v34090_v34 = vld [vmem:[#allocation25_spill] sm:$0xff] }
 0x9fd   :  { %25322 = vmatprep.mubr.f32.mxu1 %v13597_v28  ;;  %v34092_v28 = vld [vmem:[#allocation7_spill] sm:$0xff] }
 0xa00   :  { %25323 = vmatmul.mubr.f32.gmra.mrb[14].mxu1 %v13607_v43  ;;  %v34093_v43 = vld [vmem:[#allocation20_spill] sm:$0xff] }
 0xa01   :  { %25327 = vmatprep.mubr.f32.mxu1 %v31761_v6 }
 0xa04   :  { %25328 = vmatmul.mubr.f32.vlgmr.msra.gmra.mrb[0].mxu1 %v31770_v17 }
 0xa05   :  { %25352 = vmatpush3.msra.mxu1 %v31737_v12  ;;  %25330 = vmatprep.mubr.f32.mxu1 %v31772_v53  ;;  %v34054_v12 = vand.u32 4294901760, %v31768_v47 }
 0xa06   :  { %25377 = vmatprep.subr.mxu1 %v31722_v35 }
 0xa08   :  { %25331 = vmatmul.mubr.f32.gmra.mrb[2].mxu1 %v31782_v29 }
 0xa09   :  { %25333 = vmatprep.mubr.f32.mxu1 %v31788_v10 }
 0xa0c   :  { %25334 = vmatmul.mubr.f32.gmra.mrb[4].mxu1 %v31797_v19 }
 0xa0d   :  { %25336 = vmatprep.mubr.f32.mxu1 %v31802_v4 }
 0xa10   :  { %25337 = vmatmul.mubr.f32.gmra.mrb[6].mxu1 %v31824_v24 }
 0xa11   :  { %25339 = vmatprep.mubr.f32.mxu1 %v31818_v20 }
 0xa14   :  { %25340 = vmatmul.mubr.f32.gmra.mrb[8].mxu1 %v31837_v57 }
 0xa15   :  { %25342 = vmatprep.mubr.f32.mxu1 %v31849_v52 }
 0xa18   :  { %25343 = vmatmul.mubr.f32.gmra.mrb[10].mxu1 %v31865_v3 }
 0xa19   :  { %25345 = vmatprep.mubr.f32.mxu1 %v31871_v63 }
 0xa1c   :  { %25346 = vmatmul.mubr.f32.gmra.mrb[12].mxu1 %v31885_v60 }
 0xa1d   :  { %25348 = vmatprep.mubr.f32.mxu1 %v31891_v39 }
 0xa20   :  { %25349 = vmatmul.mubr.f32.gmra.mrb[14].mxu1 %v31901_v1 }
 0xa21   :  { %25353 = vmatprep.mubr.f32.mxu1 %v31768_v47  ;;  %v34060_v47 = vand.u32 4294901760, %v31822_v8 }
 0xa24   :  { %25354 = vmatmul.mubr.f32.vlgmr.msra.gmra.mrb[0].mxu1 %v31780_v18  ;;  %v34061_v18 = vand.u32 4294901760, %v31844_v15 }
 0xa25   :  { %25378 = vmatpush3.msra.mxu1 %v31722_v35  ;;  %25356 = vmatprep.mubr.f32.mxu1 %v31786_v30  ;;  %v34062_v30 = vand.u32 4294901760, %v31835_v42 }
 0xa26   :  { %25403 = vmatprep.subr.mxu1 %v31742_v46 }
 0xa28   :  { %25357 = vmatmul.mubr.f32.gmra.mrb[2].mxu1 %v31800_v33  ;;  %v34064_v33 = vand.u32 4294901760, %v31869_v48 }
 0xa29   :  { %25359 = vmatprep.mubr.f32.mxu1 %v31807_v54  ;;  %v34065_v54 = vand.u32 4294901760, %v31883_v16 }
 0xa2c   :  { %25360 = vmatmul.mubr.f32.gmra.mrb[4].mxu1 %v31816_v32 }
 0xa2d   :  { %25362 = vmatprep.mubr.f32.mxu1 %v31822_v8  ;;  %v34075_v8 = vld [vmem:[#allocation39_spill] sm:$0xff] }
 0xa30   :  { %25363 = vmatmul.mubr.f32.gmra.mrb[6].mxu1 %v31844_v15  ;;  %v21741_v15 = vld [vmem:[%s33768_s4 + $0x18] sm:$0xff] }
 0xa31   :  { %25365 = vmatprep.mubr.f32.mxu1 %v31835_v42  ;;  %v34076_v42 = vld [vmem:[#allocation12_spill] sm:$0xff] }
 0xa34   :  { %25366 = vmatmul.mubr.f32.gmra.mrb[8].mxu1 %v31859_v11 }
 0xa35   :  { %25368 = vmatprep.mubr.f32.mxu1 %v31869_v48  ;;  %v34078_v48 = vld [vmem:[#allocation43_spill] sm:$0xff] }
 0xa38   :  { %25369 = vmatmul.mubr.f32.gmra.mrb[10].mxu1 %v31883_v16 }
 0xa39   :  { %25371 = vmatprep.mubr.f32.mxu1 %v31889_v22  ;;  %v34082_v22 = vld [vmem:[#allocation26_spill] sm:$0xff] }
 0xa3c   :  { %25372 = vmatmul.mubr.f32.gmra.mrb[12].mxu1 %v31899_v37 }
 0xa3d   :  { %25374 = vmatprep.mubr.f32.mxu1 %v31908_v5  ;;  %v34085_v5 = vld [vmem:[#allocation16_spill] sm:$0xff] }
 0xa40   :  { %25375 = vmatmul.mubr.f32.gmra.mrb[14].mxu1 %v31915_v2  ;;  %v34087_v2 = vld [vmem:[#allocation36_spill] sm:$0xff] }
 0xa41   :  { %25379 = vmatprep.mubr.f32.mxu1 %v34054_v12  ;;  %v34094_v12 = vld [vmem:[#allocation28_spill] sm:$0xff] }
 0xa44   :  { %25380 = vmatmul.mubr.f32.vlgmr.msra.gmra.mrb[0].mxu1 %v34055_v58  ;;  %v34095_v58 = vld [vmem:[#allocation37_spill] sm:$0xff] }
 0xa45   :  { %25404 = vmatpush3.msra.mxu1 %v31742_v46  ;;  %25382 = vmatprep.mubr.f32.mxu1 %v34056_v50  ;;  %v34063_v46 = vand.u32 4294901760, %v31859_v11  ;;  %v32005_v11 = vand.u32 4294901760, %v21741_v15  ;;  %v34096_v50 = vld [vmem:[#allocation4_spill] sm:$0xff] }
 0xa46   :  { %25429 = vmatprep.subr.mxu1 %v31722_v35 }
 0xa47   :  { %v14788_v37 = vsub.f32 %v21741_v15, %v32005_v11  ;;  %v21742_v15 = vld [vmem:[%s33768_s4 + $0x20] sm:$0xff] }
 0xa48   :  { %25383 = vmatmul.mubr.f32.gmra.mrb[2].mxu1 %v34057_v49  ;;  %v34097_v49 = vld [vmem:[#allocation10_spill] sm:$0xff] }
 0xa49   :  { %25385 = vmatprep.mubr.f32.mxu1 %v34058_v40  ;;  %v32022_v16 = vand.u32 4294901760, %v14788_v37  ;;  %v34098_v40 = vld [vmem:[#allocation22_spill] sm:$0xff] }
 0xa4b   :  { %v14790_v32 = vsub.f32 %v14788_v37, %v32022_v16 }
 0xa4c   :  { %25386 = vmatmul.mubr.f32.gmra.mrb[4].mxu1 %v34059_v0  ;;  %v34099_v0 = vld [vmem:[#allocation33_spill] sm:$0xff] }
 0xa4d   :  { %25388 = vmatprep.mubr.f32.mxu1 %v34060_v47  ;;  %v34100_v47 = vld [vmem:[#allocation42_spill] sm:$0xff] }
 0xa50   :  { %25389 = vmatmul.mubr.f32.gmra.mrb[6].mxu1 %v34061_v18  ;;  %v34101_v18 = vld [vmem:[#allocation15_spill] sm:$0xff] }
 0xa51   :  { %25391 = vmatprep.mubr.f32.mxu1 %v34062_v30  ;;  %v34102_v30 = vld [vmem:[#allocation21_spill] sm:$0xff] }
 0xa54   :  { %25392 = vmatmul.mubr.f32.gmra.mrb[8].mxu1 %v34063_v46  ;;  %v34103_v46 = vld [vmem:[#allocation32_spill] sm:$0xff] }
 0xa55   :  { %25394 = vmatprep.mubr.f32.mxu1 %v34064_v33  ;;  %v34104_v33 = vld [vmem:[#allocation41_spill] sm:$0xff] }
 0xa58   :  { %25395 = vmatmul.mubr.f32.gmra.mrb[10].mxu1 %v34065_v54  ;;  %v34105_v54 = vld [vmem:[#allocation44_spill] sm:$0xff] }
 0xa59   :  { %25397 = vmatprep.mubr.f32.mxu1 %v13575_v38  ;;  %v34084_v38 = vld [vmem:[#allocation13_spill] sm:$0xff] }
 0xa5c   :  { %25398 = vmatmul.mubr.f32.gmra.mrb[12].mxu1 %v13585_v59  ;;  %v34086_v59 = vld [vmem:[#allocation27_spill] sm:$0xff] }
 0xa5d   :  { %25400 = vmatprep.mubr.f32.mxu1 %v13595_v51  ;;  %v34088_v51 = vld [vmem:[#allocation8_spill] sm:$0xff] }
 0xa60   :  { %25401 = vmatmul.mubr.f32.gmra.mrb[14].mxu1 %v13605_v56  ;;  %v34089_v56 = vld [vmem:[#allocation18_spill] sm:$0xff] }
 0xa61   :  { %25405 = vmatprep.mubr.f32.mxu1 %v31761_v6 }
 0xa64   :  { %25406 = vmatmul.mubr.f32.vlgmr.msra.gmra.mrb[0].mxu1 %v31770_v17 }
 0xa65   :  { %25430 = vmatpush3.msra.mxu1 %v31722_v35  ;;  %25408 = vmatprep.mubr.f32.mxu1 %v31772_v53  ;;  %v14791_v35 = vand.u32 4294901760, %v14790_v32 }
 0xa66   :  { %25455 = vmatprep.subr.mxu1 %v32005_v11 }
 0xa68   :  { %25409 = vmatmul.mubr.f32.gmra.mrb[2].mxu1 %v31782_v29 }
 0xa69   :  { %25411 = vmatprep.mubr.f32.mxu1 %v31788_v10 }
 0xa6c   :  { %25412 = vmatmul.mubr.f32.gmra.mrb[4].mxu1 %v31797_v19 }
 0xa6d   :  { %25414 = vmatprep.mubr.f32.mxu1 %v31802_v4 }
 0xa70   :  { %25415 = vmatmul.mubr.f32.gmra.mrb[6].mxu1 %v31824_v24 }
 0xa71   :  { %25417 = vmatprep.mubr.f32.mxu1 %v31818_v20 }
 0xa74   :  { %25418 = vmatmul.mubr.f32.gmra.mrb[8].mxu1 %v31837_v57 }
 0xa75   :  { %25420 = vmatprep.mubr.f32.mxu1 %v31849_v52 }
 0xa78   :  { %25421 = vmatmul.mubr.f32.gmra.mrb[10].mxu1 %v31865_v3 }
 0xa79   :  { %25423 = vmatprep.mubr.f32.mxu1 %v31871_v63 }
 0xa7c   :  { %25424 = vmatmul.mubr.f32.gmra.mrb[12].mxu1 %v31885_v60 }
 0xa7d   :  { %25426 = vmatprep.mubr.f32.mxu1 %v31891_v39 }
 0xa80   :  { %25427 = vmatmul.mubr.f32.gmra.mrb[14].mxu1 %v31901_v1 }
 0xa81   :  { %25431 = vmatprep.mubr.f32.mxu1 %v31761_v6 }
 0xa84   :  { %25432 = vmatmul.mubr.f32.vlgmr.msra.gmra.mrb[0].mxu1 %v31770_v17 }
 0xa85   :  { %25456 = vmatpush3.msra.mxu1 %v32005_v11  ;;  %25434 = vmatprep.mubr.f32.mxu1 %v31772_v53  ;;  %v14501_v53 = vld [vmem:[#allocation3 + $0x80] sm:$0xff] }
 0xa86   :  { %25481 = vmatprep.subr.mxu1 %v14791_v35  ;;  %v14534_v6 = vsel %vm10777_vm4, %v14501_v53, 0  ;;  %v15667_v53 = vld [vmem:[#allocation3 + $0x11] sm:$0xff] }
 0xa88   :  { %25435 = vmatmul.mubr.f32.gmra.mrb[2].mxu1 %v31782_v29  ;;  %v34066_v29 = vld [vmem:[#allocation29_spill] sm:$0xff] }
 0xa89   :  { %25437 = vmatprep.mubr.f32.mxu1 %v31788_v10 }
 0xa8c   :  { %25438 = vmatmul.mubr.f32.gmra.mrb[4].mxu1 %v31797_v19  ;;  %v34073_v19 = vld [vmem:[#allocation24_spill] sm:$0xff] }
 0xa8d   :  { %25440 = vmatprep.mubr.f32.mxu1 %v31802_v4  ;;  %v32045_v4 = vand.u32 4294901760, %v14534_v6 }
 0xa90   :  { %25441 = vmatmul.mubr.f32.gmra.mrb[6].mxu1 %v31824_v24 }
 0xa91   :  { %25443 = vmatprep.mubr.f32.mxu1 %v31818_v20  ;;  %v34074_v20 = vld [vmem:[#allocation30_spill] sm:$0xff] }
 0xa94   :  { %25444 = vmatmul.mubr.f32.gmra.mrb[8].mxu1 %v31837_v57  ;;  %v32050_v57 = vsub.f32 %v14534_v6, %v32045_v4  ;;  %v15686_v6 = vsel %vm10777_vm4, %v15667_v53, 0 }
 0xa95   :  { %25446 = vmatprep.mubr.f32.mxu1 %v31849_v52  ;;  %v34077_v52 = vld [vmem:[#allocation19_spill] sm:$0xff] }
 0xa96   :  { %v14698_v24 = vand.u32 4294901760, %v32050_v57 }
 0xa98   :  { %25447 = vmatmul.mubr.f32.gmra.mrb[10].mxu1 %v31865_v3  ;;  %v14509_v3 = vld [vmem:[#allocation3 + $0x120] sm:$0xff] }
 0xa99   :  { %25449 = vmatprep.mubr.f32.mxu1 %v31871_v63  ;;  %v14558_v17 = vsel %vm10777_vm4, %v14509_v3, 0  ;;  %v34079_v63 = vld [vmem:[#allocation5_spill] sm:$0xff]  ;;  %v15671_v3 = vld [vmem:[#allocation3 + $0x51] sm:$0xff] }
 0xa9c   :  { %25450 = vmatmul.mubr.f32.gmra.mrb[12].mxu1 %v31885_v60  ;;  %v34080_v60 = vld [vmem:[#allocation11_spill] sm:$0xff] }
 0xa9d   :  { %25452 = vmatprep.mubr.f32.mxu1 %v31891_v39  ;;  %v34083_v39 = vld [vmem:[#allocation31_spill] sm:$0xff] }
 0xaa0   :  { %25453 = vmatmul.mubr.f32.gmra.mrb[14].mxu1 %v31901_v1  ;;  %v34081_v1 = vld [vmem:[#allocation23_spill] sm:$0xff] }
 0xaa1   :  { %25457 = vmatprep.mubr.f32.mxu1 %v31522_v41  ;;  %v14699_v41 = vsub.f32 %v32050_v57, %v14698_v24 }
 0xaa4   :  { %25458 = vmatmul.mubr.f32.vlgmr.msra.gmra.mrb[0].mxu1 %v31532_v21  ;;  %v14700_v21 = vand.u32 4294901760, %v14699_v41 }
 0xaa5   :  { %25482 = vmatpush3.msra.mxu1 %v14791_v35  ;;  %25460 = vmatprep.mubr.f32.mxu1 %v31549_v9  ;;  %v32063_v9 = vand.u32 4294901760, %v14558_v17 }
 0xaa6   :  { %25507 = vmatprep.subr.mxu1 %v14788_v37 }
 0xaa8   :  { %25461 = vmatmul.mubr.f32.gmra.mrb[2].mxu1 %v31559_v26  ;;  %v32067_v26 = vsub.f32 %v14558_v17, %v32063_v9 }
 0xaa9   :  { %25463 = vmatprep.mubr.f32.mxu1 %v31570_v31  ;;  %v34067_v31 = vld [vmem:[#allocation38_spill] sm:$0xff] }
 0xaaa   :  { %v14778_v10 = vand.u32 4294901760, %v32067_v26 }
 0xaac   :  { %25464 = vmatmul.mubr.f32.gmra.mrb[4].mxu1 %v31578_v36  ;;  %v14779_v36 = vsub.f32 %v32067_v26, %v14778_v10 }
 0xaad   :  { %25466 = vmatprep.mubr.f32.mxu1 %v31600_v44 }
 0xaae   :  { %v14780_v44 = vand.u32 4294901760, %v14779_v36 }
 0xab0   :  { %25467 = vmatmul.mubr.f32.gmra.mrb[6].mxu1 %v14700_v21 }
 0xab1   :  { %25469 = vmatprep.mubr.f32.mxu1 %v34066_v29 }
 0xab4   :  { %25470 = vmatmul.mubr.f32.gmra.mrb[8].mxu1 %v34067_v31  ;;  %v15673_v31 = vld [vmem:[#allocation3 + $0x71] sm:$0xff] }
 0xab5   :  { %25472 = vmatprep.mubr.f32.mxu1 %v31638_v62  ;;  %v34069_v62 = vld [vmem:[#allocation17_spill] sm:$0xff] }
 0xab8   :  { %25473 = vmatmul.mubr.f32.gmra.mrb[10].mxu1 %v31645_v7  ;;  %v34071_v7 = vld [vmem:[#allocation6_spill] sm:$0xff] }
 0xab9   :  { %25475 = vmatprep.mubr.f32.mxu1 %v31651_v45  ;;  %v34068_v45 = vld [vmem:[#allocation9_spill] sm:$0xff] }
 0xabc   :  { %25476 = vmatmul.mubr.f32.gmra.mrb[12].mxu1 %v31655_v14  ;;  %v34070_v14 = vld [vmem:[#allocation34_spill] sm:$0xff] }
 0xabd   :  { %25478 = vmatprep.mubr.f32.mxu1 %v31659_v23  ;;  %v34072_v23 = vld [vmem:[#allocation14_spill] sm:$0xff] }
 0xac0   :  { %25479 = vmatmul.mubr.f32.gmra.mrb[14].mxu1 %v14780_v44 }
 0xac1   :  { %25483 = vmatprep.mubr.f32.mxu1 %v31445_v61 }
 0xac4   :  { %25484 = vmatmul.mubr.f32.vlgmr.msra.gmra.mrb[0].mxu1 %v31447_v27 }
 0xac5   :  { %25508 = vmatpush3.msra.mxu1 %v14788_v37  ;;  %25486 = vmatprep.mubr.f32.mxu1 %v31457_v13  ;;  %v32134_v37 = vand.u32 4294901760, %v21742_v15 }
 0xac6   :  { %25533 = vmatprep.subr.mxu1 %v32005_v11 }
 0xac8   :  { %25487 = vmatmul.mubr.f32.gmra.mrb[2].mxu1 %v31463_v25 }
 0xac9   :  { %25489 = vmatprep.mubr.f32.mxu1 %v34068_v45 }
 0xacc   :  { %25490 = vmatmul.mubr.f32.gmra.mrb[4].mxu1 %v34069_v62 }
 0xacd   :  { %25492 = vmatprep.mubr.f32.mxu1 %v34070_v14 }
 0xad0   :  { %25493 = vmatmul.mubr.f32.gmra.mrb[6].mxu1 %v32045_v4 }
 0xad1   :  { %25495 = vmatprep.mubr.f32.mxu1 %v34071_v7 }
 0xad4   :  { %25496 = vmatmul.mubr.f32.gmra.mrb[8].mxu1 %v34072_v23 }
 0xad5   :  { %25498 = vmatprep.mubr.f32.mxu1 %v34073_v19 }
 0xad8   :  { %25499 = vmatmul.mubr.f32.gmra.mrb[10].mxu1 %v34074_v20 }
 0xad9   :  { %25501 = vmatprep.mubr.f32.mxu1 %v34075_v8 }
 0xadc   :  { %25502 = vmatmul.mubr.f32.gmra.mrb[12].mxu1 %v34076_v42 }
 0xadd   :  { %25504 = vmatprep.mubr.f32.mxu1 %v34077_v52 }
 0xae0   :  { %25505 = vmatmul.mubr.f32.gmra.mrb[14].mxu1 %v32063_v9 }
 0xae1   :  { %25509 = vmatprep.mubr.f32.mxu1 %v34078_v48 }
 0xae4   :  { %25510 = vmatmul.mubr.f32.vlgmr.msra.gmra.mrb[0].mxu1 %v34079_v63 }
 0xae5   :  { %25534 = vmatpush3.msra.mxu1 %v32005_v11  ;;  %25512 = vmatprep.mubr.f32.mxu1 %v34080_v60 }
 0xae6   :  { %25559 = vmatprep.subr.mxu1 %v32022_v16 }
 0xae8   :  { %25513 = vmatmul.mubr.f32.gmra.mrb[2].mxu1 %v34081_v1 }
 0xae9   :  { %25515 = vmatprep.mubr.f32.mxu1 %v34082_v22 }
 0xaec   :  { %25516 = vmatmul.mubr.f32.gmra.mrb[4].mxu1 %v34083_v39 }
 0xaed   :  { %25518 = vmatprep.mubr.f32.mxu1 %v34084_v38 }
 0xaf0   :  { %25519 = vmatmul.mubr.f32.gmra.mrb[6].mxu1 %v32050_v57  ;;  %v15669_v57 = vld [vmem:[#allocation3 + $0x31] sm:$0xff] }
 0xaf1   :  { %25521 = vmatprep.mubr.f32.mxu1 %v34085_v5  ;;  %v15676_v5 = vld [vmem:[#allocation3 + $0xc1] sm:$0xff] }
 0xaf4   :  { %25522 = vmatmul.mubr.f32.gmra.mrb[8].mxu1 %v34086_v59 }
 0xaf5   :  { %25524 = vmatprep.mubr.f32.mxu1 %v34087_v2 }
 0xaf8   :  { %25525 = vmatmul.mubr.f32.gmra.mrb[10].mxu1 %v34088_v51 }
 0xaf9   :  { %25527 = vmatprep.mubr.f32.mxu1 %v34089_v56  ;;  %v15677_v56 = vld [vmem:[#allocation3 + $0xd1] sm:$0xff] }
 0xafc   :  { %25528 = vmatmul.mubr.f32.gmra.mrb[12].mxu1 %v34090_v34 }
 0xafd   :  { %25530 = vmatprep.mubr.f32.mxu1 %v34091_v55 }
 0xb00   :  { %25531 = vmatmul.mubr.f32.gmra.mrb[14].mxu1 %v32067_v26  ;;  %v15672_v26 = vld [vmem:[#allocation3 + $0x61] sm:$0xff] }
 0xb01   :  { %25535 = vmatprep.mubr.f32.mxu1 %v34092_v28  ;;  %v15701_v44 = vsel %vm10777_vm4, %v15672_v26, 0 }
 0xb02   :  { %v32205_v48 = vand.u32 4294901760, %v15701_v44 }
 0xb04   :  { %25536 = vmatmul.mubr.f32.vlgmr.msra.gmra.mrb[0].mxu1 %v34093_v43  ;;  %v32225_v59 = vsub.f32 %v15701_v44, %v32205_v48 }
 0xb05   :  { %25560 = vmatpush3.msra.mxu1 %v32022_v16  ;;  %25538 = vmatprep.mubr.f32.mxu1 %v34094_v12  ;;  %v15713_v12 = vsel %vm10777_vm4, %v15676_v5, 0 }
 0xb06   :  { %25585 = vmatprep.subr.mxu1 %v32005_v11 }
 0xb08   :  { %25539 = vmatmul.mubr.f32.gmra.mrb[2].mxu1 %v34095_v58  ;;  %v15716_v58 = vsel %vm10777_vm4, %v15677_v56, 0 }
 0xb09   :  { %25541 = vmatprep.mubr.f32.mxu1 %v34096_v50  ;;  %v15678_v50 = vld [vmem:[#allocation3 + $0xe1] sm:$0xff] }
 0xb0c   :  { %25542 = vmatmul.mubr.f32.gmra.mrb[4].mxu1 %v34097_v49  ;;  %v15851_v49 = vand.u32 4294901760, %v32225_v59 }
 0xb0d   :  { %25544 = vmatprep.mubr.f32.mxu1 %v34098_v40 }
 0xb10   :  { %25545 = vmatmul.mubr.f32.gmra.mrb[6].mxu1 %v14698_v24 }
 0xb11   :  { %25547 = vmatprep.mubr.f32.mxu1 %v34099_v0 }
 0xb14   :  { %25548 = vmatmul.mubr.f32.gmra.mrb[8].mxu1 %v34100_v47  ;;  %v15679_v47 = vld [vmem:[#allocation3 + $0xf1] sm:$0xff] }
 0xb15   :  { %25550 = vmatprep.mubr.f32.mxu1 %v34101_v18  ;;  %v15722_v53 = vsel %vm10777_vm4, %v15679_v47, 0 }
 0xb18   :  { %25551 = vmatmul.mubr.f32.gmra.mrb[10].mxu1 %v34102_v30 }
 0xb19   :  { %25553 = vmatprep.mubr.f32.mxu1 %v34103_v46 }
 0xb1c   :  { %25554 = vmatmul.mubr.f32.gmra.mrb[12].mxu1 %v34104_v33 }
 0xb1d   :  { %25556 = vmatprep.mubr.f32.mxu1 %v34105_v54 }
 0xb20   :  { %25557 = vmatmul.mubr.f32.gmra.mrb[14].mxu1 %v14778_v10 }
 0xb21   :  { %25561 = vmatprep.mubr.f32.mxu1 %v31445_v61 }
 0xb24   :  { %25562 = vmatmul.mubr.f32.vlgmr.msra.gmra.mrb[0].mxu1 %v31447_v27 }
 0xb25   :  { %25586 = vmatpush3.msra.mxu1 %v32005_v11  ;;  %25564 = vmatprep.mubr.f32.mxu1 %v31457_v13  ;;  %v32149_v11 = vsub.f32 %v21742_v15, %v32134_v37  ;;  %v32261_v15 = vand.u32 4294901760, %v15716_v58 }
 0xb26   :  { %25611 = vmatprep.subr.mxu1 %v32134_v37 }
 0xb27   :  { %v32154_v16 = vand.u32 4294901760, %v32149_v11 }
 0xb28   :  { %25565 = vmatmul.mubr.f32.gmra.mrb[2].mxu1 %v31463_v25 }
 0xb29   :  { %25567 = vmatprep.mubr.f32.mxu1 %v34068_v45  ;;  %v15963_v32 = vsub.f32 %v32149_v11, %v32154_v16 }
 0xb2b   :  { %v32162_v35 = vand.u32 4294901760, %v15963_v32  ;;  %v15719_v32 = vsel %vm10777_vm4, %v15678_v50, 0 }
 0xb2c   :  { %25568 = vmatmul.mubr.f32.gmra.mrb[4].mxu1 %v34069_v62  ;;  %v32277_v26 = vand.u32 4294901760, %v15719_v32 }
 0xb2d   :  { %25570 = vmatprep.mubr.f32.mxu1 %v34070_v14 }
 0xb2e   :  { %v32295_v56 = vsub.f32 %v15719_v32, %v32277_v26 }
 0xb30   :  { %25571 = vmatmul.mubr.f32.gmra.mrb[6].mxu1 %v32045_v4 }
 0xb31   :  { %25573 = vmatprep.mubr.f32.mxu1 %v34071_v7 }
 0xb34   :  { %25574 = vmatmul.mubr.f32.gmra.mrb[8].mxu1 %v34072_v23 }
 0xb35   :  { %25576 = vmatprep.mubr.f32.mxu1 %v34073_v19 }
 0xb38   :  { %25577 = vmatmul.mubr.f32.gmra.mrb[10].mxu1 %v34074_v20 }
 0xb39   :  { %25579 = vmatprep.mubr.f32.mxu1 %v34075_v8 }
 0xb3c   :  { %25580 = vmatmul.mubr.f32.gmra.mrb[12].mxu1 %v34076_v42 }
 0xb3d   :  { %25582 = vmatprep.mubr.f32.mxu1 %v34077_v52 }
 0xb40   :  { %25583 = vmatmul.mubr.f32.gmra.mrb[14].mxu1 %v32063_v9 }
 0xb41   :  { %25587 = vmatprep.mubr.f32.mxu1 %v31445_v61  ;;  %v15668_v61 = vld [vmem:[#allocation3 + $0x21] sm:$0xff] }
 0xb42   :  { %v15689_v24 = vsel %vm10777_vm4, %v15668_v61, 0  ;;  %v15852_v61 = vsub.f32 %v32225_v59, %v15851_v49 }
 0xb43   :  { %v32179_v41 = vand.u32 4294901760, %v15689_v24 }
 0xb44   :  { %25588 = vmatmul.mubr.f32.vlgmr.msra.gmra.mrb[0].mxu1 %v31447_v27  ;;  %v32173_v27 = vand.u32 4294901760, %v15686_v6 }
 0xb45   :  { %25612 = vmatpush3.msra.mxu1 %v32134_v37  ;;  %25590 = vmatprep.mubr.f32.mxu1 %v31457_v13  ;;  %v15692_v13 = vsel %vm10777_vm4, %v15669_v57, 0  ;;  %v32191_v10 = vsub.f32 %v15689_v24, %v32179_v41 }
 0xb46   :  { %25637 = vmatprep.subr.mxu1 %v32162_v35  ;;  %v32182_v17 = vsub.f32 %v15686_v6, %v32173_v27  ;;  %v32184_v21 = vand.u32 4294901760, %v15692_v13  ;;  %v15680_v6 = vld [vmem:[#allocation3 + $0x101] sm:$0xff] }
 0xb47   :  { %v15811_v60 = vand.u32 4294901760, %v32191_v10  ;;  %v15725_v44 = vsel %vm10777_vm4, %v15680_v6, 0 }
 0xb48   :  { %25591 = vmatmul.mubr.f32.gmra.mrb[2].mxu1 %v31463_v25  ;;  %v15670_v25 = vld [vmem:[#allocation3 + $0x41] sm:$0xff] }
 0xb49   :  { %25593 = vmatprep.mubr.f32.mxu1 %v34068_v45  ;;  %v15695_v29 = vsel %vm10777_vm4, %v15670_v25, 0  ;;  %v15704_v45 = vsel %vm10777_vm4, %v15673_v31, 0  ;;  %v15812_v34 = vsub.f32 %v32191_v10, %v15811_v60  ;;  %v32281_v31 = vsub.f32 %v15716_v58, %v32261_v15 }
 0xb4a   :  { %v32193_v36 = vand.u32 4294901760, %v15695_v29  ;;  %v32207_v63 = vand.u32 4294901760, %v15704_v45 }
 0xb4b   :  { %v15813_v18 = vand.u32 4294901760, %v15812_v34  ;;  %v32297_v34 = vand.u32 4294901760, %v15725_v44 }
 0xb4c   :  { %25594 = vmatmul.mubr.f32.gmra.mrb[4].mxu1 %v34069_v62  ;;  %v15801_v62 = vand.u32 4294901760, %v32182_v17  ;;  %v32211_v1 = vsub.f32 %v15695_v29, %v32193_v36  ;;  %v32228_v2 = vsub.f32 %v15704_v45, %v32207_v63 }
 0xb4d   :  { %25596 = vmatprep.mubr.f32.mxu1 %v34070_v14  ;;  %v32199_v14 = vsub.f32 %v15692_v13, %v32184_v21  ;;  %v15681_v13 = vld [vmem:[#allocation3 + $0x111] sm:$0xff] }
 0xb4e   :  { %v15802_v39 = vsub.f32 %v32182_v17, %v15801_v62  ;;  %v15831_v55 = vand.u32 4294901760, %v32211_v1  ;;  %v15861_v40 = vand.u32 4294901760, %v32228_v2  ;;  %v15728_v45 = vsel %vm10777_vm4, %v15681_v13, 0 }
 0xb50   :  { %25597 = vmatmul.mubr.f32.gmra.mrb[6].mxu1 %v32045_v4  ;;  %v15698_v4 = vsel %vm10777_vm4, %v15671_v3, 0  ;;  %v15832_v30 = vsub.f32 %v32211_v1, %v15831_v55  ;;  %v15862_v57 = vsub.f32 %v32228_v2, %v15861_v40 }
 0xb51   :  { %25599 = vmatprep.mubr.f32.mxu1 %v34071_v7  ;;  %v32201_v7 = vand.u32 4294901760, %v15698_v4 }
 0xb52   :  { %v15833_v25 = vand.u32 4294901760, %v15832_v30  ;;  %v32311_v30 = vsub.f32 %v15725_v44, %v32297_v34 }
 0xb53   :  { %v32219_v38 = vsub.f32 %v15698_v4, %v32201_v7  ;;  %v32283_v4 = vand.u32 4294901760, %v15722_v53 }
 0xb54   :  { %25600 = vmatmul.mubr.f32.gmra.mrb[8].mxu1 %v34072_v23  ;;  %v15674_v23 = vld [vmem:[#allocation3 + $0x81] sm:$0xff]  ;;  %v15931_v13 = vand.u32 4294901760, %v32311_v30 }
 0xb55   :  { %25602 = vmatprep.mubr.f32.mxu1 %v34073_v19  ;;  %v15675_v19 = vld [vmem:[#allocation3 + $0xb1] sm:$0xff]  ;;  %v15707_v22 = vsel %vm10777_vm4, %v15674_v23, 0  ;;  %v15841_v43 = vand.u32 4294901760, %v32219_v38  ;;  %v15682_v23 = vld [vmem:[#allocation3 + $0x121] sm:$0xff] }
 0xb56   :  { %v32230_v51 = vand.u32 4294901760, %v15707_v22  ;;  %v15731_v58 = vsel %vm10777_vm4, %v15682_v23, 0 }
 0xb57   :  { %v15842_v54 = vsub.f32 %v32219_v38, %v15841_v43 }
 0xb58   :  { %25603 = vmatmul.mubr.f32.gmra.mrb[10].mxu1 %v34074_v20  ;;  %v15821_v20 = vand.u32 4294901760, %v32199_v14  ;;  %v32248_v0 = vsub.f32 %v15707_v22, %v32230_v51  ;;  %v15863_v22 = vand.u32 4294901760, %v15862_v57 }
 0xb59   :  { %25605 = vmatprep.mubr.f32.mxu1 %v34075_v8  ;;  %v15710_v8 = vsel %vm10777_vm4, %v15675_v19, 0  ;;  %v15853_v19 = vand.u32 4294901760, %v15852_v61 }
 0xb5a   :  { %v32236_v28 = vand.u32 4294901760, %v15710_v8  ;;  %v15871_v24 = vand.u32 4294901760, %v32248_v0 }
 0xb5c   :  { %25606 = vmatmul.mubr.f32.gmra.mrb[12].mxu1 %v34076_v42  ;;  %v15803_v42 = vand.u32 4294901760, %v15802_v39  ;;  %v32254_v46 = vsub.f32 %v15710_v8, %v32236_v28  ;;  %v15872_v39 = vsub.f32 %v32248_v0, %v15871_v24 }
 0xb5d   :  { %25608 = vmatprep.mubr.f32.mxu1 %v34077_v52  ;;  %v15822_v52 = vsub.f32 %v32199_v14, %v15821_v20 }
 0xb5e   :  { %v15881_v3 = vand.u32 4294901760, %v32254_v46  ;;  %v15873_v50 = vand.u32 4294901760, %v15872_v39 }
 0xb5f   :  { %v15823_v33 = vand.u32 4294901760, %v15822_v52  ;;  %v32301_v52 = vsub.f32 %v15722_v53, %v32283_v4 }
 0xb60   :  { %25609 = vmatmul.mubr.f32.gmra.mrb[14].mxu1 %v32063_v9  ;;  %v32256_v9 = vand.u32 4294901760, %v15713_v12  ;;  %v15882_v8 = vsub.f32 %v32254_v46, %v15881_v3 }
 0xb61   :  { %25613 = vmatprep.mubr.f32.mxu1 %v15803_v42  ;;  %v15901_v42 = vand.u32 4294901760, %v32281_v31  ;;  %v15921_v53 = vand.u32 4294901760, %v32301_v52 }
 0xb62   :  { %v32275_v29 = vsub.f32 %v15713_v12, %v32256_v9  ;;  %v32303_v12 = vand.u32 4294901760, %v15728_v45 }
 0xb63   :  { %v15902_v32 = vsub.f32 %v32281_v31, %v15901_v42  ;;  %v15922_v44 = vsub.f32 %v32301_v52, %v15921_v53 }
 0xb64   :  { %25614 = vmatmul.mubr.f32.vlgmr.msra.gmra.mrb[0].mxu1 %v15813_v18  ;;  %v15891_v5 = vand.u32 4294901760, %v32275_v29  ;;  %v15911_v18 = vand.u32 4294901760, %v32295_v56  ;;  %v32320_v6 = vsub.f32 %v15728_v45, %v32303_v12 }
 0xb65   :  { %25638 = vmatpush3.msra.mxu1 %v32162_v35  ;;  %25616 = vmatprep.mubr.f32.mxu1 %v15823_v33  ;;  %v15843_v35 = vand.u32 4294901760, %v15842_v54  ;;  %v32313_v33 = vand.u32 4294901760, %v15731_v58  ;;  %v15883_v54 = vand.u32 4294901760, %v15882_v8  ;;  %v15923_v39 = vand.u32 4294901760, %v15922_v44 }
 0xb66   :  { %25663 = vmatprep.subr.mxu1 %v32149_v11  ;;  %v15892_v47 = vsub.f32 %v32275_v29, %v15891_v5  ;;  %v15912_v57 = vsub.f32 %v32295_v56, %v15911_v18  ;;  %v15941_v45 = vand.u32 4294901760, %v32320_v6 }
 0xb68   :  { %25617 = vmatmul.mubr.f32.gmra.mrb[2].mxu1 %v15833_v25  ;;  %v15893_v61 = vand.u32 4294901760, %v15892_v47  ;;  %v32327_v25 = vsub.f32 %v15731_v58, %v32313_v33  ;;  %v15913_v23 = vand.u32 4294901760, %v15912_v57  ;;  %v15942_v8 = vsub.f32 %v32320_v6, %v15941_v45 }
 0xb69   :  { %25619 = vmatprep.mubr.f32.mxu1 %v15843_v35  ;;  %v15903_v35 = vand.u32 4294901760, %v15902_v32 }
 0xb6a   :  { %v15943_v47 = vand.u32 4294901760, %v15942_v8 }
 0xb6c   :  { %25620 = vmatmul.mubr.f32.gmra.mrb[4].mxu1 %v15853_v19  ;;  %v15932_v19 = vsub.f32 %v32311_v30, %v15931_v13 }
 0xb6d   :  { %25622 = vmatprep.mubr.f32.mxu1 %v15863_v22  ;;  %v15951_v22 = vand.u32 4294901760, %v32327_v25 }
 0xb6e   :  { %v15933_v58 = vand.u32 4294901760, %v15932_v19 }
 0xb70   :  { %25623 = vmatmul.mubr.f32.gmra.mrb[6].mxu1 %v15873_v50  ;;  %v15952_v50 = vsub.f32 %v32327_v25, %v15951_v22 }
 0xb71   :  { %25625 = vmatprep.mubr.f32.mxu1 %v15883_v54 }
 0xb72   :  { %v15953_v54 = vand.u32 4294901760, %v15952_v50 }
 0xb74   :  { %25626 = vmatmul.mubr.f32.gmra.mrb[8].mxu1 %v15893_v61 }
 0xb75   :  { %25628 = vmatprep.mubr.f32.mxu1 %v15903_v35 }
 0xb78   :  { %25629 = vmatmul.mubr.f32.gmra.mrb[10].mxu1 %v15913_v23 }
 0xb79   :  { %25631 = vmatprep.mubr.f32.mxu1 %v15923_v39  ;;  %v16852_v39 = vld [vmem:[#allocation3 + $0xf2] sm:$0xff] }
 0xb7c   :  { %25632 = vmatmul.mubr.f32.gmra.mrb[12].mxu1 %v15933_v58 }
 0xb7d   :  { %25634 = vmatprep.mubr.f32.mxu1 %v15943_v47 }
 0xb80   :  { %25635 = vmatmul.mubr.f32.gmra.mrb[14].mxu1 %v15953_v54 }
 0xb81   :  { %25639 = vmatprep.mubr.f32.mxu1 %v32173_v27 }
 0xb84   :  { %25640 = vmatmul.mubr.f32.vlgmr.msra.gmra.mrb[0].mxu1 %v32179_v41 }
 0xb85   :  { %25664 = vmatpush3.msra.mxu1 %v32149_v11  ;;  %25642 = vmatprep.mubr.f32.mxu1 %v32184_v21  ;;  %v21743_v11 = vld [vmem:[%s33768_s4 + $0x28] sm:$0xff] }
 0xb86   :  { %25689 = vmatprep.subr.mxu1 %v32134_v37 }
 0xb88   :  { %25643 = vmatmul.mubr.f32.gmra.mrb[2].mxu1 %v32193_v36 }
 0xb89   :  { %25645 = vmatprep.mubr.f32.mxu1 %v32201_v7 }
 0xb8c   :  { %25646 = vmatmul.mubr.f32.gmra.mrb[4].mxu1 %v32205_v48 }
 0xb8d   :  { %25648 = vmatprep.mubr.f32.mxu1 %v32207_v63 }
 0xb90   :  { %25649 = vmatmul.mubr.f32.gmra.mrb[6].mxu1 %v32230_v51 }
 0xb91   :  { %25651 = vmatprep.mubr.f32.mxu1 %v32236_v28 }
 0xb94   :  { %25652 = vmatmul.mubr.f32.gmra.mrb[8].mxu1 %v32256_v9 }
 0xb95   :  { %25654 = vmatprep.mubr.f32.mxu1 %v32261_v15 }
 0xb98   :  { %25655 = vmatmul.mubr.f32.gmra.mrb[10].mxu1 %v32277_v26 }
 0xb99   :  { %25657 = vmatprep.mubr.f32.mxu1 %v32283_v4 }
 0xb9c   :  { %25658 = vmatmul.mubr.f32.gmra.mrb[12].mxu1 %v32297_v34 }
 0xb9d   :  { %25660 = vmatprep.mubr.f32.mxu1 %v32303_v12 }
 0xba0   :  { %25661 = vmatmul.mubr.f32.gmra.mrb[14].mxu1 %v32313_v33 }
 0xba1   :  { %25665 = vmatprep.mubr.f32.mxu1 %v32182_v17 }
 0xba4   :  { %25666 = vmatmul.mubr.f32.vlgmr.msra.gmra.mrb[0].mxu1 %v32191_v10 }
 0xba5   :  { %25690 = vmatpush3.msra.mxu1 %v32134_v37  ;;  %25668 = vmatprep.mubr.f32.mxu1 %v32199_v14  ;;  %v16840_v14 = vld [vmem:[#allocation3 + $0x12] sm:$0xff] }
 0xba6   :  { %25715 = vmatprep.subr.mxu1 %v32154_v16 }
 0xba8   :  { %25669 = vmatmul.mubr.f32.gmra.mrb[2].mxu1 %v32211_v1  ;;  %v16841_v1 = vld [vmem:[#allocation3 + $0x22] sm:$0xff] }
 0xba9   :  { %25671 = vmatprep.mubr.f32.mxu1 %v32219_v38  ;;  %v16844_v38 = vld [vmem:[#allocation3 + $0x52] sm:$0xff] }
 0xbac   :  { %25672 = vmatmul.mubr.f32.gmra.mrb[4].mxu1 %v32225_v59 }
 0xbad   :  { %25674 = vmatprep.mubr.f32.mxu1 %v32228_v2  ;;  %v16845_v2 = vld [vmem:[#allocation3 + $0x62] sm:$0xff] }
 0xbb0   :  { %25675 = vmatmul.mubr.f32.gmra.mrb[6].mxu1 %v32248_v0 }
 0xbb1   :  { %25677 = vmatprep.mubr.f32.mxu1 %v32254_v46 }
 0xbb4   :  { %25678 = vmatmul.mubr.f32.gmra.mrb[8].mxu1 %v32275_v29 }
 0xbb5   :  { %25680 = vmatprep.mubr.f32.mxu1 %v32281_v31 }
 0xbb8   :  { %25681 = vmatmul.mubr.f32.gmra.mrb[10].mxu1 %v32295_v56 }
 0xbb9   :  { %25683 = vmatprep.mubr.f32.mxu1 %v32301_v52 }
 0xbbc   :  { %25684 = vmatmul.mubr.f32.gmra.mrb[12].mxu1 %v32311_v30 }
 0xbbd   :  { %25686 = vmatprep.mubr.f32.mxu1 %v32320_v6  ;;  %v16850_v6 = vld [vmem:[#allocation3 + $0xd2] sm:$0xff] }
 0xbbe   :  { %v16889_v44 = vsel %vm10777_vm4, %v16850_v6, 0 }
 0xbc0   :  { %25687 = vmatmul.mubr.f32.gmra.mrb[14].mxu1 %v32327_v25 }
 0xbc1   :  { %25691 = vmatprep.mubr.f32.mxu1 %v15801_v62 }
 0xbc4   :  { %25692 = vmatmul.mubr.f32.vlgmr.msra.gmra.mrb[0].mxu1 %v15811_v60  ;;  %v16859_v60 = vsel %vm10777_vm4, %v16840_v14, 0  ;;  %v16895_v14 = vsel %vm10777_vm4, %v16852_v39, 0 }
 0xbc5   :  { %25716 = vmatpush3.msra.mxu1 %v32154_v16  ;;  %25694 = vmatprep.mubr.f32.mxu1 %v15821_v20  ;;  %v32417_v16 = vand.u32 4294901760, %v21743_v11  ;;  %v16862_v20 = vsel %vm10777_vm4, %v16841_v1, 0 }
 0xbc6   :  { %25741 = vmatprep.subr.mxu1 %v32134_v37 }
 0xbc8   :  { %25695 = vmatmul.mubr.f32.gmra.mrb[2].mxu1 %v15831_v55  ;;  %v16846_v55 = vld [vmem:[#allocation3 + $0x72] sm:$0xff] }
 0xbc9   :  { %25697 = vmatprep.mubr.f32.mxu1 %v15841_v43  ;;  %v16877_v0 = vsel %vm10777_vm4, %v16846_v55, 0 }
 0xbca   :  { %v32491_v31 = vand.u32 4294901760, %v16877_v0 }
 0xbcc   :  { %25698 = vmatmul.mubr.f32.gmra.mrb[4].mxu1 %v15851_v49 }
 0xbcd   :  { %25700 = vmatprep.mubr.f32.mxu1 %v15861_v40  ;;  %v16874_v40 = vsel %vm10777_vm4, %v16845_v2, 0 }
 0xbce   :  { %v32489_v29 = vand.u32 4294901760, %v16874_v40 }
 0xbd0   :  { %25701 = vmatmul.mubr.f32.gmra.mrb[6].mxu1 %v15871_v24  ;;  %v32511_v32 = vsub.f32 %v16874_v40, %v32489_v29 }
 0xbd1   :  { %25703 = vmatprep.mubr.f32.mxu1 %v15881_v3 }
 0xbd2   :  { %v17024_v23 = vand.u32 4294901760, %v32511_v32 }
 0xbd4   :  { %25704 = vmatmul.mubr.f32.gmra.mrb[8].mxu1 %v15891_v5  ;;  %v17025_v1 = vsub.f32 %v32511_v32, %v17024_v23 }
 0xbd5   :  { %25706 = vmatprep.mubr.f32.mxu1 %v15901_v42 }
 0xbd8   :  { %25707 = vmatmul.mubr.f32.gmra.mrb[10].mxu1 %v15911_v18  ;;  %v16849_v18 = vld [vmem:[#allocation3 + $0xc2] sm:$0xff] }
 0xbd9   :  { %25709 = vmatprep.mubr.f32.mxu1 %v15921_v53  ;;  %v32514_v53 = vsub.f32 %v16877_v0, %v32491_v31 }
 0xbdb   :  { %v17034_v19 = vand.u32 4294901760, %v32514_v53 }
 0xbdc   :  { %25710 = vmatmul.mubr.f32.gmra.mrb[12].mxu1 %v15931_v13 }
 0xbdd   :  { %25712 = vmatprep.mubr.f32.mxu1 %v15941_v45  ;;  %v16851_v45 = vld [vmem:[#allocation3 + $0xe2] sm:$0xff] }
 0xbe0   :  { %25713 = vmatmul.mubr.f32.gmra.mrb[14].mxu1 %v15951_v22 }
 0xbe1   :  { %25717 = vmatprep.mubr.f32.mxu1 %v32173_v27 }
 0xbe4   :  { %25718 = vmatmul.mubr.f32.vlgmr.msra.gmra.mrb[0].mxu1 %v32179_v41 }
 0xbe5   :  { %25742 = vmatpush3.msra.mxu1 %v32134_v37  ;;  %25720 = vmatprep.mubr.f32.mxu1 %v32184_v21  ;;  %v32432_v37 = vsub.f32 %v21743_v11, %v32417_v16  ;;  %v32544_v11 = vand.u32 4294901760, %v16889_v44 }
 0xbe6   :  { %25767 = vmatprep.subr.mxu1 %v32417_v16 }
 0xbe7   :  { %v32437_v17 = vand.u32 4294901760, %v32432_v37  ;;  %v32564_v55 = vsub.f32 %v16889_v44, %v32544_v11 }
 0xbe8   :  { %25721 = vmatmul.mubr.f32.gmra.mrb[2].mxu1 %v32193_v36 }
 0xbe9   :  { %25723 = vmatprep.mubr.f32.mxu1 %v32201_v7  ;;  %v17136_v10 = vsub.f32 %v32432_v37, %v32437_v17 }
 0xbeb   :  { %v32445_v62 = vand.u32 4294901760, %v17136_v10  ;;  %v16892_v10 = vsel %vm10777_vm4, %v16851_v45, 0 }
 0xbec   :  { %25724 = vmatmul.mubr.f32.gmra.mrb[4].mxu1 %v32205_v48  ;;  %v32560_v2 = vand.u32 4294901760, %v16892_v10 }
 0xbed   :  { %25726 = vmatprep.mubr.f32.mxu1 %v32207_v63 }
 0xbf0   :  { %25727 = vmatmul.mubr.f32.gmra.mrb[6].mxu1 %v32230_v51 }
 0xbf1   :  { %25729 = vmatprep.mubr.f32.mxu1 %v32236_v28 }
 0xbf4   :  { %25730 = vmatmul.mubr.f32.gmra.mrb[8].mxu1 %v32256_v9 }
 0xbf5   :  { %25732 = vmatprep.mubr.f32.mxu1 %v32261_v15 }
 0xbf8   :  { %25733 = vmatmul.mubr.f32.gmra.mrb[10].mxu1 %v32277_v26 }
 0xbf9   :  { %25735 = vmatprep.mubr.f32.mxu1 %v32283_v4 }
 0xbfc   :  { %25736 = vmatmul.mubr.f32.gmra.mrb[12].mxu1 %v32297_v34 }
 0xbfd   :  { %25738 = vmatprep.mubr.f32.mxu1 %v32303_v12 }
 0xc00   :  { %25739 = vmatmul.mubr.f32.gmra.mrb[14].mxu1 %v32313_v33 }
 0xc01   :  { %25743 = vmatprep.mubr.f32.mxu1 %v32173_v27  ;;  %v16842_v27 = vld [vmem:[#allocation3 + $0x32] sm:$0xff] }
 0xc04   :  { %25744 = vmatmul.mubr.f32.vlgmr.msra.gmra.mrb[0].mxu1 %v32179_v41  ;;  %v32456_v41 = vand.u32 4294901760, %v16859_v60 }
 0xc05   :  { %25768 = vmatpush3.msra.mxu1 %v32417_v16  ;;  %25746 = vmatprep.mubr.f32.mxu1 %v32184_v21  ;;  %v16865_v21 = vsel %vm10777_vm4, %v16842_v27, 0  ;;  %v17035_v27 = vsub.f32 %v32514_v53, %v17034_v19 }
 0xc06   :  { %25793 = vmatprep.subr.mxu1 %v32445_v62  ;;  %v32465_v59 = vsub.f32 %v16859_v60, %v32456_v41  ;;  %v16853_v60 = vld [vmem:[#allocation3 + $0x102] sm:$0xff] }
 0xc07   :  { %v16898_v40 = vsel %vm10777_vm4, %v16853_v60, 0 }
 0xc08   :  { %25747 = vmatmul.mubr.f32.gmra.mrb[2].mxu1 %v32193_v36  ;;  %v16843_v36 = vld [vmem:[#allocation3 + $0x42] sm:$0xff]  ;;  %v16974_v43 = vand.u32 4294901760, %v32465_v59  ;;  %v32580_v6 = vand.u32 4294901760, %v16898_v40 }
 0xc09   :  { %25749 = vmatprep.mubr.f32.mxu1 %v32201_v7  ;;  %v32462_v7 = vand.u32 4294901760, %v16862_v20 }
 0xc0a   :  { %v16975_v5 = vsub.f32 %v32465_v59, %v16974_v43 }
 0xc0c   :  { %25750 = vmatmul.mubr.f32.gmra.mrb[4].mxu1 %v32205_v48  ;;  %v32467_v48 = vand.u32 4294901760, %v16865_v21 }
 0xc0d   :  { %25752 = vmatprep.mubr.f32.mxu1 %v32207_v63  ;;  %v16868_v63 = vsel %vm10777_vm4, %v16843_v36, 0 }
 0xc0e   :  { %v32477_v49 = vand.u32 4294901760, %v16868_v63  ;;  %v32482_v46 = vsub.f32 %v16865_v21, %v32467_v48  ;;  %v16854_v21 = vld [vmem:[#allocation3 + $0x112] sm:$0xff] }
 0xc0f   :  { %v16901_v0 = vsel %vm10777_vm4, %v16854_v21, 0 }
 0xc10   :  { %25753 = vmatmul.mubr.f32.gmra.mrb[6].mxu1 %v32230_v51  ;;  %v16871_v51 = vsel %vm10777_vm4, %v16844_v38, 0  ;;  %v32497_v56 = vsub.f32 %v16868_v63, %v32477_v49  ;;  %v16994_v42 = vand.u32 4294901760, %v32482_v46 }
 0xc11   :  { %25755 = vmatprep.mubr.f32.mxu1 %v32236_v28  ;;  %v32474_v28 = vsub.f32 %v16862_v20, %v32462_v7  ;;  %v32484_v24 = vand.u32 4294901760, %v16871_v51 }
 0xc12   :  { %v17004_v61 = vand.u32 4294901760, %v32497_v56  ;;  %v16995_v25 = vsub.f32 %v32482_v46, %v16994_v42 }
 0xc13   :  { %v16984_v3 = vand.u32 4294901760, %v32474_v28 }
 0xc14   :  { %25756 = vmatmul.mubr.f32.gmra.mrb[8].mxu1 %v32256_v9  ;;  %v16847_v9 = vld [vmem:[#allocation3 + $0x82] sm:$0xff]  ;;  %v17005_v58 = vsub.f32 %v32497_v56, %v17004_v61  ;;  %v16996_v47 = vand.u32 4294901760, %v16995_v25  ;;  %v32586_v25 = vand.u32 4294901760, %v16901_v0 }
 0xc15   :  { %25758 = vmatprep.mubr.f32.mxu1 %v32261_v15  ;;  %v16848_v15 = vld [vmem:[#allocation3 + $0xb2] sm:$0xff]  ;;  %v16985_v30 = vsub.f32 %v32474_v28, %v16984_v3 }
 0xc16   :  { %v16883_v52 = vsel %vm10777_vm4, %v16848_v15, 0  ;;  %v17006_v36 = vand.u32 4294901760, %v17005_v58  ;;  %v17026_v15 = vand.u32 4294901760, %v17025_v1  ;;  %v32594_v58 = vsub.f32 %v16898_v40, %v32580_v6 }
 0xc17   :  { %v32519_v13 = vand.u32 4294901760, %v16883_v52  ;;  %v16986_v8 = vand.u32 4294901760, %v16985_v30  ;;  %v32578_v30 = vsub.f32 %v16892_v10, %v32560_v2  ;;  %v32603_v60 = vsub.f32 %v16901_v0, %v32586_v25 }
 0xc18   :  { %25759 = vmatmul.mubr.f32.gmra.mrb[10].mxu1 %v32277_v26  ;;  %v32501_v26 = vsub.f32 %v16871_v51, %v32484_v24  ;;  %v32566_v51 = vand.u32 4294901760, %v16895_v14  ;;  %v17104_v21 = vand.u32 4294901760, %v32594_v58 }
 0xc19   :  { %25761 = vmatprep.mubr.f32.mxu1 %v32283_v4  ;;  %v16880_v4 = vsel %vm10777_vm4, %v16847_v9, 0  ;;  %v16855_v9 = vld [vmem:[#allocation3 + $0x122] sm:$0xff]  ;;  %v17114_v0 = vand.u32 4294901760, %v32603_v60 }
 0xc1a   :  { %v32517_v57 = vand.u32 4294901760, %v16880_v4  ;;  %v17014_v35 = vand.u32 4294901760, %v32501_v26  ;;  %v16904_v44 = vsel %vm10777_vm4, %v16855_v9, 0 }
 0xc1c   :  { %25762 = vmatmul.mubr.f32.gmra.mrb[12].mxu1 %v32297_v34  ;;  %v16886_v34 = vsel %vm10777_vm4, %v16849_v18, 0  ;;  %v32536_v50 = vsub.f32 %v16880_v4, %v32517_v57  ;;  %v17015_v54 = vsub.f32 %v32501_v26, %v17014_v35 }
 0xc1d   :  { %25764 = vmatprep.mubr.f32.mxu1 %v32303_v12  ;;  %v16976_v12 = vand.u32 4294901760, %v16975_v5  ;;  %v32530_v22 = vand.u32 4294901760, %v16886_v34  ;;  %v17036_v5 = vand.u32 4294901760, %v17035_v27 }
 0xc1e   :  { %v17044_v38 = vand.u32 4294901760, %v32536_v50 }
 0xc1f   :  { %v32556_v20 = vsub.f32 %v16886_v34, %v32530_v22  ;;  %v17074_v34 = vand.u32 4294901760, %v32564_v55 }
 0xc20   :  { %25765 = vmatmul.mubr.f32.gmra.mrb[14].mxu1 %v32313_v33  ;;  %v32539_v33 = vsub.f32 %v16883_v52, %v32519_v13  ;;  %v17045_v52 = vsub.f32 %v32536_v50, %v17044_v38 }
 0xc21   :  { %25769 = vmatprep.mubr.f32.mxu1 %v16976_v12  ;;  %v17064_v4 = vand.u32 4294901760, %v32556_v20  ;;  %v32584_v12 = vsub.f32 %v16895_v14, %v32566_v51  ;;  %v17075_v10 = vsub.f32 %v32564_v55, %v17074_v34 }
 0xc22   :  { %v17054_v63 = vand.u32 4294901760, %v32539_v33  ;;  %v17046_v39 = vand.u32 4294901760, %v17045_v52 }
 0xc23   :  { %v17065_v45 = vsub.f32 %v32556_v20, %v17064_v4  ;;  %v17094_v14 = vand.u32 4294901760, %v32584_v12 }
 0xc24   :  { %25770 = vmatmul.mubr.f32.vlgmr.msra.gmra.mrb[0].mxu1 %v16986_v8  ;;  %v17055_v18 = vsub.f32 %v32539_v33, %v17054_v63  ;;  %v17084_v8 = vand.u32 4294901760, %v32578_v30 }
 0xc25   :  { %25794 = vmatpush3.msra.mxu1 %v32445_v62  ;;  %25772 = vmatprep.mubr.f32.mxu1 %v16996_v47  ;;  %v17016_v62 = vand.u32 4294901760, %v17015_v54  ;;  %v32596_v47 = vand.u32 4294901760, %v16904_v44  ;;  %v17066_v1 = vand.u32 4294901760, %v17065_v45  ;;  %v17095_v40 = vsub.f32 %v32584_v12, %v17094_v14 }
 0xc26   :  { %25819 = vmatprep.subr.mxu1 %v32432_v37  ;;  %v17056_v54 = vand.u32 4294901760, %v17055_v18  ;;  %v17085_v27 = vsub.f32 %v32578_v30, %v17084_v8  ;;  %v17115_v18 = vsub.f32 %v32603_v60, %v17114_v0 }
 0xc27   :  { %v17096_v52 = vand.u32 4294901760, %v17095_v40 }
 0xc28   :  { %25773 = vmatmul.mubr.f32.gmra.mrb[2].mxu1 %v17006_v36  ;;  %v32610_v36 = vsub.f32 %v16904_v44, %v32596_v47  ;;  %v17086_v9 = vand.u32 4294901760, %v17085_v27 }
 0xc29   :  { %25775 = vmatprep.mubr.f32.mxu1 %v17016_v62  ;;  %v17076_v62 = vand.u32 4294901760, %v17075_v10 }
 0xc2c   :  { %25776 = vmatmul.mubr.f32.gmra.mrb[4].mxu1 %v17026_v15  ;;  %v17105_v15 = vsub.f32 %v32594_v58, %v17104_v21 }
 0xc2d   :  { %25778 = vmatprep.mubr.f32.mxu1 %v17036_v5  ;;  %v17124_v5 = vand.u32 4294901760, %v32610_v36 }
 0xc2e   :  { %v17106_v44 = vand.u32 4294901760, %v17105_v15 }
 0xc2f   :  { %v17125_v45 = vsub.f32 %v32610_v36, %v17124_v5 }
 0xc30   :  { %25779 = vmatmul.mubr.f32.gmra.mrb[6].mxu1 %v17046_v39  ;;  %v17116_v39 = vand.u32 4294901760, %v17115_v18 }
 0xc31   :  { %25781 = vmatprep.mubr.f32.mxu1 %v17056_v54  ;;  %v17126_v54 = vand.u32 4294901760, %v17125_v45 }
 0xc34   :  { %25782 = vmatmul.mubr.f32.gmra.mrb[8].mxu1 %v17066_v1 }
 0xc35   :  { %25784 = vmatprep.mubr.f32.mxu1 %v17076_v62 }
 0xc38   :  { %25785 = vmatmul.mubr.f32.gmra.mrb[10].mxu1 %v17086_v9  ;;  %v18025_v9 = vld [vmem:[#allocation3 + $0xf0] sm:$0xff] }
 0xc39   :  { %25787 = vmatprep.mubr.f32.mxu1 %v17096_v52  ;;  %v18026_v52 = vld [vmem:[#allocation3 + $0x100] sm:$0xff] }
 0xc3c   :  { %25788 = vmatmul.mubr.f32.gmra.mrb[12].mxu1 %v17106_v44 }
 0xc3d   :  { %25790 = vmatprep.mubr.f32.mxu1 %v17116_v39 }
 0xc40   :  { %25791 = vmatmul.mubr.f32.gmra.mrb[14].mxu1 %v17126_v54 }
 0xc41   :  { %25795 = vmatprep.mubr.f32.mxu1 %v32456_v41 }
 0xc44   :  { %25796 = vmatmul.mubr.f32.vlgmr.msra.gmra.mrb[0].mxu1 %v32462_v7 }
 0xc45   :  { %25820 = vmatpush3.msra.mxu1 %v32432_v37  ;;  %25798 = vmatprep.mubr.f32.mxu1 %v32467_v48  ;;  %v21744_v37 = vld [vmem:[%s33768_s4 + $0x30] sm:$0xff] }
 0xc46   :  { %25845 = vmatprep.subr.mxu1 %v32417_v16 }
 0xc48   :  { %25799 = vmatmul.mubr.f32.gmra.mrb[2].mxu1 %v32477_v49 }
 0xc49   :  { %25801 = vmatprep.mubr.f32.mxu1 %v32484_v24 }
 0xc4c   :  { %25802 = vmatmul.mubr.f32.gmra.mrb[4].mxu1 %v32489_v29 }
 0xc4d   :  { %25804 = vmatprep.mubr.f32.mxu1 %v32491_v31 }
 0xc50   :  { %25805 = vmatmul.mubr.f32.gmra.mrb[6].mxu1 %v32517_v57 }
 0xc51   :  { %25807 = vmatprep.mubr.f32.mxu1 %v32519_v13 }
 0xc54   :  { %25808 = vmatmul.mubr.f32.gmra.mrb[8].mxu1 %v32530_v22 }
 0xc55   :  { %25810 = vmatprep.mubr.f32.mxu1 %v32544_v11 }
 0xc58   :  { %25811 = vmatmul.mubr.f32.gmra.mrb[10].mxu1 %v32560_v2 }
 0xc59   :  { %25813 = vmatprep.mubr.f32.mxu1 %v32566_v51 }
 0xc5c   :  { %25814 = vmatmul.mubr.f32.gmra.mrb[12].mxu1 %v32580_v6 }
 0xc5d   :  { %25816 = vmatprep.mubr.f32.mxu1 %v32586_v25 }
 0xc60   :  { %25817 = vmatmul.mubr.f32.gmra.mrb[14].mxu1 %v32596_v47 }
 0xc61   :  { %25821 = vmatprep.mubr.f32.mxu1 %v32465_v59 }
 0xc64   :  { %25822 = vmatmul.mubr.f32.vlgmr.msra.gmra.mrb[0].mxu1 %v32474_v28 }
 0xc65   :  { %25846 = vmatpush3.msra.mxu1 %v32417_v16  ;;  %25824 = vmatprep.mubr.f32.mxu1 %v32482_v46  ;;  %v18014_v46 = vld [vmem:[#allocation3 + $0x20] sm:$0xff] }
 0xc66   :  { %25871 = vmatprep.subr.mxu1 %v32437_v17 }
 0xc68   :  { %25825 = vmatmul.mubr.f32.gmra.mrb[2].mxu1 %v32497_v56  ;;  %v18016_v56 = vld [vmem:[#allocation3 + $0x40] sm:$0xff] }
 0xc69   :  { %25827 = vmatprep.mubr.f32.mxu1 %v32501_v26  ;;  %v18018_v26 = vld [vmem:[#allocation3 + $0x60] sm:$0xff] }
 0xc6c   :  { %25828 = vmatmul.mubr.f32.gmra.mrb[4].mxu1 %v32511_v32 }
 0xc6d   :  { %25830 = vmatprep.mubr.f32.mxu1 %v32514_v53  ;;  %v18045_v53 = vsel %vm10777_vm4, %v18018_v26, 0 }
 0xc70   :  { %25831 = vmatmul.mubr.f32.gmra.mrb[6].mxu1 %v32536_v50  ;;  %v18021_v50 = vld [vmem:[#allocation3 + $0x90] sm:$0xff] }
 0xc71   :  { %25833 = vmatprep.mubr.f32.mxu1 %v32539_v33 }
 0xc74   :  { %25834 = vmatmul.mubr.f32.gmra.mrb[8].mxu1 %v32556_v20 }
 0xc75   :  { %25836 = vmatprep.mubr.f32.mxu1 %v32564_v55  ;;  %v18022_v55 = vld [vmem:[#allocation3 + $0xc0] sm:$0xff] }
 0xc78   :  { %25837 = vmatmul.mubr.f32.gmra.mrb[10].mxu1 %v32578_v30 }
 0xc79   :  { %25839 = vmatprep.mubr.f32.mxu1 %v32584_v12 }
 0xc7c   :  { %25840 = vmatmul.mubr.f32.gmra.mrb[12].mxu1 %v32594_v58  ;;  %v18023_v58 = vld [vmem:[#allocation3 + $0xd0] sm:$0xff] }
 0xc7d   :  { %25842 = vmatprep.mubr.f32.mxu1 %v32603_v60  ;;  %v18024_v60 = vld [vmem:[#allocation3 + $0xe0] sm:$0xff]  ;;  %v18060_v62 = vsel %vm10777_vm4, %v18023_v58, 0 }
 0xc7e   :  { %v32822_v45 = vand.u32 4294901760, %v18060_v62 }
 0xc80   :  { %25843 = vmatmul.mubr.f32.gmra.mrb[14].mxu1 %v32610_v36 }
 0xc81   :  { %25847 = vmatprep.mubr.f32.mxu1 %v16974_v43 }
 0xc84   :  { %25848 = vmatmul.mubr.f32.vlgmr.msra.gmra.mrb[0].mxu1 %v16984_v3  ;;  %v18033_v3 = vsel %vm10777_vm4, %v18014_v46, 0 }
 0xc85   :  { %25872 = vmatpush3.msra.mxu1 %v32437_v17  ;;  %25850 = vmatprep.mubr.f32.mxu1 %v16994_v42  ;;  %v32700_v17 = vand.u32 4294901760, %v21744_v37 }
 0xc86   :  { %25897 = vmatprep.subr.mxu1 %v32417_v16 }
 0xc88   :  { %25851 = vmatmul.mubr.f32.gmra.mrb[2].mxu1 %v17004_v61  ;;  %v18019_v61 = vld [vmem:[#allocation3 + $0x70] sm:$0xff] }
 0xc89   :  { %25853 = vmatprep.mubr.f32.mxu1 %v17014_v35 }
 0xc8c   :  { %25854 = vmatmul.mubr.f32.gmra.mrb[4].mxu1 %v17024_v23  ;;  %v32761_v23 = vand.u32 4294901760, %v18045_v53 }
 0xc8d   :  { %25856 = vmatprep.mubr.f32.mxu1 %v17034_v19  ;;  %v18048_v19 = vsel %vm10777_vm4, %v18019_v61, 0  ;;  %v18029_v61 = vld [vmem:[#allocation3 + $0x130] sm:$0xff] }
 0xc8e   :  { %v32779_v30 = vsub.f32 %v18045_v53, %v32761_v23 }
 0xc90   :  { %25857 = vmatmul.mubr.f32.gmra.mrb[6].mxu1 %v17044_v38  ;;  %v32774_v38 = vand.u32 4294901760, %v18048_v19  ;;  %v18188_v27 = vand.u32 4294901760, %v32779_v30 }
 0xc91   :  { %25859 = vmatprep.mubr.f32.mxu1 %v17054_v63  ;;  %v18054_v63 = vsel %vm10777_vm4, %v18021_v50, 0 }
 0xc92   :  { %v32788_v12 = vand.u32 4294901760, %v18054_v63  ;;  %v18189_v44 = vsub.f32 %v32779_v30, %v18188_v27 }
 0xc94   :  { %25860 = vmatmul.mubr.f32.gmra.mrb[8].mxu1 %v17064_v4  ;;  %v32811_v40 = vsub.f32 %v18054_v63, %v32788_v12 }
 0xc95   :  { %25862 = vmatprep.mubr.f32.mxu1 %v17074_v34 }
 0xc96   :  { %v18218_v46 = vand.u32 4294901760, %v32811_v40 }
 0xc98   :  { %25863 = vmatmul.mubr.f32.gmra.mrb[10].mxu1 %v17084_v8  ;;  %v18057_v8 = vsel %vm10777_vm4, %v18022_v55, 0 }
 0xc99   :  { %25865 = vmatprep.mubr.f32.mxu1 %v17094_v14  ;;  %v32794_v14 = vsub.f32 %v18048_v19, %v32774_v38  ;;  %v32806_v36 = vand.u32 4294901760, %v18057_v8 }
 0xc9b   :  { %v32825_v54 = vsub.f32 %v18057_v8, %v32806_v36 }
 0xc9c   :  { %25866 = vmatmul.mubr.f32.gmra.mrb[12].mxu1 %v17104_v21 }
 0xc9d   :  { %25868 = vmatprep.mubr.f32.mxu1 %v17114_v0  ;;  %v18063_v0 = vsel %vm10777_vm4, %v18024_v60, 0 }
 0xca0   :  { %25869 = vmatmul.mubr.f32.gmra.mrb[14].mxu1 %v17124_v5  ;;  %v18198_v5 = vand.u32 4294901760, %v32794_v14 }
 0xca1   :  { %25873 = vmatprep.mubr.f32.mxu1 %v32456_v41 }
 0xca4   :  { %25874 = vmatmul.mubr.f32.vlgmr.msra.gmra.mrb[0].mxu1 %v32462_v7 }
 0xca5   :  { %25898 = vmatpush3.msra.mxu1 %v32417_v16  ;;  %25876 = vmatprep.mubr.f32.mxu1 %v32467_v48  ;;  %v32715_v16 = vsub.f32 %v21744_v37, %v32700_v17  ;;  %v32827_v37 = vand.u32 4294901760, %v18063_v0 }
 0xca6   :  { %25923 = vmatprep.subr.mxu1 %v32700_v17 }
 0xca7   :  { %v32720_v59 = vand.u32 4294901760, %v32715_v16 }
 0xca8   :  { %25877 = vmatmul.mubr.f32.gmra.mrb[2].mxu1 %v32477_v49 }
 0xca9   :  { %25879 = vmatprep.mubr.f32.mxu1 %v32484_v24  ;;  %v18310_v28 = vsub.f32 %v32715_v16, %v32720_v59 }
 0xcab   :  { %v32728_v43 = vand.u32 4294901760, %v18310_v28  ;;  %v18066_v28 = vsel %vm10777_vm4, %v18025_v9, 0 }
 0xcac   :  { %25880 = vmatmul.mubr.f32.gmra.mrb[4].mxu1 %v32489_v29  ;;  %v32842_v53 = vand.u32 4294901760, %v18066_v28 }
 0xcad   :  { %25882 = vmatprep.mubr.f32.mxu1 %v32491_v31 }
 0xcae   :  { %v32859_v60 = vsub.f32 %v18066_v28, %v32842_v53 }
 0xcb0   :  { %25883 = vmatmul.mubr.f32.gmra.mrb[6].mxu1 %v32517_v57 }
 0xcb1   :  { %25885 = vmatprep.mubr.f32.mxu1 %v32519_v13 }
 0xcb4   :  { %25886 = vmatmul.mubr.f32.gmra.mrb[8].mxu1 %v32530_v22 }
 0xcb5   :  { %25888 = vmatprep.mubr.f32.mxu1 %v32544_v11 }
 0xcb8   :  { %25889 = vmatmul.mubr.f32.gmra.mrb[10].mxu1 %v32560_v2 }
 0xcb9   :  { %25891 = vmatprep.mubr.f32.mxu1 %v32566_v51 }
 0xcbc   :  { %25892 = vmatmul.mubr.f32.gmra.mrb[12].mxu1 %v32580_v6 }
 0xcbd   :  { %25894 = vmatprep.mubr.f32.mxu1 %v32586_v25 }
 0xcc0   :  { %25895 = vmatmul.mubr.f32.gmra.mrb[14].mxu1 %v32596_v47 }
 0xcc1   :  { %25899 = vmatprep.mubr.f32.mxu1 %v32456_v41  ;;  %v18015_v41 = vld [vmem:[#allocation3 + $0x30] sm:$0xff] }
 0xcc2   :  { %v18036_v42 = vsel %vm10777_vm4, %v18015_v41, 0  ;;  %v18027_v41 = vld [vmem:[#allocation3 + $0x110] sm:$0xff] }
 0xcc3   :  { %v18072_v50 = vsel %vm10777_vm4, %v18027_v41, 0 }
 0xcc4   :  { %25900 = vmatmul.mubr.f32.vlgmr.msra.gmra.mrb[0].mxu1 %v32462_v7  ;;  %v32739_v7 = vand.u32 4294901760, %v18033_v3 }
 0xcc5   :  { %25924 = vmatpush3.msra.mxu1 %v32700_v17  ;;  %25902 = vmatprep.mubr.f32.mxu1 %v32467_v48  ;;  %v18017_v48 = vld [vmem:[#allocation3 + $0x50] sm:$0xff] }
 0xcc6   :  { %25949 = vmatprep.subr.mxu1 %v32728_v43  ;;  %v32749_v32 = vsub.f32 %v18033_v3, %v32739_v7  ;;  %v18069_v3 = vsel %vm10777_vm4, %v18026_v52, 0 }
 0xcc7   :  { %v32849_v19 = vand.u32 4294901760, %v18069_v3 }
 0xcc8   :  { %25903 = vmatmul.mubr.f32.gmra.mrb[2].mxu1 %v32477_v49  ;;  %v18039_v49 = vsel %vm10777_vm4, %v18016_v56, 0  ;;  %v18148_v33 = vand.u32 4294901760, %v32749_v32 }
 0xcc9   :  { %25905 = vmatprep.mubr.f32.mxu1 %v32484_v24  ;;  %v32745_v24 = vand.u32 4294901760, %v18036_v42 }
 0xccc   :  { %25906 = vmatmul.mubr.f32.gmra.mrb[4].mxu1 %v32489_v29  ;;  %v18042_v29 = vsel %vm10777_vm4, %v18017_v48, 0  ;;  %v18028_v48 = vld [vmem:[#allocation3 + $0x120] sm:$0xff] }
 0xccd   :  { %25908 = vmatprep.mubr.f32.mxu1 %v32491_v31  ;;  %v32751_v31 = vand.u32 4294901760, %v18039_v49  ;;  %v32756_v35 = vand.u32 4294901760, %v18042_v29  ;;  %v18075_v63 = vsel %vm10777_vm4, %v18028_v48, 0 }
 0xccf   :  { %v32766_v20 = vsub.f32 %v18039_v49, %v32751_v31  ;;  %v18190_v49 = vand.u32 4294901760, %v18189_v44 }
 0xcd0   :  { %25909 = vmatmul.mubr.f32.gmra.mrb[6].mxu1 %v32517_v57  ;;  %v18020_v57 = vld [vmem:[#allocation3 + $0x80] sm:$0xff] }
 0xcd1   :  { %25911 = vmatprep.mubr.f32.mxu1 %v32519_v13  ;;  %v32759_v13 = vsub.f32 %v18036_v42, %v32745_v24  ;;  %v18199_v42 = vsub.f32 %v32794_v14, %v18198_v5 }
 0xcd3   :  { %v18158_v4 = vand.u32 4294901760, %v32759_v13  ;;  %v18200_v55 = vand.u32 4294901760, %v18199_v42 }
 0xcd4   :  { %25912 = vmatmul.mubr.f32.gmra.mrb[8].mxu1 %v32530_v22  ;;  %v18051_v22 = vsel %vm10777_vm4, %v18020_v57, 0  ;;  %v32847_v57 = vsub.f32 %v18063_v0, %v32827_v37  ;;  %v32870_v0 = vand.u32 4294901760, %v18075_v63 }
 0xcd5   :  { %25914 = vmatprep.mubr.f32.mxu1 %v32544_v11  ;;  %v32772_v11 = vsub.f32 %v18042_v29, %v32756_v35  ;;  %v32781_v34 = vand.u32 4294901760, %v18051_v22  ;;  %v18159_v1 = vsub.f32 %v32759_v13, %v18158_v4  ;;  %v32840_v29 = vsub.f32 %v18060_v62, %v32822_v45 }
 0xcd6   :  { %v32868_v62 = vsub.f32 %v18069_v3, %v32849_v19  ;;  %v32886_v41 = vsub.f32 %v18075_v63, %v32870_v0 }
 0xcd7   :  { %v18178_v10 = vand.u32 4294901760, %v32772_v11  ;;  %v18160_v18 = vand.u32 4294901760, %v18159_v1  ;;  %v18238_v58 = vand.u32 4294901760, %v32840_v29  ;;  %v32861_v1 = vand.u32 4294901760, %v18072_v50 }
 0xcd8   :  { %25915 = vmatmul.mubr.f32.gmra.mrb[10].mxu1 %v32560_v2  ;;  %v18149_v2 = vsub.f32 %v32749_v32, %v18148_v33  ;;  %v18268_v3 = vand.u32 4294901760, %v32868_v62 }
 0xcd9   :  { %25917 = vmatprep.mubr.f32.mxu1 %v32566_v51  ;;  %v18168_v51 = vand.u32 4294901760, %v32766_v20  ;;  %v18179_v15 = vsub.f32 %v32772_v11, %v18178_v10  ;;  %v18239_v52 = vsub.f32 %v32840_v29, %v18238_v58  ;;  %v32879_v44 = vsub.f32 %v18072_v50, %v32861_v1 }
 0xcda   :  { %v18150_v21 = vand.u32 4294901760, %v18149_v2  ;;  %v18078_v2 = vsel %vm10777_vm4, %v18029_v61, 0  ;;  %v18269_v61 = vsub.f32 %v32868_v62, %v18268_v3  ;;  %v18288_v50 = vand.u32 4294901760, %v32886_v41 }
 0xcdb   :  { %v18180_v56 = vand.u32 4294901760, %v18179_v15  ;;  %v32872_v15 = vand.u32 4294901760, %v18078_v2  ;;  %v18240_v42 = vand.u32 4294901760, %v18239_v52 }
 0xcdc   :  { %25918 = vmatmul.mubr.f32.gmra.mrb[12].mxu1 %v32580_v6  ;;  %v32801_v6 = vsub.f32 %v18051_v22, %v32781_v34  ;;  %v18219_v22 = vsub.f32 %v32811_v40, %v18218_v46 }
 0xcdd   :  { %25920 = vmatprep.mubr.f32.mxu1 %v32586_v25  ;;  %v18169_v25 = vsub.f32 %v32766_v20, %v18168_v51 }
 0xcde   :  { %v18220_v9 = vand.u32 4294901760, %v18219_v22 }
 0xcdf   :  { %v18170_v39 = vand.u32 4294901760, %v18169_v25  ;;  %v18248_v25 = vand.u32 4294901760, %v32847_v57 }
 0xce0   :  { %25921 = vmatmul.mubr.f32.gmra.mrb[14].mxu1 %v32596_v47  ;;  %v18208_v47 = vand.u32 4294901760, %v32801_v6 }
 0xce1   :  { %25925 = vmatprep.mubr.f32.mxu1 %v18150_v21  ;;  %v18249_v28 = vsub.f32 %v32847_v57, %v18248_v25 }
 0xce2   :  { %v18209_v26 = vsub.f32 %v32801_v6, %v18208_v47 }
 0xce4   :  { %25926 = vmatmul.mubr.f32.vlgmr.msra.gmra.mrb[0].mxu1 %v18160_v18  ;;  %v18210_v8 = vand.u32 4294901760, %v18209_v26  ;;  %v18258_v18 = vand.u32 4294901760, %v32859_v60  ;;  %v18250_v26 = vand.u32 4294901760, %v18249_v28 }
 0xce5   :  { %25950 = vmatpush3.msra.mxu1 %v32728_v43  ;;  %25928 = vmatprep.mubr.f32.mxu1 %v18170_v39  ;;  %v18228_v43 = vand.u32 4294901760, %v32825_v54 }
 0xce6   :  { %25975 = vmatprep.subr.mxu1 %v32715_v16  ;;  %v18259_v48 = vsub.f32 %v32859_v60, %v18258_v18 }
 0xce7   :  { %v18229_v21 = vsub.f32 %v32825_v54, %v18228_v43 }
 0xce8   :  { %25929 = vmatmul.mubr.f32.gmra.mrb[2].mxu1 %v18180_v56  ;;  %v32889_v56 = vsub.f32 %v18078_v2, %v32872_v15  ;;  %v18260_v63 = vand.u32 4294901760, %v18259_v48  ;;  %v18270_v2 = vand.u32 4294901760, %v18269_v61 }
 0xce9   :  { %25931 = vmatprep.mubr.f32.mxu1 %v18190_v49  ;;  %v18230_v39 = vand.u32 4294901760, %v18229_v21  ;;  %v18278_v49 = vand.u32 4294901760, %v32879_v44 }
 0xcea   :  { %v18298_v22 = vand.u32 4294901760, %v32889_v56 }
 0xcec   :  { %25932 = vmatmul.mubr.f32.gmra.mrb[4].mxu1 %v18200_v55  ;;  %v18279_v55 = vsub.f32 %v32879_v44, %v18278_v49  ;;  %v18299_v21 = vsub.f32 %v32889_v56, %v18298_v22 }
 0xced   :  { %25934 = vmatprep.mubr.f32.mxu1 %v18210_v8  ;;  %v18289_v8 = vsub.f32 %v32886_v41, %v18288_v50 }
 0xcef   :  { %v18290_v52 = vand.u32 4294901760, %v18289_v8 }
 0xcf0   :  { %25935 = vmatmul.mubr.f32.gmra.mrb[6].mxu1 %v18220_v9  ;;  %v18280_v9 = vand.u32 4294901760, %v18279_v55 }
 0xcf1   :  { %25937 = vmatprep.mubr.f32.mxu1 %v18230_v39  ;;  %v18300_v39 = vand.u32 4294901760, %v18299_v21 }
 0xcf4   :  { %25938 = vmatmul.mubr.f32.gmra.mrb[8].mxu1 %v18240_v42 }
 0xcf5   :  { %25940 = vmatprep.mubr.f32.mxu1 %v18250_v26 }
 0xcf8   :  { %25941 = vmatmul.mubr.f32.gmra.mrb[10].mxu1 %v18260_v63 }
 0xcf9   :  { %25943 = vmatprep.mubr.f32.mxu1 %v18270_v2  ;;  %v19199_v2 = vld [vmem:[#allocation3 + $0x101] sm:$0xff] }
 0xcfc   :  { %25944 = vmatmul.mubr.f32.gmra.mrb[12].mxu1 %v18280_v9 }
 0xcfd   :  { %25946 = vmatprep.mubr.f32.mxu1 %v18290_v52 }
 0xd00   :  { %25947 = vmatmul.mubr.f32.gmra.mrb[14].mxu1 %v18300_v39 }
 0xd01   :  { %25951 = vmatprep.mubr.f32.mxu1 %v32739_v7 }
 0xd04   :  { %25952 = vmatmul.mubr.f32.vlgmr.msra.gmra.mrb[0].mxu1 %v32745_v24 }
 0xd05   :  { %25976 = vmatpush3.msra.mxu1 %v32715_v16  ;;  %25954 = vmatprep.mubr.f32.mxu1 %v32751_v31  ;;  %v21745_v16 = vld [vmem:[%s33768_s4 + $0x38] sm:$0xff] }
 0xd06   :  { %26001 = vmatprep.subr.mxu1 %v32700_v17 }
 0xd08   :  { %25955 = vmatmul.mubr.f32.gmra.mrb[2].mxu1 %v32756_v35 }
 0xd09   :  { %25957 = vmatprep.mubr.f32.mxu1 %v32761_v23 }
 0xd0c   :  { %25958 = vmatmul.mubr.f32.gmra.mrb[4].mxu1 %v32774_v38 }
 0xd0d   :  { %25960 = vmatprep.mubr.f32.mxu1 %v32781_v34 }
 0xd10   :  { %25961 = vmatmul.mubr.f32.gmra.mrb[6].mxu1 %v32788_v12 }
 0xd11   :  { %25963 = vmatprep.mubr.f32.mxu1 %v32806_v36 }
 0xd14   :  { %25964 = vmatmul.mubr.f32.gmra.mrb[8].mxu1 %v32822_v45 }
 0xd15   :  { %25966 = vmatprep.mubr.f32.mxu1 %v32827_v37 }
 0xd18   :  { %25967 = vmatmul.mubr.f32.gmra.mrb[10].mxu1 %v32842_v53 }
 0xd19   :  { %25969 = vmatprep.mubr.f32.mxu1 %v32849_v19 }
 0xd1c   :  { %25970 = vmatmul.mubr.f32.gmra.mrb[12].mxu1 %v32861_v1 }
 0xd1d   :  { %25972 = vmatprep.mubr.f32.mxu1 %v32870_v0 }
 0xd20   :  { %25973 = vmatmul.mubr.f32.gmra.mrb[14].mxu1 %v32872_v15 }
 0xd21   :  { %25977 = vmatprep.mubr.f32.mxu1 %v32749_v32 }
 0xd24   :  { %25978 = vmatmul.mubr.f32.vlgmr.msra.gmra.mrb[0].mxu1 %v32759_v13 }
 0xd25   :  { %26002 = vmatpush3.msra.mxu1 %v32700_v17  ;;  %25980 = vmatprep.mubr.f32.mxu1 %v32766_v20  ;;  %v19187_v20 = vld [vmem:[#allocation3 + $0x21] sm:$0xff] }
 0xd26   :  { %26027 = vmatprep.subr.mxu1 %v32720_v59 }
 0xd28   :  { %25981 = vmatmul.mubr.f32.gmra.mrb[2].mxu1 %v32772_v11  ;;  %v19206_v11 = vsel %vm10777_vm4, %v19187_v20, 0 }
 0xd29   :  { %25983 = vmatprep.mubr.f32.mxu1 %v32779_v30 }
 0xd2c   :  { %25984 = vmatmul.mubr.f32.gmra.mrb[4].mxu1 %v32794_v14 }
 0xd2d   :  { %25986 = vmatprep.mubr.f32.mxu1 %v32801_v6  ;;  %v19193_v6 = vld [vmem:[#allocation3 + $0x81] sm:$0xff] }
 0xd30   :  { %25987 = vmatmul.mubr.f32.gmra.mrb[6].mxu1 %v32811_v40 }
 0xd31   :  { %25989 = vmatprep.mubr.f32.mxu1 %v32825_v54 }
 0xd34   :  { %25990 = vmatmul.mubr.f32.gmra.mrb[8].mxu1 %v32840_v29 }
 0xd35   :  { %25992 = vmatprep.mubr.f32.mxu1 %v32847_v57 }
 0xd38   :  { %25993 = vmatmul.mubr.f32.gmra.mrb[10].mxu1 %v32859_v60 }
 0xd39   :  { %25995 = vmatprep.mubr.f32.mxu1 %v32868_v62 }
 0xd3c   :  { %25996 = vmatmul.mubr.f32.gmra.mrb[12].mxu1 %v32879_v44  ;;  %v19196_v44 = vld [vmem:[#allocation3 + $0xd1] sm:$0xff] }
 0xd3d   :  { %25998 = vmatprep.mubr.f32.mxu1 %v32886_v41  ;;  %v19197_v41 = vld [vmem:[#allocation3 + $0xe1] sm:$0xff]  ;;  %v19233_v26 = vsel %vm10777_vm4, %v19196_v44, 0 }
 0xd3e   :  { %v33107_v9 = vand.u32 4294901760, %v19233_v26 }
 0xd40   :  { %25999 = vmatmul.mubr.f32.gmra.mrb[14].mxu1 %v32889_v56 }
 0xd41   :  { %26003 = vmatprep.mubr.f32.mxu1 %v18148_v33 }
 0xd44   :  { %26004 = vmatmul.mubr.f32.vlgmr.msra.gmra.mrb[0].mxu1 %v18158_v4  ;;  %v19189_v4 = vld [vmem:[#allocation3 + $0x41] sm:$0xff] }
 0xd45   :  { %26028 = vmatpush3.msra.mxu1 %v32720_v59  ;;  %26006 = vmatprep.mubr.f32.mxu1 %v18168_v51  ;;  %v32983_v59 = vand.u32 4294901760, %v21745_v16  ;;  %v19191_v51 = vld [vmem:[#allocation3 + $0x61] sm:$0xff] }
 0xd46   :  { %26053 = vmatprep.subr.mxu1 %v32700_v17  ;;  %v19218_v14 = vsel %vm10777_vm4, %v19191_v51, 0 }
 0xd47   :  { %v33044_v40 = vand.u32 4294901760, %v19218_v14 }
 0xd48   :  { %26007 = vmatmul.mubr.f32.gmra.mrb[2].mxu1 %v18178_v10 }
 0xd49   :  { %26009 = vmatprep.mubr.f32.mxu1 %v18188_v27  ;;  %v19192_v27 = vld [vmem:[#allocation3 + $0x71] sm:$0xff]  ;;  %v33062_v60 = vsub.f32 %v19218_v14, %v33044_v40 }
 0xd4b   :  { %v19361_v42 = vand.u32 4294901760, %v33062_v60 }
 0xd4c   :  { %26010 = vmatmul.mubr.f32.gmra.mrb[4].mxu1 %v18198_v5  ;;  %v19221_v5 = vsel %vm10777_vm4, %v19192_v27, 0  ;;  %v19202_v27 = vld [vmem:[#allocation3 + $0x131] sm:$0xff] }
 0xd4d   :  { %26012 = vmatprep.mubr.f32.mxu1 %v18208_v47  ;;  %v19194_v47 = vld [vmem:[#allocation3 + $0x91] sm:$0xff]  ;;  %v19362_v21 = vsub.f32 %v33062_v60, %v19361_v42 }
 0xd4e   :  { %v19227_v57 = vsel %vm10777_vm4, %v19194_v47, 0 }
 0xd50   :  { %26013 = vmatmul.mubr.f32.gmra.mrb[6].mxu1 %v18218_v46 }
 0xd51   :  { %26015 = vmatprep.mubr.f32.mxu1 %v18228_v43  ;;  %v33057_v43 = vand.u32 4294901760, %v19221_v5 }
 0xd54   :  { %26016 = vmatmul.mubr.f32.gmra.mrb[8].mxu1 %v18238_v58 }
 0xd55   :  { %26018 = vmatprep.mubr.f32.mxu1 %v18248_v25 }
 0xd58   :  { %26019 = vmatmul.mubr.f32.gmra.mrb[10].mxu1 %v18258_v18  ;;  %v33072_v18 = vand.u32 4294901760, %v19227_v57 }
 0xd59   :  { %26021 = vmatprep.mubr.f32.mxu1 %v18268_v3  ;;  %v33077_v3 = vsub.f32 %v19221_v5, %v33057_v43 }
 0xd5a   :  { %v33094_v61 = vsub.f32 %v19227_v57, %v33072_v18 }
 0xd5b   :  { %v19371_v55 = vand.u32 4294901760, %v33077_v3 }
 0xd5c   :  { %26022 = vmatmul.mubr.f32.gmra.mrb[12].mxu1 %v18278_v49  ;;  %v19391_v20 = vand.u32 4294901760, %v33094_v61 }
 0xd5d   :  { %26024 = vmatprep.mubr.f32.mxu1 %v18288_v50  ;;  %v19236_v50 = vsel %vm10777_vm4, %v19197_v41, 0 }
 0xd60   :  { %26025 = vmatmul.mubr.f32.gmra.mrb[14].mxu1 %v18298_v22  ;;  %v19198_v22 = vld [vmem:[#allocation3 + $0xf1] sm:$0xff] }
 0xd61   :  { %26029 = vmatprep.mubr.f32.mxu1 %v32739_v7 }
 0xd64   :  { %26030 = vmatmul.mubr.f32.vlgmr.msra.gmra.mrb[0].mxu1 %v32745_v24 }
 0xd65   :  { %26054 = vmatpush3.msra.mxu1 %v32700_v17  ;;  %26032 = vmatprep.mubr.f32.mxu1 %v32751_v31  ;;  %v32998_v17 = vsub.f32 %v21745_v16, %v32983_v59  ;;  %v33110_v16 = vand.u32 4294901760, %v19236_v50 }
 0xd66   :  { %26079 = vmatprep.subr.mxu1 %v32983_v59 }
 0xd67   :  { %v33003_v32 = vand.u32 4294901760, %v32998_v17 }
 0xd68   :  { %26033 = vmatmul.mubr.f32.gmra.mrb[2].mxu1 %v32756_v35 }
 0xd69   :  { %26035 = vmatprep.mubr.f32.mxu1 %v32761_v23  ;;  %v19483_v13 = vsub.f32 %v32998_v17, %v33003_v32 }
 0xd6b   :  { %v33011_v33 = vand.u32 4294901760, %v19483_v13  ;;  %v19239_v13 = vsel %vm10777_vm4, %v19198_v22, 0 }
 0xd6c   :  { %26036 = vmatmul.mubr.f32.gmra.mrb[4].mxu1 %v32774_v38  ;;  %v33123_v14 = vand.u32 4294901760, %v19239_v13 }
 0xd6d   :  { %26038 = vmatprep.mubr.f32.mxu1 %v32781_v34 }
 0xd6e   :  { %v33145_v41 = vsub.f32 %v19239_v13, %v33123_v14 }
 0xd70   :  { %26039 = vmatmul.mubr.f32.gmra.mrb[6].mxu1 %v32788_v12 }
 0xd71   :  { %26041 = vmatprep.mubr.f32.mxu1 %v32806_v36 }
 0xd74   :  { %26042 = vmatmul.mubr.f32.gmra.mrb[8].mxu1 %v32822_v45 }
 0xd75   :  { %26044 = vmatprep.mubr.f32.mxu1 %v32827_v37 }
 0xd78   :  { %26045 = vmatmul.mubr.f32.gmra.mrb[10].mxu1 %v32842_v53 }
 0xd79   :  { %26047 = vmatprep.mubr.f32.mxu1 %v32849_v19 }
 0xd7c   :  { %26048 = vmatmul.mubr.f32.gmra.mrb[12].mxu1 %v32861_v1 }
 0xd7d   :  { %26050 = vmatprep.mubr.f32.mxu1 %v32870_v0 }
 0xd80   :  { %26051 = vmatmul.mubr.f32.gmra.mrb[14].mxu1 %v32872_v15 }
 0xd81   :  { %26055 = vmatprep.mubr.f32.mxu1 %v32739_v7  ;;  %v19188_v7 = vld [vmem:[#allocation3 + $0x31] sm:$0xff] }
 0xd82   :  { %v19209_v30 = vsel %vm10777_vm4, %v19188_v7, 0  ;;  %v19200_v7 = vld [vmem:[#allocation3 + $0x111] sm:$0xff] }
 0xd83   :  { %v19245_v47 = vsel %vm10777_vm4, %v19200_v7, 0 }
 0xd84   :  { %26056 = vmatmul.mubr.f32.vlgmr.msra.gmra.mrb[0].mxu1 %v32745_v24  ;;  %v33022_v24 = vand.u32 4294901760, %v19206_v11 }
 0xd85   :  { %26080 = vmatpush3.msra.mxu1 %v32983_v59  ;;  %26058 = vmatprep.mubr.f32.mxu1 %v32751_v31  ;;  %v19190_v31 = vld [vmem:[#allocation3 + $0x51] sm:$0xff] }
 0xd86   :  { %26105 = vmatprep.subr.mxu1 %v33011_v33  ;;  %v33032_v10 = vsub.f32 %v19206_v11, %v33022_v24  ;;  %v19242_v11 = vsel %vm10777_vm4, %v19199_v2, 0 }
 0xd87   :  { %v33132_v5 = vand.u32 4294901760, %v19242_v11 }
 0xd88   :  { %26059 = vmatmul.mubr.f32.gmra.mrb[2].mxu1 %v32756_v35  ;;  %v19212_v35 = vsel %vm10777_vm4, %v19189_v4, 0  ;;  %v19321_v54 = vand.u32 4294901760, %v33032_v10 }
 0xd89   :  { %26061 = vmatprep.mubr.f32.mxu1 %v32761_v23  ;;  %v33028_v23 = vand.u32 4294901760, %v19209_v30 }
 0xd8c   :  { %26062 = vmatmul.mubr.f32.gmra.mrb[4].mxu1 %v32774_v38  ;;  %v19215_v38 = vsel %vm10777_vm4, %v19190_v31, 0  ;;  %v19201_v31 = vld [vmem:[#allocation3 + $0x121] sm:$0xff] }
 0xd8d   :  { %26064 = vmatprep.mubr.f32.mxu1 %v32781_v34  ;;  %v33034_v34 = vand.u32 4294901760, %v19212_v35 }
 0xd8f   :  { %v33049_v46 = vsub.f32 %v19212_v35, %v33034_v34  ;;  %v19363_v35 = vand.u32 4294901760, %v19362_v21 }
 0xd90   :  { %26065 = vmatmul.mubr.f32.gmra.mrb[6].mxu1 %v32788_v12  ;;  %v33039_v12 = vand.u32 4294901760, %v19215_v38 }
 0xd91   :  { %26067 = vmatprep.mubr.f32.mxu1 %v32806_v36  ;;  %v33042_v36 = vsub.f32 %v19209_v30, %v33028_v23  ;;  %v19341_v25 = vand.u32 4294901760, %v33049_v46  ;;  %v19372_v30 = vsub.f32 %v33077_v3, %v19371_v55 }
 0xd92   :  { %v33055_v29 = vsub.f32 %v19215_v38, %v33039_v12  ;;  %v33121_v38 = vsub.f32 %v19233_v26, %v33107_v9  ;;  %v33151_v26 = vsub.f32 %v19242_v11, %v33132_v5 }
 0xd93   :  { %v19331_v58 = vand.u32 4294901760, %v33042_v36  ;;  %v19342_v49 = vsub.f32 %v33049_v46, %v19341_v25  ;;  %v19373_v57 = vand.u32 4294901760, %v19372_v30 }
 0xd94   :  { %26068 = vmatmul.mubr.f32.gmra.mrb[8].mxu1 %v32822_v45  ;;  %v19224_v45 = vsel %vm10777_vm4, %v19193_v6, 0  ;;  %v19351_v28 = vand.u32 4294901760, %v33055_v29  ;;  %v33130_v6 = vsub.f32 %v19236_v50, %v33110_v16  ;;  %v19411_v44 = vand.u32 4294901760, %v33121_v38 }
 0xd95   :  { %26070 = vmatprep.mubr.f32.mxu1 %v32827_v37  ;;  %v19195_v37 = vld [vmem:[#allocation3 + $0xc1] sm:$0xff]  ;;  %v33068_v62 = vand.u32 4294901760, %v19224_v45  ;;  %v19332_v56 = vsub.f32 %v33042_v36, %v19331_v58  ;;  %v19343_v52 = vand.u32 4294901760, %v19342_v49  ;;  %v19441_v11 = vand.u32 4294901760, %v33151_v26 }
 0xd96   :  { %v19352_v63 = vsub.f32 %v33055_v29, %v19351_v28  ;;  %v19421_v49 = vand.u32 4294901760, %v33130_v6  ;;  %v19412_v2 = vsub.f32 %v33121_v38, %v19411_v44 }
 0xd97   :  { %v19333_v8 = vand.u32 4294901760, %v19332_v56  ;;  %v33147_v56 = vand.u32 4294901760, %v19245_v47 }
 0xd98   :  { %26071 = vmatmul.mubr.f32.gmra.mrb[10].mxu1 %v32842_v53  ;;  %v19322_v53 = vsub.f32 %v33032_v10, %v19321_v54  ;;  %v19353_v4 = vand.u32 4294901760, %v19352_v63  ;;  %v19422_v13 = vsub.f32 %v33130_v6, %v19421_v49  ;;  %v19413_v30 = vand.u32 4294901760, %v19412_v2 }
 0xd99   :  { %26073 = vmatprep.mubr.f32.mxu1 %v32849_v19  ;;  %v19230_v19 = vsel %vm10777_vm4, %v19195_v37, 0  ;;  %v19248_v37 = vsel %vm10777_vm4, %v19201_v31, 0  ;;  %v33162_v21 = vsub.f32 %v19245_v47, %v33147_v56 }
 0xd9a   :  { %v33083_v48 = vand.u32 4294901760, %v19230_v19  ;;  %v33153_v50 = vand.u32 4294901760, %v19248_v37 }
 0xd9c   :  { %26074 = vmatmul.mubr.f32.gmra.mrb[12].mxu1 %v32861_v1  ;;  %v19323_v1 = vand.u32 4294901760, %v19322_v53  ;;  %v19251_v53 = vsel %vm10777_vm4, %v19202_v27, 0  ;;  %v33169_v7 = vsub.f32 %v19248_v37, %v33153_v50  ;;  %v19423_v27 = vand.u32 4294901760, %v19422_v13 }
 0xd9d   :  { %26076 = vmatprep.mubr.f32.mxu1 %v32870_v0  ;;  %v33089_v0 = vsub.f32 %v19224_v45, %v33068_v62  ;;  %v19392_v45 = vsub.f32 %v33094_v61, %v19391_v20  ;;  %v33155_v63 = vand.u32 4294901760, %v19251_v53 }
 0xd9e   :  { %v19461_v47 = vand.u32 4294901760, %v33169_v7 }
 0xd9f   :  { %v19381_v39 = vand.u32 4294901760, %v33089_v0  ;;  %v19393_v22 = vand.u32 4294901760, %v19392_v45 }
 0xda0   :  { %26077 = vmatmul.mubr.f32.gmra.mrb[14].mxu1 %v32872_v15  ;;  %v33105_v15 = vsub.f32 %v19230_v19, %v33083_v48 }
 0xda1   :  { %26081 = vmatprep.mubr.f32.mxu1 %v19323_v1 }
 0xda2   :  { %v19401_v51 = vand.u32 4294901760, %v33105_v15 }
 0xda4   :  { %26082 = vmatmul.mubr.f32.vlgmr.msra.gmra.mrb[0].mxu1 %v19333_v8  ;;  %v19402_v19 = vsub.f32 %v33105_v15, %v19401_v51  ;;  %v19431_v8 = vand.u32 4294901760, %v33145_v41 }
 0xda5   :  { %26106 = vmatpush3.msra.mxu1 %v33011_v33  ;;  %26084 = vmatprep.mubr.f32.mxu1 %v19343_v52  ;;  %v19382_v33 = vsub.f32 %v33089_v0, %v19381_v39 }
 0xda6   :  { %26131 = vmatprep.subr.mxu1 %v32998_v17  ;;  %v19403_v52 = vand.u32 4294901760, %v19402_v19  ;;  %v19432_v31 = vsub.f32 %v33145_v41, %v19431_v8  ;;  %v19462_v19 = vsub.f32 %v33169_v7, %v19461_v47 }
 0xda7   :  { %v19383_v1 = vand.u32 4294901760, %v19382_v33  ;;  %v19442_v33 = vsub.f32 %v33151_v26, %v19441_v11 }
 0xda8   :  { %26085 = vmatmul.mubr.f32.gmra.mrb[2].mxu1 %v19353_v4  ;;  %v33172_v4 = vsub.f32 %v19251_v53, %v33155_v63  ;;  %v19433_v37 = vand.u32 4294901760, %v19432_v31  ;;  %v19463_v2 = vand.u32 4294901760, %v19462_v19 }
 0xda9   :  { %26087 = vmatprep.mubr.f32.mxu1 %v19363_v35  ;;  %v19451_v35 = vand.u32 4294901760, %v33162_v21  ;;  %v19443_v53 = vand.u32 4294901760, %v19442_v33 }
 0xdaa   :  { %v19471_v45 = vand.u32 4294901760, %v33172_v4 }
 0xdac   :  { %26088 = vmatmul.mubr.f32.gmra.mrb[4].mxu1 %v19373_v57  ;;  %v19452_v57 = vsub.f32 %v33162_v21, %v19451_v35 }
 0xdad   :  { %26090 = vmatprep.mubr.f32.mxu1 %v19383_v1  ;;  %v19472_v1 = vsub.f32 %v33172_v4, %v19471_v45 }
 0xdb0   :  { %26091 = vmatmul.mubr.f32.gmra.mrb[6].mxu1 %v19393_v22  ;;  %v19453_v22 = vand.u32 4294901760, %v19452_v57 }
 0xdb1   :  { %26093 = vmatprep.mubr.f32.mxu1 %v19403_v52  ;;  %v19473_v52 = vand.u32 4294901760, %v19472_v1 }
 0xdb4   :  { %26094 = vmatmul.mubr.f32.gmra.mrb[8].mxu1 %v19413_v30 }
 0xdb5   :  { %26096 = vmatprep.mubr.f32.mxu1 %v19423_v27 }
 0xdb8   :  { %26097 = vmatmul.mubr.f32.gmra.mrb[10].mxu1 %v19433_v37 }
 0xdb9   :  { %26099 = vmatprep.mubr.f32.mxu1 %v19443_v53  ;;  %v20372_v53 = vld [vmem:[#allocation3 + $0x102] sm:$0xff] }
 0xdbc   :  { %26100 = vmatmul.mubr.f32.gmra.mrb[12].mxu1 %v19453_v22 }
 0xdbd   :  { %26102 = vmatprep.mubr.f32.mxu1 %v19463_v2 }
 0xdc0   :  { %26103 = vmatmul.mubr.f32.gmra.mrb[14].mxu1 %v19473_v52 }
 0xdc1   :  { %26107 = vmatprep.mubr.f32.mxu1 %v33022_v24 }
 0xdc4   :  { %26108 = vmatmul.mubr.f32.vlgmr.msra.gmra.mrb[0].mxu1 %v33028_v23 }
 0xdc5   :  { %26132 = vmatpush3.msra.mxu1 %v32998_v17  ;;  %26110 = vmatprep.mubr.f32.mxu1 %v33034_v34  ;;  %v21746_v17 = vld [vmem:[%s33768_s4 + $0x40] sm:$0xff] }
 0xdc6   :  { %26157 = vmatprep.subr.mxu1 %v32983_v59 }
 0xdc8   :  { %26111 = vmatmul.mubr.f32.gmra.mrb[2].mxu1 %v33039_v12 }
 0xdc9   :  { %26113 = vmatprep.mubr.f32.mxu1 %v33044_v40 }
 0xdcc   :  { %26114 = vmatmul.mubr.f32.gmra.mrb[4].mxu1 %v33057_v43 }
 0xdcd   :  { %26116 = vmatprep.mubr.f32.mxu1 %v33068_v62 }
 0xdd0   :  { %26117 = vmatmul.mubr.f32.gmra.mrb[6].mxu1 %v33072_v18 }
 0xdd1   :  { %26119 = vmatprep.mubr.f32.mxu1 %v33083_v48 }
 0xdd4   :  { %26120 = vmatmul.mubr.f32.gmra.mrb[8].mxu1 %v33107_v9 }
 0xdd5   :  { %26122 = vmatprep.mubr.f32.mxu1 %v33110_v16 }
 0xdd8   :  { %26123 = vmatmul.mubr.f32.gmra.mrb[10].mxu1 %v33123_v14 }
 0xdd9   :  { %26125 = vmatprep.mubr.f32.mxu1 %v33132_v5 }
 0xddc   :  { %26126 = vmatmul.mubr.f32.gmra.mrb[12].mxu1 %v33147_v56 }
 0xddd   :  { %26128 = vmatprep.mubr.f32.mxu1 %v33153_v50 }
 0xde0   :  { %26129 = vmatmul.mubr.f32.gmra.mrb[14].mxu1 %v33155_v63 }
 0xde1   :  { %26133 = vmatprep.mubr.f32.mxu1 %v33032_v10 }
 0xde4   :  { %26134 = vmatmul.mubr.f32.vlgmr.msra.gmra.mrb[0].mxu1 %v33042_v36 }
 0xde5   :  { %26158 = vmatpush3.msra.mxu1 %v32983_v59  ;;  %26136 = vmatprep.mubr.f32.mxu1 %v33049_v46  ;;  %v20360_v46 = vld [vmem:[#allocation3 + $0x22] sm:$0xff] }
 0xde6   :  { %26183 = vmatprep.subr.mxu1 %v33003_v32 }
 0xde8   :  { %26137 = vmatmul.mubr.f32.gmra.mrb[2].mxu1 %v33055_v29  ;;  %v20379_v29 = vsel %vm10777_vm4, %v20360_v46, 0 }
 0xde9   :  { %26139 = vmatprep.mubr.f32.mxu1 %v33062_v60 }
 0xdec   :  { %26140 = vmatmul.mubr.f32.gmra.mrb[4].mxu1 %v33077_v3 }
 0xded   :  { %26142 = vmatprep.mubr.f32.mxu1 %v33089_v0 }
 0xdf0   :  { %26143 = vmatmul.mubr.f32.gmra.mrb[6].mxu1 %v33094_v61 }
 0xdf1   :  { %26145 = vmatprep.mubr.f32.mxu1 %v33105_v15  ;;  %v20367_v15 = vld [vmem:[#allocation3 + $0x92] sm:$0xff] }
 0xdf4   :  { %26146 = vmatmul.mubr.f32.gmra.mrb[8].mxu1 %v33121_v38  ;;  %v20400_v38 = vsel %vm10777_vm4, %v20367_v15, 0 }
 0xdf5   :  { %26148 = vmatprep.mubr.f32.mxu1 %v33130_v6  ;;  %v20368_v6 = vld [vmem:[#allocation3 + $0xc2] sm:$0xff] }
 0xdf8   :  { %26149 = vmatmul.mubr.f32.gmra.mrb[10].mxu1 %v33145_v41 }
 0xdf9   :  { %26151 = vmatprep.mubr.f32.mxu1 %v33151_v26  ;;  %v33354_v26 = vand.u32 4294901760, %v20400_v38 }
 0xdfb   :  { %v33377_v33 = vsub.f32 %v20400_v38, %v33354_v26 }
 0xdfc   :  { %26152 = vmatmul.mubr.f32.gmra.mrb[12].mxu1 %v33162_v21  ;;  %v20369_v21 = vld [vmem:[#allocation3 + $0xd2] sm:$0xff] }
 0xdfd   :  { %26154 = vmatprep.mubr.f32.mxu1 %v33169_v7  ;;  %v20370_v7 = vld [vmem:[#allocation3 + $0xe2] sm:$0xff]  ;;  %v20406_v27 = vsel %vm10777_vm4, %v20369_v21, 0  ;;  %v20564_v46 = vand.u32 4294901760, %v33377_v33 }
 0xdfe   :  { %v33388_v22 = vand.u32 4294901760, %v20406_v27 }
 0xe00   :  { %26155 = vmatmul.mubr.f32.gmra.mrb[14].mxu1 %v33172_v4 }
 0xe01   :  { %26159 = vmatprep.mubr.f32.mxu1 %v19321_v54 }
 0xe04   :  { %26160 = vmatmul.mubr.f32.vlgmr.msra.gmra.mrb[0].mxu1 %v19331_v58  ;;  %v20362_v58 = vld [vmem:[#allocation3 + $0x42] sm:$0xff] }
 0xe05   :  { %26184 = vmatpush3.msra.mxu1 %v33003_v32  ;;  %26162 = vmatprep.mubr.f32.mxu1 %v19341_v25  ;;  %v33266_v32 = vand.u32 4294901760, %v21746_v17  ;;  %v20364_v25 = vld [vmem:[#allocation3 + $0x62] sm:$0xff] }
 0xe06   :  { %26209 = vmatprep.subr.mxu1 %v32983_v59  ;;  %v20391_v3 = vsel %vm10777_vm4, %v20364_v25, 0 }
 0xe07   :  { %v33327_v61 = vand.u32 4294901760, %v20391_v3 }
 0xe08   :  { %26163 = vmatmul.mubr.f32.gmra.mrb[2].mxu1 %v19351_v28 }
 0xe09   :  { %26165 = vmatprep.mubr.f32.mxu1 %v19361_v42  ;;  %v20365_v42 = vld [vmem:[#allocation3 + $0x72] sm:$0xff]  ;;  %v33345_v41 = vsub.f32 %v20391_v3, %v33327_v61 }
 0xe0b   :  { %v20534_v30 = vand.u32 4294901760, %v33345_v41 }
 0xe0c   :  { %26166 = vmatmul.mubr.f32.gmra.mrb[4].mxu1 %v19371_v55  ;;  %v20394_v55 = vsel %vm10777_vm4, %v20365_v42, 0  ;;  %v20375_v42 = vld [vmem:[#allocation3 + $0x132] sm:$0xff] }
 0xe0d   :  { %26168 = vmatprep.mubr.f32.mxu1 %v19381_v39  ;;  %v20535_v1 = vsub.f32 %v33345_v41, %v20534_v30 }
 0xe10   :  { %26169 = vmatmul.mubr.f32.gmra.mrb[6].mxu1 %v19391_v20 }
 0xe11   :  { %26171 = vmatprep.mubr.f32.mxu1 %v19401_v51  ;;  %v33340_v51 = vand.u32 4294901760, %v20394_v55 }
 0xe14   :  { %26172 = vmatmul.mubr.f32.gmra.mrb[8].mxu1 %v19411_v44 }
 0xe15   :  { %26174 = vmatprep.mubr.f32.mxu1 %v19421_v49 }
 0xe18   :  { %26175 = vmatmul.mubr.f32.gmra.mrb[10].mxu1 %v19431_v8  ;;  %v20403_v8 = vsel %vm10777_vm4, %v20368_v6, 0 }
 0xe19   :  { %26177 = vmatprep.mubr.f32.mxu1 %v19441_v11  ;;  %v33360_v11 = vsub.f32 %v20394_v55, %v33340_v51 }
 0xe1b   :  { %v20544_v57 = vand.u32 4294901760, %v33360_v11 }
 0xe1c   :  { %26178 = vmatmul.mubr.f32.gmra.mrb[12].mxu1 %v19451_v35  ;;  %v33372_v35 = vand.u32 4294901760, %v20403_v8 }
 0xe1d   :  { %26180 = vmatprep.mubr.f32.mxu1 %v19461_v47  ;;  %v20409_v47 = vsel %vm10777_vm4, %v20370_v7, 0 }
 0xe1e   :  { %v33391_v52 = vsub.f32 %v20403_v8, %v33372_v35 }
 0xe20   :  { %26181 = vmatmul.mubr.f32.gmra.mrb[14].mxu1 %v19471_v45  ;;  %v20371_v45 = vld [vmem:[#allocation3 + $0xf2] sm:$0xff] }
 0xe21   :  { %26185 = vmatprep.mubr.f32.mxu1 %v33022_v24 }
 0xe24   :  { %26186 = vmatmul.mubr.f32.vlgmr.msra.gmra.mrb[0].mxu1 %v33028_v23 }
 0xe25   :  { %26210 = vmatpush3.msra.mxu1 %v32983_v59  ;;  %26188 = vmatprep.mubr.f32.mxu1 %v33034_v34  ;;  %v33281_v59 = vsub.f32 %v21746_v17, %v33266_v32  ;;  %v33393_v17 = vand.u32 4294901760, %v20409_v47 }
 0xe26   :  { %26235 = vmatprep.subr.mxu1 %v33266_v32 }
 0xe27   :  { %v33286_v10 = vand.u32 4294901760, %v33281_v59 }
 0xe28   :  { %26189 = vmatmul.mubr.f32.gmra.mrb[2].mxu1 %v33039_v12 }
 0xe29   :  { %26191 = vmatprep.mubr.f32.mxu1 %v33044_v40  ;;  %v20656_v36 = vsub.f32 %v33281_v59, %v33286_v10 }
 0xe2b   :  { %v33294_v54 = vand.u32 4294901760, %v20656_v36  ;;  %v20412_v36 = vsel %vm10777_vm4, %v20371_v45, 0 }
 0xe2c   :  { %26192 = vmatmul.mubr.f32.gmra.mrb[4].mxu1 %v33057_v43  ;;  %v33408_v3 = vand.u32 4294901760, %v20412_v36 }
 0xe2d   :  { %26194 = vmatprep.mubr.f32.mxu1 %v33068_v62 }
 0xe2e   :  { %v33425_v7 = vsub.f32 %v20412_v36, %v33408_v3 }
 0xe30   :  { %26195 = vmatmul.mubr.f32.gmra.mrb[6].mxu1 %v33072_v18 }
 0xe31   :  { %26197 = vmatprep.mubr.f32.mxu1 %v33083_v48 }
 0xe34   :  { %26198 = vmatmul.mubr.f32.gmra.mrb[8].mxu1 %v33107_v9 }
 0xe35   :  { %26200 = vmatprep.mubr.f32.mxu1 %v33110_v16 }
 0xe38   :  { %26201 = vmatmul.mubr.f32.gmra.mrb[10].mxu1 %v33123_v14 }
 0xe39   :  { %26203 = vmatprep.mubr.f32.mxu1 %v33132_v5 }
 0xe3c   :  { %26204 = vmatmul.mubr.f32.gmra.mrb[12].mxu1 %v33147_v56 }
 0xe3d   :  { %26206 = vmatprep.mubr.f32.mxu1 %v33153_v50 }
 0xe40   :  { %26207 = vmatmul.mubr.f32.gmra.mrb[14].mxu1 %v33155_v63 }
 0xe41   :  { %26211 = vmatprep.mubr.f32.mxu1 %v33022_v24  ;;  %v20361_v24 = vld [vmem:[#allocation3 + $0x32] sm:$0xff] }
 0xe42   :  { %v20382_v60 = vsel %vm10777_vm4, %v20361_v24, 0  ;;  %v20373_v24 = vld [vmem:[#allocation3 + $0x112] sm:$0xff] }
 0xe43   :  { %v20418_v15 = vsel %vm10777_vm4, %v20373_v24, 0 }
 0xe44   :  { %26212 = vmatmul.mubr.f32.vlgmr.msra.gmra.mrb[0].mxu1 %v33028_v23  ;;  %v33305_v23 = vand.u32 4294901760, %v20379_v29 }
 0xe45   :  { %26236 = vmatpush3.msra.mxu1 %v33266_v32  ;;  %26214 = vmatprep.mubr.f32.mxu1 %v33034_v34  ;;  %v20363_v34 = vld [vmem:[#allocation3 + $0x52] sm:$0xff] }
 0xe46   :  { %26261 = vmatprep.subr.mxu1 %v33294_v54  ;;  %v33315_v28 = vsub.f32 %v20379_v29, %v33305_v23  ;;  %v20415_v29 = vsel %vm10777_vm4, %v20372_v53, 0 }
 0xe47   :  { %v33415_v55 = vand.u32 4294901760, %v20415_v29 }
 0xe48   :  { %26215 = vmatmul.mubr.f32.gmra.mrb[2].mxu1 %v33039_v12  ;;  %v20385_v12 = vsel %vm10777_vm4, %v20362_v58, 0  ;;  %v20494_v39 = vand.u32 4294901760, %v33315_v28 }
 0xe49   :  { %26217 = vmatprep.mubr.f32.mxu1 %v33044_v40  ;;  %v33311_v40 = vand.u32 4294901760, %v20382_v60 }
 0xe4c   :  { %26218 = vmatmul.mubr.f32.gmra.mrb[4].mxu1 %v33057_v43  ;;  %v20388_v43 = vsel %vm10777_vm4, %v20363_v34, 0  ;;  %v20374_v34 = vld [vmem:[#allocation3 + $0x122] sm:$0xff] }
 0xe4d   :  { %26220 = vmatprep.mubr.f32.mxu1 %v33068_v62  ;;  %v33317_v62 = vand.u32 4294901760, %v20385_v12  ;;  %v33322_v0 = vand.u32 4294901760, %v20388_v43  ;;  %v20421_v38 = vsel %vm10777_vm4, %v20374_v34, 0 }
 0xe4f   :  { %v33332_v20 = vsub.f32 %v20385_v12, %v33317_v62  ;;  %v20536_v12 = vand.u32 4294901760, %v20535_v1 }
 0xe50   :  { %26221 = vmatmul.mubr.f32.gmra.mrb[6].mxu1 %v33072_v18  ;;  %v20366_v18 = vld [vmem:[#allocation3 + $0x82] sm:$0xff] }
 0xe51   :  { %26223 = vmatprep.mubr.f32.mxu1 %v33083_v48  ;;  %v33325_v48 = vsub.f32 %v20382_v60, %v33311_v40  ;;  %v20545_v60 = vsub.f32 %v33360_v11, %v20544_v57 }
 0xe53   :  { %v20504_v44 = vand.u32 4294901760, %v33325_v48  ;;  %v20546_v6 = vand.u32 4294901760, %v20545_v60 }
 0xe54   :  { %26224 = vmatmul.mubr.f32.gmra.mrb[8].mxu1 %v33107_v9  ;;  %v20397_v9 = vsel %vm10777_vm4, %v20366_v18, 0  ;;  %v33413_v18 = vsub.f32 %v20409_v47, %v33393_v17  ;;  %v33436_v47 = vand.u32 4294901760, %v20421_v38 }
 0xe55   :  { %26226 = vmatprep.mubr.f32.mxu1 %v33110_v16  ;;  %v33338_v16 = vsub.f32 %v20388_v43, %v33322_v0  ;;  %v33347_v49 = vand.u32 4294901760, %v20397_v9  ;;  %v20505_v4 = vsub.f32 %v33325_v48, %v20504_v44  ;;  %v33406_v43 = vsub.f32 %v20406_v27, %v33388_v22 }
 0xe56   :  { %v33434_v27 = vsub.f32 %v20415_v29, %v33415_v55  ;;  %v33452_v24 = vsub.f32 %v20421_v38, %v33436_v47 }
 0xe57   :  { %v20524_v13 = vand.u32 4294901760, %v33338_v16  ;;  %v20506_v19 = vand.u32 4294901760, %v20505_v4  ;;  %v20584_v21 = vand.u32 4294901760, %v33406_v43  ;;  %v33427_v4 = vand.u32 4294901760, %v20418_v15 }
 0xe58   :  { %26227 = vmatmul.mubr.f32.gmra.mrb[10].mxu1 %v33123_v14  ;;  %v20495_v14 = vsub.f32 %v33315_v28, %v20494_v39  ;;  %v20614_v29 = vand.u32 4294901760, %v33434_v27 }
 0xe59   :  { %26229 = vmatprep.mubr.f32.mxu1 %v33132_v5  ;;  %v20514_v5 = vand.u32 4294901760, %v33332_v20  ;;  %v20525_v37 = vsub.f32 %v33338_v16, %v20524_v13  ;;  %v20585_v53 = vsub.f32 %v33406_v43, %v20584_v21  ;;  %v33445_v1 = vsub.f32 %v20418_v15, %v33427_v4 }
 0xe5a   :  { %v20496_v31 = vand.u32 4294901760, %v20495_v14  ;;  %v20424_v14 = vsel %vm10777_vm4, %v20375_v42, 0  ;;  %v20615_v42 = vsub.f32 %v33434_v27, %v20614_v29  ;;  %v20634_v15 = vand.u32 4294901760, %v33452_v24 }
 0xe5b   :  { %v20526_v58 = vand.u32 4294901760, %v20525_v37  ;;  %v33438_v37 = vand.u32 4294901760, %v20424_v14  ;;  %v20586_v60 = vand.u32 4294901760, %v20585_v53 }
 0xe5c   :  { %26230 = vmatmul.mubr.f32.gmra.mrb[12].mxu1 %v33147_v56  ;;  %v33367_v56 = vsub.f32 %v20397_v9, %v33347_v49  ;;  %v20565_v9 = vsub.f32 %v33377_v33, %v20564_v46 }
 0xe5d   :  { %26232 = vmatprep.mubr.f32.mxu1 %v33153_v50  ;;  %v20515_v50 = vsub.f32 %v33332_v20, %v20514_v5 }
 0xe5e   :  { %v20566_v45 = vand.u32 4294901760, %v20565_v9 }
 0xe5f   :  { %v20516_v2 = vand.u32 4294901760, %v20515_v50  ;;  %v20594_v50 = vand.u32 4294901760, %v33413_v18 }
 0xe60   :  { %26233 = vmatmul.mubr.f32.gmra.mrb[14].mxu1 %v33155_v63  ;;  %v20554_v63 = vand.u32 4294901760, %v33367_v56 }
 0xe61   :  { %26237 = vmatprep.mubr.f32.mxu1 %v20496_v31  ;;  %v20595_v36 = vsub.f32 %v33413_v18, %v20594_v50 }
 0xe62   :  { %v20555_v25 = vsub.f32 %v33367_v56, %v20554_v63 }
 0xe64   :  { %26238 = vmatmul.mubr.f32.vlgmr.msra.gmra.mrb[0].mxu1 %v20506_v19  ;;  %v20556_v8 = vand.u32 4294901760, %v20555_v25  ;;  %v20604_v19 = vand.u32 4294901760, %v33425_v7  ;;  %v20596_v25 = vand.u32 4294901760, %v20595_v36 }
 0xe65   :  { %26262 = vmatpush3.msra.mxu1 %v33294_v54  ;;  %26240 = vmatprep.mubr.f32.mxu1 %v20516_v2  ;;  %v20574_v54 = vand.u32 4294901760, %v33391_v52 }
 0xe66   :  { %26287 = vmatprep.subr.mxu1 %v33281_v59  ;;  %v20605_v34 = vsub.f32 %v33425_v7, %v20604_v19 }
 0xe67   :  { %v20575_v31 = vsub.f32 %v33391_v52, %v20574_v54 }
 0xe68   :  { %26241 = vmatmul.mubr.f32.gmra.mrb[2].mxu1 %v20526_v58  ;;  %v33455_v58 = vsub.f32 %v20424_v14, %v33438_v37  ;;  %v20606_v38 = vand.u32 4294901760, %v20605_v34  ;;  %v20616_v14 = vand.u32 4294901760, %v20615_v42 }
 0xe69   :  { %26243 = vmatprep.mubr.f32.mxu1 %v20536_v12  ;;  %v20576_v2 = vand.u32 4294901760, %v20575_v31  ;;  %v20624_v12 = vand.u32 4294901760, %v33445_v1 }
 0xe6a   :  { %v20644_v9 = vand.u32 4294901760, %v33455_v58 }
 0xe6c   :  { %26244 = vmatmul.mubr.f32.gmra.mrb[4].mxu1 %v20546_v6  ;;  %v20625_v6 = vsub.f32 %v33445_v1, %v20624_v12  ;;  %v20645_v31 = vsub.f32 %v33455_v58, %v20644_v9 }
 0xe6d   :  { %26246 = vmatprep.mubr.f32.mxu1 %v20556_v8  ;;  %v20635_v8 = vsub.f32 %v33452_v24, %v20634_v15 }
 0xe6f   :  { %v20636_v53 = vand.u32 4294901760, %v20635_v8 }
 0xe70   :  { %26247 = vmatmul.mubr.f32.gmra.mrb[6].mxu1 %v20566_v45  ;;  %v20626_v45 = vand.u32 4294901760, %v20625_v6 }
 0xe71   :  { %26249 = vmatprep.mubr.f32.mxu1 %v20576_v2  ;;  %v20646_v2 = vand.u32 4294901760, %v20645_v31 }
 0xe74   :  { %26250 = vmatmul.mubr.f32.gmra.mrb[8].mxu1 %v20586_v60 }
 0xe75   :  { %26252 = vmatprep.mubr.f32.mxu1 %v20596_v25 }
 0xe78   :  { %26253 = vmatmul.mubr.f32.gmra.mrb[10].mxu1 %v20606_v38 }
 0xe79   :  { %26255 = vmatprep.mubr.f32.mxu1 %v20616_v14 }
 0xe7c   :  { %26256 = vmatmul.mubr.f32.gmra.mrb[12].mxu1 %v20626_v45 }
 0xe7d   :  { %26258 = vmatprep.mubr.f32.mxu1 %v20636_v53 }
 0xe80   :  { %26259 = vmatmul.mubr.f32.gmra.mrb[14].mxu1 %v20646_v2 }
 0xe81   :  { %26263 = vmatprep.mubr.f32.mxu1 %v33305_v23 }
 0xe84   :  { %26264 = vmatmul.mubr.f32.vlgmr.msra.gmra.mrb[0].mxu1 %v33311_v40 }
 0xe85   :  { %26288 = vmatpush3.msra.mxu1 %v33281_v59  ;;  %26266 = vmatprep.mubr.f32.mxu1 %v33317_v62 }
 0xe86   :  { %26313 = vmatprep.subr.mxu1 %v33266_v32 }
 0xe88   :  { %26267 = vmatmul.mubr.f32.gmra.mrb[2].mxu1 %v33322_v0 }
 0xe89   :  { %26269 = vmatprep.mubr.f32.mxu1 %v33327_v61 }
 0xe8c   :  { %26270 = vmatmul.mubr.f32.gmra.mrb[4].mxu1 %v33340_v51 }
 0xe8d   :  { %26272 = vmatprep.mubr.f32.mxu1 %v33347_v49 }
 0xe90   :  { %26273 = vmatmul.mubr.f32.gmra.mrb[6].mxu1 %v33354_v26 }
 0xe91   :  { %26275 = vmatprep.mubr.f32.mxu1 %v33372_v35 }
 0xe94   :  { %26276 = vmatmul.mubr.f32.gmra.mrb[8].mxu1 %v33388_v22 }
 0xe95   :  { %26278 = vmatprep.mubr.f32.mxu1 %v33393_v17 }
 0xe98   :  { %26279 = vmatmul.mubr.f32.gmra.mrb[10].mxu1 %v33408_v3 }
 0xe99   :  { %26281 = vmatprep.mubr.f32.mxu1 %v33415_v55 }
 0xe9c   :  { %26282 = vmatmul.mubr.f32.gmra.mrb[12].mxu1 %v33427_v4 }
 0xe9d   :  { %26284 = vmatprep.mubr.f32.mxu1 %v33436_v47 }
 0xea0   :  { %26285 = vmatmul.mubr.f32.gmra.mrb[14].mxu1 %v33438_v37 }
 0xea1   :  { %26289 = vmatprep.mubr.f32.mxu1 %v33315_v28 }
 0xea4   :  { %26290 = vmatmul.mubr.f32.vlgmr.msra.gmra.mrb[0].mxu1 %v33325_v48 }
 0xea5   :  { %26314 = vmatpush3.msra.mxu1 %v33266_v32  ;;  %26292 = vmatprep.mubr.f32.mxu1 %v33332_v20 }
 0xea6   :  { %26339 = vmatprep.subr.mxu1 %v33286_v10 }
 0xea8   :  { %26293 = vmatmul.mubr.f32.gmra.mrb[2].mxu1 %v33338_v16 }
 0xea9   :  { %26295 = vmatprep.mubr.f32.mxu1 %v33345_v41 }
 0xeac   :  { %26296 = vmatmul.mubr.f32.gmra.mrb[4].mxu1 %v33360_v11 }
 0xead   :  { %26298 = vmatprep.mubr.f32.mxu1 %v33367_v56 }
 0xeb0   :  { %26299 = vmatmul.mubr.f32.gmra.mrb[6].mxu1 %v33377_v33 }
 0xeb1   :  { %26301 = vmatprep.mubr.f32.mxu1 %v33391_v52 }
 0xeb4   :  { %26302 = vmatmul.mubr.f32.gmra.mrb[8].mxu1 %v33406_v43 }
 0xeb5   :  { %26304 = vmatprep.mubr.f32.mxu1 %v33413_v18 }
 0xeb8   :  { %26305 = vmatmul.mubr.f32.gmra.mrb[10].mxu1 %v33425_v7 }
 0xeb9   :  { %26307 = vmatprep.mubr.f32.mxu1 %v33434_v27 }
 0xebc   :  { %26308 = vmatmul.mubr.f32.gmra.mrb[12].mxu1 %v33445_v1 }
 0xebd   :  { %26310 = vmatprep.mubr.f32.mxu1 %v33452_v24 }
 0xec0   :  { %26311 = vmatmul.mubr.f32.gmra.mrb[14].mxu1 %v33455_v58 }
 0xec1   :  { %26315 = vmatprep.mubr.f32.mxu1 %v20494_v39 }
 0xec4   :  { %26316 = vmatmul.mubr.f32.vlgmr.msra.gmra.mrb[0].mxu1 %v20504_v44 }
 0xec5   :  { %26340 = vmatpush3.msra.mxu1 %v33286_v10  ;;  %26318 = vmatprep.mubr.f32.mxu1 %v20514_v5 }
 0xec6   :  { %26365 = vmatprep.subr.mxu1 %v33266_v32 }
 0xec8   :  { %26319 = vmatmul.mubr.f32.gmra.mrb[2].mxu1 %v20524_v13 }
 0xec9   :  { %26321 = vmatprep.mubr.f32.mxu1 %v20534_v30 }
 0xecc   :  { %26322 = vmatmul.mubr.f32.gmra.mrb[4].mxu1 %v20544_v57 }
 0xecd   :  { %26324 = vmatprep.mubr.f32.mxu1 %v20554_v63 }
 0xed0   :  { %26325 = vmatmul.mubr.f32.gmra.mrb[6].mxu1 %v20564_v46 }
 0xed1   :  { %26327 = vmatprep.mubr.f32.mxu1 %v20574_v54 }
 0xed4   :  { %26328 = vmatmul.mubr.f32.gmra.mrb[8].mxu1 %v20584_v21 }
 0xed5   :  { %26330 = vmatprep.mubr.f32.mxu1 %v20594_v50 }
 0xed8   :  { %26331 = vmatmul.mubr.f32.gmra.mrb[10].mxu1 %v20604_v19 }
 0xed9   :  { %26333 = vmatprep.mubr.f32.mxu1 %v20614_v29 }
 0xedc   :  { %26334 = vmatmul.mubr.f32.gmra.mrb[12].mxu1 %v20624_v12 }
 0xedd   :  { %26336 = vmatprep.mubr.f32.mxu1 %v20634_v15 }
 0xee0   :  { %26337 = vmatmul.mubr.f32.gmra.mrb[14].mxu1 %v20644_v9 }
 0xee1   :  { %26341 = vmatprep.mubr.f32.mxu1 %v33305_v23 }
 0xee4   :  { %26342 = vmatmul.mubr.f32.vlgmr.msra.gmra.mrb[0].mxu1 %v33311_v40 }
 0xee5   :  { %26366 = vmatpush3.msra.mxu1 %v33266_v32  ;;  %26344 = vmatprep.mubr.f32.mxu1 %v33317_v62 }
 0xee8   :  { %26345 = vmatmul.mubr.f32.gmra.mrb[2].mxu1 %v33322_v0 }
 0xee9   :  { %26347 = vmatprep.mubr.f32.mxu1 %v33327_v61 }
 0xeec   :  { %26348 = vmatmul.mubr.f32.gmra.mrb[4].mxu1 %v33340_v51 }
 0xeed   :  { %26350 = vmatprep.mubr.f32.mxu1 %v33347_v49 }
 0xef0   :  { %26351 = vmatmul.mubr.f32.gmra.mrb[6].mxu1 %v33354_v26 }
 0xef1   :  { %26353 = vmatprep.mubr.f32.mxu1 %v33372_v35 }
 0xef4   :  { %26354 = vmatmul.mubr.f32.gmra.mrb[8].mxu1 %v33388_v22 }
 0xef5   :  { %26356 = vmatprep.mubr.f32.mxu1 %v33393_v17 }
 0xef8   :  { %26357 = vmatmul.mubr.f32.gmra.mrb[10].mxu1 %v33408_v3 }
 0xef9   :  { %26359 = vmatprep.mubr.f32.mxu1 %v33415_v55 }
 0xefc   :  { %26360 = vmatmul.mubr.f32.gmra.mrb[12].mxu1 %v33427_v4 }
 0xefd   :  { %26362 = vmatprep.mubr.f32.mxu1 %v33436_v47 }
 0xf00   :  { %26363 = vmatmul.mubr.f32.gmra.mrb[14].mxu1 %v33438_v37 }
 0xf01   :  { %26367 = vmatprep.mubr.f32.mxu1 %v33305_v23 }
 0xf04   :  { %26368 = vmatmul.mubr.f32.vlgmr.msra.gmra.mrb[0].mxu1 %v33311_v40 }
 0xf05   :  { %26370 = vmatprep.mubr.f32.mxu1 %v33317_v62 }
 0xf08   :  { %26371 = vmatmul.mubr.f32.gmra.mrb[2].mxu1 %v33322_v0 }
 0xf09   :  { %26373 = vmatprep.mubr.f32.mxu1 %v33327_v61 }
 0xf0c   :  { %26374 = vmatmul.mubr.f32.gmra.mrb[4].mxu1 %v33340_v51 }
 0xf0d   :  { %26376 = vmatprep.mubr.f32.mxu1 %v33347_v49 }
 0xf10   :  { %26377 = vmatmul.mubr.f32.gmra.mrb[6].mxu1 %v33354_v26 }
 0xf11   :  { %26379 = vmatprep.mubr.f32.mxu1 %v33372_v35 }
 0xf14   :  { %26380 = vmatmul.mubr.f32.gmra.mrb[8].mxu1 %v33388_v22 }
 0xf15   :  { %26382 = vmatprep.mubr.f32.mxu1 %v33393_v17 }
 0xf18   :  { %26383 = vmatmul.mubr.f32.gmra.mrb[10].mxu1 %v33408_v3 }
 0xf19   :  { %26385 = vmatprep.mubr.f32.mxu1 %v33415_v55 }
 0xf1c   :  { %26386 = vmatmul.mubr.f32.gmra.mrb[12].mxu1 %v33427_v4 }
 0xf1d   :  { %26388 = vmatprep.mubr.f32.mxu1 %v33436_v47 }
 0xf20   :  { %26389 = vmatmul.mubr.f32.gmra.mrb[14].mxu1 %v33438_v37 }
 0xfd7   :  { %v33578_v32 = vpop.f32.mrb[0].mxu1 }
 0xfd8   :  { %v21534_v59 = vsel %vm10777_vm4, %v33578_v32, 0.0  ;;  %v21571_v10 = vmul.f32 %v33578_v32, %v33578_v32  ;;  %v33584_v23 = vpop.f32.mrb[1].mxu1 }
 0xfd9   :  { %v21533_v40 = vsel %vm10777_vm4, %v33584_v23, 0.0  ;;  %v21570_v28 = vmul.f32 %v33584_v23, %v33584_v23 }
 0xfda   :  { %v21587_v62 = vsel %vm10777_vm4, %v21571_v10, 0.0  ;;  %v21535_v0 = vadd.f32 %v21534_v59, %v21533_v40 }
 0xfdb   :  { %v21586_v48 = vsel %vm10777_vm4, %v21570_v28, 0.0  ;;  %v33592_v61 = vpop.f32.mrb[2].mxu1 }
 0xfdc   :  { %v21588_v39 = vadd.f32 %v21587_v62, %v21586_v48  ;;  %v33594_v20 = vpop.f32.mrb[3].mxu1  ;;  %v21573_v16 = vmul.f32 %v33592_v61, %v33592_v61  ;;  %v21538_v49 = vsel %vm10777_vm4, %v33592_v61, 0.0 }
 0xfdd   :  { %v21536_v51 = vsel %vm10777_vm4, %v33594_v20, 0.0  ;;  %v21572_v44 = vmul.f32 %v33594_v20, %v33594_v20 }
 0xfde   :  { %v21537_v41 = vadd.f32 %v21536_v51, %v21535_v0  ;;  %v21591_v56 = vsel %vm10777_vm4, %v21573_v16, 0.0 }
 0xfdf   :  { %v21589_v5 = vsel %vm10777_vm4, %v21572_v44, 0.0  ;;  %v33605_v26 = vpop.f32.mrb[4].mxu1 }
 0xfe0   :  { %v21590_v13 = vadd.f32 %v21589_v5, %v21588_v39  ;;  %v33607_v11 = vpop.f32.mrb[5].mxu1  ;;  %v21539_v30 = vadd.f32 %v21538_v49, %v21537_v41  ;;  %v21575_v35 = vmul.f32 %v33605_v26, %v33605_v26  ;;  %v21542_v52 = vsel %vm10777_vm4, %v33605_v26, 0.0 }
 0xfe1   :  { %v21540_v33 = vsel %vm10777_vm4, %v33607_v11, 0.0  ;;  %v21574_v57 = vmul.f32 %v33607_v11, %v33607_v11 }
 0xfe2   :  { %v21541_v63 = vadd.f32 %v21540_v33, %v21539_v30  ;;  %v21592_v22 = vadd.f32 %v21591_v56, %v21590_v13  ;;  %v21595_v18 = vsel %vm10777_vm4, %v21575_v35, 0.0 }
 0xfe3   :  { %v21593_v17 = vsel %vm10777_vm4, %v21574_v57, 0.0  ;;  %v33619_v46 = vpop.f32.mrb[6].mxu1 }
 0xfe4   :  { %v21594_v43 = vadd.f32 %v21593_v17, %v21592_v22  ;;  %v33621_v3 = vpop.f32.mrb[7].mxu1  ;;  %v21543_v54 = vadd.f32 %v21542_v52, %v21541_v63  ;;  %v21577_v55 = vmul.f32 %v33619_v46, %v33619_v46  ;;  %v21546_v27 = vsel %vm10777_vm4, %v33619_v46, 0.0 }
 0xfe5   :  { %v21544_v21 = vsel %vm10777_vm4, %v33621_v3, 0.0  ;;  %v21576_v7 = vmul.f32 %v33621_v3, %v33621_v3 }
 0xfe6   :  { %v21545_v4 = vadd.f32 %v21544_v21, %v21543_v54  ;;  %v21596_v50 = vadd.f32 %v21595_v18, %v21594_v43  ;;  %v21599_v29 = vsel %vm10777_vm4, %v21577_v55, 0.0 }
 0xfe7   :  { %v21597_v47 = vsel %vm10777_vm4, %v21576_v7, 0.0  ;;  %v33633_v37 = vpop.f32.mrb[8].mxu1 }
 0xfe8   :  { %v21598_v19 = vadd.f32 %v21597_v47, %v21596_v50  ;;  %v33635_v1 = vpop.f32.mrb[9].mxu1  ;;  %v21547_v36 = vadd.f32 %v21546_v27, %v21545_v4  ;;  %v21579_v24 = vmul.f32 %v33633_v37, %v33633_v37  ;;  %v21550_v25 = vsel %vm10777_vm4, %v33633_v37, 0.0 }
 0xfe9   :  { %v21548_v58 = vsel %vm10777_vm4, %v33635_v1, 0.0  ;;  %v21578_v60 = vmul.f32 %v33635_v1, %v33635_v1 }
 0xfea   :  { %v21549_v34 = vadd.f32 %v21548_v58, %v21547_v36  ;;  %v21600_v12 = vadd.f32 %v21599_v29, %v21598_v19  ;;  %v21603_v14 = vsel %vm10777_vm4, %v21579_v24, 0.0 }
 0xfeb   :  { %v21601_v42 = vsel %vm10777_vm4, %v21578_v60, 0.0  ;;  %v33647_v15 = vpop.f32.mrb[10].mxu1 }
 0xfec   :  { %v21602_v9 = vadd.f32 %v21601_v42, %v21600_v12  ;;  %v33649_v38 = vpop.f32.mrb[11].mxu1  ;;  %v21551_v6 = vadd.f32 %v21550_v25, %v21549_v34  ;;  %v21581_v8 = vmul.f32 %v33647_v15, %v33647_v15  ;;  %v21554_v59 = vsel %vm10777_vm4, %v33647_v15, 0.0 }
 0xfed   :  { %v21552_v31 = vsel %vm10777_vm4, %v33649_v38, 0.0  ;;  %v21580_v45 = vmul.f32 %v33649_v38, %v33649_v38 }
 0xfee   :  { %v21553_v53 = vadd.f32 %v21552_v31, %v21551_v6  ;;  %v21604_v2 = vadd.f32 %v21603_v14, %v21602_v9  ;;  %v21607_v48 = vsel %vm10777_vm4, %v21581_v8, 0.0  ;;  %v21628_v31 = vld [vmem:[%s33771_s5] sm:$0x1] }
 0xfef   :  { %v21605_v10 = vsel %vm10777_vm4, %v21580_v45, 0.0  ;;  %v33661_v40 = vpop.f32.mrb[12].mxu1 }
 0xff0   :  { %v21606_v28 = vadd.f32 %v21605_v10, %v21604_v2  ;;  %v33663_v62 = vpop.f32.mrb[13].mxu1  ;;  %v21555_v0 = vadd.f32 %v21554_v59, %v21553_v53  ;;  %v21583_v39 = vmul.f32 %v33661_v40, %v33661_v40  ;;  %v21558_v49 = vsel %vm10777_vm4, %v33661_v40, 0.0  ;;  %v21632_v2 = vld [vmem:[%s33772_s6] sm:$0x1] }
 0xff1   :  { %v21556_v16 = vsel %vm10777_vm4, %v33663_v62, 0.0  ;;  %v21582_v51 = vmul.f32 %v33663_v62, %v33663_v62  ;;  %v34106_v10 = vld [vmem:[#allocation40_spill] sm:$0xff] }
 0xff2   :  { %v21557_v44 = vadd.f32 %v21556_v16, %v21555_v0  ;;  %v21608_v41 = vadd.f32 %v21607_v48, %v21606_v28  ;;  %v21611_v33 = vsel %vm10777_vm4, %v21583_v39, 0.0 }
 0xff3   :  { %v21609_v5 = vsel %vm10777_vm4, %v21582_v51, 0.0  ;;  %v26390_v13 = vpop.f32.mrb[14].mxu1 }
 0xff4   :  { %v21610_v30 = vadd.f32 %v21609_v5, %v21608_v41  ;;  %v21507_v56 = vpop.f32.mrb[15].mxu1  ;;  %v21559_v35 = vadd.f32 %v21558_v49, %v21557_v44  ;;  %v21585_v57 = vmul.f32 %v26390_v13, %v26390_v13  ;;  %v21562_v43 = vsel %vm10777_vm4, %v26390_v13, 0.0 }
 0xff5   :  { %v21560_v63 = vsel %vm10777_vm4, %v21507_v56, 0.0  ;;  %v21584_v22 = vmul.f32 %v21507_v56, %v21507_v56 }
 0xff6   :  { %v21561_v52 = vadd.f32 %v21560_v63, %v21559_v35  ;;  %v21612_v17 = vadd.f32 %v21611_v33, %v21610_v30  ;;  %v21615_v21 = vsel %vm10777_vm4, %v21585_v57, 0.0 }
 0xff7   :  { %v21613_v54 = vsel %vm10777_vm4, %v21584_v22, 0.0 }
 0xff8   :  { %v21563_v18 = vadd.f32 %v21562_v43, %v21561_v52  ;;  %v21614_v55 = vadd.f32 %v21613_v54, %v21612_v17 }
 0xffa   :  { %v21564_v7 = vrot.slane %v21563_v18, 4  ;;  %v21616_v4 = vadd.f32 %v21615_v21, %v21614_v55 }
 0xffc   :  { %v21565_v50 = vadd.f32 %v21564_v7, %v21563_v18  ;;  %v21617_v27 = vrot.slane %v21616_v4, 4 }
 0xffe   :  { %v21566_v47 = vrot.slane %v21565_v50, 2  ;;  %v21618_v19 = vadd.f32 %v21617_v27, %v21616_v4 }
0x1000   :  { %v21567_v36 = vadd.f32 %v21566_v47, %v21565_v50  ;;  %v21619_v29 = vrot.slane %v21618_v19, 2 }
0x1002   :  { %v21568_v24 = vrot.slane %v21567_v36, 1  ;;  %v21620_v58 = vadd.f32 %v21619_v29, %v21618_v19 }
0x1004   :  { %v21569_v60 = vadd.f32 %v21568_v24, %v21567_v36  ;;  %v21621_v34 = vrot.slane %v21620_v58, 1 }
0x1006   :  { %v21622_v12 = vadd.f32 %v21621_v34, %v21620_v58  ;;  %v21623_v25 = vmul.f32 0.0078125, %v21569_v60 }
0x1008   :  { %v21624_v42 = vmul.f32 0.0078125, %v21622_v12  ;;  %v21625_v9 = vmul.f32 %v21623_v25, %v21623_v25 }
0x100a   :  { %v21626_v6 = vsub.f32 %v21624_v42, %v21625_v9 }
0x100c   :  { %v21627_v14 = vmax.f32 %v21626_v6, 0.0 }
0x100e   :  { %v21629_v8 = vadd.f32 1e-05, %v21627_v14 }
0x1010   :  { %28091 = vrsqrt.f32 %v21629_v8 }
0x101a   :  { %v28092_v45 = vpop.eup %28091 }
0x101b   :  { %v21631_v53 = vmul.f32 %v28092_v45, %v21628_v31 }
0x101d   :  { %v21633_v59 = vmul.f32 %v21631_v53, %v21623_v25  ;;  %v21639_v28 = vrot.slane %v21631_v53, %v34106_v10 }
0x101f   :  { %v21634_v0 = vsub.f32 %v21632_v2, %v21633_v59  ;;  %v21641_v48 = vmul.f32 %v21639_v28, %v33584_v23  ;;  %v21642_v39 = vmul.f32 %v33578_v32, %v21639_v28  ;;  %v21643_v16 = vmul.f32 %v21639_v28, %v33594_v20 }
0x1020   :  { %v21644_v51 = vmul.f32 %v33592_v61, %v21639_v28  ;;  %v21645_v44 = vmul.f32 %v21639_v28, %v33607_v11  ;;  %v21646_v41 = vmul.f32 %v33605_v26, %v21639_v28  ;;  %v21647_v49 = vmul.f32 %v21639_v28, %v33621_v3 }
0x1021   :  { %v21648_v5 = vmul.f32 %v33619_v46, %v21639_v28  ;;  %v21649_v30 = vmul.f32 %v21639_v28, %v33635_v1  ;;  %v21650_v35 = vmul.f32 %v33633_v37, %v21639_v28  ;;  %v21651_v23 = vmul.f32 %v21639_v28, %v33649_v38 }
0x1022   :  { %v21652_v32 = vmul.f32 %v33647_v15, %v21639_v28  ;;  %v21653_v20 = vmul.f32 %v21639_v28, %v33663_v62  ;;  %v21654_v61 = vmul.f32 %v33661_v40, %v21639_v28  ;;  %v21655_v33 = vmul.f32 %v21639_v28, %v21507_v56 }
0x1023   :  { %v21656_v11 = vmul.f32 %v26390_v13, %v21639_v28  ;;  %v21661_v26 = vrot.slane %v21634_v0, %v34106_v10 }
0x1025   :  { %v21663_v57 = vadd.f32 %v21661_v26, %v21641_v48  ;;  %v21664_v3 = vadd.f32 %v21661_v26, %v21642_v39  ;;  %v21665_v63 = vadd.f32 %v21661_v26, %v21643_v16  ;;  %v21666_v46 = vadd.f32 %v21661_v26, %v21644_v51 }
0x1026   :  { %v21667_v22 = vadd.f32 %v21661_v26, %v21645_v44  ;;  %v21668_v1 = vadd.f32 %v21661_v26, %v21646_v41  ;;  %v21669_v52 = vadd.f32 %v21661_v26, %v21647_v49  ;;  %v21670_v37 = vadd.f32 %v21661_v26, %v21648_v5 }
0x1027   :  { %v21671_v17 = vadd.f32 %v21661_v26, %v21649_v30  ;;  %v21672_v38 = vadd.f32 %v21661_v26, %v21650_v35  ;;  %v21673_v43 = vadd.f32 %v21661_v26, %v21651_v23  ;;  %v21674_v15 = vadd.f32 %v21661_v26, %v21652_v32 }
0x1028   :  { %v21675_v54 = vadd.f32 %v21661_v26, %v21653_v20  ;;  %v21676_v62 = vadd.f32 %v21661_v26, %v21654_v61  ;;  %v21677_v18 = vadd.f32 %v21661_v26, %v21655_v33  ;;  %v21678_v40 = vadd.f32 %v21661_v26, %v21656_v11 }
0x1029   :  { %v21679_v56 = vmax.f32 %v21663_v57, 0.0  ;;  %v21680_v13 = vmax.f32 %v21664_v3, 0.0  ;;  %v21681_v55 = vmax.f32 %v21665_v63, 0.0  ;;  %v21682_v21 = vmax.f32 %v21666_v46, 0.0 }
0x102a   :  { %v21683_v7 = vmax.f32 %v21667_v22, 0.0  ;;  %v21684_v4 = vmax.f32 %v21668_v1, 0.0  ;;  %v21685_v50 = vmax.f32 %v21669_v52, 0.0  ;;  %v21686_v27 = vmax.f32 %v21670_v37, 0.0 }
0x102b   :  { %v21687_v47 = vmax.f32 %v21671_v17, 0.0  ;;  %v21688_v19 = vmax.f32 %v21672_v38, 0.0  ;;  %v21689_v36 = vmax.f32 %v21673_v43, 0.0  ;;  %v21690_v29 = vmax.f32 %v21674_v15, 0.0  ;;  %21695 = vst.msk [vmem:[%s33773_s7] sm:$0xff] %vm10777_vm4, %v21679_v56  ;;  %21696 = vst.msk [vmem:[%s33773_s7 + $0x8] sm:$0xff] %vm10777_vm4, %v21680_v13 }
0x102c   :  { %21697 = vst.msk [vmem:[%s33773_s7 + $0x10] sm:$0xff] %vm10777_vm4, %v21681_v55  ;;  %21698 = vst.msk [vmem:[%s33773_s7 + $0x18] sm:$0xff] %vm10777_vm4, %v21682_v21  ;;  %v21691_v24 = vmax.f32 %v21675_v54, 0.0  ;;  %v21692_v58 = vmax.f32 %v21676_v62, 0.0  ;;  %v21693_v60 = vmax.f32 %v21677_v18, 0.0  ;;  %v21694_v34 = vmax.f32 %v21678_v40, 0.0 }
0x102d   :  { %21699 = vst.msk [vmem:[%s33773_s7 + $0x20] sm:$0xff] %vm10777_vm4, %v21683_v7  ;;  %21700 = vst.msk [vmem:[%s33773_s7 + $0x28] sm:$0xff] %vm10777_vm4, %v21684_v4 }
0x102e   :  { %21701 = vst.msk [vmem:[%s33773_s7 + $0x30] sm:$0xff] %vm10777_vm4, %v21685_v50  ;;  %21702 = vst.msk [vmem:[%s33773_s7 + $0x38] sm:$0xff] %vm10777_vm4, %v21686_v27 }
0x102f   :  { %21703 = vst.msk [vmem:[%s33773_s7 + $0x40] sm:$0xff] %vm10777_vm4, %v21687_v47  ;;  %21704 = vst.msk [vmem:[%s33773_s7 + $0x48] sm:$0xff] %vm10777_vm4, %v21688_v19 }
0x1030   :  { %21705 = vst.msk [vmem:[%s33773_s7 + $0x50] sm:$0xff] %vm10777_vm4, %v21689_v36  ;;  %21706 = vst.msk [vmem:[%s33773_s7 + $0x58] sm:$0xff] %vm10777_vm4, %v21690_v29 }
0x1031   :  { %21707 = vst.msk [vmem:[%s33773_s7 + $0x60] sm:$0xff] %vm10777_vm4, %v21691_v24  ;;  %21708 = vst.msk [vmem:[%s33773_s7 + $0x68] sm:$0xff] %vm10777_vm4, %v21692_v58 }
0x1032   :  { %21709 = vst.msk [vmem:[%s33773_s7 + $0x70] sm:$0xff] %vm10777_vm4, %v21693_v60  ;;  %21710 = vst.msk [vmem:[%s33773_s7 + $0x78] sm:$0xff] %vm10777_vm4, %v21694_v34 }

</bundles_post_ra>
